<compile_context>
chip_gen: v6e
topology: v6e:2x2x1
jax: 0.10.0
libtpu: 0.0.40
codegen_flags: <defaults>
</compile_context>

<pallas_src>
import math

import numpy as np

import jax
import jax.numpy as jnp
from jax.experimental import pallas as pl
from jax.experimental.pallas import tpu as pltpu

# ---- small, shape-consistent hyper-params (PyTorch defaults are 100/64/1/32/10) ----
NZ = 16           # nz
NGF = 8           # ngf
NC = 1            # nc
IMG = 16          # img_size
NCLS = 10         # n_cls
INIT = IMG // 4   # init_size (4)
D = NGF * INIT * INIT   # output width of each linear head (128)
EPS = 1e-5
BATCH = 8         # larger batch per call (perf review: biggest throughput lever)

C0 = 2 * NGF      # 16 channels after the linear heads
KPAD = 32         # [z | y] concat (26) zero-padded to 32 lanes for the merged head matmul

HIGH = jax.lax.Precision.HIGHEST


# ------------------------------ in-kernel helpers ---------------------------------
def _bn_act(x2, w, c, gamma, beta, slope):
    """Training-mode BatchNorm2d (+ optional LeakyReLU) on a (rows, w*c) slab.

    rows = batch*H, lanes are (w, c)-interleaved (c fastest); stats are per channel c
    over N, H, W with biased variance, exactly like nn.BatchNorm2d in training mode.
    """
    rows = x2.shape[0]
    wc = w * c
    n = float(rows * w)
    # per-channel reducer (wc, c) and lane expander (c, wc), both built from iotas
    sel = (jax.lax.broadcasted_iota(jnp.int32, (wc, c), 0) % c
           == jax.lax.broadcasted_iota(jnp.int32, (wc, c), 1)).astype(jnp.float32)
    expand = (jax.lax.broadcasted_iota(jnp.int32, (c, wc), 1) % c
              == jax.lax.broadcasted_iota(jnp.int32, (c, wc), 0)).astype(jnp.float32)
    # fused stats: ONE selector matmul over the row-stacked [x ; x*x] slab (HIGHEST prec)
    stacked = jnp.concatenate([x2, x2 * x2], axis=0)                     # (2*rows, wc)
    ps = jnp.dot(stacked, sel, preferred_element_type=jnp.float32,
                 precision=HIGH)                                         # (2*rows, c)
    s1 = jnp.sum(ps[:rows], axis=0, keepdims=True)                       # (1, c)
    s2 = jnp.sum(ps[rows:], axis=0, keepdims=True)                       # (1, c)
    mean = s1 * (1.0 / n)
    var = jnp.maximum(s2 * (1.0 / n) - mean * mean, 0.0)
    scale_c = gamma * jax.lax.rsqrt(var + EPS)                           # (1, c)
    shift_c = beta - mean * scale_c                                      # (1, c)
    # lane expansion (1, c) -> (1, w*c) rides the under-used MXU instead of 2*w concats
    scale = jnp.dot(scale_c, expand, preferred_element_type=jnp.float32, precision=HIGH)
    shift = jnp.dot(shift_c, expand, preferred_element_type=jnp.float32, precision=HIGH)
    out = x2 * scale + shift
    if slope is not None:
        out = jnp.where(out >= 0.0, out, slope * out)
    return out


def _upsample_rows_and_pad(x3):
    """(B, H, L) -> (B, 2H + 2, L): nearest 2x along H plus one zero row each side."""
    b, h, l = x3.shape
    up = jnp.broadcast_to(x3[:, :, None, :], (b, h, 2, l)).reshape(b, 2 * h, l)
    zrow = jnp.zeros((b, 1, l), x3.dtype)
    return jnp.concatenate([zrow, up, zrow], axis=1)


def _pad_rows(x3):
    """(B, H, L) -> (B, H + 2, L): one zero row each side."""
    b, _, l = x3.shape
    zrow = jnp.zeros((b, 1, l), x3.dtype)
    return jnp.concatenate([zrow, x3, zrow], axis=1)


def _conv_rows(xpad3, m_ref, cbias, h_out, precision=None):
    """3x3 conv as ONE matmul.

    kx taps, W zero-pad and (optional) 2x W-upsample are folded into the packed
    (3*L_in, L_out) banded weights; the 3 ky-shifted row slabs are lane-concatenated.

    xpad3: (B, h_out + 2, L_in) H-padded (and H-upsampled) rows.
    m_ref: (3*L_in, L_out) banded weight matrix (ky-major rows).
    """
    b, _, lin = xpad3.shape
    lhs = jnp.concatenate([xpad3[:, ky:ky + h_out, :] for ky in range(3)], axis=-1)
    lhs = lhs.reshape(b * h_out, 3 * lin)
    return jnp.dot(lhs, m_ref[...], preferred_element_type=jnp.float32,
                   precision=precision) + cbias


# ------------------------------ fused Pallas kernel --------------------------------
def cgen_fused_kernel(zy_ref, wh_ref, bl_ref,
                      g0_ref, be0_ref,
                      m1_ref, cb1_ref, g1_ref, be1_ref,
                      m2_ref, cb2_ref, g2_ref, be2_ref,
                      m3_ref, cb3_ref,
                      o_ref):
    b = zy_ref.shape[0]
    h0 = w0 = INIT                   # 4 x 4 initial spatial size
    l0 = w0 * C0                     # 64 lanes, (w, c)-interleaved
    zy = zy_ref[...]                 # (B, 32) = [z | y | zero-pad]

    # ---- merged l1/l2 linear heads; columns pre-permuted to NHWC (w, c) lane order ----
    rows = []
    for h in range(h0):
        xh = (jnp.dot(zy, wh_ref[h], preferred_element_type=jnp.float32)
              + bl_ref[h])                                    # (B, 64)
        rows.append(xh.reshape(b, 1, l0))
    x3 = jnp.concatenate(rows, axis=1)                        # (B, 4, 64)

    # ---- conv_blocks0: BatchNorm2d(2*ngf) ----
    x2 = _bn_act(x3.reshape(b * h0, l0), w0, C0, g0_ref[...], be0_ref[...], None)

    # ---- upsample 2x + Conv(2*ngf -> 2*ngf) + BN + LeakyReLU(0.2) ----
    h1, w1, c1 = 2 * h0, 2 * w0, C0                           # 8, 8, 16
    xp = _upsample_rows_and_pad(x2.reshape(b, h0, l0))        # (B, 10, 64)
    x2 = _conv_rows(xp, m1_ref, cb1_ref[...], h1)             # (B*8, 128)
    x2 = _bn_act(x2, w1, c1, g1_ref[...], be1_ref[...], 0.2)

    # ---- upsample 2x + Conv(2*ngf -> ngf) + BN + LeakyReLU(0.2) ----
    h2, w2, c2 = 2 * h1, 2 * w1, NGF                          # 16, 16, 8
    xp = _upsample_rows_and_pad(x2.reshape(b, h1, w1 * c1))   # (B, 18, 128)
    x2 = _conv_rows(xp, m2_ref, cb2_ref[...], h2)             # (B*16, 128)
    x2 = _bn_act(x2, w2, c2, g2_ref[...], be2_ref[...], 0.2)

    # ---- Conv(ngf -> nc) + tanh + BatchNorm2d(nc, affine=False) ----
    xp = _pad_rows(x2.reshape(b, h2, w2 * c2))                # (B, 18, 128)
    x2 = _conv_rows(xp, m3_ref, cb3_ref[...], h2, precision=HIGH)   # (B*16, 16)
    x2 = jnp.tanh(x2)
    n = float(x2.shape[0] * x2.shape[1])                      # nc == 1 -> global stats
    s1 = jnp.sum(jnp.sum(x2, axis=1, keepdims=True), axis=0, keepdims=True)
    s2 = jnp.sum(jnp.sum(x2 * x2, axis=1, keepdims=True), axis=0, keepdims=True)
    mean = s1 * (1.0 / n)
    var = jnp.maximum(s2 * (1.0 / n) - mean * mean, 0.0)
    out = (x2 - mean) * jax.lax.rsqrt(var + EPS)              # (B*16, 16)

    o_ref[...] = out.reshape(b, IMG, IMG)


# ------------------------------ wrapper / pallas_call -------------------------------
def _full_spec(a):
    nd = a.ndim
    return pl.BlockSpec(a.shape, lambda *_: (0,) * nd)


def generator_forward(z, y, kp):
    b = z.shape[0]
    pad = jnp.zeros((b, KPAD - NZ - NCLS), jnp.float32)
    zy = jnp.concatenate([z, y, pad], axis=1)                 # (B, 32): one XLA concat
    args = (zy, kp["wh"], kp["bl"],
            kp["bn0_g"], kp["bn0_b"],
            kp["m1"], kp["cb1"], kp["bn1_g"], kp["bn1_b"],
            kp["m2"], kp["cb2"], kp["bn2_g"], kp["bn2_b"],
            kp["m3"], kp["cb3"])
    # grid=(1,): BatchNorm couples the whole batch, so no per-core batch split
    # (a v7x dual-TC split would need a cross-core BN reduction to stay correct).
    out = pl.pallas_call(
        cgen_fused_kernel,
        out_shape=jax.ShapeDtypeStruct((b, IMG, IMG), jnp.float32),
        grid=(1,),
        in_specs=[_full_spec(a) for a in args],
        out_specs=pl.BlockSpec((b, IMG, IMG), lambda *_: (0, 0, 0)),
        compiler_params=pltpu.CompilerParams(dimension_semantics=("arbitrary",)),
    )(*args)
    return out[:, None, :, :]    # -> NCHW (B, nc, img, img); nc == 1 so no transpose needed


# ------------------------------ trace-time weight packing ---------------------------
def pack_params(p):
    """Pre-permute / pre-fold the PyTorch-style weights for the fused kernel (host, once)."""
    f32 = np.float32
    w1 = np.asarray(p["w1"], f32)        # (NZ, D)
    b1 = np.asarray(p["b1"], f32)        # (D,)
    w2 = np.asarray(p["w2"], f32)        # (NCLS, D)
    b2 = np.asarray(p["b2"], f32)        # (D,)
    h0 = w0 = INIT

    # block-diagonal merge of the two linear heads (concat along the output axis),
    # input rows padded NZ+NCLS=26 -> KPAD=32 to match the zy concat in the wrapper.
    wfull = np.zeros((KPAD, 2 * D), f32)
    wfull[:NZ, :D] = w1
    wfull[NZ:NZ + NCLS, D:] = w2
    bfull = np.concatenate([b1, b2])

    # permute output columns NCHW -> per-h NHWC-(w, c) lane order; single merged weight
    wh = np.zeros((h0, KPAD, w0 * C0), f32)
    bl = np.zeros((h0, 1, w0 * C0), f32)
    for h in range(h0):
        cols = np.array([c * (h0 * w0) + h * w0 + w
                         for w in range(w0) for c in range(C0)])
        wh[h] = wfull[:, cols]
        bl[h, 0] = bfull[cols]

    def band(w_hwio, w_in, upsample):
        """(3*W_in*Cin, W_out*Cout) banded matrix (ky-major rows): kx taps + W zero-pad
        (+ 2x nearest W-upsample) folded in, so each conv is a single MXU matmul."""
        w_hwio = np.asarray(w_hwio, f32)           # (3, 3, Cin, Cout)
        _, _, cin, cout = w_hwio.shape
        w_out = w_in * 2 if upsample else w_in
        m = np.zeros((3, w_in * cin, w_out * cout), f32)
        for ky in range(3):
            for wo in range(w_out):
                for kx in range(3):
                    wi_up = wo + kx - 1
                    if not (0 <= wi_up < w_out):
                        continue
                    wi = wi_up // 2 if upsample else wi_up
                    m[ky, wi * cin:(wi + 1) * cin,
                          wo * cout:(wo + 1) * cout] += w_hwio[ky, kx]
        return m.reshape(3 * w_in * cin, w_out * cout)

    def lane_bias(bias, w_out):
        bias = np.asarray(bias, f32)
        return np.tile(bias, w_out).reshape(1, -1)   # lane j = w*Cout + c -> bias[c]

    packed = {
        "wh": wh, "bl": bl,
        "bn0_g": np.asarray(p["bn0_g"], f32).reshape(1, -1),
        "bn0_b": np.asarray(p["bn0_b"], f32).reshape(1, -1),
        "m1": band(p["c1_w"], w0, True),             # (192, 128)
        "cb1": lane_bias(p["c1_b"], 2 * w0),         # (1, 128)
        "bn1_g": np.asarray(p["bn1_g"], f32).reshape(1, -1),
        "bn1_b": np.asarray(p["bn1_b"], f32).reshape(1, -1),
        "m2": band(p["c2_w"], 2 * w0, True),         # (384, 128)
        "cb2": lane_bias(p["c2_b"], 4 * w0),         # (1, 128)
        "bn2_g": np.asarray(p["bn2_g"], f32).reshape(1, -1),
        "bn2_b": np.asarray(p["bn2_b"], f32).reshape(1, -1),
        "m3": band(p["c3_w"], 4 * w0, False),        # (384, 16)
        "cb3": lane_bias(p["c3_b"], 4 * w0),         # (1, 16)
    }
    return {k: jnp.asarray(v) for k, v in packed.items()}


# ------------------------------ pure-JAX reference ----------------------------------
def upsample2x(x):  # nearest neighbour, scale_factor=2
    return jnp.repeat(jnp.repeat(x, 2, axis=1), 2, axis=2)


def ref_conv3x3(x, w, b):
    y = jax.lax.conv_general_dilated(
        x, w, window_strides=(1, 1), padding="SAME",
        dimension_numbers=("NHWC", "HWIO", "NHWC"),
        precision=jax.lax.Precision.HIGHEST)
    return y + b.reshape(1, 1, 1, -1)


def ref_bn(x, gamma, beta, negative_slope=None):
    mean = jnp.mean(x, axis=(0, 1, 2), keepdims=True)
    var = jnp.mean(jnp.square(x - mean), axis=(0, 1, 2), keepdims=True)
    out = (x - mean) * jax.lax.rsqrt(var + EPS) * gamma.reshape(1, 1, 1, -1) \
        + beta.reshape(1, 1, 1, -1)
    if negative_slope is not None:
        out = jnp.where(out >= 0.0, out, negative_slope * out)
    return out


def ref_forward(z, y, p):
    b = z.shape[0]
    o1 = jnp.dot(z, p["w1"], precision=jax.lax.Precision.HIGHEST) + p["b1"]
    o2 = jnp.dot(y, p["w2"], precision=jax.lax.Precision.HIGHEST) + p["b2"]
    out = jnp.concatenate([o1, o2], axis=1)
    x = out.reshape(b, 2 * NGF, INIT, INIT).transpose(0, 2, 3, 1)
    x = ref_bn(x, p["bn0_g"], p["bn0_b"])
    x = upsample2x(x)
    x = ref_conv3x3(x, p["c1_w"], p["c1_b"])
    x = ref_bn(x, p["bn1_g"], p["bn1_b"], 0.2)
    x = upsample2x(x)
    x = ref_conv3x3(x, p["c2_w"], p["c2_b"])
    x = ref_bn(x, p["bn2_g"], p["bn2_b"], 0.2)
    x = jnp.tanh(ref_conv3x3(x, p["c3_w"], p["c3_b"]))
    x = ref_bn(x, jnp.ones((NC,)), jnp.zeros((NC,)))
    return x.transpose(0, 3, 1, 2)


# ------------------------------ deterministic params --------------------------------
def init_params(key):
    ks = jax.random.split(key, 16)

    def w(k, shape, fan_in):
        return jax.random.normal(k, shape, jnp.float32) * (1.0 / math.sqrt(fan_in))

    return {
        "w1": w(ks[0], (NZ, D), NZ),
        "b1": 0.01 * jax.random.normal(ks[1], (D,), jnp.float32),
        "w2": w(ks[2], (NCLS, D), NCLS),
        "b2": 0.01 * jax.random.normal(ks[3], (D,), jnp.float32),
        "bn0_g": 1.0 + 0.1 * jax.random.normal(ks[4], (2 * NGF,), jnp.float32),
        "bn0_b": 0.1 * jax.random.normal(ks[5], (2 * NGF,), jnp.float32),
        "c1_w": w(ks[6], (3, 3, 2 * NGF, 2 * NGF), 9 * 2 * NGF),
        "c1_b": 0.01 * jax.random.normal(ks[7], (2 * NGF,), jnp.float32),
        "bn1_g": 1.0 + 0.1 * jax.random.normal(ks[8], (2 * NGF,), jnp.float32),
        "bn1_b": 0.1 * jax.random.normal(ks[9], (2 * NGF,), jnp.float32),
        "c2_w": w(ks[10], (3, 3, 2 * NGF, NGF), 9 * 2 * NGF),
        "c2_b": 0.01 * jax.random.normal(ks[11], (NGF,), jnp.float32),
        "bn2_g": 1.0 + 0.1 * jax.random.normal(ks[12], (NGF,), jnp.float32),
        "bn2_b": 0.1 * jax.random.normal(ks[13], (NGF,), jnp.float32),
        "c3_w": w(ks[14], (3, 3, NGF, NC), 9 * NGF),
        "c3_b": 0.01 * jax.random.normal(ks[15], (NC,), jnp.float32),
    }


if __name__ == "__main__":
    key = jax.random.PRNGKey(0)
    kz, kyy, kp = jax.random.split(key, 3)
    z = jax.random.normal(kz, (BATCH, NZ), jnp.float32)
    y = jax.nn.one_hot(jax.random.randint(kyy, (BATCH,), 0, NCLS), NCLS, dtype=jnp.float32)
    params = init_params(kp)
    packed = pack_params(params)

    fwd = jax.jit(generator_forward)
    img = jax.block_until_ready(fwd(z, y, packed))

    ref = ref_forward(z, y, params)
    assert img.shape == (BATCH, NC, IMG, IMG), img.shape
    # heads / conv1 / conv2 use the default single-pass bf16 MXU path; BN stats and the
    # final conv use HIGHEST -> error comfortably under the loose tolerance
    err = float(jnp.max(jnp.abs(img - ref)))
    assert err < 5e-2, f"max abs err {err}"

    print("KERNEL_OK")
</pallas_src>

<mosaic_0001>
module attributes {stable_mosaic.version = 11 : i64} {
  func.func @cgen_fused_kernel(%arg0: i32, %arg1: memref<8x32xf32, #tpu.memory_space<vmem>>, %arg2: memref<4x32x64xf32, #tpu.memory_space<vmem>>, %arg3: memref<4x1x64xf32, #tpu.memory_space<vmem>>, %arg4: memref<1x16xf32, #tpu.memory_space<vmem>>, %arg5: memref<1x16xf32, #tpu.memory_space<vmem>>, %arg6: memref<192x128xf32, #tpu.memory_space<vmem>>, %arg7: memref<1x128xf32, #tpu.memory_space<vmem>>, %arg8: memref<1x16xf32, #tpu.memory_space<vmem>>, %arg9: memref<1x16xf32, #tpu.memory_space<vmem>>, %arg10: memref<384x128xf32, #tpu.memory_space<vmem>>, %arg11: memref<1x128xf32, #tpu.memory_space<vmem>>, %arg12: memref<1x8xf32, #tpu.memory_space<vmem>>, %arg13: memref<1x8xf32, #tpu.memory_space<vmem>>, %arg14: memref<384x16xf32, #tpu.memory_space<vmem>>, %arg15: memref<1x16xf32, #tpu.memory_space<vmem>>, %arg16: memref<8x16x16xf32, #tpu.memory_space<vmem>>) attributes {dimension_semantics = [#tpu.dimension_semantics<arbitrary>], iteration_bounds = array<i64: 1>, scalar_prefetch = 0 : i64, scratch_operands = 0 : i64, tpu.core_type = #tpu.core_type<tc>, window_params = [{pipeline_mode = #tpu.pipeline_mode<synchronous>, transform_indices = @transform_0, window_bounds = array<i64: 8, 32>}, {pipeline_mode = #tpu.pipeline_mode<synchronous>, transform_indices = @transform_1, window_bounds = array<i64: 4, 32, 64>}, {pipeline_mode = #tpu.pipeline_mode<synchronous>, transform_indices = @transform_2, window_bounds = array<i64: 4, 1, 64>}, {pipeline_mode = #tpu.pipeline_mode<synchronous>, transform_indices = @transform_3, window_bounds = array<i64: 1, 16>}, {pipeline_mode = #tpu.pipeline_mode<synchronous>, transform_indices = @transform_4, window_bounds = array<i64: 1, 16>}, {pipeline_mode = #tpu.pipeline_mode<synchronous>, transform_indices = @transform_5, window_bounds = array<i64: 192, 128>}, {pipeline_mode = #tpu.pipeline_mode<synchronous>, transform_indices = @transform_6, window_bounds = array<i64: 1, 128>}, {pipeline_mode = #tpu.pipeline_mode<synchronous>, transform_indices = @transform_7, window_bounds = array<i64: 1, 16>}, {pipeline_mode = #tpu.pipeline_mode<synchronous>, transform_indices = @transform_8, window_bounds = array<i64: 1, 16>}, {pipeline_mode = #tpu.pipeline_mode<synchronous>, transform_indices = @transform_9, window_bounds = array<i64: 384, 128>}, {pipeline_mode = #tpu.pipeline_mode<synchronous>, transform_indices = @transform_10, window_bounds = array<i64: 1, 128>}, {pipeline_mode = #tpu.pipeline_mode<synchronous>, transform_indices = @transform_11, window_bounds = array<i64: 1, 8>}, {pipeline_mode = #tpu.pipeline_mode<synchronous>, transform_indices = @transform_12, window_bounds = array<i64: 1, 8>}, {pipeline_mode = #tpu.pipeline_mode<synchronous>, transform_indices = @transform_13, window_bounds = array<i64: 384, 16>}, {pipeline_mode = #tpu.pipeline_mode<synchronous>, transform_indices = @transform_14, window_bounds = array<i64: 1, 16>}, {pipeline_mode = #tpu.pipeline_mode<synchronous>, transform_indices = @transform_15, window_bounds = array<i64: 8, 16, 16>}]} {
    %c0 = arith.constant 0 : index
    %c0_0 = arith.constant 0 : index
    %0 = vector.load %arg1[%c0, %c0_0] : memref<8x32xf32, #tpu.memory_space<vmem>>, vector<8x32xf32>
    %c0_1 = arith.constant 0 : index
    %c0_2 = arith.constant 0 : index
    %c0_3 = arith.constant 0 : index
    %1 = vector.load %arg2[%c0_1, %c0_2, %c0_3] : memref<4x32x64xf32, #tpu.memory_space<vmem>>, vector<1x32x64xf32>
    %2 = vector.shape_cast %1 : vector<1x32x64xf32> to vector<32x64xf32>
    %cst = arith.constant dense<0.000000e+00> : vector<8x64xf32>
    %3 = tpu.matmul %0, %2, %cst {dimension_numbers = #tpu.dot_dimension_numbers<[1], [0], [0], [1], [0, 0, 1, 1], [], []>} : vector<8x32xf32>, vector<32x64xf32>, vector<8x64xf32> -> vector<8x64xf32>
    %c0_4 = arith.constant 0 : index
    %c0_5 = arith.constant 0 : index
    %c0_6 = arith.constant 0 : index
    %4 = vector.load %arg3[%c0_4, %c0_5, %c0_6] : memref<4x1x64xf32, #tpu.memory_space<vmem>>, vector<1x1x64xf32>
    %5 = vector.shape_cast %4 : vector<1x1x64xf32> to vector<1x64xf32>
    %6 = vector.broadcast %5 : vector<1x64xf32> to vector<8x64xf32>
    %7 = arith.addf %3, %6 : vector<8x64xf32>
    %8 = vector.shape_cast %7 : vector<8x64xf32> to vector<8x1x64xf32>
    %c1 = arith.constant 1 : index
    %c0_7 = arith.constant 0 : index
    %c0_8 = arith.constant 0 : index
    %9 = vector.load %arg2[%c1, %c0_7, %c0_8] : memref<4x32x64xf32, #tpu.memory_space<vmem>>, vector<1x32x64xf32>
    %10 = vector.shape_cast %9 : vector<1x32x64xf32> to vector<32x64xf32>
    %cst_9 = arith.constant dense<0.000000e+00> : vector<8x64xf32>
    %11 = tpu.matmul %0, %10, %cst_9 {dimension_numbers = #tpu.dot_dimension_numbers<[1], [0], [0], [1], [0, 0, 1, 1], [], []>} : vector<8x32xf32>, vector<32x64xf32>, vector<8x64xf32> -> vector<8x64xf32>
    %c1_10 = arith.constant 1 : index
    %c0_11 = arith.constant 0 : index
    %c0_12 = arith.constant 0 : index
    %12 = vector.load %arg3[%c1_10, %c0_11, %c0_12] : memref<4x1x64xf32, #tpu.memory_space<vmem>>, vector<1x1x64xf32>
    %13 = vector.shape_cast %12 : vector<1x1x64xf32> to vector<1x64xf32>
    %14 = vector.broadcast %13 : vector<1x64xf32> to vector<8x64xf32>
    %15 = arith.addf %11, %14 : vector<8x64xf32>
    %16 = vector.shape_cast %15 : vector<8x64xf32> to vector<8x1x64xf32>
    %c2 = arith.constant 2 : index
    %c0_13 = arith.constant 0 : index
    %c0_14 = arith.constant 0 : index
    %17 = vector.load %arg2[%c2, %c0_13, %c0_14] : memref<4x32x64xf32, #tpu.memory_space<vmem>>, vector<1x32x64xf32>
    %18 = vector.shape_cast %17 : vector<1x32x64xf32> to vector<32x64xf32>
    %cst_15 = arith.constant dense<0.000000e+00> : vector<8x64xf32>
    %19 = tpu.matmul %0, %18, %cst_15 {dimension_numbers = #tpu.dot_dimension_numbers<[1], [0], [0], [1], [0, 0, 1, 1], [], []>} : vector<8x32xf32>, vector<32x64xf32>, vector<8x64xf32> -> vector<8x64xf32>
    %c2_16 = arith.constant 2 : index
    %c0_17 = arith.constant 0 : index
    %c0_18 = arith.constant 0 : index
    %20 = vector.load %arg3[%c2_16, %c0_17, %c0_18] : memref<4x1x64xf32, #tpu.memory_space<vmem>>, vector<1x1x64xf32>
    %21 = vector.shape_cast %20 : vector<1x1x64xf32> to vector<1x64xf32>
    %22 = vector.broadcast %21 : vector<1x64xf32> to vector<8x64xf32>
    %23 = arith.addf %19, %22 : vector<8x64xf32>
    %24 = vector.shape_cast %23 : vector<8x64xf32> to vector<8x1x64xf32>
    %c3 = arith.constant 3 : index
    %c0_19 = arith.constant 0 : index
    %c0_20 = arith.constant 0 : index
    %25 = vector.load %arg2[%c3, %c0_19, %c0_20] : memref<4x32x64xf32, #tpu.memory_space<vmem>>, vector<1x32x64xf32>
    %26 = vector.shape_cast %25 : vector<1x32x64xf32> to vector<32x64xf32>
    %cst_21 = arith.constant dense<0.000000e+00> : vector<8x64xf32>
    %27 = tpu.matmul %0, %26, %cst_21 {dimension_numbers = #tpu.dot_dimension_numbers<[1], [0], [0], [1], [0, 0, 1, 1], [], []>} : vector<8x32xf32>, vector<32x64xf32>, vector<8x64xf32> -> vector<8x64xf32>
    %c3_22 = arith.constant 3 : index
    %c0_23 = arith.constant 0 : index
    %c0_24 = arith.constant 0 : index
    %28 = vector.load %arg3[%c3_22, %c0_23, %c0_24] : memref<4x1x64xf32, #tpu.memory_space<vmem>>, vector<1x1x64xf32>
    %29 = vector.shape_cast %28 : vector<1x1x64xf32> to vector<1x64xf32>
    %30 = vector.broadcast %29 : vector<1x64xf32> to vector<8x64xf32>
    %31 = arith.addf %27, %30 : vector<8x64xf32>
    %32 = vector.shape_cast %31 : vector<8x64xf32> to vector<8x1x64xf32>
    %33 = tpu.concatenate %8, %16, %24, %32 in 1 : vector<8x1x64xf32>, vector<8x1x64xf32>, vector<8x1x64xf32>, vector<8x1x64xf32> -> vector<8x4x64xf32>
    %34 = vector.shape_cast %33 : vector<8x4x64xf32> to vector<32x64xf32>
    %c0_25 = arith.constant 0 : index
    %c0_26 = arith.constant 0 : index
    %35 = vector.load %arg4[%c0_25, %c0_26] : memref<1x16xf32, #tpu.memory_space<vmem>>, vector<1x16xf32>
    %c0_27 = arith.constant 0 : index
    %c0_28 = arith.constant 0 : index
    %36 = vector.load %arg5[%c0_27, %c0_28] : memref<1x16xf32, #tpu.memory_space<vmem>>, vector<1x16xf32>
    %37 = tpu.iota {dimensions = array<i32: 0>} : vector<64x16xi32>
    %c16_i32 = arith.constant 16 : i32
    %c0_i32 = arith.constant 0 : i32
    %38 = arith.cmpi eq, %c16_i32, %c0_i32 : i32
    %c1_i32 = arith.constant 1 : i32
    %39 = arith.select %38, %c1_i32, %c16_i32 : i32
    %40 = vector.broadcast %39 : i32 to vector<64x16xi32>
    %41 = arith.remsi %37, %40 : vector<64x16xi32>
    %c0_i32_29 = arith.constant 0 : i32
    %42 = vector.broadcast %c0_i32_29 : i32 to vector<64x16xi32>
    %43 = arith.cmpi ne, %41, %42 : vector<64x16xi32>
    %c0_i32_30 = arith.constant 0 : i32
    %44 = vector.broadcast %c0_i32_30 : i32 to vector<64x16xi32>
    %45 = arith.cmpi slt, %41, %44 : vector<64x16xi32>
    %c0_i32_31 = arith.constant 0 : i32
    %46 = arith.cmpi slt, %39, %c0_i32_31 : i32
    %47 = vector.broadcast %46 : i1 to vector<64x16xi1>
    %48 = vector.broadcast %47 : vector<64x16xi1> to vector<64x16xi1>
    %49 = arith.xori %45, %48 : vector<64x16xi1>
    %50 = arith.andi %49, %43 : vector<64x16xi1>
    %51 = vector.broadcast %39 : i32 to vector<64x16xi32>
    %52 = arith.addi %41, %51 : vector<64x16xi32>
    %53 = arith.select %50, %52, %41 : vector<64x16xi1>, vector<64x16xi32>
    %54 = tpu.iota {dimensions = array<i32: 1>} : vector<64x16xi32>
    %55 = arith.cmpi eq, %53, %54 : vector<64x16xi32>
    %56 = arith.extui %55 : vector<64x16xi1> to vector<64x16xi32>
    %57 = arith.sitofp %56 : vector<64x16xi32> to vector<64x16xf32>
    %58 = tpu.iota {dimensions = array<i32: 1>} : vector<16x64xi32>
    %c16_i32_32 = arith.constant 16 : i32
    %c0_i32_33 = arith.constant 0 : i32
    %59 = arith.cmpi eq, %c16_i32_32, %c0_i32_33 : i32
    %c1_i32_34 = arith.constant 1 : i32
    %60 = arith.select %59, %c1_i32_34, %c16_i32_32 : i32
    %61 = vector.broadcast %60 : i32 to vector<16x64xi32>
    %62 = arith.remsi %58, %61 : vector<16x64xi32>
    %c0_i32_35 = arith.constant 0 : i32
    %63 = vector.broadcast %c0_i32_35 : i32 to vector<16x64xi32>
    %64 = arith.cmpi ne, %62, %63 : vector<16x64xi32>
    %c0_i32_36 = arith.constant 0 : i32
    %65 = vector.broadcast %c0_i32_36 : i32 to vector<16x64xi32>
    %66 = arith.cmpi slt, %62, %65 : vector<16x64xi32>
    %c0_i32_37 = arith.constant 0 : i32
    %67 = arith.cmpi slt, %60, %c0_i32_37 : i32
    %68 = vector.broadcast %67 : i1 to vector<16x64xi1>
    %69 = vector.broadcast %68 : vector<16x64xi1> to vector<16x64xi1>
    %70 = arith.xori %66, %69 : vector<16x64xi1>
    %71 = arith.andi %70, %64 : vector<16x64xi1>
    %72 = vector.broadcast %60 : i32 to vector<16x64xi32>
    %73 = arith.addi %62, %72 : vector<16x64xi32>
    %74 = arith.select %71, %73, %62 : vector<16x64xi1>, vector<16x64xi32>
    %75 = tpu.iota {dimensions = array<i32: 0>} : vector<16x64xi32>
    %76 = arith.cmpi eq, %74, %75 : vector<16x64xi32>
    %77 = arith.extui %76 : vector<16x64xi1> to vector<16x64xi32>
    %78 = arith.sitofp %77 : vector<16x64xi32> to vector<16x64xf32>
    %79 = arith.mulf %34, %34 : vector<32x64xf32>
    %80 = tpu.concatenate %34, %79 in 0 : vector<32x64xf32>, vector<32x64xf32> -> vector<64x64xf32>
    %cst_38 = arith.constant dense<0.000000e+00> : vector<64x16xf32>
    %81 = tpu.matmul %80, %57, %cst_38 {dimension_numbers = #tpu.dot_dimension_numbers<[1], [0], [0], [1], [0, 0, 1, 1], [], []>, precision = #tpu.contract_precision<fp32>} : vector<64x64xf32>, vector<64x16xf32>, vector<64x16xf32> -> vector<64x16xf32>
    %82 = vector.extract_strided_slice %81 {offsets = [0, 0], sizes = [32, 16], strides = [1, 1]} : vector<64x16xf32> to vector<32x16xf32>
    %cst_39 = arith.constant dense<0.000000e+00> : vector<16xf32>
    %83 = vector.multi_reduction <add>, %82, %cst_39 [0] : vector<32x16xf32> to vector<16xf32>
    %84 = vector.shape_cast %83 : vector<16xf32> to vector<1x16xf32>
    %85 = vector.extract_strided_slice %81 {offsets = [32, 0], sizes = [32, 16], strides = [1, 1]} : vector<64x16xf32> to vector<32x16xf32>
    %cst_40 = arith.constant dense<0.000000e+00> : vector<16xf32>
    %86 = vector.multi_reduction <add>, %85, %cst_40 [0] : vector<32x16xf32> to vector<16xf32>
    %87 = vector.shape_cast %86 : vector<16xf32> to vector<1x16xf32>
    %cst_41 = arith.constant 7.812500e-03 : f32
    %88 = vector.broadcast %cst_41 : f32 to vector<1x16xf32>
    %89 = arith.mulf %84, %88 : vector<1x16xf32>
    %cst_42 = arith.constant 7.812500e-03 : f32
    %90 = vector.broadcast %cst_42 : f32 to vector<1x16xf32>
    %91 = arith.mulf %87, %90 : vector<1x16xf32>
    %92 = arith.mulf %89, %89 : vector<1x16xf32>
    %93 = arith.subf %91, %92 : vector<1x16xf32>
    %cst_43 = arith.constant 0.000000e+00 : f32
    %94 = vector.broadcast %cst_43 : f32 to vector<1x16xf32>
    %95 = arith.maximumf %93, %94 : vector<1x16xf32>
    %cst_44 = arith.constant 9.99999974E-6 : f32
    %96 = vector.broadcast %cst_44 : f32 to vector<1x16xf32>
    %97 = arith.addf %95, %96 : vector<1x16xf32>
    %98 = math.rsqrt %97 : vector<1x16xf32>
    %99 = arith.mulf %35, %98 : vector<1x16xf32>
    %100 = arith.mulf %89, %99 : vector<1x16xf32>
    %101 = arith.subf %36, %100 : vector<1x16xf32>
    %cst_45 = arith.constant dense<0.000000e+00> : vector<1x64xf32>
    %102 = tpu.matmul %99, %78, %cst_45 {dimension_numbers = #tpu.dot_dimension_numbers<[1], [0], [0], [1], [0, 0, 1, 1], [], []>, precision = #tpu.contract_precision<fp32>} : vector<1x16xf32>, vector<16x64xf32>, vector<1x64xf32> -> vector<1x64xf32>
    %cst_46 = arith.constant dense<0.000000e+00> : vector<1x64xf32>
    %103 = tpu.matmul %101, %78, %cst_46 {dimension_numbers = #tpu.dot_dimension_numbers<[1], [0], [0], [1], [0, 0, 1, 1], [], []>, precision = #tpu.contract_precision<fp32>} : vector<1x16xf32>, vector<16x64xf32>, vector<1x64xf32> -> vector<1x64xf32>
    %104 = vector.broadcast %102 : vector<1x64xf32> to vector<32x64xf32>
    %105 = arith.mulf %34, %104 : vector<32x64xf32>
    %106 = vector.broadcast %103 : vector<1x64xf32> to vector<32x64xf32>
    %107 = arith.addf %105, %106 : vector<32x64xf32>
    %108 = vector.shape_cast %107 : vector<32x64xf32> to vector<8x4x64xf32>
    %109 = vector.shape_cast %108 : vector<8x4x64xf32> to vector<8x4x1x64xf32>
    %110 = vector.shape_cast %109 : vector<8x4x1x64xf32> to vector<8x4x1x64xf32>
    %111 = vector.broadcast %110 : vector<8x4x1x64xf32> to vector<8x4x2x64xf32>
    %112 = vector.shape_cast %111 : vector<8x4x2x64xf32> to vector<8x8x64xf32>
    %cst_47 = arith.constant 0.000000e+00 : f32
    %113 = vector.broadcast %cst_47 : f32 to vector<8x1x64xf32>
    %114 = tpu.concatenate %113, %112, %113 in 1 : vector<8x1x64xf32>, vector<8x8x64xf32>, vector<8x1x64xf32> -> vector<8x10x64xf32>
    %c0_48 = arith.constant 0 : index
    %c0_49 = arith.constant 0 : index
    %115 = vector.load %arg7[%c0_48, %c0_49] : memref<1x128xf32, #tpu.memory_space<vmem>>, vector<1x128xf32>
    %116 = vector.extract_strided_slice %114 {offsets = [0, 0, 0], sizes = [8, 8, 64], strides = [1, 1, 1]} : vector<8x10x64xf32> to vector<8x8x64xf32>
    %117 = vector.extract_strided_slice %114 {offsets = [0, 1, 0], sizes = [8, 8, 64], strides = [1, 1, 1]} : vector<8x10x64xf32> to vector<8x8x64xf32>
    %118 = vector.extract_strided_slice %114 {offsets = [0, 2, 0], sizes = [8, 8, 64], strides = [1, 1, 1]} : vector<8x10x64xf32> to vector<8x8x64xf32>
    %119 = tpu.concatenate %116, %117, %118 in 2 : vector<8x8x64xf32>, vector<8x8x64xf32>, vector<8x8x64xf32> -> vector<8x8x192xf32>
    %120 = vector.shape_cast %119 : vector<8x8x192xf32> to vector<64x192xf32>
    %c0_50 = arith.constant 0 : index
    %c0_51 = arith.constant 0 : index
    %121 = vector.load %arg6[%c0_50, %c0_51] : memref<192x128xf32, #tpu.memory_space<vmem>>, vector<192x128xf32>
    %cst_52 = arith.constant dense<0.000000e+00> : vector<64x128xf32>
    %122 = tpu.matmul %120, %121, %cst_52 {dimension_numbers = #tpu.dot_dimension_numbers<[1], [0], [0], [1], [0, 0, 1, 1], [], []>} : vector<64x192xf32>, vector<192x128xf32>, vector<64x128xf32> -> vector<64x128xf32>
    %123 = vector.broadcast %115 : vector<1x128xf32> to vector<64x128xf32>
    %124 = arith.addf %122, %123 : vector<64x128xf32>
    %c0_53 = arith.constant 0 : index
    %c0_54 = arith.constant 0 : index
    %125 = vector.load %arg8[%c0_53, %c0_54] : memref<1x16xf32, #tpu.memory_space<vmem>>, vector<1x16xf32>
    %c0_55 = arith.constant 0 : index
    %c0_56 = arith.constant 0 : index
    %126 = vector.load %arg9[%c0_55, %c0_56] : memref<1x16xf32, #tpu.memory_space<vmem>>, vector<1x16xf32>
    %127 = tpu.iota {dimensions = array<i32: 0>} : vector<128x16xi32>
    %c16_i32_57 = arith.constant 16 : i32
    %c0_i32_58 = arith.constant 0 : i32
    %128 = arith.cmpi eq, %c16_i32_57, %c0_i32_58 : i32
    %c1_i32_59 = arith.constant 1 : i32
    %129 = arith.select %128, %c1_i32_59, %c16_i32_57 : i32
    %130 = vector.broadcast %129 : i32 to vector<128x16xi32>
    %131 = arith.remsi %127, %130 : vector<128x16xi32>
    %c0_i32_60 = arith.constant 0 : i32
    %132 = vector.broadcast %c0_i32_60 : i32 to vector<128x16xi32>
    %133 = arith.cmpi ne, %131, %132 : vector<128x16xi32>
    %c0_i32_61 = arith.constant 0 : i32
    %134 = vector.broadcast %c0_i32_61 : i32 to vector<128x16xi32>
    %135 = arith.cmpi slt, %131, %134 : vector<128x16xi32>
    %c0_i32_62 = arith.constant 0 : i32
    %136 = arith.cmpi slt, %129, %c0_i32_62 : i32
    %137 = vector.broadcast %136 : i1 to vector<128x16xi1>
    %138 = vector.broadcast %137 : vector<128x16xi1> to vector<128x16xi1>
    %139 = arith.xori %135, %138 : vector<128x16xi1>
    %140 = arith.andi %139, %133 : vector<128x16xi1>
    %141 = vector.broadcast %129 : i32 to vector<128x16xi32>
    %142 = arith.addi %131, %141 : vector<128x16xi32>
    %143 = arith.select %140, %142, %131 : vector<128x16xi1>, vector<128x16xi32>
    %144 = tpu.iota {dimensions = array<i32: 1>} : vector<128x16xi32>
    %145 = arith.cmpi eq, %143, %144 : vector<128x16xi32>
    %146 = arith.extui %145 : vector<128x16xi1> to vector<128x16xi32>
    %147 = arith.sitofp %146 : vector<128x16xi32> to vector<128x16xf32>
    %148 = tpu.iota {dimensions = array<i32: 1>} : vector<16x128xi32>
    %c16_i32_63 = arith.constant 16 : i32
    %c0_i32_64 = arith.constant 0 : i32
    %149 = arith.cmpi eq, %c16_i32_63, %c0_i32_64 : i32
    %c1_i32_65 = arith.constant 1 : i32
    %150 = arith.select %149, %c1_i32_65, %c16_i32_63 : i32
    %151 = vector.broadcast %150 : i32 to vector<16x128xi32>
    %152 = arith.remsi %148, %151 : vector<16x128xi32>
    %c0_i32_66 = arith.constant 0 : i32
    %153 = vector.broadcast %c0_i32_66 : i32 to vector<16x128xi32>
    %154 = arith.cmpi ne, %152, %153 : vector<16x128xi32>
    %c0_i32_67 = arith.constant 0 : i32
    %155 = vector.broadcast %c0_i32_67 : i32 to vector<16x128xi32>
    %156 = arith.cmpi slt, %152, %155 : vector<16x128xi32>
    %c0_i32_68 = arith.constant 0 : i32
    %157 = arith.cmpi slt, %150, %c0_i32_68 : i32
    %158 = vector.broadcast %157 : i1 to vector<16x128xi1>
    %159 = vector.broadcast %158 : vector<16x128xi1> to vector<16x128xi1>
    %160 = arith.xori %156, %159 : vector<16x128xi1>
    %161 = arith.andi %160, %154 : vector<16x128xi1>
    %162 = vector.broadcast %150 : i32 to vector<16x128xi32>
    %163 = arith.addi %152, %162 : vector<16x128xi32>
    %164 = arith.select %161, %163, %152 : vector<16x128xi1>, vector<16x128xi32>
    %165 = tpu.iota {dimensions = array<i32: 0>} : vector<16x128xi32>
    %166 = arith.cmpi eq, %164, %165 : vector<16x128xi32>
    %167 = arith.extui %166 : vector<16x128xi1> to vector<16x128xi32>
    %168 = arith.sitofp %167 : vector<16x128xi32> to vector<16x128xf32>
    %169 = arith.mulf %124, %124 : vector<64x128xf32>
    %170 = tpu.concatenate %124, %169 in 0 : vector<64x128xf32>, vector<64x128xf32> -> vector<128x128xf32>
    %cst_69 = arith.constant dense<0.000000e+00> : vector<128x16xf32>
    %171 = tpu.matmul %170, %147, %cst_69 {dimension_numbers = #tpu.dot_dimension_numbers<[1], [0], [0], [1], [0, 0, 1, 1], [], []>, precision = #tpu.contract_precision<fp32>} : vector<128x128xf32>, vector<128x16xf32>, vector<128x16xf32> -> vector<128x16xf32>
    %172 = vector.extract_strided_slice %171 {offsets = [0, 0], sizes = [64, 16], strides = [1, 1]} : vector<128x16xf32> to vector<64x16xf32>
    %cst_70 = arith.constant dense<0.000000e+00> : vector<16xf32>
    %173 = vector.multi_reduction <add>, %172, %cst_70 [0] : vector<64x16xf32> to vector<16xf32>
    %174 = vector.shape_cast %173 : vector<16xf32> to vector<1x16xf32>
    %175 = vector.extract_strided_slice %171 {offsets = [64, 0], sizes = [64, 16], strides = [1, 1]} : vector<128x16xf32> to vector<64x16xf32>
    %cst_71 = arith.constant dense<0.000000e+00> : vector<16xf32>
    %176 = vector.multi_reduction <add>, %175, %cst_71 [0] : vector<64x16xf32> to vector<16xf32>
    %177 = vector.shape_cast %176 : vector<16xf32> to vector<1x16xf32>
    %cst_72 = arith.constant 0.001953125 : f32
    %178 = vector.broadcast %cst_72 : f32 to vector<1x16xf32>
    %179 = arith.mulf %174, %178 : vector<1x16xf32>
    %cst_73 = arith.constant 0.001953125 : f32
    %180 = vector.broadcast %cst_73 : f32 to vector<1x16xf32>
    %181 = arith.mulf %177, %180 : vector<1x16xf32>
    %182 = arith.mulf %179, %179 : vector<1x16xf32>
    %183 = arith.subf %181, %182 : vector<1x16xf32>
    %cst_74 = arith.constant 0.000000e+00 : f32
    %184 = vector.broadcast %cst_74 : f32 to vector<1x16xf32>
    %185 = arith.maximumf %183, %184 : vector<1x16xf32>
    %cst_75 = arith.constant 9.99999974E-6 : f32
    %186 = vector.broadcast %cst_75 : f32 to vector<1x16xf32>
    %187 = arith.addf %185, %186 : vector<1x16xf32>
    %188 = math.rsqrt %187 : vector<1x16xf32>
    %189 = arith.mulf %125, %188 : vector<1x16xf32>
    %190 = arith.mulf %179, %189 : vector<1x16xf32>
    %191 = arith.subf %126, %190 : vector<1x16xf32>
    %cst_76 = arith.constant dense<0.000000e+00> : vector<1x128xf32>
    %192 = tpu.matmul %189, %168, %cst_76 {dimension_numbers = #tpu.dot_dimension_numbers<[1], [0], [0], [1], [0, 0, 1, 1], [], []>, precision = #tpu.contract_precision<fp32>} : vector<1x16xf32>, vector<16x128xf32>, vector<1x128xf32> -> vector<1x128xf32>
    %cst_77 = arith.constant dense<0.000000e+00> : vector<1x128xf32>
    %193 = tpu.matmul %191, %168, %cst_77 {dimension_numbers = #tpu.dot_dimension_numbers<[1], [0], [0], [1], [0, 0, 1, 1], [], []>, precision = #tpu.contract_precision<fp32>} : vector<1x16xf32>, vector<16x128xf32>, vector<1x128xf32> -> vector<1x128xf32>
    %194 = vector.broadcast %192 : vector<1x128xf32> to vector<64x128xf32>
    %195 = arith.mulf %124, %194 : vector<64x128xf32>
    %196 = vector.broadcast %193 : vector<1x128xf32> to vector<64x128xf32>
    %197 = arith.addf %195, %196 : vector<64x128xf32>
    %cst_78 = arith.constant 0.000000e+00 : f32
    %198 = vector.broadcast %cst_78 : f32 to vector<64x128xf32>
    %199 = arith.cmpf oge, %197, %198 : vector<64x128xf32>
    %cst_79 = arith.constant 2.000000e-01 : f32
    %200 = vector.broadcast %cst_79 : f32 to vector<64x128xf32>
    %201 = arith.mulf %200, %197 : vector<64x128xf32>
    %202 = arith.select %199, %197, %201 : vector<64x128xi1>, vector<64x128xf32>
    %203 = vector.shape_cast %202 : vector<64x128xf32> to vector<8x8x128xf32>
    %204 = vector.shape_cast %203 : vector<8x8x128xf32> to vector<8x8x1x128xf32>
    %205 = vector.shape_cast %204 : vector<8x8x1x128xf32> to vector<8x8x1x128xf32>
    %206 = vector.broadcast %205 : vector<8x8x1x128xf32> to vector<8x8x2x128xf32>
    %207 = vector.shape_cast %206 : vector<8x8x2x128xf32> to vector<8x16x128xf32>
    %cst_80 = arith.constant 0.000000e+00 : f32
    %208 = vector.broadcast %cst_80 : f32 to vector<8x1x128xf32>
    %209 = tpu.concatenate %208, %207, %208 in 1 : vector<8x1x128xf32>, vector<8x16x128xf32>, vector<8x1x128xf32> -> vector<8x18x128xf32>
    %c0_81 = arith.constant 0 : index
    %c0_82 = arith.constant 0 : index
    %210 = vector.load %arg11[%c0_81, %c0_82] : memref<1x128xf32, #tpu.memory_space<vmem>>, vector<1x128xf32>
    %211 = vector.extract_strided_slice %209 {offsets = [0, 0, 0], sizes = [8, 16, 128], strides = [1, 1, 1]} : vector<8x18x128xf32> to vector<8x16x128xf32>
    %212 = vector.extract_strided_slice %209 {offsets = [0, 1, 0], sizes = [8, 16, 128], strides = [1, 1, 1]} : vector<8x18x128xf32> to vector<8x16x128xf32>
    %213 = vector.extract_strided_slice %209 {offsets = [0, 2, 0], sizes = [8, 16, 128], strides = [1, 1, 1]} : vector<8x18x128xf32> to vector<8x16x128xf32>
    %214 = tpu.concatenate %211, %212, %213 in 2 : vector<8x16x128xf32>, vector<8x16x128xf32>, vector<8x16x128xf32> -> vector<8x16x384xf32>
    %215 = vector.shape_cast %214 : vector<8x16x384xf32> to vector<128x384xf32>
    %c0_83 = arith.constant 0 : index
    %c0_84 = arith.constant 0 : index
    %216 = vector.load %arg10[%c0_83, %c0_84] : memref<384x128xf32, #tpu.memory_space<vmem>>, vector<384x128xf32>
    %cst_85 = arith.constant dense<0.000000e+00> : vector<128x128xf32>
    %217 = tpu.matmul %215, %216, %cst_85 {dimension_numbers = #tpu.dot_dimension_numbers<[1], [0], [0], [1], [0, 0, 1, 1], [], []>} : vector<128x384xf32>, vector<384x128xf32>, vector<128x128xf32> -> vector<128x128xf32>
    %218 = vector.broadcast %210 : vector<1x128xf32> to vector<128x128xf32>
    %219 = arith.addf %217, %218 : vector<128x128xf32>
    %c0_86 = arith.constant 0 : index
    %c0_87 = arith.constant 0 : index
    %220 = vector.load %arg12[%c0_86, %c0_87] : memref<1x8xf32, #tpu.memory_space<vmem>>, vector<1x8xf32>
    %c0_88 = arith.constant 0 : index
    %c0_89 = arith.constant 0 : index
    %221 = vector.load %arg13[%c0_88, %c0_89] : memref<1x8xf32, #tpu.memory_space<vmem>>, vector<1x8xf32>
    %222 = tpu.iota {dimensions = array<i32: 0>} : vector<128x8xi32>
    %c8_i32 = arith.constant 8 : i32
    %c0_i32_90 = arith.constant 0 : i32
    %223 = arith.cmpi eq, %c8_i32, %c0_i32_90 : i32
    %c1_i32_91 = arith.constant 1 : i32
    %224 = arith.select %223, %c1_i32_91, %c8_i32 : i32
    %225 = vector.broadcast %224 : i32 to vector<128x8xi32>
    %226 = arith.remsi %222, %225 : vector<128x8xi32>
    %c0_i32_92 = arith.constant 0 : i32
    %227 = vector.broadcast %c0_i32_92 : i32 to vector<128x8xi32>
    %228 = arith.cmpi ne, %226, %227 : vector<128x8xi32>
    %c0_i32_93 = arith.constant 0 : i32
    %229 = vector.broadcast %c0_i32_93 : i32 to vector<128x8xi32>
    %230 = arith.cmpi slt, %226, %229 : vector<128x8xi32>
    %c0_i32_94 = arith.constant 0 : i32
    %231 = arith.cmpi slt, %224, %c0_i32_94 : i32
    %232 = vector.broadcast %231 : i1 to vector<128x8xi1>
    %233 = vector.broadcast %232 : vector<128x8xi1> to vector<128x8xi1>
    %234 = arith.xori %230, %233 : vector<128x8xi1>
    %235 = arith.andi %234, %228 : vector<128x8xi1>
    %236 = vector.broadcast %224 : i32 to vector<128x8xi32>
    %237 = arith.addi %226, %236 : vector<128x8xi32>
    %238 = arith.select %235, %237, %226 : vector<128x8xi1>, vector<128x8xi32>
    %239 = tpu.iota {dimensions = array<i32: 1>} : vector<128x8xi32>
    %240 = arith.cmpi eq, %238, %239 : vector<128x8xi32>
    %241 = arith.extui %240 : vector<128x8xi1> to vector<128x8xi32>
    %242 = arith.sitofp %241 : vector<128x8xi32> to vector<128x8xf32>
    %243 = tpu.iota {dimensions = array<i32: 1>} : vector<8x128xi32>
    %c8_i32_95 = arith.constant 8 : i32
    %c0_i32_96 = arith.constant 0 : i32
    %244 = arith.cmpi eq, %c8_i32_95, %c0_i32_96 : i32
    %c1_i32_97 = arith.constant 1 : i32
    %245 = arith.select %244, %c1_i32_97, %c8_i32_95 : i32
    %246 = vector.broadcast %245 : i32 to vector<8x128xi32>
    %247 = arith.remsi %243, %246 : vector<8x128xi32>
    %c0_i32_98 = arith.constant 0 : i32
    %248 = vector.broadcast %c0_i32_98 : i32 to vector<8x128xi32>
    %249 = arith.cmpi ne, %247, %248 : vector<8x128xi32>
    %c0_i32_99 = arith.constant 0 : i32
    %250 = vector.broadcast %c0_i32_99 : i32 to vector<8x128xi32>
    %251 = arith.cmpi slt, %247, %250 : vector<8x128xi32>
    %c0_i32_100 = arith.constant 0 : i32
    %252 = arith.cmpi slt, %245, %c0_i32_100 : i32
    %253 = vector.broadcast %252 : i1 to vector<8x128xi1>
    %254 = vector.broadcast %253 : vector<8x128xi1> to vector<8x128xi1>
    %255 = arith.xori %251, %254 : vector<8x128xi1>
    %256 = arith.andi %255, %249 : vector<8x128xi1>
    %257 = vector.broadcast %245 : i32 to vector<8x128xi32>
    %258 = arith.addi %247, %257 : vector<8x128xi32>
    %259 = arith.select %256, %258, %247 : vector<8x128xi1>, vector<8x128xi32>
    %260 = tpu.iota {dimensions = array<i32: 0>} : vector<8x128xi32>
    %261 = arith.cmpi eq, %259, %260 : vector<8x128xi32>
    %262 = arith.extui %261 : vector<8x128xi1> to vector<8x128xi32>
    %263 = arith.sitofp %262 : vector<8x128xi32> to vector<8x128xf32>
    %264 = arith.mulf %219, %219 : vector<128x128xf32>
    %265 = tpu.concatenate %219, %264 in 0 : vector<128x128xf32>, vector<128x128xf32> -> vector<256x128xf32>
    %cst_101 = arith.constant dense<0.000000e+00> : vector<256x8xf32>
    %266 = tpu.matmul %265, %242, %cst_101 {dimension_numbers = #tpu.dot_dimension_numbers<[1], [0], [0], [1], [0, 0, 1, 1], [], []>, precision = #tpu.contract_precision<fp32>} : vector<256x128xf32>, vector<128x8xf32>, vector<256x8xf32> -> vector<256x8xf32>
    %267 = vector.extract_strided_slice %266 {offsets = [0, 0], sizes = [128, 8], strides = [1, 1]} : vector<256x8xf32> to vector<128x8xf32>
    %cst_102 = arith.constant dense<0.000000e+00> : vector<8xf32>
    %268 = vector.multi_reduction <add>, %267, %cst_102 [0] : vector<128x8xf32> to vector<8xf32>
    %269 = vector.shape_cast %268 : vector<8xf32> to vector<1x8xf32>
    %270 = vector.extract_strided_slice %266 {offsets = [128, 0], sizes = [128, 8], strides = [1, 1]} : vector<256x8xf32> to vector<128x8xf32>
    %cst_103 = arith.constant dense<0.000000e+00> : vector<8xf32>
    %271 = vector.multi_reduction <add>, %270, %cst_103 [0] : vector<128x8xf32> to vector<8xf32>
    %272 = vector.shape_cast %271 : vector<8xf32> to vector<1x8xf32>
    %cst_104 = arith.constant 4.8828125E-4 : f32
    %273 = vector.broadcast %cst_104 : f32 to vector<1x8xf32>
    %274 = arith.mulf %269, %273 : vector<1x8xf32>
    %cst_105 = arith.constant 4.8828125E-4 : f32
    %275 = vector.broadcast %cst_105 : f32 to vector<1x8xf32>
    %276 = arith.mulf %272, %275 : vector<1x8xf32>
    %277 = arith.mulf %274, %274 : vector<1x8xf32>
    %278 = arith.subf %276, %277 : vector<1x8xf32>
    %cst_106 = arith.constant 0.000000e+00 : f32
    %279 = vector.broadcast %cst_106 : f32 to vector<1x8xf32>
    %280 = arith.maximumf %278, %279 : vector<1x8xf32>
    %cst_107 = arith.constant 9.99999974E-6 : f32
    %281 = vector.broadcast %cst_107 : f32 to vector<1x8xf32>
    %282 = arith.addf %280, %281 : vector<1x8xf32>
    %283 = math.rsqrt %282 : vector<1x8xf32>
    %284 = arith.mulf %220, %283 : vector<1x8xf32>
    %285 = arith.mulf %274, %284 : vector<1x8xf32>
    %286 = arith.subf %221, %285 : vector<1x8xf32>
    %cst_108 = arith.constant dense<0.000000e+00> : vector<1x128xf32>
    %287 = tpu.matmul %284, %263, %cst_108 {dimension_numbers = #tpu.dot_dimension_numbers<[1], [0], [0], [1], [0, 0, 1, 1], [], []>, precision = #tpu.contract_precision<fp32>} : vector<1x8xf32>, vector<8x128xf32>, vector<1x128xf32> -> vector<1x128xf32>
    %cst_109 = arith.constant dense<0.000000e+00> : vector<1x128xf32>
    %288 = tpu.matmul %286, %263, %cst_109 {dimension_numbers = #tpu.dot_dimension_numbers<[1], [0], [0], [1], [0, 0, 1, 1], [], []>, precision = #tpu.contract_precision<fp32>} : vector<1x8xf32>, vector<8x128xf32>, vector<1x128xf32> -> vector<1x128xf32>
    %289 = vector.broadcast %287 : vector<1x128xf32> to vector<128x128xf32>
    %290 = arith.mulf %219, %289 : vector<128x128xf32>
    %291 = vector.broadcast %288 : vector<1x128xf32> to vector<128x128xf32>
    %292 = arith.addf %290, %291 : vector<128x128xf32>
    %cst_110 = arith.constant 0.000000e+00 : f32
    %293 = vector.broadcast %cst_110 : f32 to vector<128x128xf32>
    %294 = arith.cmpf oge, %292, %293 : vector<128x128xf32>
    %cst_111 = arith.constant 2.000000e-01 : f32
    %295 = vector.broadcast %cst_111 : f32 to vector<128x128xf32>
    %296 = arith.mulf %295, %292 : vector<128x128xf32>
    %297 = arith.select %294, %292, %296 : vector<128x128xi1>, vector<128x128xf32>
    %298 = vector.shape_cast %297 : vector<128x128xf32> to vector<8x16x128xf32>
    %cst_112 = arith.constant 0.000000e+00 : f32
    %299 = vector.broadcast %cst_112 : f32 to vector<8x1x128xf32>
    %300 = tpu.concatenate %299, %298, %299 in 1 : vector<8x1x128xf32>, vector<8x16x128xf32>, vector<8x1x128xf32> -> vector<8x18x128xf32>
    %c0_113 = arith.constant 0 : index
    %c0_114 = arith.constant 0 : index
    %301 = vector.load %arg15[%c0_113, %c0_114] : memref<1x16xf32, #tpu.memory_space<vmem>>, vector<1x16xf32>
    %302 = vector.extract_strided_slice %300 {offsets = [0, 0, 0], sizes = [8, 16, 128], strides = [1, 1, 1]} : vector<8x18x128xf32> to vector<8x16x128xf32>
    %303 = vector.extract_strided_slice %300 {offsets = [0, 1, 0], sizes = [8, 16, 128], strides = [1, 1, 1]} : vector<8x18x128xf32> to vector<8x16x128xf32>
    %304 = vector.extract_strided_slice %300 {offsets = [0, 2, 0], sizes = [8, 16, 128], strides = [1, 1, 1]} : vector<8x18x128xf32> to vector<8x16x128xf32>
    %305 = tpu.concatenate %302, %303, %304 in 2 : vector<8x16x128xf32>, vector<8x16x128xf32>, vector<8x16x128xf32> -> vector<8x16x384xf32>
    %306 = vector.shape_cast %305 : vector<8x16x384xf32> to vector<128x384xf32>
    %c0_115 = arith.constant 0 : index
    %c0_116 = arith.constant 0 : index
    %307 = vector.load %arg14[%c0_115, %c0_116] : memref<384x16xf32, #tpu.memory_space<vmem>>, vector<384x16xf32>
    %cst_117 = arith.constant dense<0.000000e+00> : vector<128x16xf32>
    %308 = tpu.matmul %306, %307, %cst_117 {dimension_numbers = #tpu.dot_dimension_numbers<[1], [0], [0], [1], [0, 0, 1, 1], [], []>, precision = #tpu.contract_precision<fp32>} : vector<128x384xf32>, vector<384x16xf32>, vector<128x16xf32> -> vector<128x16xf32>
    %309 = vector.broadcast %301 : vector<1x16xf32> to vector<128x16xf32>
    %310 = arith.addf %308, %309 : vector<128x16xf32>
    %311 = math.tanh %310 : vector<128x16xf32>
    %cst_118 = arith.constant dense<0.000000e+00> : vector<128xf32>
    %312 = vector.multi_reduction <add>, %311, %cst_118 [1] : vector<128x16xf32> to vector<128xf32>
    %313 = vector.shape_cast %312 : vector<128xf32> to vector<128x1xf32>
    %cst_119 = arith.constant dense<0.000000e+00> : vector<1xf32>
    %314 = vector.multi_reduction <add>, %313, %cst_119 [0] : vector<128x1xf32> to vector<1xf32>
    %315 = vector.shape_cast %314 : vector<1xf32> to vector<1x1xf32>
    %316 = arith.mulf %311, %311 : vector<128x16xf32>
    %cst_120 = arith.constant dense<0.000000e+00> : vector<128xf32>
    %317 = vector.multi_reduction <add>, %316, %cst_120 [1] : vector<128x16xf32> to vector<128xf32>
    %318 = vector.shape_cast %317 : vector<128xf32> to vector<128x1xf32>
    %cst_121 = arith.constant dense<0.000000e+00> : vector<1xf32>
    %319 = vector.multi_reduction <add>, %318, %cst_121 [0] : vector<128x1xf32> to vector<1xf32>
    %320 = vector.shape_cast %319 : vector<1xf32> to vector<1x1xf32>
    %cst_122 = arith.constant 4.8828125E-4 : f32
    %321 = vector.broadcast %cst_122 : f32 to vector<1x1xf32>
    %322 = arith.mulf %315, %321 : vector<1x1xf32>
    %cst_123 = arith.constant 4.8828125E-4 : f32
    %323 = vector.broadcast %cst_123 : f32 to vector<1x1xf32>
    %324 = arith.mulf %320, %323 : vector<1x1xf32>
    %325 = arith.mulf %322, %322 : vector<1x1xf32>
    %326 = arith.subf %324, %325 : vector<1x1xf32>
    %cst_124 = arith.constant 0.000000e+00 : f32
    %327 = vector.broadcast %cst_124 : f32 to vector<1x1xf32>
    %328 = arith.maximumf %326, %327 : vector<1x1xf32>
    %329 = vector.broadcast %322 : vector<1x1xf32> to vector<128x16xf32>
    %330 = arith.subf %311, %329 : vector<128x16xf32>
    %cst_125 = arith.constant 9.99999974E-6 : f32
    %331 = vector.broadcast %cst_125 : f32 to vector<1x1xf32>
    %332 = arith.addf %328, %331 : vector<1x1xf32>
    %333 = math.rsqrt %332 : vector<1x1xf32>
    %334 = vector.broadcast %333 : vector<1x1xf32> to vector<128x16xf32>
    %335 = arith.mulf %330, %334 : vector<128x16xf32>
    %336 = vector.shape_cast %335 : vector<128x16xf32> to vector<8x16x16xf32>
    %c0_126 = arith.constant 0 : index
    %c0_127 = arith.constant 0 : index
    %c0_128 = arith.constant 0 : index
    %337 = vector.load %arg16[%c0_126, %c0_127, %c0_128] : memref<8x16x16xf32, #tpu.memory_space<vmem>>, vector<8x16x16xf32>
    tpu.vector_store %arg16[%c0_126, %c0_127, %c0_128], %336 {strides = array<i32>} : memref<8x16x16xf32, #tpu.memory_space<vmem>>, vector<8x16x16xf32>,
    return
  }
  func.func @transform_0(%arg0: i32) -> (i32, i32) {
    %c0_i32 = arith.constant 0 : i32
    %c0_i32_0 = arith.constant 0 : i32
    %c0_i32_1 = arith.constant 0 : i32
    return %c0_i32, %c0_i32_0 : i32, i32
  }
  func.func @transform_1(%arg0: i32) -> (i32, i32, i32) {
    %c0_i32 = arith.constant 0 : i32
    %c0_i32_0 = arith.constant 0 : i32
    %c0_i32_1 = arith.constant 0 : i32
    %c0_i32_2 = arith.constant 0 : i32
    return %c0_i32, %c0_i32_0, %c0_i32_1 : i32, i32, i32
  }
  func.func @transform_2(%arg0: i32) -> (i32, i32, i32) {
    %c0_i32 = arith.constant 0 : i32
    %c0_i32_0 = arith.constant 0 : i32
    %c0_i32_1 = arith.constant 0 : i32
    %c0_i32_2 = arith.constant 0 : i32
    return %c0_i32, %c0_i32_0, %c0_i32_1 : i32, i32, i32
  }
  func.func @transform_3(%arg0: i32) -> (i32, i32) {
    %c0_i32 = arith.constant 0 : i32
    %c0_i32_0 = arith.constant 0 : i32
    %c0_i32_1 = arith.constant 0 : i32
    return %c0_i32, %c0_i32_0 : i32, i32
  }
  func.func @transform_4(%arg0: i32) -> (i32, i32) {
    %c0_i32 = arith.constant 0 : i32
    %c0_i32_0 = arith.constant 0 : i32
    %c0_i32_1 = arith.constant 0 : i32
    return %c0_i32, %c0_i32_0 : i32, i32
  }
  func.func @transform_5(%arg0: i32) -> (i32, i32) {
    %c0_i32 = arith.constant 0 : i32
    %c0_i32_0 = arith.constant 0 : i32
    %c0_i32_1 = arith.constant 0 : i32
    return %c0_i32, %c0_i32_0 : i32, i32
  }
  func.func @transform_6(%arg0: i32) -> (i32, i32) {
    %c0_i32 = arith.constant 0 : i32
    %c0_i32_0 = arith.constant 0 : i32
    %c0_i32_1 = arith.constant 0 : i32
    return %c0_i32, %c0_i32_0 : i32, i32
  }
  func.func @transform_7(%arg0: i32) -> (i32, i32) {
    %c0_i32 = arith.constant 0 : i32
    %c0_i32_0 = arith.constant 0 : i32
    %c0_i32_1 = arith.constant 0 : i32
    return %c0_i32, %c0_i32_0 : i32, i32
  }
  func.func @transform_8(%arg0: i32) -> (i32, i32) {
    %c0_i32 = arith.constant 0 : i32
    %c0_i32_0 = arith.constant 0 : i32
    %c0_i32_1 = arith.constant 0 : i32
    return %c0_i32, %c0_i32_0 : i32, i32
  }
  func.func @transform_9(%arg0: i32) -> (i32, i32) {
    %c0_i32 = arith.constant 0 : i32
    %c0_i32_0 = arith.constant 0 : i32
    %c0_i32_1 = arith.constant 0 : i32
    return %c0_i32, %c0_i32_0 : i32, i32
  }
  func.func @transform_10(%arg0: i32) -> (i32, i32) {
    %c0_i32 = arith.constant 0 : i32
    %c0_i32_0 = arith.constant 0 : i32
    %c0_i32_1 = arith.constant 0 : i32
    return %c0_i32, %c0_i32_0 : i32, i32
  }
  func.func @transform_11(%arg0: i32) -> (i32, i32) {
    %c0_i32 = arith.constant 0 : i32
    %c0_i32_0 = arith.constant 0 : i32
    %c0_i32_1 = arith.constant 0 : i32
    return %c0_i32, %c0_i32_0 : i32, i32
  }
  func.func @transform_12(%arg0: i32) -> (i32, i32) {
    %c0_i32 = arith.constant 0 : i32
    %c0_i32_0 = arith.constant 0 : i32
    %c0_i32_1 = arith.constant 0 : i32
    return %c0_i32, %c0_i32_0 : i32, i32
  }
  func.func @transform_13(%arg0: i32) -> (i32, i32) {
    %c0_i32 = arith.constant 0 : i32
    %c0_i32_0 = arith.constant 0 : i32
    %c0_i32_1 = arith.constant 0 : i32
    return %c0_i32, %c0_i32_0 : i32, i32
  }
  func.func @transform_14(%arg0: i32) -> (i32, i32) {
    %c0_i32 = arith.constant 0 : i32
    %c0_i32_0 = arith.constant 0 : i32
    %c0_i32_1 = arith.constant 0 : i32
    return %c0_i32, %c0_i32_0 : i32, i32
  }
  func.func @transform_15(%arg0: i32) -> (i32, i32, i32) {
    %c0_i32 = arith.constant 0 : i32
    %c0_i32_0 = arith.constant 0 : i32
    %c0_i32_1 = arith.constant 0 : i32
    %c0_i32_2 = arith.constant 0 : i32
    return %c0_i32, %c0_i32_0, %c0_i32_1 : i32, i32, i32
  }
}

</mosaic_0001>

<bundles_post_ra>
// kernel: generator_forward.1
= control target key start
LH: loop header
LB: loop body
LE: loop exit
PB: predicated region body
PF: predicated region fallthrough
CT: control target
= control target key end

     0   :  { %20 = vsyncpa [#allocation3], 0  ;;  %s24458_s0 = inlined_call_operand.vmem [shape: f32[8,32], index: 0, kind: input, shape index: {}]   ;;  %s24459_s1 = inlined_call_operand.hbm [shape: f32[4,32,64], index: 1, kind: input, shape index: {}]   ;;  %s24460_s2 = inlined_call_operand.vmem [shape: f32[4,1,64], index: 2, kind: input, shape index: {}]   ;;  %s24461_s3 = inlined_call_operand.vmem [shape: f32[1,16], index: 3, kind: input, shape index: {}]   ;;  %s24462_s4 = inlined_call_operand.vmem [shape: f32[1,16], index: 4, kind: input, shape index: {}]   ;;  %s24463_s5 = inlined_call_operand.hbm [shape: f32[192,128], index: 5, kind: input, shape index: {}]   ;;  %s24464_s6 = inlined_call_operand.vmem [shape: f32[1,128], index: 6, kind: input, shape index: {}]   ;;  %s24465_s7 = inlined_call_operand.vmem [shape: f32[1,16], index: 7, kind: input, shape index: {}]   ;;  %s24466_s8 = inlined_call_operand.vmem [shape: f32[1,16], index: 8, kind: input, shape index: {}]   ;;  %s24467_s9 = inlined_call_operand.vmem [shape: f32[384,128], index: 9, kind: input, shape index: {}]   ;;  %s24468_s10 = inlined_call_operand.vmem [shape: f32[1,128], index: 10, kind: input, shape index: {}]   ;;  %s24469_s11 = inlined_call_operand.vmem [shape: f32[1,8], index: 11, kind: input, shape index: {}]   ;;  %s24470_s12 = inlined_call_operand.vmem [shape: f32[1,8], index: 12, kind: input, shape index: {}]   ;;  %s24471_s13 = inlined_call_operand.vmem [shape: f32[384,16], index: 13, kind: input, shape index: {}]   ;;  %s24472_s14 = inlined_call_operand.vmem [shape: f32[1,16], index: 14, kind: input, shape index: {}]   ;;  %s24473_s15 = inlined_call_operand.hbm [shape: f32[8,16,16], index: 15, kind: output, shape index: {}]  }
   0x1   :  { %21 = vsyncpa [#allocation6], 0 }
   0x2   :  { %22 = vsyncpa [#allocation4], 0  ;;  %s17733_s18 = smov [#allocation2]  }
   0x3   :  { %s30_s19 = sshll.u32 %s17733_s18, 4  ;;  %s31_s19 = int_to_ptr.vmem [resolvable:$true] %s30_s19 }
   0x4   :  { %s17675_s20 = scalar_lea.vmem %s31_s19, 2048  ;;  %p17680_p1 = scmp.lt.s32.totalorder %s31_s19, %s31_s19 }
   0x5   :  { %p17676_p0 = scmp.ne.s32.totalorder %s31_s19, %s17675_s20  ;;  %p17681_p2 = scmp.lt.s32.totalorder %s17675_s20, %s17675_s20 }
   0x7   :  { %p17682_p3 = por %p17681_p2, %p17680_p1 }
   0x9   :  { %p17683_p4 = pnand %p17682_p3, %p17676_p0 }
   0xb   :  { %17686 = shalt.err (!%p17683_p4)
}
   0xc   :  { %s17734_s21 = smov 128   ;;  %s17735_s22 = smov 8  }
   0xd   :  { %36 = dma.hbm_to_vmem [thread:$0]  %s24459_s1, 2048, %s31_s19, [#allocation3], %s17734_s21, %s17734_s21, %s17735_s22  }
   0xe   :  { %s17736_s25 = smov [#allocation5]  }
   0xf   :  { %s48_s26 = sshll.u32 %s17736_s25, 4  ;;  %s49_s26 = int_to_ptr.vmem [resolvable:$true] %s48_s26 }
  0x10   :  { %s17695_s27 = scalar_lea.vmem %s49_s26, 3072  ;;  %p17700_p6 = scmp.lt.s32.totalorder %s49_s26, %s49_s26 }
  0x11   :  { %p17696_p5 = scmp.ne.s32.totalorder %s49_s26, %s17695_s27  ;;  %p17701_p7 = scmp.lt.s32.totalorder %s17695_s27, %s17695_s27 }
  0x13   :  { %p17702_p8 = por %p17701_p7, %p17700_p6 }
  0x15   :  { %p17703_p9 = pnand %p17702_p8, %p17696_p5 }
  0x17   :  { %17706 = shalt.err (!%p17703_p9)
}
  0x18   :  { %54 = dma.hbm_to_vmem [thread:$0]  %s24463_s5, 3072, %s49_s26, [#allocation6], %s17734_s21, %s17734_s21, %s17735_s22  }
  0x19   :  { %17727 = dma.done.wait [#allocation3], 2048  }
  0x1a   :  { %17728 = vsyncadd [#allocation3], 4294965248 }
  0x1b   :  { %17729 = dma.done.wait [#allocation6], 3072  }
  0x1c   :  { %17730 = vsyncadd [#allocation6], 4294964224  ;;  %v24474_v0 = vmov 0.0   ;;  %vm24567_vm0 = vmmov 0   ;;  %v83_v1 = vld [vmem:[#allocation2 + $0x18] sm:$0xff]  ;;  %v82_v3 = vld [vmem:[#allocation2 + $0x10] sm:$0xff]  ;;  %v170_v18 = vlaneseq }
  0x1d   :  { %15968 = vmatprep.subr.mxu0 %v24474_v0  ;;  %15979 = vmatprep.subr.mxu1 %v24474_v0  ;;  %v227_v2 = vld [vmem:[#allocation2 + $0x38] sm:$0xff]  ;;  %v226_v4 = vld [vmem:[#allocation2 + $0x30] sm:$0xff]  ;;  %v81_v5 = vld [vmem:[#allocation2 + $0x8] sm:$0xff]  ;;  %vm91_vm1 = vcmask 261120   ;;  %v25072_v24 = vmov 0  ;;  %v25077_v29 = vmov 0 }
  0x1e   :  { %15976 = vmatprep.mubr.msk.f32.mxu0 %vm24567_vm0, %v24474_v0  ;;  %15987 = vmatprep.mubr.msk.f32.mxu1 %vm24567_vm0, %v24474_v0  ;;  %v225_v6 = vld [vmem:[#allocation2 + $0x28] sm:$0xff]  ;;  %v80_v7 = vld [vmem:[#allocation2] sm:$0xff]  ;;  %v360_v10 = vld [vmem:[#allocation2 + $0x58] sm:$0xff]  ;;  %v17867_v19 = vshrl.u32 %v170_v18, 7  ;;  %v17873_v22 = vand.u32 127, %v170_v18  ;;  %v25083_v35 = vmov 0 }
  0x1f   :  { %15969 = vmatpush3.msra.mxu0 %v83_v1  ;;  %15980 = vmatpush3.msra.mxu1 %v227_v2  ;;  %v224_v8 = vld [vmem:[#allocation2 + $0x20] sm:$0xff]  ;;  %v493_v11 = vld [vmem:[#allocation2 + $0x78] sm:$0xff]  ;;  %v359_v12 = vld [vmem:[#allocation2 + $0x50] sm:$0xff]  ;;  %v25089_v42 = vmov 0  ;;  %v25096_v50 = vmov 0  ;;  %v25103_v58 = vmov 0 }
  0x20   :  { %15970 = vmatprep.subr.mxu0 %v24474_v0  ;;  %15981 = vmatprep.subr.mxu1 %v24474_v0  ;;  %v79_v9 = vld [vmem:[%s24458_s0] sm:$0xff]  ;;  %v492_v13 = vld [vmem:[#allocation2 + $0x70] sm:$0xff]  ;;  %v358_v14 = vld [vmem:[#allocation2 + $0x48] sm:$0xff]  ;;  %25068 = vst [vmem:[#allocation11_spill] sm:$0xff] %v17867_v19  ;;  %v17870_v20 = vadd.s32 56, %v17867_v19  ;;  %v17876_v23 = vadd.s32 48, %v17867_v19 }
  0x21   :  { %15971 = vmatpush3.msra.mxu0 %v82_v3  ;;  %15982 = vmatpush3.msra.mxu1 %v226_v4  ;;  %v491_v15 = vld [vmem:[#allocation2 + $0x68] sm:$0xff]  ;;  %v357_v16 = vld [vmem:[#allocation2 + $0x40] sm:$0xff]  ;;  %25070 = vst [vmem:[#allocation13_spill] sm:$0xff] %v17873_v22  ;;  %v17885_v26 = vadd.s32 40, %v17867_v19  ;;  %v17899_v31 = vadd.s32 32, %v17867_v19  ;;  %v17919_v38 = vadd.s32 24, %v17867_v19 }
  0x22   :  { %15972 = vmatprep.subr.mxu0 %v24474_v0  ;;  %15983 = vmatprep.subr.mxu1 %v24474_v0  ;;  %v490_v17 = vld [vmem:[#allocation2 + $0x60] sm:$0xff]  ;;  %25069 = vst [vmem:[#allocation12_spill] sm:$0xff] %v17870_v20  ;;  %v833_v21 = vand.u32 15, %v17870_v20  ;;  %25071 = vst [vmem:[#allocation14_spill] sm:$0xff] %v17876_v23  ;;  %v826_v25 = vand.u32 15, %v17876_v23  ;;  %v17938_v45 = vadd.s32 16, %v17867_v19 }
  0x23   :  { %15973 = vmatpush3.msra.mxu0 %v81_v5  ;;  %15984 = vmatpush3.msra.mxu1 %v225_v6  ;;  %25075 = vst [vmem:[#allocation16_spill] sm:$0xff] %v17885_v26  ;;  %v819_v30 = vand.u32 15, %v17885_v26  ;;  %25080 = vst [vmem:[#allocation19_spill] sm:$0xff] %v17899_v31  ;;  %v812_v36 = vand.u32 15, %v17899_v31  ;;  %v805_v44 = vand.u32 15, %v17919_v38  ;;  %v17956_v52 = vadd.s32 8, %v17867_v19 }
  0x24   :  { %15974 = vmatprep.subr.mxu0 %v24474_v0  ;;  %15985 = vmatprep.subr.mxu1 %v24474_v0  ;;  %vm17879_vm2 = vcmp.eq.s32.totalorder %v833_v21, %v17873_v22  ;;  %vm17893_vm3 = vcmp.eq.s32.totalorder %v826_v25, %v17873_v22  ;;  %25086 = vst [vmem:[#allocation23_spill] sm:$0xff] %v17919_v38  ;;  %25092 = vst [vmem:[#allocation27_spill] sm:$0xff] %v17938_v45  ;;  %v798_v51 = vand.u32 15, %v17938_v45  ;;  %v25109_v3 = vmov 0  ;;  %v14278_v38 = vld [vmem:[%s24460_s2 + $0x3] ss:$0 sm:$0xff] }
  0x25   :  { %15975 = vmatpush3.msra.mxu0 %v80_v7  ;;  %15986 = vmatpush3.msra.mxu1 %v224_v8  ;;  %v25073_v24 = vsel %vm17879_vm2, 4294967295, %v25072_v24  ;;  %v14287_v27 = vsel %vm17879_vm2, 1.0, %v24474_v0  ;;  %v25078_v29 = vsel %vm17893_vm3, 4294967295, %v25077_v29  ;;  %v14286_v32 = vsel %vm17893_vm3, 1.0, %v24474_v0  ;;  %25099 = vst [vmem:[#allocation32_spill] sm:$0xff] %v17956_v52 }
  0x26   :  { %15977 = vmatmul.mubr.msk.f32.vlgmr.msra.gmra.mxu0 %vm91_vm1, %v79_v9  ;;  %15988 = vmatmul.mubr.msk.f32.vlgmr.msra.gmra.mxu1 %vm91_vm1, %v79_v9  ;;  %25074 = vst [vmem:[#allocation15_spill] sm:$0xff] %v25073_v24  ;;  %v17890_v28 = vsub.f32 %v14287_v27, %v14287_v27  ;;  %25079 = vst [vmem:[#allocation18_spill] sm:$0xff] %v25078_v29  ;;  %v17907_v34 = vsub.f32 %v14286_v32, %v14286_v32  ;;  %v791_v59 = vand.u32 15, %v17956_v52  ;;  %v25113_v6 = vmov 0 }
  0x27   :  { %15990 = vmatprep.subr.mxu0 %v24474_v0  ;;  %16001 = vmatprep.subr.mxu1 %v24474_v0  ;;  %vm17910_vm4 = vcmp.eq.s32.totalorder %v819_v30, %v17873_v22  ;;  %vm17929_vm5 = vcmp.eq.s32.totalorder %v812_v36, %v17873_v22  ;;  %vm17950_vm6 = vcmp.eq.s32.totalorder %v805_v44, %v17873_v22  ;;  %v784_v63 = vand.u32 15, %v17867_v19 }
  0x28   :  { %15991 = vmatpush3.msra.mxu0 %v360_v10  ;;  %16002 = vmatpush3.msra.mxu1 %v493_v11  ;;  %25076 = vst [vmem:[#allocation17_spill] sm:$0xff] %v17890_v28  ;;  %v17905_v33 = vand.u32 4294901760, %v17890_v28  ;;  %25082 = vst [vmem:[#allocation21_spill] sm:$0xff] %v17907_v34  ;;  %v25084_v35 = vsel %vm17910_vm4, 4294967295, %v25083_v35  ;;  %v14285_v37 = vsel %vm17910_vm4, 1.0, %v24474_v0  ;;  %v17924_v40 = vand.u32 4294901760, %v17907_v34 }
  0x29   :  { %15992 = vmatprep.subr.mxu0 %v24474_v0  ;;  %16003 = vmatprep.subr.mxu1 %v24474_v0  ;;  %25085 = vst [vmem:[#allocation22_spill] sm:$0xff] %v25084_v35  ;;  %v17926_v41 = vsub.f32 %v14285_v37, %v14285_v37  ;;  %v25090_v42 = vsel %vm17929_vm5, 4294967295, %v25089_v42  ;;  %v14284_v43 = vsel %vm17929_vm5, 1.0, %v24474_v0  ;;  %v25097_v50 = vsel %vm17950_vm6, 4294967295, %v25096_v50  ;;  %v14269_v37 = vld [vmem:[%s24460_s2] ss:$0 sm:$0xff] }
  0x2a   :  { %15993 = vmatpush3.msra.mxu0 %v359_v12  ;;  %16004 = vmatpush3.msra.mxu1 %v492_v13  ;;  %25081 = vst [vmem:[#allocation20_spill] sm:$0xff] %v17905_v33  ;;  %v1142_v39 = vsub.f32 %v17890_v28, %v17905_v33  ;;  %25087 = vst [vmem:[#allocation24_spill] sm:$0xff] %v17924_v40  ;;  %v1149_v47 = vsub.f32 %v17907_v34, %v17924_v40  ;;  %v14283_v56 = vsel %vm17950_vm6, 1.0, %v24474_v0  ;;  %v24476_v13 = vmov 1.0  }
  0x2b   :  { %15994 = vmatprep.subr.mxu0 %v24474_v0  ;;  %16005 = vmatprep.subr.mxu1 %v24474_v0  ;;  %25088 = vst [vmem:[#allocation25_spill] sm:$0xff] %v17926_v41  ;;  %25091 = vst [vmem:[#allocation26_spill] sm:$0xff] %v25090_v42  ;;  %v17945_v48 = vand.u32 4294901760, %v17926_v41  ;;  %v17947_v49 = vsub.f32 %v14284_v43, %v14284_v43  ;;  %v17970_v57 = vsub.f32 %v14283_v56, %v14283_v56  ;;  %v17740_v30 = vmov 1966171168  }
  0x2c   :  { %15995 = vmatpush3.msra.mxu0 %v358_v14  ;;  %16006 = vmatpush3.msra.mxu1 %v491_v15  ;;  %v17940_v46 = vand.u32 4294901760, %v1142_v39  ;;  %25098 = vst [vmem:[#allocation31_spill] sm:$0xff] %v25097_v50  ;;  %v17959_v53 = vand.u32 4294901760, %v1149_v47  ;;  %vm17973_vm7 = vcmp.eq.s32.totalorder %v798_v51, %v17873_v22  ;;  %vm17994_vm8 = vcmp.eq.s32.totalorder %v791_v59, %v17873_v22  ;;  %v14272_v39 = vld [vmem:[%s24460_s2 + $0x1] ss:$0 sm:$0xff] }
  0x2d   :  { %15996 = vmatprep.subr.mxu0 %v24474_v0  ;;  %16007 = vmatprep.subr.mxu1 %v24474_v0  ;;  %25094 = vst [vmem:[#allocation29_spill] sm:$0xff] %v17945_v48  ;;  %25095 = vst [vmem:[#allocation30_spill] sm:$0xff] %v17947_v49  ;;  %v1156_v54 = vsub.f32 %v17926_v41, %v17945_v48  ;;  %v17964_v55 = vand.u32 4294901760, %v17947_v49  ;;  %v25104_v58 = vsel %vm17973_vm7, 4294967295, %v25103_v58  ;;  %v14282_v62 = vsel %vm17973_vm7, 1.0, %v24474_v0 }
  0x2e   :  { %15997 = vmatpush3.msra.mxu0 %v357_v16  ;;  %15998 = vmatprep.mubr.msk.f32.mxu0 %vm24567_vm0, %v24474_v0  ;;  %25093 = vst [vmem:[#allocation28_spill] sm:$0xff] %v17940_v46  ;;  %25100 = vst [vmem:[#allocation33_spill] sm:$0xff] %v17959_v53  ;;  %v17989_v1 = vand.u32 4294901760, %v17970_v57  ;;  %v17991_v2 = vsub.f32 %v14282_v62, %v14282_v62  ;;  %v25110_v3 = vsel %vm17994_vm8, 4294967295, %v25109_v3  ;;  %v14281_v5 = vsel %vm17994_vm8, 1.0, %v24474_v0 }
  0x2f   :  { %16008 = vmatpush3.msra.mxu1 %v490_v17  ;;  %16009 = vmatprep.mubr.msk.f32.mxu1 %vm24567_vm0, %v24474_v0  ;;  %25101 = vst [vmem:[#allocation34_spill] sm:$0xff] %v17964_v55  ;;  %25102 = vst [vmem:[#allocation35_spill] sm:$0xff] %v17970_v57  ;;  %v17979_v60 = vand.u32 4294901760, %v1156_v54  ;;  %v1163_v61 = vsub.f32 %v17947_v49, %v17964_v55  ;;  %vm18005_vm9 = vcmp.eq.s32.totalorder %v784_v63, %v17873_v22  ;;  %vm24565_vm10 = vcmask 1040384  }
  0x30   :  { %15999 = vmatmul.mubr.msk.f32.vlgmr.msra.gmra.mxu0 %vm91_vm1, %v79_v9  ;;  %16010 = vmatmul.mubr.msk.f32.vlgmr.msra.gmra.mxu1 %vm91_vm1, %v79_v9  ;;  %25105 = vst [vmem:[#allocation36_spill] sm:$0xff] %v25104_v58  ;;  %25107 = vst [vmem:[#allocation38_spill] sm:$0xff] %v17989_v1  ;;  %v25114_v6 = vsel %vm18005_vm9, 4294967295, %v25113_v6  ;;  %v1170_v7 = vsub.f32 %v17970_v57, %v17989_v1  ;;  %v18013_v8 = vand.u32 4294901760, %v17991_v2  ;;  %v14280_v10 = vsel %vm18005_vm9, 1.0, %v24474_v0 }
  0x31   :  { %16040 = vmatprep.subr.mxu1 %v17940_v46  ;;  %25106 = vst [vmem:[#allocation37_spill] sm:$0xff] %v17979_v60  ;;  %25108 = vst [vmem:[#allocation39_spill] sm:$0xff] %v17991_v2  ;;  %v17999_v4 = vand.u32 4294901760, %v1163_v61  ;;  %v18015_v9 = vsub.f32 %v14281_v5, %v14281_v5  ;;  %16012 = vmatprep.subr.msk.mxu0 %vm17879_vm2, %v24476_v13  ;;  %v18032_v15 = vsub.f32 %v14280_v10, %v14280_v10  ;;  %vm751_vm11 = vcmask 1041408  }
  0x32   :  { %16041 = vmatpush3.msra.mxu1 %v17940_v46  ;;  %25111 = vst [vmem:[#allocation40_spill] sm:$0xff] %v25110_v3  ;;  %25115 = vst [vmem:[#allocation42_spill] sm:$0xff] %v25114_v6  ;;  %v18022_v11 = vand.u32 4294901760, %v1170_v7  ;;  %v1177_v12 = vsub.f32 %v17991_v2, %v18013_v8  ;;  %16013 = vmatpush3.msk.msra.mxu0 %vm17879_vm2, %v24476_v13  ;;  %v168_v32 = vunpack.c.l.s4 %v17740_v30  ;;  %vm760_vm12 = vcmask 1042432  }
  0x33   :  { %16042 = vmatprep.subr.mxu1 %v17959_v53  ;;  %25112 = vst [vmem:[#allocation41_spill] sm:$0xff] %v17999_v4  ;;  %25116 = vst [vmem:[#allocation43_spill] sm:$0xff] %v18013_v8  ;;  %v18030_v14 = vand.u32 4294901760, %v18015_v9  ;;  %16014 = vmatprep.subr.msk.mxu0 %vm17893_vm3, %v24476_v13  ;;  %v18047_v18 = vand.u32 4294901760, %v18032_v15  ;;  %vm24570_vm13 = vcmask 523264   ;;  %vm24564_vm1 = vcmask 130048  }
  0x34   :  { %16043 = vmatpush3.msra.mxu1 %v17959_v53  ;;  %25117 = vst [vmem:[#allocation44_spill] sm:$0xff] %v18015_v9  ;;  %25118 = vst [vmem:[#allocation45_spill] sm:$0xff] %v18022_v11  ;;  %v18038_v16 = vand.u32 4294901760, %v1177_v12  ;;  %16015 = vmatpush3.msk.msra.mxu0 %vm17893_vm3, %v24476_v13  ;;  %v169_v36 = vunpack.c.0.s8 %v168_v32 }
  0x35   :  { %16044 = vmatprep.subr.mxu1 %v17979_v60  ;;  %25119 = vst [vmem:[#allocation46_spill] sm:$0xff] %v18030_v14  ;;  %25120 = vst [vmem:[#allocation47_spill] sm:$0xff] %v18032_v15  ;;  %v1184_v17 = vsub.f32 %v18015_v9, %v18030_v14  ;;  %16016 = vmatprep.subr.msk.mxu0 %vm17910_vm4, %v24476_v13  ;;  %v1191_v25 = vsub.f32 %v18032_v15, %v18047_v18 }
  0x36   :  { %16045 = vmatpush3.msra.mxu1 %v17979_v60  ;;  %25121 = vst [vmem:[#allocation48_spill] sm:$0xff] %v18038_v16  ;;  %25122 = vst [vmem:[#allocation49_spill] sm:$0xff] %v18047_v18  ;;  %16017 = vmatpush3.msk.msra.mxu0 %vm17910_vm4, %v24476_v13  ;;  %v18111_v43 = vsub.s32 %v169_v36, %v17867_v19 }
  0x37   :  { %16046 = vmatprep.subr.mxu1 %v17999_v4  ;;  %v18057_v21 = vand.u32 4294901760, %v1184_v17  ;;  %16018 = vmatprep.subr.msk.mxu0 %vm17929_vm5, %v24476_v13  ;;  %v18068_v27 = vand.u32 4294901760, %v1191_v25 }
  0x38   :  { %16047 = vmatpush3.msra.mxu1 %v17999_v4  ;;  %16019 = vmatpush3.msk.msra.mxu0 %vm17929_vm5, %v24476_v13  ;;  %25125 = vst [vmem:[#allocation52_spill] sm:$0xff] %v18111_v43 }
  0x39   :  { %16048 = vmatprep.subr.mxu1 %v18022_v11  ;;  %25123 = vst [vmem:[#allocation50_spill] sm:$0xff] %v18057_v21  ;;  %25124 = vst [vmem:[#allocation51_spill] sm:$0xff] %v18068_v27  ;;  %16020 = vmatprep.subr.msk.mxu0 %vm17950_vm6, %v24476_v13 }
  0x3a   :  { %16049 = vmatpush3.msra.mxu1 %v18022_v11  ;;  %16021 = vmatpush3.msk.msra.mxu0 %vm17950_vm6, %v24476_v13 }
  0x3b   :  { %16050 = vmatprep.subr.mxu1 %v18038_v16  ;;  %16022 = vmatprep.subr.msk.mxu0 %vm17973_vm7, %v24476_v13 }
  0x3c   :  { %16051 = vmatpush3.msra.mxu1 %v18038_v16  ;;  %16023 = vmatpush3.msk.msra.mxu0 %vm17973_vm7, %v24476_v13 }
  0x3d   :  { %16052 = vmatprep.subr.mxu1 %v18057_v21  ;;  %16024 = vmatprep.subr.msk.mxu0 %vm17994_vm8, %v24476_v13 }
  0x3e   :  { %16053 = vmatpush3.msra.mxu1 %v18057_v21  ;;  %16025 = vmatpush3.msk.msra.mxu0 %vm17994_vm8, %v24476_v13 }
  0x3f   :  { %16054 = vmatprep.subr.mxu1 %v18068_v27  ;;  %16026 = vmatprep.subr.msk.mxu0 %vm18005_vm9, %v24476_v13 }
  0x40   :  { %16055 = vmatpush3.msra.mxu1 %v18068_v27  ;;  %16027 = vmatpush3.msk.msra.mxu0 %vm18005_vm9, %v24476_v13 }
  0x41   :  { %16096 = vmatprep.subr.msk.mxu1 %vm17879_vm2, %v24476_v13  ;;  %16068 = vmatprep.subr.mxu0 %v17890_v28 }
  0xe6   :  { %v161_v44 = vpop.f32.mrf.mxu0  ;;  %v302_v47 = vpop.f32.mrf.mxu1 }
  0xe7   :  { %v162_v51 = vadd.f32 %v14269_v37, %v161_v44  ;;  %v303_v54 = vadd.f32 %v14272_v39, %v302_v47  ;;  %v18121_v37 = vsub.s32 0, %v17867_v19 }
  0xe8   :  { %v15978_v56 = vpop.f32.mrf.mxu0  ;;  %v15989_v59 = vpop.f32.mrf.mxu1 }
  0xe9   :  { %v166_v61 = vcombine.high %v162_v51, %v162_v51  ;;  %v173_v62 = vrot.slane %v162_v51, %v18111_v43  ;;  %v307_v63 = vcombine.high %v303_v54, %v303_v54  ;;  %v314_v5 = vrot.slane %v303_v54, %v18111_v43  ;;  %25126 = vst [vmem:[#allocation53_spill] sm:$0xff] %v18121_v37 }
  0xeb   :  { %v180_v7 = vrot.slane %v166_v61, %v18111_v43  ;;  %v181_v10 = vcombine.high %v173_v62, %v173_v62  ;;  %v321_v12 = vrot.slane %v307_v63, %v18111_v43  ;;  %v322_v17 = vcombine.high %v314_v5, %v314_v5  ;;  %v14275_v63 = vld [vmem:[%s24460_s2 + $0x2] ss:$0 sm:$0xff] }
  0xec   :  { %v330_v25 = vrot.slane %v314_v5, %v18111_v43  ;;  %v189_v32 = vrot.slane %v173_v62, %v18111_v43 }
  0xed   :  { %v182_v30 = vcombine.high %v180_v7, %v180_v7  ;;  %v203_v36 = vrot.slane %v181_v10, %v18111_v43  ;;  %v323_v39 = vcombine.high %v321_v12, %v321_v12  ;;  %v337_v44 = vrot.slane %v321_v12, %v18111_v43 }
  0xee   :  { %v344_v47 = vrot.slane %v322_v17, %v18111_v43  ;;  %v352_v51 = vcombine.high %v330_v25, %v330_v25  ;;  %v196_v54 = vrot.slane %v180_v7, %v18111_v43  ;;  %v211_v0 = vcombine.high %v189_v32, %v189_v32 }
  0xef   :  { %v210_v56 = vrot.slane %v182_v30, %v18111_v43  ;;  %v351_v59 = vrot.slane %v323_v39, %v18111_v43  ;;  %v353_v61 = vcombine.high %v337_v44, %v337_v44  ;;  %v213_v12 = vcombine.high %v203_v36, %v203_v36 }
  0xf0   :  { %v354_v62 = vcombine.high %v344_v47, %v344_v47  ;;  %v435_v5 = vpop.f32.mrf.mxu0  ;;  %v568_v10 = vpop.f32.mrf.mxu1  ;;  %v625_v17 = vrot.slane %v330_v25, %v18121_v37  ;;  %v629_v13 = vrot.slane %v344_v47, %v18121_v37  ;;  %v633_v45 = vrot.slane %v352_v51, %v18121_v37 }
  0xf1   :  { %v355_v7 = vcombine.high %v351_v59, %v351_v59  ;;  %v641_v39 = vrot.slane %v337_v44, %v18121_v37  ;;  %v212_v23 = vcombine.high %v196_v54, %v196_v54  ;;  %v436_v20 = vadd.f32 %v14275_v63, %v435_v5 }
  0xf2   :  { %v637_v30 = vrot.slane %v354_v62, %v18121_v37  ;;  %v16000_v31 = vpop.f32.mrf.mxu0  ;;  %v16011_v26 = vpop.f32.mrf.mxu1  ;;  %v214_v27 = vcombine.high %v210_v56, %v210_v56  ;;  %v645_v25 = vrot.slane %v351_v59, %v18121_v37  ;;  %v649_v47 = vrot.slane %v353_v61, %v18121_v37 }
  0xf3   :  { %v653_v51 = vrot.slane %v355_v7, %v18121_v37  ;;  %v743_v62 = vsel %vm24565_vm10, %v189_v32, %v625_v17  ;;  %v440_v21 = vcombine.high %v436_v20, %v436_v20  ;;  %v447_v44 = vrot.slane %v436_v20, %v18111_v43 }
  0xf4   :  { %v569_v16 = vadd.f32 %v14278_v38, %v568_v10  ;;  %v744_v11 = vsel %vm24565_vm10, %v203_v36, %v629_v13  ;;  %v745_v26 = vsel %vm24565_vm10, %v211_v0, %v633_v45  ;;  %v746_v31 = vsel %vm24565_vm10, %v213_v12, %v637_v30 }
  0xf5   :  { %v747_v63 = vsel %vm24565_vm10, %v196_v54, %v641_v39  ;;  %v454_v59 = vrot.slane %v440_v21, %v18111_v43  ;;  %v455_v5 = vcombine.high %v447_v44, %v447_v44  ;;  %v463_v61 = vrot.slane %v447_v44, %v18111_v43 }
  0xf6   :  { %v573_v7 = vcombine.high %v569_v16, %v569_v16  ;;  %v748_v32 = vsel %vm24565_vm10, %v210_v56, %v645_v25  ;;  %v749_v20 = vsel %vm24565_vm10, %v212_v23, %v649_v47  ;;  %v750_v38 = vsel %vm24565_vm10, %v214_v27, %v653_v51 }
  0xf7   :  { %v580_v13 = vrot.slane %v569_v16, %v18111_v43  ;;  %v456_v0 = vcombine.high %v454_v59, %v454_v59  ;;  %v470_v45 = vrot.slane %v454_v59, %v18111_v43  ;;  %v477_v36 = vrot.slane %v455_v5, %v18111_v43 }
  0xf8   :  { %v485_v54 = vcombine.high %v463_v61, %v463_v61  ;;  %v665_v21 = vrot.slane %v463_v61, %v18121_v37  ;;  %v587_v10 = vrot.slane %v573_v7, %v18111_v43 }
  0xf9   :  { %v588_v12 = vcombine.high %v580_v13, %v580_v13  ;;  %v596_v17 = vrot.slane %v580_v13, %v18111_v43  ;;  %v484_v56 = vrot.slane %v456_v0, %v18111_v43  ;;  %v486_v23 = vcombine.high %v470_v45, %v470_v45 }
  0xfa   :  { %v487_v30 = vcombine.high %v477_v36, %v477_v36  ;;  %v669_v27 = vrot.slane %v477_v36, %v18121_v37  ;;  %v673_v16 = vrot.slane %v485_v54, %v18121_v37  ;;  %v681_v39 = vrot.slane %v470_v45, %v18121_v37 }
  0xfb   :  { %v752_v25 = vsel %vm751_vm11, %v743_v62, %v665_v21  ;;  %v589_v47 = vcombine.high %v587_v10, %v587_v10  ;;  %v488_v51 = vcombine.high %v484_v56, %v484_v56  ;;  %v685_v59 = vrot.slane %v484_v56, %v18121_v37 }
  0xfc   :  { %v677_v44 = vrot.slane %v487_v30, %v18121_v37  ;;  %v689_v5 = vrot.slane %v486_v23, %v18121_v37  ;;  %v753_v61 = vsel %vm751_vm11, %v744_v11, %v669_v27  ;;  %v754_v7 = vsel %vm751_vm11, %v745_v26, %v673_v16 }
  0xfd   :  { %v756_v13 = vsel %vm751_vm11, %v747_v63, %v681_v39  ;;  %v603_v0 = vrot.slane %v587_v10, %v18111_v43  ;;  %v693_v45 = vrot.slane %v488_v51, %v18121_v37  ;;  %v610_v62 = vrot.slane %v588_v12, %v18111_v43 }
  0xfe   :  { %v617_v36 = vrot.slane %v589_v47, %v18111_v43  ;;  %v618_v54 = vcombine.high %v596_v17, %v596_v17  ;;  %v705_v56 = vrot.slane %v596_v17, %v18121_v37  ;;  %v755_v11 = vsel %vm751_vm11, %v746_v31, %v677_v44 }
  0xff   :  { %v619_v21 = vcombine.high %v603_v0, %v603_v0  ;;  %v721_v23 = vrot.slane %v603_v0, %v18121_v37  ;;  %v620_v30 = vcombine.high %v610_v62, %v610_v62  ;;  %v709_v63 = vrot.slane %v610_v62, %v18121_v37 }
 0x100   :  { %v621_v26 = vcombine.high %v617_v36, %v617_v36  ;;  %v713_v10 = vrot.slane %v618_v54, %v18121_v37  ;;  %v725_v27 = vrot.slane %v617_v36, %v18121_v37  ;;  %v18182_v16 = vsel %vm760_vm12, %v752_v25, %v705_v56 }
 0x101   :  { %v729_v12 = vrot.slane %v619_v21, %v18121_v37  ;;  %v757_v39 = vsel %vm751_vm11, %v748_v32, %v685_v59  ;;  %v717_v17 = vrot.slane %v620_v30, %v18121_v37  ;;  %v18188_v31 = vsel %vm760_vm12, %v753_v61, %v709_v63 }
 0x102   :  { %v733_v47 = vrot.slane %v621_v26, %v18121_v37  ;;  %25127 = vst [vmem:[#allocation54_spill] sm:$0xff] %v18188_v31  ;;  %v18191_v51 = vsel %vm760_vm12, %v754_v7, %v713_v10  ;;  %v936_v44 = vcombine.low %v18182_v16, %v18188_v31  ;;  %v18196_v0 = vsel %vm760_vm12, %v756_v13, %v721_v23 }
 0x103   :  { %25128 = vst [vmem:[#allocation55_spill] sm:$0xff] %v18196_v0  ;;  %v18199_v25 = vsel %vm760_vm12, %v757_v39, %v725_v27  ;;  %v758_v32 = vsel %vm751_vm11, %v749_v20, %v689_v5  ;;  %v18203_v59 = vsel %vm760_vm12, %v755_v11, %v717_v17  ;;  %v759_v7 = vsel %vm751_vm11, %v750_v38, %v693_v45 }
 0x104   :  { %25129 = vst [vmem:[#allocation56_spill] sm:$0xff] %v18199_v25  ;;  %25130 = vst [vmem:[#allocation57_spill] sm:$0xff] %v18203_v59  ;;  %v938_v61 = vcombine.low %v18196_v0, %v18199_v25  ;;  %v18209_v62 = vsel %vm760_vm12, %v758_v32, %v729_v12  ;;  %v953_v36 = vsel %vm24570_vm13, %v936_v44, 0  ;;  %v937_v13 = vcombine.low %v18191_v51, %v18203_v59 }
 0x105   :  { %25131 = vst [vmem:[#allocation58_spill] sm:$0xff] %v18209_v62  ;;  %v18215_v54 = vsel %vm760_vm12, %v759_v7, %v733_v47  ;;  %v920_v20 = vmul.f32 %v18182_v16, %v18182_v16  ;;  %v18219_v5 = vand.u32 4294901760, %v953_v36  ;;  %v921_v45 = vmul.f32 %v18188_v31, %v18188_v31 }
 0x106   :  { %25132 = vst [vmem:[#allocation59_spill] sm:$0xff] %v18215_v54  ;;  %v957_v21 = vsel %vm24570_vm13, %v938_v61, 0  ;;  %v939_v38 = vcombine.low %v18209_v62, %v18215_v54  ;;  %v955_v56 = vsel %vm24570_vm13, %v937_v13, 0  ;;  %v922_v11 = vmul.f32 %v18191_v51, %v18191_v51 }
 0x107   :  { %v18227_v23 = vand.u32 4294901760, %v957_v21  ;;  %v923_v30 = vmul.f32 %v18203_v59, %v18203_v59  ;;  %16056 = vmatprep.mubr.f32.mxu1 %v18219_v5  ;;  %v18234_v26 = vand.u32 4294901760, %v955_v56  ;;  %v948_v10 = vcombine.low %v920_v20, %v921_v45 }
 0x108   :  { %v959_v63 = vsel %vm24570_vm13, %v939_v38, 0  ;;  %v18238_v27 = vsub.f32 %v953_v36, %v18219_v5  ;;  %v924_v47 = vmul.f32 %v18196_v0, %v18196_v0  ;;  %v925_v7 = vmul.f32 %v18199_v25, %v18199_v25 }
 0x109   :  { %v18240_v12 = vand.u32 4294901760, %v959_v63  ;;  %v949_v39 = vcombine.low %v922_v11, %v923_v30  ;;  %v18243_v17 = vsub.f32 %v957_v21, %v18227_v23  ;;  %v18248_v44 = vsub.f32 %v955_v56, %v18234_v26  ;;  %16057 = vmatmul.mubr.f32.vlgmr.msra.gmra.mxu1 %v18234_v26 }
 0x10a   :  { %v961_v32 = vsel %vm24570_vm13, %v948_v10, 0  ;;  %v24492_v61 = vand.u32 4294901760, %v18238_v27  ;;  %16059 = vmatprep.mubr.f32.mxu1 %v18227_v23  ;;  %v25133_v36 = vmov 1.0   ;;  %v950_v30 = vcombine.low %v924_v47, %v925_v7 }
 0x10b   :  { %16097 = vmatpush3.msk.msra.mxu1 %vm17879_vm2, %v25133_v36  ;;  %v18259_v13 = vand.u32 4294901760, %v961_v32  ;;  %v963_v20 = vsel %vm24570_vm13, %v949_v39, 0  ;;  %v24493_v21 = vand.u32 4294901760, %v18243_v17  ;;  %v18264_v38 = vsub.f32 %v959_v63, %v18240_v12 }
 0x10c   :  { %16098 = vmatprep.subr.msk.mxu1 %vm17893_vm3, %v25133_v36  ;;  %v1045_v45 = vsub.f32 %v18238_v27, %v24492_v61  ;;  %v24498_v56 = vand.u32 4294901760, %v18248_v44  ;;  %v18273_v11 = vand.u32 4294901760, %v963_v20  ;;  %v926_v39 = vmul.f32 %v18209_v62, %v18209_v62 }
 0x10d   :  { %16099 = vmatpush3.msk.msra.mxu1 %vm17893_vm3, %v25133_v36  ;;  %v1065_v63 = vsub.f32 %v18243_v17, %v24493_v21  ;;  %v927_v61 = vmul.f32 %v18215_v54, %v18215_v54  ;;  %v965_v21 = vsel %vm24570_vm13, %v950_v30, 0  ;;  %v18295_v10 = vsub.f32 %v961_v32, %v18259_v13 }
 0x10e   :  { %16060 = vmatmul.mubr.f32.gmra.mxu1 %v18240_v12  ;;  %16100 = vmatprep.subr.msk.mxu1 %vm17910_vm4, %v25133_v36  ;;  %v1046_v47 = vand.u32 4294901760, %v1045_v45  ;;  %v1055_v7 = vsub.f32 %v18248_v44, %v24498_v56  ;;  %v18301_v4 = vand.u32 4294901760, %v965_v21  ;;  %v18308_v32 = vsub.f32 %v963_v20, %v18273_v11 }
 0x10f   :  { %16062 = vmatprep.mubr.f32.mxu1 %v18259_v13  ;;  %16101 = vmatpush3.msk.msra.mxu1 %vm17910_vm4, %v25133_v36  ;;  %v951_v60 = vcombine.low %v926_v39, %v927_v61  ;;  %v1066_v56 = vand.u32 4294901760, %v1065_v63  ;;  %v1084_v30 = vand.u32 4294901760, %v18295_v10  ;;  %v25134_v61 = vand.u32 4294901760, %v18264_v38 }
 0x110   :  { %16028 = vmatprep.mubr.f32.mxu0 %v1046_v47  ;;  %16102 = vmatprep.subr.msk.mxu1 %vm17929_vm5, %v25133_v36  ;;  %v1056_v45 = vand.u32 4294901760, %v1055_v7  ;;  %v18321_v63 = vsub.f32 %v965_v21, %v18301_v4  ;;  %v1094_v20 = vand.u32 4294901760, %v18308_v32  ;;  %vm24566_vm11 = vcmask 1046528  }
 0x111   :  { %16103 = vmatpush3.msk.msra.mxu1 %vm17929_vm5, %v25133_v36  ;;  %v967_v53 = vsel %vm24570_vm13, %v951_v60, 0  ;;  %v1075_v39 = vsub.f32 %v18264_v38, %v25134_v61  ;;  %v1085_v60 = vsub.f32 %v18295_v10, %v1084_v30  ;;  %vm24569_vm12 = vcmask 1045504  }
 0x112   :  { %16029 = vmatmul.mubr.f32.vlgmr.msra.gmra.mxu0 %v1056_v45  ;;  %16063 = vmatmul.mubr.f32.gmra.mxu1 %v18273_v11  ;;  %v18318_v47 = vand.u32 4294901760, %v967_v53  ;;  %v1095_v61 = vsub.f32 %v18308_v32, %v1094_v20 }
 0x113   :  { %16069 = vmatpush3.msra.mxu0 %v17890_v28  ;;  %16104 = vmatprep.subr.msk.mxu1 %vm17950_vm6, %v25133_v36  ;;  %v1076_v21 = vand.u32 4294901760, %v1075_v39  ;;  %v1086_v45 = vand.u32 4294901760, %v1085_v60  ;;  %v25135_v60 = vand.u32 4294901760, %v18238_v27 }
 0x114   :  { %16031 = vmatprep.mubr.f32.mxu0 %v1066_v56  ;;  %16065 = vmatprep.mubr.f32.mxu1 %v18301_v4  ;;  %v1104_v56 = vand.u32 4294901760, %v18321_v63  ;;  %v18340_v7 = vsub.f32 %v967_v53, %v18318_v47 }
 0x115   :  { %16070 = vmatprep.subr.mxu0 %v17907_v34  ;;  %16105 = vmatpush3.msk.msra.mxu1 %vm17950_vm6, %v25133_v36 }
 0x116   :  { %16071 = vmatpush3.msra.mxu0 %v17907_v34  ;;  %16106 = vmatprep.subr.msk.mxu1 %vm17973_vm7, %v25133_v36  ;;  %v1105_v53 = vsub.f32 %v18321_v63, %v1104_v56  ;;  %v1114_v39 = vand.u32 4294901760, %v18340_v7 }
 0x117   :  { %16072 = vmatprep.subr.mxu0 %v17926_v41  ;;  %16107 = vmatpush3.msk.msra.mxu1 %vm17973_vm7, %v25133_v36 }
 0x118   :  { %16032 = vmatmul.mubr.f32.gmra.mxu0 %v1076_v21  ;;  %16066 = vmatmul.mubr.f32.gmra.mxu1 %v18318_v47  ;;  %v1096_v21 = vand.u32 4294901760, %v1095_v61  ;;  %v1106_v46 = vand.u32 4294901760, %v1105_v53  ;;  %v25137_v61 = vand.u32 4294901760, %v18243_v17 }
 0x119   :  { %16073 = vmatpush3.msra.mxu0 %v17926_v41  ;;  %16108 = vmatprep.subr.msk.mxu1 %vm17994_vm8, %v25133_v36 }
 0x11a   :  { %16034 = vmatprep.mubr.f32.mxu0 %v1086_v45  ;;  %16074 = vmatprep.subr.mxu0 %v17947_v49  ;;  %v25136_v45 = vand.u32 4294901760, %v18248_v44 }
 0x11b   :  { %16109 = vmatpush3.msk.msra.mxu1 %vm17994_vm8, %v25133_v36  ;;  %16112 = vmatprep.mubr.f32.mxu1 %v25135_v60  ;;  %v1115_v60 = vsub.f32 %v18340_v7, %v1114_v39 }
 0x11c   :  { %16075 = vmatpush3.msra.mxu0 %v17947_v49  ;;  %16110 = vmatprep.subr.msk.mxu1 %vm18005_vm9, %v25133_v36 }
 0x11d   :  { %16076 = vmatprep.subr.mxu0 %v17970_v57  ;;  %16111 = vmatpush3.msk.msra.mxu1 %vm18005_vm9, %v25133_v36  ;;  %v1116_v53 = vand.u32 4294901760, %v1115_v60 }
 0x11e   :  { %16035 = vmatmul.mubr.f32.gmra.mxu0 %v1096_v21  ;;  %16113 = vmatmul.mubr.f32.vlgmr.msra.gmra.mxu1 %v25136_v45 }
 0x11f   :  { %16077 = vmatpush3.msra.mxu0 %v17970_v57  ;;  %16152 = vmatprep.subr.msk.mxu1 %vm17879_vm2, %v25133_v36 }
 0x120   :  { %16037 = vmatprep.mubr.f32.mxu0 %v1106_v46  ;;  %16078 = vmatprep.subr.mxu0 %v17991_v2  ;;  %v25138_v46 = vand.u32 4294901760, %v18264_v38 }
 0x121   :  { %16115 = vmatprep.mubr.f32.mxu1 %v25137_v61  ;;  %16153 = vmatpush3.msk.msra.mxu1 %vm17879_vm2, %v25133_v36 }
 0x122   :  { %16079 = vmatpush3.msra.mxu0 %v17991_v2  ;;  %16154 = vmatprep.subr.msk.mxu1 %vm17893_vm3, %v25133_v36 }
 0x123   :  { %16080 = vmatprep.subr.mxu0 %v18015_v9  ;;  %16155 = vmatpush3.msk.msra.mxu1 %vm17893_vm3, %v25133_v36 }
 0x124   :  { %16038 = vmatmul.mubr.f32.gmra.mxu0 %v1116_v53  ;;  %16116 = vmatmul.mubr.f32.gmra.mxu1 %v25138_v46 }
 0x125   :  { %16081 = vmatpush3.msra.mxu0 %v18015_v9  ;;  %16156 = vmatprep.subr.msk.mxu1 %vm17910_vm4, %v25133_v36 }
 0x126   :  { %16082 = vmatprep.subr.mxu0 %v18032_v15  ;;  %16084 = vmatprep.mubr.f32.mxu0 %v18238_v27  ;;  %v25139_v27 = vmov 0.0  }
 0x127   :  { %16118 = vmatprep.mubr.f32.mxu1 %v1084_v30  ;;  %16157 = vmatpush3.msk.msra.mxu1 %vm17910_vm4, %v25133_v36 }
 0x128   :  { %16083 = vmatpush3.msra.mxu0 %v18032_v15  ;;  %16158 = vmatprep.subr.msk.mxu1 %vm17929_vm5, %v25133_v36 }
 0x129   :  { %16124 = vmatprep.subr.mxu0 %v17905_v33  ;;  %16159 = vmatpush3.msk.msra.mxu1 %vm17929_vm5, %v25133_v36 }
 0x12a   :  { %16085 = vmatmul.mubr.f32.vlgmr.msra.gmra.mxu0 %v18248_v44  ;;  %16119 = vmatmul.mubr.f32.gmra.mxu1 %v1094_v20 }
 0x12b   :  { %16125 = vmatpush3.msra.mxu0 %v17905_v33  ;;  %16160 = vmatprep.subr.msk.mxu1 %vm17950_vm6, %v25133_v36 }
 0x12c   :  { %16087 = vmatprep.mubr.f32.mxu0 %v18243_v17  ;;  %16121 = vmatprep.mubr.f32.mxu1 %v1104_v56 }
 0x12d   :  { %16126 = vmatprep.subr.mxu0 %v17924_v40  ;;  %16161 = vmatpush3.msk.msra.mxu1 %vm17950_vm6, %v25133_v36 }
 0x12e   :  { %16127 = vmatpush3.msra.mxu0 %v17924_v40  ;;  %16162 = vmatprep.subr.msk.mxu1 %vm17973_vm7, %v25133_v36 }
 0x12f   :  { %16128 = vmatprep.subr.mxu0 %v17945_v48  ;;  %16163 = vmatpush3.msk.msra.mxu1 %vm17973_vm7, %v25133_v36 }
 0x130   :  { %16088 = vmatmul.mubr.f32.gmra.mxu0 %v18264_v38  ;;  %16122 = vmatmul.mubr.f32.gmra.mxu1 %v1114_v39 }
 0x131   :  { %16129 = vmatpush3.msra.mxu0 %v17945_v48  ;;  %16164 = vmatprep.subr.msk.mxu1 %vm17994_vm8, %v25133_v36 }
 0x132   :  { %16090 = vmatprep.mubr.f32.mxu0 %v18295_v10  ;;  %16130 = vmatprep.subr.mxu0 %v17964_v55 }
 0x133   :  { %16165 = vmatpush3.msk.msra.mxu1 %vm17994_vm8, %v25133_v36  ;;  %16168 = vmatprep.mubr.f32.mxu1 %v18219_v5 }
 0x134   :  { %16131 = vmatpush3.msra.mxu0 %v17964_v55  ;;  %16166 = vmatprep.subr.msk.mxu1 %vm18005_vm9, %v25133_v36 }
 0x135   :  { %16132 = vmatprep.subr.mxu0 %v17989_v1  ;;  %16167 = vmatpush3.msk.msra.mxu1 %vm18005_vm9, %v25133_v36 }
 0x136   :  { %16091 = vmatmul.mubr.f32.gmra.mxu0 %v18308_v32  ;;  %16169 = vmatmul.mubr.f32.vlgmr.msra.gmra.mxu1 %v18234_v26 }
 0x137   :  { %16133 = vmatpush3.msra.mxu0 %v17989_v1  ;;  %16093 = vmatprep.mubr.f32.mxu0 %v18321_v63 }
 0x138   :  { %16134 = vmatprep.subr.mxu0 %v18013_v8  ;;  %16171 = vmatprep.mubr.f32.mxu1 %v18227_v23 }
 0x139   :  { %16135 = vmatpush3.msra.mxu0 %v18013_v8  ;;  %16187 = vmatprep.subr.mxu1 %v25139_v27 }
 0x13a   :  { %16136 = vmatprep.subr.mxu0 %v18030_v14  ;;  %16094 = vmatmul.mubr.f32.gmra.mxu0 %v18340_v7 }
 0x13b   :  { %16137 = vmatpush3.msra.mxu0 %v18030_v14  ;;  %16172 = vmatmul.mubr.f32.gmra.mxu1 %v18240_v12 }
 0x13c   :  { %16138 = vmatprep.subr.mxu0 %v18047_v18  ;;  %16140 = vmatprep.mubr.f32.mxu0 %v18219_v5  ;;  %v906_v5 = vand.u32 15, %v17873_v22 }
 0x13d   :  { %16174 = vmatprep.mubr.f32.mxu1 %v18259_v13  ;;  %16139 = vmatpush3.msra.mxu0 %v18047_v18 }
 0x13e   :  { %16141 = vmatmul.mubr.f32.vlgmr.msra.gmra.mxu0 %v18234_v26  ;;  %16180 = vmatprep.subr.mxu0 %v25139_v27  ;;  %vm18478_vm14 = vcmp.eq.s32.totalorder %v906_v5, %v17867_v19  ;;  %vm18483_vm15 = vcmp.eq.s32.totalorder %v906_v5, %v17956_v52  ;;  %v25143_v26 = vmov 0 }
 0x13f   :  { %16175 = vmatmul.mubr.f32.gmra.mxu1 %v18273_v11  ;;  %16143 = vmatprep.mubr.f32.mxu0 %v18227_v23  ;;  %v25140_v23 = vmov 0  ;;  %v25144_v26 = vsel %vm18483_vm15, 4294967295, %v25143_v26 }
 0x140   :  { %16177 = vmatprep.mubr.f32.mxu1 %v18301_v4  ;;  %v25141_v23 = vsel %vm18478_vm14, 4294967295, %v25140_v23  ;;  %25145 = vst [vmem:[#allocation61_spill] sm:$0xff] %v25144_v26  ;;  %16181 = vmatpush3.msk.msra.mxu0 %vm18483_vm15, %v25133_v36 }
 0x141   :  { %25142 = vst [vmem:[#allocation60_spill] sm:$0xff] %v25141_v23  ;;  %16182 = vmatprep.subr.mxu0 %v25139_v27 }
 0x142   :  { %16144 = vmatmul.mubr.f32.gmra.mxu0 %v18240_v12  ;;  %v14288_v12 = vsel %vm18478_vm14, 1.0, %v25139_v27 }
 0x143   :  { %16178 = vmatmul.mubr.f32.gmra.mxu1 %v18318_v47  ;;  %16146 = vmatprep.mubr.f32.mxu0 %v18259_v13  ;;  %v18499_v44 = vsub.f32 %v14288_v12, %v14288_v12 }
 0x144   :  { %16191 = vmatprep.mubr.msk.f32.mxu1 %vm24567_vm0, %v25139_v27  ;;  %16183 = vmatpush3.msk.msra.mxu0 %vm18478_vm14, %v25133_v36 }
 0x145   :  { %25147 = vst [vmem:[#allocation63_spill] sm:$0xff] %v18499_v44  ;;  %v18508_v38 = vand.u32 4294901760, %v18499_v44  ;;  %16194 = vmatprep.subr.mxu0 %v25139_v27 }
 0x146   :  { %16147 = vmatmul.mubr.f32.gmra.mxu0 %v18273_v11 }
 0x147   :  { %16149 = vmatprep.mubr.f32.mxu0 %v18301_v4  ;;  %v14289_v4 = vsel %vm18483_vm15, 1.0, %v25139_v27  ;;  %25149 = vst [vmem:[#allocation65_spill] sm:$0xff] %v18508_v38  ;;  %v1963_v10 = vsub.f32 %v18499_v44, %v18508_v38 }
 0x148   :  { %v18496_v17 = vsub.f32 %v14289_v4, %v14289_v4 }
 0x149   :  { %v18517_v32 = vand.u32 4294901760, %v1963_v10 }
 0x14a   :  { %16150 = vmatmul.mubr.f32.gmra.mxu0 %v18318_v47  ;;  %25146 = vst [vmem:[#allocation62_spill] sm:$0xff] %v18496_v17  ;;  %v18505_v13 = vand.u32 4294901760, %v18496_v17 }
 0x14b   :  { %16184 = vmatprep.mubr.msk.f32.mxu0 %vm24567_vm0, %v25139_v27  ;;  %25151 = vst [vmem:[#allocation67_spill] sm:$0xff] %v18517_v32 }
 0x14c   :  { %25148 = vst [vmem:[#allocation64_spill] sm:$0xff] %v18505_v13  ;;  %v1956_v11 = vsub.f32 %v18496_v17, %v18505_v13 }
 0x14e   :  { %v18515_v30 = vand.u32 4294901760, %v1956_v11 }
 0x150   :  { %25150 = vst [vmem:[#allocation66_spill] sm:$0xff] %v18515_v30  ;;  %16188 = vmatpush3.msra.mxu1 %v18515_v30 }
 0x151   :  { %16189 = vmatprep.subr.mxu1 %v25139_v27 }
 0x152   :  { %16190 = vmatpush3.msra.mxu1 %v18517_v32 }
 0x153   :  { %16201 = vmatprep.subr.mxu1 %v25139_v27 }
 0x1c9   :  { %v16058_v47 = vpop.f32.mrf.mxu1 }
 0x1cb   :  { %v1229_v63 = vpop.f32.mrf.mxu1 }
 0x1ce   :  { %v16061_v20 = vpop.f32.mrf.mxu1 }
 0x1d0   :  { %v1241_v56 = vpop.f32.mrf.mxu1 }
 0x1d2   :  { %v16030_v7 = vpop.f32.mrf.mxu0  ;;  %v16064_v39 = vpop.f32.mrf.mxu1 }
 0x1d3   :  { %v1236_v49 = vadd.f32 %v16058_v47, %v16030_v7 }
 0x1d4   :  { %v1048_v21 = vpop.f32.mrf.mxu0  ;;  %v1253_v45 = vpop.f32.mrf.mxu1 }
 0x1d5   :  { %v1230_v28 = vadd.f32 %v1229_v63, %v1048_v21 }
 0x1d8   :  { %v16033_v60 = vpop.f32.mrf.mxu0  ;;  %v16067_v61 = vpop.f32.mrf.mxu1 }
 0x1d9   :  { %v1248_v58 = vadd.f32 %v16061_v20, %v16033_v60 }
 0x1da   :  { %v1068_v53 = vpop.f32.mrf.mxu0  ;;  %v1265_v46 = vpop.f32.mrf.mxu1 }
 0x1db   :  { %v1242_v29 = vadd.f32 %v1241_v56, %v1068_v53 }
 0x1de   :  { %v16036_v5 = vpop.f32.mrf.mxu0  ;;  %v16114_v4 = vpop.f32.mrf.mxu1 }
 0x1df   :  { %v1260_v25 = vadd.f32 %v16064_v39, %v16036_v5 }
 0x1e0   :  { %v1088_v12 = vpop.f32.mrf.mxu0  ;;  %v1489_v11 = vpop.f32.mrf.mxu1 }
 0x1e1   :  { %v1254_v62 = vadd.f32 %v1253_v45, %v1088_v12 }
 0x1e4   :  { %v16039_v10 = vpop.f32.mrf.mxu0  ;;  %v16117_v52 = vpop.f32.mrf.mxu1 }
 0x1e6   :  { %v1108_v18 = vpop.f32.mrf.mxu0  ;;  %v1505_v14 = vpop.f32.mrf.mxu1 }
 0x1ea   :  { %v16086_v8 = vpop.f32.mrf.mxu0  ;;  %v16120_v1 = vpop.f32.mrf.mxu1 }
 0x1eb   :  { %v1367_v6 = vadd.f32 %v16086_v8, %v1236_v49  ;;  %v1272_v49 = vadd.f32 %v16067_v61, %v16039_v10 }
 0x1ec   :  { %v1359_v55 = vpop.f32.mrf.mxu0  ;;  %v1521_v48 = vpop.f32.mrf.mxu1 }
 0x1ed   :  { %v1360_v50 = vadd.f32 %v1359_v55, %v1230_v28  ;;  %v1498_v22 = vadd.f32 %v16114_v4, %v1367_v6 }
 0x1ef   :  { %v1490_v59 = vadd.f32 %v1489_v11, %v1360_v50 }
 0x1f0   :  { %v16089_v40 = vpop.f32.mrf.mxu0  ;;  %v16123_v33 = vpop.f32.mrf.mxu1 }
 0x1f1   :  { %v1381_v24 = vadd.f32 %v16089_v40, %v1248_v58  ;;  %v1266_v58 = vadd.f32 %v1265_v46, %v1108_v18 }
 0x1f2   :  { %v1373_v15 = vpop.f32.mrf.mxu0  ;;  %v1537_v9 = vpop.f32.mrf.mxu1 }
 0x1f3   :  { %v1374_v31 = vadd.f32 %v1373_v15, %v1242_v29  ;;  %v1514_v63 = vadd.f32 %v16117_v52, %v1381_v24 }
 0x1f5   :  { %v1506_v40 = vadd.f32 %v1505_v14, %v1374_v31 }
 0x1f6   :  { %v16092_v2 = vpop.f32.mrf.mxu0  ;;  %v16170_v57 = vpop.f32.mrf.mxu1 }
 0x1f7   :  { %v1395_v7 = vadd.f32 %v16092_v2, %v1260_v25 }
 0x1f8   :  { %v1387_v41 = vpop.f32.mrf.mxu0  ;;  %v1761_v34 = vpop.f32.mrf.mxu1 }
 0x1f9   :  { %v1388_v8 = vadd.f32 %v1387_v41, %v1254_v62  ;;  %v1530_v50 = vadd.f32 %v16120_v1, %v1395_v7 }
 0x1fa   :  { %v16095_v3 = vpop.f32.mrf.mxu0 }
 0x1fb   :  { %v16173_v42 = vpop.f32.mrf.mxu1  ;;  %v1409_v39 = vadd.f32 %v16095_v3, %v1272_v49  ;;  %v1522_v24 = vadd.f32 %v1521_v48, %v1388_v8 }
 0x1fc   :  { %v1401_v35 = vpop.f32.mrf.mxu0 }
 0x1fd   :  { %v1773_v54 = vpop.f32.mrf.mxu1  ;;  %v1402_v15 = vadd.f32 %v1401_v35, %v1266_v58  ;;  %v1546_v31 = vadd.f32 %v16123_v33, %v1409_v39 }
 0x1fe   :  { %v16142_v43 = vpop.f32.mrf.mxu0 }
 0x1ff   :  { %v1647_v19 = vadd.f32 %v16142_v43, %v1498_v22  ;;  %v16176_v20 = vpop.f32.mrf.mxu1  ;;  %v1538_v62 = vadd.f32 %v1537_v9, %v1402_v15 }
 0x200   :  { %v1640_v47 = vpop.f32.mrf.mxu0 }
 0x201   :  { %v1641_v0 = vadd.f32 %v1640_v47, %v1490_v59  ;;  %v1768_v55 = vadd.f32 %v16170_v57, %v1647_v19  ;;  %v1785_v2 = vpop.f32.mrf.mxu1 }
 0x202   :  { %v16145_v28 = vpop.f32.mrf.mxu0 }
 0x203   :  { %v1762_v21 = vadd.f32 %v1761_v34, %v1641_v0  ;;  %v1659_v56 = vadd.f32 %v16145_v28, %v1514_v63  ;;  %v1809_v41 = vsel %vm24564_vm1, %v1768_v55, 0.0  ;;  %v16179_v3 = vpop.f32.mrf.mxu1 }
 0x204   :  { %v1652_v6 = vpop.f32.mrf.mxu0 }
 0x205   :  { %v1808_v22 = vsel %vm24564_vm1, %v1762_v21, 0.0  ;;  %v1653_v29 = vadd.f32 %v1652_v6, %v1506_v40  ;;  %v1780_v52 = vadd.f32 %v16173_v42, %v1659_v56  ;;  %v1797_v46 = vpop.f32.mrf.mxu1 }
 0x206   :  { %v16148_v43 = vpop.f32.mrf.mxu0  ;;  %v1810_v34 = vadd.f32 %v1809_v41, %v1808_v22 }
 0x207   :  { %v1774_v25 = vadd.f32 %v1773_v54, %v1653_v29  ;;  %v1671_v19 = vadd.f32 %v16148_v43, %v1530_v50  ;;  %v1813_v35 = vsel %vm24564_vm1, %v1780_v52, 0.0 }
 0x208   :  { %v1664_v57 = vpop.f32.mrf.mxu0 }
 0x209   :  { %v1811_v14 = vsel %vm24564_vm1, %v1774_v25, 0.0  ;;  %v1665_v18 = vadd.f32 %v1664_v57, %v1522_v24  ;;  %v1792_v1 = vadd.f32 %v16176_v20, %v1671_v19  ;;  %v770_v19 = vld [vmem:[%s24462_s4] sm:$0x1] }
 0x20a   :  { %v1812_v0 = vadd.f32 %v1811_v14, %v1810_v34  ;;  %v16151_v59 = vpop.f32.mrf.mxu0 }
 0x20b   :  { %v1786_v45 = vadd.f32 %v1785_v2, %v1665_v18  ;;  %v1683_v48 = vadd.f32 %v16151_v59, %v1546_v31  ;;  %v1822_v5 = vsel %vm24564_vm1, %v1792_v1, 0.0  ;;  %v769_v2 = vld [vmem:[%s24461_s3] sm:$0x1]  ;;  %s17742_s3 = smov 64  }
 0x20c   :  { %v1814_v60 = vadd.f32 %v1813_v35, %v1812_v0  ;;  %v1676_v61 = vpop.f32.mrf.mxu0 }
 0x20d   :  { %v1821_v42 = vsel %vm24564_vm1, %v1786_v45, 0.0  ;;  %v1677_v54 = vadd.f32 %v1676_v61, %v1538_v62  ;;  %v1804_v4 = vadd.f32 %v16179_v3, %v1683_v48  ;;  %v3408_v45 = vld [vmem:[#allocation5 + $0x78] sm:$0xff]  ;;  %v3407_v48 = vld [vmem:[#allocation5 + $0x70] sm:$0xff]  ;;  %v3405_v61 = vld [vmem:[#allocation5 + $0x60] sm:$0xff] }
 0x20e   :  { %v1815_v53 = vrot.slane %v1814_v60, 4  ;;  %v1823_v11 = vadd.f32 %v1822_v5, %v1821_v42  ;;  %v3404_v42 = vld [vmem:[#allocation5 + $0x58] sm:$0xff] }
 0x20f   :  { %v1798_v33 = vadd.f32 %v1797_v46, %v1677_v54  ;;  %v1826_v7 = vsel %vm24564_vm1, %v1804_v4, 0.0  ;;  %v3403_v54 = vld [vmem:[#allocation5 + $0x50] sm:$0xff]  ;;  %v3401_v46 = vld [vmem:[#allocation5 + $0x40] sm:$0xff]  ;;  %v3400_v5 = vld [vmem:[#allocation5 + $0x38] sm:$0xff] }
 0x210   :  { %v1816_v12 = vadd.f32 %v1815_v53, %v1814_v60  ;;  %v3406_v60 = vld [vmem:[#allocation5 + $0x68] sm:$0xff]  ;;  %v3399_v4 = vld [vmem:[#allocation5 + $0x30] sm:$0xff] }
 0x211   :  { %v1824_v9 = vsel %vm24564_vm1, %v1798_v33, 0.0  ;;  %v3402_v53 = vld [vmem:[#allocation5 + $0x48] sm:$0xff] }
 0x212   :  { %v1817_v10 = vrot.slane %v1816_v12, 2  ;;  %v1825_v47 = vadd.f32 %v1824_v9, %v1823_v11  ;;  %v3398_v33 = vld [vmem:[#allocation5 + $0x28] sm:$0xff]  ;;  %v3396_v11 = vld [vmem:[#allocation5 + $0x18] sm:$0xff]  ;;  %v3395_v9 = vld [vmem:[#allocation5 + $0x10] sm:$0xff] }
 0x214   :  { %v1818_v63 = vadd.f32 %v1817_v10, %v1816_v12  ;;  %v1827_v49 = vadd.f32 %v1826_v7, %v1825_v47  ;;  %v3397_v12 = vld [vmem:[#allocation5 + $0x20] sm:$0xff]  ;;  %v3394_v10 = vld [vmem:[#allocation5 + $0x8] sm:$0xff]  ;;  %v3416_v7 = vld [vmem:[#allocation5 + $0xb8] sm:$0xff] }
 0x215   :  { %v3393_v47 = vld [vmem:[#allocation5] sm:$0xff] }
 0x216   :  { %v1819_v8 = vrot.slane %v1818_v63, 1  ;;  %v1828_v20 = vrot.slane %v1827_v49, 4 }
 0x218   :  { %v1829_v28 = vadd.f32 %v1828_v20, %v1827_v49  ;;  %v1820_v55 = vadd.f32 %v1819_v8, %v1818_v63  ;;  %v3415_v63 = vld [vmem:[#allocation5 + $0xb0] sm:$0xff]  ;;  %v3414_v8 = vld [vmem:[#allocation5 + $0xa8] sm:$0xff] }
 0x21a   :  { %v1830_v21 = vrot.slane %v1829_v28, 2  ;;  %v1834_v40 = vmul.f32 0.0078125, %v1820_v55 }
 0x21c   :  { %v1831_v56 = vadd.f32 %v1830_v21, %v1829_v28  ;;  %v1836_v39 = vmul.f32 %v1834_v40, %v1834_v40  ;;  %v3413_v28 = vld [vmem:[#allocation5 + $0xa0] sm:$0xff]  ;;  %v3412_v21 = vld [vmem:[#allocation5 + $0x98] sm:$0xff] }
 0x21e   :  { %v1832_v58 = vrot.slane %v1831_v56, 1 }
 0x220   :  { %v1833_v6 = vadd.f32 %v1832_v58, %v1831_v56 }
 0x222   :  { %v1835_v22 = vmul.f32 0.0078125, %v1833_v6 }
 0x224   :  { %v1837_v29 = vsub.f32 %v1835_v22, %v1836_v39  ;;  %v3410_v39 = vld [vmem:[#allocation5 + $0x88] sm:$0xff] }
 0x226   :  { %v1838_v50 = vmax.f32 %v1837_v29, 0.0 }
 0x228   :  { %v1839_v15 = vadd.f32 1e-05, %v1838_v50 }
 0x22a   :  { %17627 = vrsqrt.f32 %v1839_v15 }
 0x237   :  { %v17628_v43 = vpop.eup %17627 }
 0x238   :  { %v1841_v24 = vmul.f32 %v17628_v43, %v769_v2 }
 0x23a   :  { %v1845_v41 = vsel %vm24564_vm1, %v1841_v24, 0  ;;  %v1842_v52 = vmul.f32 %v1841_v24, %v1834_v40  ;;  %v3411_v40 = vld [vmem:[#allocation5 + $0x90] sm:$0xff] }
 0x23b   :  { %v1914_v25 = vand.u32 4294901760, %v1845_v41 }
 0x23c   :  { %v1843_v57 = vsub.f32 %v770_v19, %v1842_v52 }
 0x23d   :  { %16192 = vmatmul.mubr.f32.vlgmr.msra.gmra.mxu1 %v1914_v25  ;;  %v1915_v34 = vsub.f32 %v1845_v41, %v1914_v25 }
 0x23e   :  { %16202 = vmatpush3.msk.msra.mxu1 %vm18483_vm15, %v25133_v36  ;;  %16205 = vmatprep.mubr.msk.f32.mxu1 %vm24567_vm0, %v25139_v27  ;;  %v2307_v31 = vsel %vm24564_vm1, %v1843_v57, 0 }
 0x23f   :  { %16203 = vmatprep.subr.mxu1 %v25139_v27  ;;  %v1916_v14 = vand.u32 4294901760, %v1915_v34  ;;  %v2376_v0 = vand.u32 4294901760, %v2307_v31 }
 0x240   :  { %16204 = vmatpush3.msk.msra.mxu1 %vm18478_vm14, %v25133_v36 }
 0x241   :  { %v1917_v18 = vsub.f32 %v1915_v34, %v1916_v14  ;;  %16206 = vmatmul.mubr.f32.vlgmr.msra.gmra.mxu1 %v1916_v14  ;;  %16215 = vmatprep.subr.mxu1 %v25139_v27  ;;  %v2377_v59 = vsub.f32 %v2307_v31, %v2376_v0 }
 0x242   :  { %16216 = vmatpush3.msk.msra.mxu1 %vm18483_vm15, %v25133_v36  ;;  %16219 = vmatprep.mubr.msk.f32.mxu1 %vm24567_vm0, %v25139_v27 }
 0x243   :  { %v1918_v3 = vand.u32 4294901760, %v1917_v18  ;;  %16217 = vmatprep.subr.mxu1 %v25139_v27  ;;  %v2378_v62 = vand.u32 4294901760, %v2377_v59 }
 0x244   :  { %16218 = vmatpush3.msk.msra.mxu1 %vm18478_vm14, %v25133_v36 }
 0x245   :  { %16185 = vmatmul.mubr.f32.vlgmr.msra.gmra.mxu0 %v1918_v3  ;;  %16220 = vmatmul.mubr.f32.vlgmr.msra.gmra.mxu1 %v1914_v25  ;;  %v2379_v35 = vsub.f32 %v2377_v59, %v2378_v62 }
 0x246   :  { %16195 = vmatpush3.msra.mxu0 %v18496_v17  ;;  %16229 = vmatprep.subr.mxu1 %v25139_v27 }
 0x247   :  { %16196 = vmatprep.subr.mxu0 %v25139_v27  ;;  %16230 = vmatpush3.msra.mxu1 %v18515_v30  ;;  %v2380_v1 = vand.u32 4294901760, %v2379_v35  ;;  %v25235_v30 = vld [vmem:[#allocation37_spill] sm:$0xff] }
 0x248   :  { %16197 = vmatpush3.msra.mxu0 %v18499_v44  ;;  %16231 = vmatprep.subr.mxu1 %v25139_v27 }
 0x249   :  { %16198 = vmatprep.mubr.msk.f32.mxu0 %vm24567_vm0, %v25139_v27  ;;  %16208 = vmatprep.subr.mxu0 %v25139_v27 }
 0x24a   :  { %16232 = vmatpush3.msra.mxu1 %v18517_v32  ;;  %16233 = vmatprep.mubr.msk.f32.mxu1 %vm24567_vm0, %v25139_v27 }
 0x24b   :  { %16199 = vmatmul.mubr.f32.vlgmr.msra.gmra.mxu0 %v1915_v34  ;;  %16234 = vmatmul.mubr.f32.vlgmr.msra.gmra.mxu1 %v2376_v0 }
 0x24c   :  { %16209 = vmatpush3.msra.mxu0 %v18505_v13  ;;  %16243 = vmatprep.subr.mxu1 %v25139_v27 }
 0x24d   :  { %16210 = vmatprep.subr.mxu0 %v25139_v27  ;;  %16244 = vmatpush3.msk.msra.mxu1 %vm18483_vm15, %v25133_v36 }
 0x24e   :  { %16211 = vmatpush3.msra.mxu0 %v18508_v38  ;;  %16245 = vmatprep.subr.mxu1 %v25139_v27 }
 0x24f   :  { %16212 = vmatprep.mubr.msk.f32.mxu0 %vm24567_vm0, %v25139_v27  ;;  %16222 = vmatprep.subr.mxu0 %v25139_v27 }
 0x250   :  { %16246 = vmatpush3.msk.msra.mxu1 %vm18478_vm14, %v25133_v36  ;;  %16247 = vmatprep.mubr.msk.f32.mxu1 %vm24567_vm0, %v25139_v27 }
 0x251   :  { %16213 = vmatmul.mubr.f32.vlgmr.msra.gmra.mxu0 %v1914_v25  ;;  %16248 = vmatmul.mubr.f32.vlgmr.msra.gmra.mxu1 %v2378_v62 }
 0x252   :  { %16223 = vmatpush3.msk.msra.mxu0 %vm18483_vm15, %v25133_v36  ;;  %16257 = vmatprep.subr.mxu1 %v25139_v27 }
 0x253   :  { %16224 = vmatprep.subr.mxu0 %v25139_v27  ;;  %16258 = vmatpush3.msk.msra.mxu1 %vm18483_vm15, %v25133_v36 }
 0x254   :  { %16225 = vmatpush3.msk.msra.mxu0 %vm18478_vm14, %v25133_v36  ;;  %16259 = vmatprep.subr.mxu1 %v25139_v27 }
 0x255   :  { %16226 = vmatprep.mubr.msk.f32.mxu0 %vm24567_vm0, %v25139_v27  ;;  %16236 = vmatprep.subr.mxu0 %v25139_v27 }
 0x256   :  { %16260 = vmatpush3.msk.msra.mxu1 %vm18478_vm14, %v25133_v36  ;;  %16261 = vmatprep.mubr.msk.f32.mxu1 %vm24567_vm0, %v25139_v27 }
 0x257   :  { %16227 = vmatmul.mubr.f32.vlgmr.msra.gmra.mxu0 %v2380_v1  ;;  %16262 = vmatmul.mubr.f32.vlgmr.msra.gmra.mxu1 %v2376_v0 }
 0x258   :  { %16237 = vmatpush3.msra.mxu0 %v18496_v17  ;;  %16240 = vmatprep.mubr.msk.f32.mxu0 %vm24567_vm0, %v25139_v27  ;;  %v25229_v17 = vld [vmem:[#allocation34_spill] sm:$0xff] }
 0x259   :  { %16238 = vmatprep.subr.mxu0 %v25139_v27 }
 0x25a   :  { %16239 = vmatpush3.msra.mxu0 %v18499_v44 }
 0x25b   :  { %16250 = vmatprep.subr.mxu0 %v25139_v27  ;;  %16241 = vmatmul.mubr.f32.vlgmr.msra.gmra.mxu0 %v2377_v59 }
 0x25c   :  { %16251 = vmatpush3.msra.mxu0 %v18505_v13  ;;  %16254 = vmatprep.mubr.msk.f32.mxu0 %vm24567_vm0, %v25139_v27 }
 0x25d   :  { %16252 = vmatprep.subr.mxu0 %v25139_v27 }
 0x25e   :  { %16253 = vmatpush3.msra.mxu0 %v18508_v38 }
 0x25f   :  { %16255 = vmatmul.mubr.f32.vlgmr.msra.gmra.mxu0 %v2376_v0  ;;  %3439 = vmatprep.subr.mxu0 %v25139_v27 }
 0x260   :  { %3440 = vmatpush1.msra.mxu0 %v3408_v45 }
 0x261   :  { %3441 = vmatprep.subr.mxu0 %v25139_v27 }
 0x262   :  { %3442 = vmatpush1.msra.mxu0 %v3407_v48 }
 0x263   :  { %3443 = vmatprep.subr.mxu0 %v25139_v27 }
 0x264   :  { %3444 = vmatpush1.msra.mxu0 %v3406_v60 }
 0x265   :  { %3445 = vmatprep.subr.mxu0 %v25139_v27 }
 0x266   :  { %3446 = vmatpush1.msra.mxu0 %v3405_v61  ;;  %v17741_v61 = vmov 1983009808  }
 0x267   :  { %3447 = vmatprep.subr.mxu0 %v25139_v27 }
 0x268   :  { %3448 = vmatpush1.msra.mxu0 %v3404_v42  ;;  %v3129_v42 = vunpack.c.l.s4 %v17741_v61 }
 0x269   :  { %3449 = vmatprep.subr.mxu0 %v25139_v27 }
 0x26a   :  { %3450 = vmatpush1.msra.mxu0 %v3403_v54 }
 0x26b   :  { %3451 = vmatprep.subr.mxu0 %v25139_v27 }
 0x26c   :  { %3452 = vmatpush1.msra.mxu0 %v3402_v53 }
 0x26d   :  { %3453 = vmatprep.subr.mxu0 %v25139_v27 }
 0x26e   :  { %3454 = vmatpush1.msra.mxu0 %v3401_v46 }
 0x26f   :  { %3455 = vmatprep.subr.mxu0 %v25139_v27 }
 0x270   :  { %3456 = vmatpush1.msra.mxu0 %v3400_v5 }
 0x271   :  { %3457 = vmatprep.subr.mxu0 %v25139_v27 }
 0x272   :  { %3458 = vmatpush1.msra.mxu0 %v3399_v4 }
 0x273   :  { %3459 = vmatprep.subr.mxu0 %v25139_v27 }
 0x274   :  { %3460 = vmatpush1.msra.mxu0 %v3398_v33  ;;  %v3130_v33 = vunpack.c.0.s8 %v3129_v42 }
 0x275   :  { %3461 = vmatprep.subr.mxu0 %v25139_v27 }
 0x276   :  { %3462 = vmatpush1.msra.mxu0 %v3397_v12 }
 0x277   :  { %3463 = vmatprep.subr.mxu0 %v25139_v27 }
 0x278   :  { %3464 = vmatpush1.msra.mxu0 %v3396_v11 }
 0x279   :  { %3465 = vmatprep.subr.mxu0 %v25139_v27 }
 0x27a   :  { %3466 = vmatpush1.msra.mxu0 %v3395_v9  ;;  %v25152_v9 = vld [vmem:[#allocation55_spill] sm:$0xff] }
 0x27b   :  { %3467 = vmatprep.subr.mxu0 %v25139_v27 }
 0x27c   :  { %3468 = vmatpush1.msra.mxu0 %v3394_v10 }
 0x27d   :  { %3469 = vmatprep.subr.mxu0 %v25139_v27 }
 0x27e   :  { %3470 = vmatpush1.msra.mxu0 %v3393_v47 }
 0x27f   :  { %3487 = vmatprep.subr.mxu0 %v25139_v27 }
 0x280   :  { %3488 = vmatpush2.msra.mxu0 %v3416_v7  ;;  %v25153_v7 = vld [vmem:[#allocation58_spill] sm:$0xff] }
 0x281   :  { %3489 = vmatprep.subr.mxu0 %v25139_v27 }
 0x282   :  { %3490 = vmatpush2.msra.mxu0 %v3415_v63 }
 0x283   :  { %3491 = vmatprep.subr.mxu0 %v25139_v27 }
 0x284   :  { %3492 = vmatpush2.msra.mxu0 %v3414_v8 }
 0x285   :  { %3493 = vmatprep.subr.mxu0 %v25139_v27 }
 0x286   :  { %3494 = vmatpush2.msra.mxu0 %v3413_v28 }
 0x287   :  { %3495 = vmatprep.subr.mxu0 %v25139_v27 }
 0x288   :  { %3496 = vmatpush2.msra.mxu0 %v3412_v21 }
 0x289   :  { %3497 = vmatprep.subr.mxu0 %v25139_v27 }
 0x28a   :  { %3498 = vmatpush2.msra.mxu0 %v3411_v40 }
 0x28b   :  { %3499 = vmatprep.subr.mxu0 %v25139_v27 }
 0x28c   :  { %3500 = vmatpush2.msra.mxu0 %v3410_v39  ;;  %v25158_v39 = vld [vmem:[#allocation56_spill] sm:$0xff] }
 0x28d   :  { %3501 = vmatprep.subr.mxu0 %v25139_v27 }
 0x2fd   :  { %v2001_v49 = vpop.f32.mrf.mxu1 }
 0x2ff   :  { %v16193_v20 = vpop.f32.mrf.mxu1 }
 0x301   :  { %v2152_v55 = vpop.f32.mrf.mxu1 }
 0x303   :  { %v16207_v56 = vpop.f32.mrf.mxu1 }
 0x304   :  { %v25155_v56 = vld [vmem:[#allocation11_spill] sm:$0xff] }
 0x305   :  { %v1920_v58 = vpop.f32.mrf.mxu0  ;;  %v2302_v6 = vpop.f32.mrf.mxu1  ;;  %v18649_v40 = vsub.s32 %v3130_v33, %v25155_v56 }
 0x306   :  { %v2002_v50 = vadd.f32 %v2001_v49, %v1920_v58  ;;  %v25154_v49 = vld [vmem:[#allocation57_spill] sm:$0xff] }
 0x307   :  { %v16186_v22 = vpop.f32.mrf.mxu0  ;;  %v16221_v29 = vpop.f32.mrf.mxu1  ;;  %25156 = vst [vmem:[#allocation55_spill] sm:$0xff] %v18649_v40 }
 0x308   :  { %v25159_v22 = vld [vmem:[#allocation52_spill] sm:$0xff] }
 0x30b   :  { %v2077_v15 = vpop.f32.mrf.mxu0  ;;  %v2463_v2 = vpop.f32.mrf.mxu1 }
 0x30c   :  { %v2078_v43 = vadd.f32 %v2077_v15, %v2002_v50 }
 0x30d   :  { %v16200_v24 = vpop.f32.mrf.mxu0  ;;  %v16235_v41 = vpop.f32.mrf.mxu1 }
 0x30e   :  { %v2153_v52 = vadd.f32 %v2152_v55, %v2078_v43 }
 0x311   :  { %v2229_v25 = vpop.f32.mrf.mxu0  ;;  %v2614_v19 = vpop.f32.mrf.mxu1 }
 0x312   :  { %v2230_v14 = vadd.f32 %v2229_v25, %v2153_v52 }
 0x313   :  { %v16214_v34 = vpop.f32.mrf.mxu0  ;;  %v16249_v57 = vpop.f32.mrf.mxu1 }
 0x314   :  { %v2303_v3 = vadd.f32 %v2302_v6, %v2230_v14  ;;  %v25157_v6 = vld [vmem:[#allocation54_spill] sm:$0xff] }
 0x316   :  { %v2771_v45 = vrot.slane %v2303_v3, %v18121_v37 }
 0x317   :  { %v2382_v18 = vpop.f32.mrf.mxu0  ;;  %v2764_v31 = vpop.f32.mrf.mxu1 }
 0x318   :  { %v2464_v62 = vadd.f32 %v2463_v2, %v2382_v18  ;;  %v2773_v46 = vcombine.high %v2771_v45, %v2771_v45  ;;  %v2775_v12 = vmul.f32 %v2771_v45, %v18182_v16  ;;  %v2777_v11 = vmul.f32 %v2771_v45, %v18191_v51  ;;  %v25160_v2 = vld [vmem:[#allocation59_spill] sm:$0xff] }
 0x319   :  { %v16228_v0 = vpop.f32.mrf.mxu0  ;;  %v16263_v59 = vpop.f32.mrf.mxu1  ;;  %v2779_v10 = vmul.f32 %v2771_v45, %v25152_v9  ;;  %v2781_v63 = vmul.f32 %v2771_v45, %v25153_v7 }
 0x31a   :  { %v2778_v8 = vmul.f32 %v2773_v46, %v25154_v49  ;;  %v2776_v16 = vmul.f32 %v2773_v46, %v25157_v6  ;;  %v2780_v51 = vmul.f32 %v2773_v46, %v25158_v39  ;;  %v2782_v43 = vmul.f32 %v2773_v46, %v25160_v2 }
 0x31b   :  { %v2539_v35 = vpop.f32.mrf.mxu0 }
 0x31c   :  { %v2540_v1 = vadd.f32 %v2539_v35, %v2464_v62 }
 0x31d   :  { %v16242_v48 = vpop.f32.mrf.mxu0 }
 0x31e   :  { %v2615_v60 = vadd.f32 %v2614_v19, %v2540_v1 }
 0x31f   :  { %v2691_v54 = vpop.f32.mrf.mxu0 }
 0x320   :  { %v2692_v53 = vadd.f32 %v2691_v54, %v2615_v60 }
 0x321   :  { %v16256_v5 = vpop.f32.mrf.mxu0 }
 0x322   :  { %v2765_v4 = vadd.f32 %v2764_v31, %v2692_v53 }
 0x324   :  { %v2786_v47 = vrot.slane %v2765_v4, %v18121_v37 }
 0x326   :  { %v2788_v20 = vcombine.high %v2786_v47, %v2786_v47  ;;  %v2790_v28 = vadd.f32 %v2786_v47, %v2775_v12  ;;  %v2792_v55 = vadd.f32 %v2786_v47, %v2777_v11  ;;  %v2794_v21 = vadd.f32 %v2786_v47, %v2779_v10 }
 0x327   :  { %v2796_v58 = vadd.f32 %v2786_v47, %v2781_v63 }
 0x328   :  { %v2812_v29 = vrot.slane %v2790_v28, %v25159_v22  ;;  %v2860_v50 = vrot.slane %v2792_v55, %v25159_v22  ;;  %v2793_v15 = vadd.f32 %v2788_v20, %v2778_v8  ;;  %v18657_v24 = vrot.slane %v2794_v21, %v25159_v22 }
 0x329   :  { %v18660_v41 = vrot.slane %v2796_v58, %v25159_v22  ;;  %v2791_v52 = vadd.f32 %v2788_v20, %v2776_v16  ;;  %v2795_v25 = vadd.f32 %v2788_v20, %v2780_v51  ;;  %v18667_v0 = vadd.f32 %v2788_v20, %v2782_v43  ;;  %v3409_v58 = vld [vmem:[#allocation5 + $0x80] sm:$0xff] }
 0x32a   :  { %v2813_v19 = vcombine.high %v2812_v29, %v2812_v29  ;;  %v2861_v34 = vcombine.high %v2860_v50, %v2860_v50  ;;  %v2868_v57 = vrot.slane %v2860_v50, %v25159_v22  ;;  %v2820_v14 = vrot.slane %v2812_v29, %v25159_v22  ;;  %3502 = vmatpush2.msra.mxu0 %v3409_v58 }
 0x32b   :  { %v2884_v18 = vrot.slane %v2793_v15, %v25159_v22  ;;  %v2836_v31 = vrot.slane %v2791_v52, %v25159_v22  ;;  %v2932_v3 = vrot.slane %v2795_v25, %v25159_v22 }
 0x32c   :  { %v2875_v59 = vrot.slane %v2861_v34, %v25159_v22  ;;  %v2876_v62 = vcombine.high %v2868_v57, %v2868_v57  ;;  %v3033_v35 = vrot.slane %v2868_v57, %v18121_v37  ;;  %v2827_v1 = vrot.slane %v2813_v19, %v25159_v22 }
 0x32d   :  { %v2828_v45 = vcombine.high %v2820_v14, %v2820_v14  ;;  %v3001_v48 = vrot.slane %v2820_v14, %v18121_v37  ;;  %v2885_v60 = vcombine.high %v2884_v18, %v2884_v18  ;;  %v2892_v61 = vrot.slane %v2884_v18, %v25159_v22 }
 0x32e   :  { %v2877_v42 = vcombine.high %v2875_v59, %v2875_v59  ;;  %v3037_v54 = vrot.slane %v2875_v59, %v18121_v37  ;;  %v3041_v53 = vrot.slane %v2876_v62, %v18121_v37  ;;  %v2829_v46 = vcombine.high %v2827_v1, %v2827_v1 }
 0x32f   :  { %v3005_v5 = vrot.slane %v2827_v1, %v18121_v37  ;;  %v3009_v4 = vrot.slane %v2828_v45, %v18121_v37  ;;  %v2899_v33 = vrot.slane %v2885_v60, %v25159_v22  ;;  %v2900_v12 = vcombine.high %v2892_v61, %v2892_v61 }
 0x330   :  { %v3045_v11 = vrot.slane %v2877_v42, %v18121_v37  ;;  %v3160_v9 = vcombine.low %v3033_v35, %v3037_v54  ;;  %v3013_v10 = vrot.slane %v2829_v46, %v18121_v37  ;;  %v3049_v47 = vrot.slane %v2892_v61, %v18121_v37 }
 0x331   :  { %v3126_v7 = vcombine.low %v3001_v48, %v3005_v5  ;;  %v2901_v63 = vcombine.high %v2899_v33, %v2899_v33  ;;  %v3053_v49 = vrot.slane %v2899_v33, %v18121_v37  ;;  %v3057_v8 = vrot.slane %v2900_v12, %v18121_v37 }
 0x332   :  { %v3161_v20 = vcombine.low %v3041_v53, %v3045_v11  ;;  %v3168_v28 = vrot.slane %v3160_v9, %v18649_v40  ;;  %v3127_v55 = vcombine.low %v3009_v4, %v3013_v10  ;;  %v2837_v21 = vcombine.high %v2836_v31, %v2836_v31 }
 0x333   :  { %v3134_v6 = vrot.slane %v3126_v7, %v18649_v40  ;;  %v3061_v16 = vrot.slane %v2901_v63, %v18121_v37  ;;  %v3177_v39 = vcombine.low %v3049_v47, %v3053_v49  ;;  %v2844_v51 = vrot.slane %v2836_v31, %v25159_v22 }
 0x334   :  { %v3175_v29 = vrot.slane %v3161_v20, %v18649_v40  ;;  %v3141_v50 = vrot.slane %v3127_v55, %v18649_v40  ;;  %v2851_v15 = vrot.slane %v2837_v21, %v25159_v22  ;;  %v2933_v2 = vcombine.high %v2932_v3, %v2932_v3 }
 0x335   :  { %v3178_v43 = vcombine.low %v3057_v8, %v3061_v16  ;;  %v3185_v52 = vrot.slane %v3177_v39, %v18649_v40  ;;  %v2852_v25 = vcombine.high %v2844_v51, %v2844_v51  ;;  %v2909_v19 = vcombine.high %v18657_v24, %v18657_v24 }
 0x336   :  { %v3176_v34 = vcombine.low %v3168_v28, %v3175_v29  ;;  %v3142_v57 = vcombine.low %v3134_v6, %v3141_v50  ;;  %v2853_v14 = vcombine.high %v2851_v15, %v2851_v15  ;;  %v3021_v18 = vrot.slane %v2851_v15, %v18121_v37 }
 0x337   :  { %v3192_v31 = vrot.slane %v3178_v43, %v18649_v40  ;;  %v3017_v59 = vrot.slane %v2844_v51, %v18121_v37  ;;  %v2940_v62 = vrot.slane %v2932_v3, %v25159_v22  ;;  %v2947_v35 = vrot.slane %v2933_v2, %v25159_v22 }
 0x338   :  { %v3264_v1 = vrot.slane %v3176_v34, 7  ;;  %v3262_v45 = vrot.slane %v3142_v57, 7  ;;  %v3025_v48 = vrot.slane %v2852_v25, %v18121_v37  ;;  %v3029_v60 = vrot.slane %v2853_v14, %v18121_v37 }
 0x339   :  { %v3193_v61 = vcombine.low %v3185_v52, %v3192_v31  ;;  %v3143_v42 = vcombine.low %v3017_v59, %v3021_v18  ;;  %v2948_v54 = vcombine.high %v2940_v62, %v2940_v62  ;;  %v2949_v53 = vcombine.high %v2947_v35, %v2947_v35 }
 0x33a   :  { %v18702_v46 = vsel %vm24565_vm10, 0.0, %v3264_v1  ;;  %v18705_v5 = vsel %vm24565_vm10, %v3264_v1, 0.0  ;;  %v18708_v3 = vsel %vm24565_vm10, 0.0, %v3262_v45  ;;  %v3286_v4 = vsel %vm24565_vm10, %v3262_v45, 0.0 }
 0x33b   :  { %v3318_v33 = vrot.slane %v18702_v46, 1  ;;  %v3319_v12 = vrot.slane %v18705_v5, 1  ;;  %v3361_v11 = vrot.slane %v18708_v3, 2  ;;  %v3081_v9 = vrot.slane %v2940_v62, %v18121_v37 }
 0x33c   :  { %v3362_v10 = vrot.slane %v3286_v4, 2  ;;  %v3312_v47 = vrot.slane %v18708_v3, 1  ;;  %v3313_v7 = vrot.slane %v3286_v4, 1  ;;  %v3265_v63 = vrot.slane %v3193_v61, 7 }
 0x33d   :  { %v3320_v49 = vsel %vm24566_vm11, %v3318_v33, %v3319_v12  ;;  %v3144_v8 = vcombine.low %v3025_v48, %v3029_v60  ;;  %v3151_v20 = vrot.slane %v3143_v42, %v18649_v40  ;;  %v3085_v28 = vrot.slane %v2947_v35, %v18121_v37 }
 0x33e   :  { %3340 = vrot.lane.b32.xlu1 %v3320_v49, %s17742_s3  ;;  %v3363_v55 = vsel %vm24569_vm12, %v3361_v11, %v3362_v10  ;;  %v3314_v21 = vsel %vm24566_vm11, %v3312_v47, %v3313_v7  ;;  %v18723_v58 = vsel %vm24565_vm10, 0.0, %v3265_v63  ;;  %v18726_v6 = vsel %vm24565_vm10, %v3265_v63, 0.0 }
 0x33f   :  { %14327 = vmatprep.mubr.msk.f32.mxu0 %vm24570_vm13, %v3363_v55  ;;  %3336 = vrot.lane.b32.xlu0 %v3314_v21, %s17742_s3  ;;  %v3321_v16 = vrot.slane %v18723_v58, 1  ;;  %v3322_v39 = vrot.slane %v18726_v6, 1  ;;  %v3158_v51 = vrot.slane %v3144_v8, %v18649_v40  ;;  %v3089_v29 = vrot.slane %v2948_v54, %v18121_v37 }
 0x340   :  { %v3093_v50 = vrot.slane %v2949_v53, %v18121_v37  ;;  %v3211_v15 = vcombine.low %v3081_v9, %v3085_v28  ;;  %v2916_v2 = vrot.slane %v18657_v24, %v25159_v22  ;;  %v2923_v43 = vrot.slane %v2909_v19, %v25159_v22 }
 0x341   :  { %v3323_v52 = vsel %vm24566_vm11, %v3321_v16, %v3322_v39  ;;  %v3159_v25 = vcombine.low %v3151_v20, %v3158_v51  ;;  %v2980_v34 = vrot.slane %v18667_v0, %v25159_v22  ;;  %v2957_v57 = vcombine.high %v18660_v41, %v18660_v41 }
 0x342   :  { %3342 = vrot.lane.b32.xlu1 %v3323_v52, %s17742_s3  ;;  %v3212_v14 = vcombine.low %v3089_v29, %v3093_v50  ;;  %v3219_v18 = vrot.slane %v3211_v15, %v18649_v40  ;;  %v2924_v31 = vcombine.high %v2916_v2, %v2916_v2  ;;  %v2925_v59 = vcombine.high %v2923_v43, %v2923_v43 }
 0x343   :  { %v3263_v62 = vrot.slane %v3159_v25, 7  ;;  %v3065_v24 = vrot.slane %v2916_v2, %v18121_v37  ;;  %v3069_v19 = vrot.slane %v2923_v43, %v18121_v37  ;;  %v2981_v35 = vcombine.high %v2980_v34, %v2980_v34 }
 0x344   :  { %v3226_v1 = vrot.slane %v3212_v14, %v18649_v40  ;;  %v3073_v0 = vrot.slane %v2924_v31, %v18121_v37  ;;  %v3077_v45 = vrot.slane %v2925_v59, %v18121_v37  ;;  %v2988_v48 = vrot.slane %v2980_v34, %v25159_v22 }
 0x345   :  { %v18752_v60 = vsel %vm24565_vm10, 0.0, %v3263_v62  ;;  %v18755_v61 = vsel %vm24565_vm10, %v3263_v62, 0.0  ;;  %v3194_v42 = vcombine.low %v3065_v24, %v3069_v19  ;;  %v2995_v54 = vrot.slane %v2981_v35, %v25159_v22 }
 0x346   :  { %v3315_v53 = vrot.slane %v18752_v60, 1  ;;  %v3316_v4 = vrot.slane %v18755_v61, 1  ;;  %v3227_v33 = vcombine.low %v3219_v18, %v3226_v1  ;;  %v3195_v12 = vcombine.low %v3073_v0, %v3077_v45 }
 0x347   :  { %v3202_v11 = vrot.slane %v3194_v42, %v18649_v40  ;;  %v2996_v9 = vcombine.high %v2988_v48, %v2988_v48  ;;  %v2997_v10 = vcombine.high %v2995_v54, %v2995_v54  ;;  %v3113_v47 = vrot.slane %v2988_v48, %v18121_v37 }
 0x348   :  { %v3317_v7 = vsel %vm24566_vm11, %v3315_v53, %v3316_v4  ;;  %v3267_v63 = vrot.slane %v3227_v33, 7  ;;  %v3209_v49 = vrot.slane %v3195_v12, %v18649_v40  ;;  %v3117_v8 = vrot.slane %v2995_v54, %v18121_v37 }
 0x349   :  { %3338 = vrot.lane.b32.xlu0 %v3317_v7, %s17742_s3  ;;  %v3121_v20 = vrot.slane %v2996_v9, %v18121_v37  ;;  %v3125_v28 = vrot.slane %v2997_v10, %v18121_v37  ;;  %v2964_v55 = vrot.slane %v18660_v41, %v25159_v22  ;;  %v2971_v21 = vrot.slane %v2957_v57, %v25159_v22 }
 0x34a   :  { %v18772_v16 = vsel %vm24565_vm10, 0.0, %v3267_v63  ;;  %v18775_v39 = vsel %vm24565_vm10, %v3267_v63, 0.0  ;;  %v3210_v51 = vcombine.low %v3202_v11, %v3209_v49  ;;  %v3245_v29 = vcombine.low %v3113_v47, %v3117_v8 }
 0x34b   :  { %v3327_v50 = vrot.slane %v18772_v16, 1  ;;  %v3328_v15 = vrot.slane %v18775_v39, 1  ;;  %v3246_v2 = vcombine.low %v3121_v20, %v3125_v28  ;;  %v2972_v43 = vcombine.high %v2964_v55, %v2964_v55 }
 0x34c   :  { %v3266_v52 = vrot.slane %v3210_v51, 7  ;;  %v3253_v25 = vrot.slane %v3245_v29, %v18649_v40  ;;  %v2973_v41 = vcombine.high %v2971_v21, %v2971_v21  ;;  %v3097_v14 = vrot.slane %v2964_v55, %v18121_v37  ;;  %v25165_v29 = vld [vmem:[#allocation13_spill] sm:$0xff] }
 0x34d   :  { %v3329_v34 = vsel %vm24566_vm11, %v3327_v50, %v3328_v15  ;;  %v3260_v57 = vrot.slane %v3246_v2, %v18649_v40  ;;  %v3101_v18 = vrot.slane %v2971_v21, %v18121_v37  ;;  %v3105_v62 = vrot.slane %v2972_v43, %v18121_v37 }
 0x34e   :  { %3346 = vrot.lane.b32.xlu1 %v3329_v34, %s17742_s3  ;;  %v18786_v31 = vsel %vm24565_vm10, 0.0, %v3266_v52  ;;  %v18789_v59 = vsel %vm24565_vm10, %v3266_v52, 0.0  ;;  %v3109_v24 = vrot.slane %v2973_v41, %v18121_v37  ;;  %v18809_v7 = vadd.s32 120, %v25155_v56 }
 0x34f   :  { %v3324_v19 = vrot.slane %v18786_v31, 1  ;;  %v3325_v35 = vrot.slane %v18789_v59, 1  ;;  %v3261_v1 = vcombine.low %v3253_v25, %v3260_v57  ;;  %v3228_v0 = vcombine.low %v3097_v14, %v3101_v18 }
 0x350   :  { %v3229_v45 = vcombine.low %v3105_v62, %v3109_v24  ;;  %25161 = vst [vmem:[#allocation58_spill] sm:$0xff] %v18809_v7  ;;  %v18812_v63 = vadd.s32 112, %v25155_v56  ;;  %v18816_v49 = vadd.s32 104, %v25155_v56  ;;  %v3607_v28 = vand.u32 15, %v18809_v7  ;;  %v25223_v7 = vld [vmem:[#allocation20_spill] sm:$0xff] }
 0x351   :  { %v3326_v48 = vsel %vm24566_vm11, %v3324_v19, %v3325_v35  ;;  %v3269_v42 = vrot.slane %v3261_v1, 7  ;;  %v3236_v54 = vrot.slane %v3228_v0, %v18649_v40  ;;  %v18826_v55 = vadd.s32 96, %v25155_v56 }
 0x352   :  { %3344 = vrot.lane.b32.xlu0 %v3326_v48, %s17742_s3  ;;  %v3243_v53 = vrot.slane %v3229_v45, %v18649_v40  ;;  %25162 = vst [vmem:[#allocation57_spill] sm:$0xff] %v18812_v63  ;;  %25163 = vst [vmem:[#allocation54_spill] sm:$0xff] %v18816_v49  ;;  %vm18831_vm1 = vcmp.eq.s32.totalorder %v3607_v28, %v25165_v29  ;;  %v3600_v15 = vand.u32 15, %v18812_v63  ;;  %v3593_v2 = vand.u32 15, %v18816_v49  ;;  %v25191_v28 = vld [vmem:[#allocation36_spill] sm:$0xff] }
 0x353   :  { %v18800_v4 = vsel %vm24565_vm10, 0.0, %v3269_v42  ;;  %v18803_v33 = vsel %vm24565_vm10, %v3269_v42, 0.0  ;;  %25164 = vst [vmem:[#allocation56_spill] sm:$0xff] %v18826_v55  ;;  %v14342_v52 = vsel %vm18831_vm1, 1.0, %v25139_v27  ;;  %16264 = vmatprep.subr.msk.mxu1 %vm18831_vm1, %v25133_v36  ;;  %v3586_v34 = vand.u32 15, %v18826_v55 }
 0x354   :  { %v3333_v12 = vrot.slane %v18800_v4, 1  ;;  %v3334_v11 = vrot.slane %v18803_v33, 1  ;;  %v3244_v9 = vcombine.low %v3236_v54, %v3243_v53  ;;  %v18845_v25 = vsub.f32 %v14342_v52, %v14342_v52  ;;  %16265 = vmatpush3.msk.msra.mxu1 %vm18831_vm1, %v25133_v36 }
 0x355   :  { %v18860_v57 = vadd.s32 88, %v25155_v56  ;;  %v18872_v18 = vadd.s32 80, %v25155_v56  ;;  %v18879_v24 = vadd.s32 72, %v25155_v56  ;;  %vm18882_vm0 = vcmp.eq.s32.totalorder %v3586_v34, %v25165_v29 }
 0x356   :  { %v3335_v10 = vsel %vm24566_vm11, %v3333_v12, %v3334_v11  ;;  %v3268_v47 = vrot.slane %v3244_v9, 7  ;;  %16376 = vmatprep.subr.mxu0 %v18845_v25  ;;  %v18891_v1 = vadd.s32 64, %v25155_v56  ;;  %v3370_v22 = vrot.slane %v18723_v58, 2 }
 0x357   :  { %3350 = vrot.lane.b32.xlu1 %v3335_v10, %s17742_s3  ;;  %25170 = vst [vmem:[#allocation59_spill] sm:$0xff] %v18860_v57  ;;  %25173 = vst [vmem:[#allocation68_spill] sm:$0xff] %v18872_v18  ;;  %v3579_v62 = vand.u32 15, %v18860_v57  ;;  %v3572_v35 = vand.u32 15, %v18872_v18  ;;  %v3565_v45 = vand.u32 15, %v18879_v24 }
 0x358   :  { %v18819_v8 = vsel %vm24565_vm10, 0.0, %v3268_v47  ;;  %v18822_v20 = vsel %vm24565_vm10, %v3268_v47, 0.0  ;;  %vm18848_vm10 = vcmp.eq.s32.totalorder %v3600_v15, %v25165_v29  ;;  %25174 = vst [vmem:[#allocation69_spill] sm:$0xff] %v18879_v24  ;;  %25177 = vst [vmem:[#allocation70_spill] sm:$0xff] %v18891_v1  ;;  %v3558_v42 = vand.u32 15, %v18891_v1  ;;  %v25190_v47 = vld [vmem:[#allocation31_spill] sm:$0xff] }
 0x359   :  { %v3330_v21 = vrot.slane %v18819_v8, 1  ;;  %v3331_v51 = vrot.slane %v18822_v20, 1  ;;  %16266 = vmatprep.subr.msk.mxu1 %vm18848_vm10, %v25133_v36  ;;  %vm18897_vm12 = vcmp.eq.s32.totalorder %v3579_v62, %v25165_v29  ;;  %vm18909_vm13 = vcmp.eq.s32.totalorder %v3572_v35, %v25165_v29 }
 0x35a   :  { %16267 = vmatpush3.msk.msra.mxu1 %vm18848_vm10, %v25133_v36  ;;  %vm18921_vm14 = vcmp.eq.s32.totalorder %v3565_v45, %v25165_v29  ;;  %vm18932_vm15 = vcmp.eq.s32.totalorder %v3558_v42, %v25165_v29  ;;  %v14341_v15 = vsel %vm18848_vm10, 1.0, %v25139_v27  ;;  %v14339_v45 = vsel %vm18882_vm0, 1.0, %v25139_v27 }
 0x35b   :  { %v3332_v43 = vsel %vm24566_vm11, %v3330_v21, %v3331_v51  ;;  %vm18864_vm11 = vcmp.eq.s32.totalorder %v3593_v2, %v25165_v29  ;;  %v25192_v21 = vld [vmem:[#allocation40_spill] sm:$0xff]  ;;  %v25193_v51 = vld [vmem:[#allocation42_spill] sm:$0xff]  ;;  %v3364_v2 = vrot.slane %v18752_v60, 2  ;;  %v19001_v62 = vsub.f32 %v14341_v15, %v14341_v15 }
 0x35c   :  { %3348 = vrot.lane.b32.xlu0 %v3332_v43, %s17742_s3  ;;  %16268 = vmatprep.subr.msk.mxu1 %vm18864_vm11, %v25133_v36  ;;  %v3365_v43 = vrot.slane %v18755_v61, 2  ;;  %v14340_v52 = vsel %vm18864_vm11, 1.0, %v25139_v27  ;;  %v14338_v61 = vsel %vm18897_vm12, 1.0, %v25139_v27  ;;  %v14337_v15 = vsel %vm18909_vm13, 1.0, %v25139_v27 }
 0x35d   :  { %16269 = vmatpush3.msk.msra.mxu1 %vm18864_vm11, %v25133_v36  ;;  %v19009_v56 = vsub.f32 %v14340_v52, %v14340_v52  ;;  %v3368_v52 = vrot.slane %v18705_v5, 2  ;;  %v3371_v29 = vrot.slane %v18726_v6, 2  ;;  %v3373_v6 = vrot.slane %v18786_v31, 2 }
 0x35e   :  { %16270 = vmatprep.subr.msk.mxu1 %vm18882_vm0, %v25133_v36 }
 0x35f   :  { %16271 = vmatpush3.msk.msra.mxu1 %vm18882_vm0, %v25133_v36 }
 0x360   :  { %16272 = vmatprep.subr.msk.mxu1 %vm18897_vm12, %v25133_v36 }
 0x361   :  { %16273 = vmatpush3.msk.msra.mxu1 %vm18897_vm12, %v25133_v36 }
 0x362   :  { %16274 = vmatprep.subr.msk.mxu1 %vm18909_vm13, %v25133_v36 }
 0x363   :  { %16275 = vmatpush3.msk.msra.mxu1 %vm18909_vm13, %v25133_v36 }
 0x364   :  { %16276 = vmatprep.subr.msk.mxu1 %vm18921_vm14, %v25133_v36 }
 0x365   :  { %16277 = vmatpush3.msk.msra.mxu1 %vm18921_vm14, %v25133_v36 }
 0x366   :  { %16278 = vmatprep.subr.msk.mxu1 %vm18932_vm15, %v25133_v36 }
 0x367   :  { %16279 = vmatpush3.msk.msra.mxu1 %vm18932_vm15, %v25133_v36 }
 0x368   :  { %16280 = vmatprep.subr.msk.mxu1 %vm17879_vm2, %v25133_v36 }
 0x369   :  { %16281 = vmatpush3.msk.msra.mxu1 %vm17879_vm2, %v25133_v36 }
 0x36a   :  { %16282 = vmatprep.subr.msk.mxu1 %vm17893_vm3, %v25133_v36 }
 0x36b   :  { %16283 = vmatpush3.msk.msra.mxu1 %vm17893_vm3, %v25133_v36 }
 0x36c   :  { %16284 = vmatprep.subr.msk.mxu1 %vm17910_vm4, %v25133_v36 }
 0x36d   :  { %16285 = vmatpush3.msk.msra.mxu1 %vm17910_vm4, %v25133_v36 }
 0x36e   :  { %16286 = vmatprep.subr.msk.mxu1 %vm17929_vm5, %v25133_v36 }
 0x36f   :  { %16287 = vmatpush3.msk.msra.mxu1 %vm17929_vm5, %v25133_v36 }
 0x370   :  { %16288 = vmatprep.subr.msk.mxu1 %vm17950_vm6, %v25133_v36 }
 0x371   :  { %16289 = vmatpush3.msk.msra.mxu1 %vm17950_vm6, %v25133_v36 }
 0x372   :  { %16290 = vmatprep.subr.msk.mxu1 %vm17973_vm7, %v25133_v36 }
 0x373   :  { %16291 = vmatpush3.msk.msra.mxu1 %vm17973_vm7, %v25133_v36 }
 0x374   :  { %16292 = vmatprep.subr.msk.mxu1 %vm17994_vm8, %v25133_v36 }
 0x375   :  { %16293 = vmatpush3.msk.msra.mxu1 %vm17994_vm8, %v25133_v36  ;;  %vm25194_vm8 = vcmask 523264  }
 0x376   :  { %16294 = vmatprep.subr.msk.mxu1 %vm18005_vm9, %v25133_v36  ;;  %vm25196_vm7 = vmmov %vm25194_vm8 }
 0x377   :  { %16295 = vmatpush3.msk.msra.mxu1 %vm18005_vm9, %v25133_v36  ;;  %vm25195_vm9 = vcmask 1045504  }
 0x378   :  { %v3366_v42 = vsel %vm25195_vm9, %v3364_v2, %v3365_v43  ;;  %v19024_v2 = vsub.f32 %v14338_v61, %v14338_v61  ;;  %v14336_v43 = vsel %vm18921_vm14, 1.0, %v25139_v27 }
 0x379   :  { %v19040_v40 = vsub.f32 %v14336_v43, %v14336_v43 }
 0x37a   :  { %v3954_v18 = vand.u32 4294901760, %v19024_v2 }
 0x37c   :  { %v3955_v57 = vsub.f32 %v19024_v2, %v3954_v18 }
 0x3b1   :  { %v3337_v34 = vpop.permute.xlu0 %3336 }
 0x3b2   :  { %v3385_v35 = vsel %vm25194_vm8, %v18708_v3, %v3337_v34  ;;  %v19017_v3 = vsub.f32 %v14339_v45, %v14339_v45  ;;  %v3367_v34 = vrot.slane %v18702_v46, 2  ;;  %v14335_v45 = vsel %vm18932_vm15, 1.0, %v25139_v27  ;;  %vm25197_vm8 = vmmov %vm25195_vm9 }
 0x3b3   :  { %3504 = vmatmul.mubr.f32.vlgmr.msra.gmra.mxu0 %v3385_v35  ;;  %v19033_v35 = vsub.f32 %v14337_v15, %v14337_v15  ;;  %v19049_v1 = vsub.f32 %v14335_v45, %v14335_v45  ;;  %vm25198_vm9 = vmmov %vm25196_vm7  ;;  %v25200_v45 = vld [vmem:[#allocation17_spill] sm:$0xff] }
 0x3b4   :  { %14328 = vmatprep.mubr.msk.f32.mxu0 %vm25196_vm7, %v3366_v42  ;;  %16377 = vmatpush3.msra.mxu0 %v18845_v25  ;;  %v3341_v42 = vpop.permute.xlu1 %3340  ;;  %v3369_v15 = vsel %vm25197_vm8, %v3367_v34, %v3368_v52  ;;  %v3372_v52 = vsel %vm25197_vm8, %v3370_v22, %v3371_v29  ;;  %v3374_v34 = vrot.slane %v18789_v59, 2  ;;  %v3376_v29 = vrot.slane %v18772_v16, 2  ;;  %vm25207_vm6 = vmmov %vm25197_vm8 }
 0x3b5   :  { %16378 = vmatprep.subr.mxu0 %v19001_v62  ;;  %v3377_v59 = vrot.slane %v18775_v39, 2  ;;  %v3380_v39 = vrot.slane %v18822_v20, 2  ;;  %v3383_v20 = vrot.slane %v18803_v33, 2 }
 0x3b6   :  { %16379 = vmatpush3.msra.mxu0 %v19001_v62  ;;  %v3375_v22 = vsel %vm25197_vm8, %v3373_v6, %v3374_v34  ;;  %v25206_v6 = vld [vmem:[#allocation35_spill] sm:$0xff] }
 0x3b7   :  { %16380 = vmatprep.subr.mxu0 %v19009_v56 }
 0x3b8   :  { %16381 = vmatpush3.msra.mxu0 %v19009_v56  ;;  %v3343_v43 = vpop.permute.xlu1 %3342 }
 0x3b9   :  { %16382 = vmatprep.subr.mxu0 %v19017_v3 }
 0x3ba   :  { %16383 = vmatpush3.msra.mxu0 %v19017_v3 }
 0x3bb   :  { %v3339_v61 = vpop.permute.xlu0 %3338  ;;  %16384 = vmatprep.subr.mxu0 %v19024_v2 }
 0x3bc   :  { %v3386_v5 = vsel %vm25196_vm7, %v18752_v60, %v3339_v61  ;;  %16385 = vmatpush3.msra.mxu0 %v19024_v2  ;;  %v3387_v60 = vsel %vm25196_vm7, %v18702_v46, %v3341_v42  ;;  %v3388_v46 = vsel %vm25196_vm7, %v18723_v58, %v3343_v43  ;;  %v25201_v61 = vld [vmem:[#allocation21_spill] sm:$0xff]  ;;  %v3379_v43 = vrot.slane %v18819_v8, 2 }
 0x3bd   :  { %3509 = vmatmul.mubr.f32.gmra.mxu0 %v3386_v5  ;;  %16386 = vmatprep.subr.mxu0 %v19033_v35  ;;  %v25203_v5 = vld [vmem:[#allocation25_spill] sm:$0xff] }
 0x3be   :  { %14329 = vmatprep.mubr.msk.f32.mxu0 %vm25198_vm9, %v3369_v15  ;;  %16387 = vmatpush3.msra.mxu0 %v19033_v35  ;;  %vm25199_vm9 = vmmov %vm25196_vm7  ;;  %v3381_v34 = vsel %vm25207_vm6, %v3379_v43, %v3380_v39 }
 0x3bf   :  { %16388 = vmatprep.subr.mxu0 %v19040_v40 }
 0x3c0   :  { %16389 = vmatpush3.msra.mxu0 %v19040_v40  ;;  %v3347_v15 = vpop.permute.xlu1 %3346 }
 0x3c1   :  { %3514 = vmatmul.mubr.f32.gmra.mxu0 %v3387_v60  ;;  %16390 = vmatprep.subr.mxu0 %v19049_v1  ;;  %v3378_v60 = vsel %vm25197_vm8, %v3376_v29, %v3377_v59  ;;  %vm25209_vm8 = vmmov %vm25196_vm7 }
 0x3c2   :  { %14330 = vmatprep.mubr.msk.f32.mxu0 %vm25199_vm9, %v3372_v52  ;;  %16391 = vmatpush3.msra.mxu0 %v19049_v1  ;;  %vm25202_vm9 = vmmov %vm25196_vm7  ;;  %v25204_v52 = vld [vmem:[#allocation30_spill] sm:$0xff] }
 0x3c3   :  { %16392 = vmatprep.subr.mxu0 %v25200_v45 }
 0x3c4   :  { %16393 = vmatpush3.msra.mxu0 %v25200_v45  ;;  %v3345_v42 = vpop.permute.xlu0 %3344  ;;  %v3382_v45 = vrot.slane %v18800_v4, 2 }
 0x3c5   :  { %3519 = vmatmul.mubr.f32.gmra.mxu0 %v3388_v46  ;;  %16394 = vmatprep.subr.mxu0 %v25201_v61  ;;  %v3389_v58 = vsel %vm25196_vm7, %v18786_v31, %v3345_v42  ;;  %v3390_v31 = vsel %vm25196_vm7, %v18772_v16, %v3347_v15  ;;  %v25208_v46 = vld [vmem:[#allocation39_spill] sm:$0xff] }
 0x3c6   :  { %14331 = vmatprep.mubr.msk.f32.mxu0 %vm25202_vm9, %v3375_v22  ;;  %16395 = vmatpush3.msra.mxu0 %v25201_v61  ;;  %vm25205_vm9 = vmmov %vm25196_vm7  ;;  %v25210_v22 = vld [vmem:[#allocation44_spill] sm:$0xff]  ;;  %v3384_v59 = vsel %vm25207_vm6, %v3382_v45, %v3383_v20  ;;  %v25212_v61 = vld [vmem:[#allocation47_spill] sm:$0xff]  ;;  %vm25245_vm6 = vnez %v25190_v47 }
 0x3c7   :  { %16396 = vmatprep.subr.mxu0 %v25203_v5  ;;  %v19108_v15 = vld [vmem:[%s24464_s6] ss:$0 sm:$0xff] }
 0x3c8   :  { %16397 = vmatpush3.msra.mxu0 %v25203_v5  ;;  %v3926_v5 = vand.u32 4294901760, %v18845_v25 }
 0x3c9   :  { %3524 = vmatmul.mubr.f32.gmra.mxu0 %v3389_v58  ;;  %16398 = vmatprep.subr.mxu0 %v25204_v52  ;;  %v3351_v29 = vpop.permute.xlu1 %3350 }
 0x3ca   :  { %14332 = vmatprep.mubr.msk.f32.mxu0 %vm25205_vm9, %v3378_v60  ;;  %16399 = vmatpush3.msra.mxu0 %v25204_v52  ;;  %vm25211_vm9 = vmmov %vm25196_vm7 }
 0x3cb   :  { %16400 = vmatprep.subr.mxu0 %v25206_v6 }
 0x3cc   :  { %16401 = vmatpush3.msra.mxu0 %v25206_v6 }
 0x3cd   :  { %3529 = vmatmul.mubr.f32.gmra.mxu0 %v3390_v31  ;;  %16402 = vmatprep.subr.mxu0 %v25208_v46 }
 0x3ce   :  { %v3349_v42 = vpop.permute.xlu0 %3348  ;;  %14333 = vmatprep.mubr.msk.f32.mxu0 %vm25209_vm8, %v3381_v34  ;;  %16403 = vmatpush3.msra.mxu0 %v25208_v46  ;;  %vm25213_vm8 = vmmov %vm25196_vm7 }
 0x3cf   :  { %16404 = vmatprep.subr.mxu0 %v25210_v22  ;;  %v3391_v16 = vsel %vm25211_vm9, %v18819_v8, %v3349_v42  ;;  %v3392_v33 = vsel %vm25213_vm8, %v18800_v4, %v3351_v29  ;;  %v3927_v8 = vsub.f32 %v18845_v25, %v3926_v5  ;;  %v3933_v29 = vand.u32 4294901760, %v19001_v62 }
 0x3d0   :  { %16405 = vmatpush3.msra.mxu0 %v25210_v22  ;;  %vm25244_vm9 = vnez %v25144_v26  ;;  %vm25247_vm8 = vnez %v25141_v23 }
 0x3d1   :  { %3534 = vmatmul.mubr.f32.gmra.mxu0 %v3391_v16  ;;  %16406 = vmatprep.subr.mxu0 %v25212_v61  ;;  %v3928_v58 = vand.u32 4294901760, %v3927_v8  ;;  %v3940_v8 = vand.u32 4294901760, %v19009_v56 }
 0x3d2   :  { %14334 = vmatprep.mubr.msk.f32.mxu0 %vm25196_vm7, %v3384_v59  ;;  %16407 = vmatpush3.msra.mxu0 %v25212_v61  ;;  %vm25246_vm7 = vnez %v25191_v28 }
 0x3d3   :  { %16488 = vmatprep.subr.mxu0 %v3926_v5  ;;  %16320 = vmatprep.subr.mxu1 %v3928_v58 }
 0x3d5   :  { %3539 = vmatmul.mubr.f32.gmra.mxu0 %v3392_v33 }
 0x473   :  { %v3505_v60 = vpop.f32.mrf.mxu0 }
 0x474   :  { %v19111_v43 = vadd.f32 %v19108_v15, %v3505_v60  ;;  %v3934_v60 = vsub.f32 %v19001_v62, %v3933_v29 }
 0x475   :  { %v3507_v39 = vpop.f32.mrf.mxu0 }
 0x476   :  { %25214 = vst [vmem:[#allocation15_spill] sm:$0xff] %v19111_v43  ;;  %v19114_v4 = vand.u32 4294901760, %v19111_v43 }
 0x478   :  { %v19118_v52 = vsub.f32 %v19111_v43, %v19114_v4 }
 0x47a   :  { %16408 = vmatprep.mubr.f32.mxu0 %v19118_v52  ;;  %v24590_v25 = vand.u32 4294901760, %v19118_v52 }
 0x47c   :  { %v3766_v6 = vsub.f32 %v19118_v52, %v24590_v25  ;;  %v3935_v25 = vand.u32 4294901760, %v3934_v60 }
 0x47d   :  { %v3510_v31 = vpop.f32.mrf.mxu0 }
 0x47e   :  { %v19126_v34 = vadd.f32 %v19108_v15, %v3510_v31  ;;  %v3767_v45 = vand.u32 4294901760, %v3766_v6  ;;  %v3947_v6 = vand.u32 4294901760, %v19017_v3 }
 0x47f   :  { %v3512_v20 = vpop.f32.mrf.mxu0 }
 0x480   :  { %25215 = vst [vmem:[#allocation18_spill] sm:$0xff] %v19126_v34  ;;  %v19129_v46 = vand.u32 4294901760, %v19126_v34  ;;  %16296 = vmatprep.mubr.f32.mxu1 %v3767_v45 }
 0x481   :  { %v3515_v42 = vpop.f32.mrf.mxu0 }
 0x482   :  { %v19133_v22 = vsub.f32 %v19126_v34, %v19129_v46  ;;  %v19136_v16 = vadd.f32 %v19108_v15, %v3515_v42  ;;  %v3941_v42 = vsub.f32 %v19009_v56, %v3940_v8 }
 0x483   :  { %v3517_v59 = vpop.f32.mrf.mxu0 }
 0x484   :  { %25216 = vst [vmem:[#allocation22_spill] sm:$0xff] %v19136_v16  ;;  %v19140_v61 = vand.u32 4294901760, %v19136_v16  ;;  %16409 = vmatmul.mubr.f32.vlgmr.msra.gmra.mxu0 %v19133_v22  ;;  %v24593_v33 = vand.u32 4294901760, %v19133_v22  ;;  %v3942_v60 = vand.u32 4294901760, %v3941_v42 }
 0x485   :  { %v3520_v39 = vpop.f32.mrf.mxu0  ;;  %16489 = vmatpush3.msra.mxu0 %v3926_v5 }
 0x486   :  { %v19148_v31 = vadd.f32 %v19108_v15, %v3520_v39  ;;  %v19152_v45 = vsub.f32 %v19136_v16, %v19140_v61  ;;  %v3776_v20 = vsub.f32 %v19133_v22, %v24593_v33  ;;  %16490 = vmatprep.subr.mxu0 %v3933_v29  ;;  %v3948_v33 = vsub.f32 %v19017_v3, %v3947_v6 }
 0x487   :  { %v3522_v59 = vpop.f32.mrf.mxu0  ;;  %16491 = vmatpush3.msra.mxu0 %v3933_v29 }
 0x488   :  { %25217 = vst [vmem:[#allocation26_spill] sm:$0xff] %v19148_v31  ;;  %v19159_v62 = vand.u32 4294901760, %v19148_v31  ;;  %16411 = vmatprep.mubr.f32.mxu0 %v19152_v45  ;;  %v3777_v5 = vand.u32 4294901760, %v3776_v20  ;;  %v24596_v39 = vand.u32 4294901760, %v19152_v45  ;;  %16492 = vmatprep.subr.mxu0 %v3940_v8  ;;  %v3949_v42 = vand.u32 4294901760, %v3948_v33 }
 0x489   :  { %v3525_v24 = vpop.f32.mrf.mxu0  ;;  %16493 = vmatpush3.msra.mxu0 %v3940_v8  ;;  %v3961_v8 = vand.u32 4294901760, %v19033_v35 }
 0x48a   :  { %v19166_v56 = vadd.f32 %v19108_v15, %v3525_v24  ;;  %16297 = vmatmul.mubr.f32.vlgmr.msra.gmra.mxu1 %v3777_v5  ;;  %v19170_v29 = vsub.f32 %v19148_v31, %v19159_v62  ;;  %v3786_v20 = vsub.f32 %v19152_v45, %v24596_v39  ;;  %16494 = vmatprep.subr.mxu0 %v3947_v6 }
 0x48b   :  { %v3527_v59 = vpop.f32.mrf.mxu0  ;;  %16321 = vmatpush3.msra.mxu1 %v3928_v58  ;;  %16495 = vmatpush3.msra.mxu0 %v3947_v6  ;;  %v3674_v58 = vmul.f32 %v19111_v43, %v19111_v43  ;;  %v3962_v6 = vsub.f32 %v19033_v35, %v3961_v8  ;;  %v3675_v35 = vmul.f32 %v19126_v34, %v19126_v34  ;;  %v3956_v43 = vand.u32 4294901760, %v3955_v57 }
 0x48c   :  { %25218 = vst [vmem:[#allocation31_spill] sm:$0xff] %v19166_v56  ;;  %v19177_v3 = vand.u32 4294901760, %v19166_v56  ;;  %16412 = vmatmul.mubr.f32.gmra.mxu0 %v19170_v29  ;;  %v3787_v24 = vand.u32 4294901760, %v3786_v20  ;;  %v24598_v5 = vand.u32 4294901760, %v19170_v29  ;;  %16322 = vmatprep.subr.mxu1 %v3935_v25 }
 0x48d   :  { %v3530_v55 = vpop.f32.mrf.mxu0  ;;  %16323 = vmatpush3.msra.mxu1 %v3935_v25  ;;  %16496 = vmatprep.subr.mxu0 %v3954_v18  ;;  %v3968_v25 = vand.u32 4294901760, %v19040_v40  ;;  %v19203_v37 = vand.u32 4294901760, %v3674_v58 }
 0x48e   :  { %v19186_v59 = vadd.f32 %v19108_v15, %v3530_v55  ;;  %16299 = vmatprep.mubr.f32.mxu1 %v3787_v24  ;;  %v19190_v20 = vsub.f32 %v19166_v56, %v19177_v3  ;;  %v3796_v2 = vsub.f32 %v19170_v29, %v24598_v5  ;;  %16324 = vmatprep.subr.mxu1 %v3942_v60 }
 0x48f   :  { %v3532_v33 = vpop.f32.mrf.mxu0  ;;  %16497 = vmatpush3.msra.mxu0 %v3954_v18  ;;  %16325 = vmatpush3.msra.mxu1 %v3942_v60  ;;  %v3975_v18 = vand.u32 4294901760, %v19049_v1  ;;  %v3969_v60 = vsub.f32 %v19040_v40, %v3968_v25  ;;  %v19219_v40 = vand.u32 4294901760, %v3675_v35 }
 0x490   :  { %25219 = vst [vmem:[#allocation36_spill] sm:$0xff] %v19186_v59  ;;  %v19199_v55 = vand.u32 4294901760, %v19186_v59  ;;  %16414 = vmatprep.mubr.f32.mxu0 %v19190_v20  ;;  %v3797_v24 = vand.u32 4294901760, %v3796_v2  ;;  %v24605_v39 = vand.u32 4294901760, %v19190_v20  ;;  %16498 = vmatprep.subr.mxu0 %v3961_v8  ;;  %v3676_v33 = vmul.f32 %v19136_v16, %v19136_v16 }
 0x491   :  { %v3535_v5 = vpop.f32.mrf.mxu0  ;;  %16326 = vmatprep.subr.mxu1 %v3949_v42  ;;  %16499 = vmatpush3.msra.mxu0 %v3961_v8  ;;  %v3963_v8 = vand.u32 4294901760, %v3962_v6  ;;  %v3976_v16 = vsub.f32 %v19049_v1, %v3975_v18  ;;  %v25255_v50 = vand.u32 4294901760, %v19190_v20 }
 0x492   :  { %v19210_v34 = vadd.f32 %v19108_v15, %v3535_v5  ;;  %16300 = vmatmul.mubr.f32.gmra.mxu1 %v3797_v24  ;;  %v19214_v2 = vsub.f32 %v19186_v59, %v19199_v55  ;;  %v3806_v57 = vsub.f32 %v19190_v20, %v24605_v39  ;;  %16500 = vmatprep.subr.mxu0 %v3968_v25  ;;  %v19232_v1 = vand.u32 4294901760, %v3676_v33 }
 0x493   :  { %v3537_v49 = vpop.f32.mrf.mxu0  ;;  %16327 = vmatpush3.msra.mxu1 %v3949_v42  ;;  %16501 = vmatpush3.msra.mxu0 %v3968_v25  ;;  %v3677_v39 = vmul.f32 %v19148_v31, %v19148_v31  ;;  %v3970_v42 = vand.u32 4294901760, %v3969_v60  ;;  %v3678_v25 = vmul.f32 %v19166_v56, %v19166_v56  ;;  %v19247_v60 = vsub.f32 %v3675_v35, %v19219_v40 }
 0x494   :  { %25220 = vst [vmem:[#allocation40_spill] sm:$0xff] %v19210_v34  ;;  %v19223_v5 = vand.u32 4294901760, %v19210_v34  ;;  %16415 = vmatmul.mubr.f32.gmra.mxu0 %v19214_v2  ;;  %v3807_v24 = vand.u32 4294901760, %v3806_v57  ;;  %16328 = vmatprep.subr.mxu1 %v3956_v43  ;;  %v19230_v49 = vsub.f32 %v3674_v58, %v19203_v37  ;;  %v25222_v31 = vand.u32 4294901760, %v19214_v2 }
 0x495   :  { %v3540_v6 = vpop.f32.mrf.mxu0  ;;  %16329 = vmatpush3.msra.mxu1 %v3956_v43  ;;  %16502 = vmatprep.subr.mxu0 %v3975_v18  ;;  %v3977_v56 = vand.u32 4294901760, %v3976_v16  ;;  %v19255_v38 = vand.u32 4294901760, %v3677_v39  ;;  %v19262_v35 = vand.u32 4294901760, %v3678_v25  ;;  %v25256_v41 = vand.u32 4294901760, %v19214_v2 }
 0x496   :  { %v19237_v57 = vadd.f32 %v19108_v15, %v3540_v6  ;;  %16302 = vmatprep.mubr.f32.mxu1 %v3807_v24  ;;  %v19241_v63 = vsub.f32 %v19210_v34, %v19223_v5  ;;  %v3816_v58 = vsub.f32 %v19214_v2, %v25222_v31  ;;  %16330 = vmatprep.subr.mxu1 %v3963_v8  ;;  %v25260_v0 = vand.u32 4294901760, %v19247_v60 }
 0x497   :  { %v3542_v43 = vpop.f32.mrf.mxu0  ;;  %16503 = vmatpush3.msra.mxu0 %v3975_v18  ;;  %16331 = vmatpush3.msra.mxu1 %v3963_v8  ;;  %v19258_v31 = vsub.f32 %v3676_v33, %v19232_v1  ;;  %v3679_v18 = vmul.f32 %v19186_v59, %v19186_v59  ;;  %v25224_v33 = vld [vmem:[#allocation24_spill] sm:$0xff]  ;;  %v19280_v16 = vsub.f32 %v3677_v39, %v19255_v38  ;;  %v25226_v59 = vld [vmem:[#allocation29_spill] sm:$0xff] }
 0x498   :  { %25221 = vst [vmem:[#allocation42_spill] sm:$0xff] %v19237_v57  ;;  %v19250_v15 = vand.u32 4294901760, %v19237_v57  ;;  %16417 = vmatprep.mubr.f32.mxu0 %v19241_v63  ;;  %v3817_v24 = vand.u32 4294901760, %v3816_v58  ;;  %v24612_v6 = vand.u32 4294901760, %v19241_v63  ;;  %16504 = vmatprep.subr.mxu0 %v25223_v7  ;;  %v25257_v14 = vand.u32 4294901760, %v19241_v63 }
 0x499   :  { %16332 = vmatprep.subr.mxu1 %v3970_v42  ;;  %16505 = vmatpush3.msra.mxu0 %v25223_v7  ;;  %v3680_v7 = vmul.f32 %v19210_v34, %v19210_v34  ;;  %v25261_v48 = vand.u32 4294901760, %v19258_v31  ;;  %v25262_v54 = vand.u32 4294901760, %v19280_v16 }
 0x49a   :  { %16303 = vmatmul.mubr.f32.gmra.mxu1 %v3817_v24  ;;  %v19268_v8 = vsub.f32 %v19237_v57, %v19250_v15  ;;  %v3826_v58 = vsub.f32 %v19241_v63, %v24612_v6  ;;  %16506 = vmatprep.subr.mxu0 %v25224_v33  ;;  %v25225_v6 = vand.u32 4294901760, %v19230_v49  ;;  %v25259_v63 = vand.u32 4294901760, %v19230_v49 }
 0x49b   :  { %16333 = vmatpush3.msra.mxu1 %v3970_v42  ;;  %16507 = vmatpush3.msra.mxu0 %v25224_v33  ;;  %v19288_v42 = vsub.f32 %v3678_v25, %v19262_v35  ;;  %v19291_v33 = vand.u32 4294901760, %v3679_v18  ;;  %v19297_v13 = vand.u32 4294901760, %v3680_v7 }
 0x49c   :  { %16418 = vmatmul.mubr.f32.gmra.mxu0 %v19268_v8  ;;  %v3827_v43 = vand.u32 4294901760, %v3826_v58  ;;  %v24616_v24 = vand.u32 4294901760, %v19268_v8  ;;  %16334 = vmatprep.subr.mxu1 %v3977_v56  ;;  %v3846_v34 = vsub.f32 %v19230_v49, %v25225_v6  ;;  %v3681_v6 = vmul.f32 %v19237_v57, %v19237_v57 }
 0x49d   :  { %16420 = vmatprep.mubr.f32.mxu0 %v19230_v49  ;;  %16335 = vmatpush3.msra.mxu1 %v3977_v56  ;;  %v25227_v56 = vld [vmem:[#allocation28_spill] sm:$0xff]  ;;  %v25230_v57 = vand.u32 4294901760, %v19258_v31  ;;  %v19315_v32 = vsub.f32 %v3679_v18, %v19291_v33  ;;  %v25258_v19 = vand.u32 4294901760, %v19268_v8  ;;  %v25263_v53 = vand.u32 4294901760, %v19288_v42 }
 0x49e   :  { %16305 = vmatprep.mubr.f32.mxu1 %v3827_v43  ;;  %v3836_v39 = vsub.f32 %v19268_v8, %v24616_v24  ;;  %16508 = vmatprep.subr.mxu0 %v25226_v59  ;;  %v25228_v43 = vand.u32 4294901760, %v19247_v60  ;;  %v3847_v44 = vand.u32 4294901760, %v3846_v34  ;;  %v19322_v24 = vand.u32 4294901760, %v3681_v6 }
 0x49f   :  { %16336 = vmatprep.subr.mxu1 %v25227_v56  ;;  %16509 = vmatpush3.msra.mxu0 %v25226_v59  ;;  %v3866_v59 = vsub.f32 %v19258_v31, %v25230_v57  ;;  %v25232_v57 = vand.u32 4294901760, %v19280_v16 }
 0x4a0   :  { %16421 = vmatmul.mubr.f32.gmra.mxu0 %v19247_v60  ;;  %v3837_v25 = vand.u32 4294901760, %v3836_v39  ;;  %v3856_v58 = vsub.f32 %v19247_v60, %v25228_v43  ;;  %16337 = vmatpush3.msra.mxu1 %v25227_v56  ;;  %v25231_v43 = vld [vmem:[#allocation33_spill] sm:$0xff]  ;;  %v19320_v56 = vsub.f32 %v3680_v7, %v19297_v13  ;;  %v25233_v39 = vld [vmem:[#allocation38_spill] sm:$0xff]  ;;  %v25234_v7 = vand.u32 4294901760, %v19288_v42 }
 0x4a1   :  { %16423 = vmatprep.mubr.f32.mxu0 %v19258_v31  ;;  %16510 = vmatprep.subr.mxu0 %v25229_v17  ;;  %v3876_v18 = vsub.f32 %v19280_v16, %v25232_v57  ;;  %v25236_v57 = vld [vmem:[#allocation43_spill] sm:$0xff] }
 0x4a2   :  { %16306 = vmatmul.mubr.f32.gmra.mxu1 %v3837_v25  ;;  %16338 = vmatprep.subr.mxu1 %v25231_v43  ;;  %v3857_v34 = vand.u32 4294901760, %v3856_v58  ;;  %v3867_v25 = vand.u32 4294901760, %v3866_v59  ;;  %v19338_v58 = vsub.f32 %v3681_v6, %v19322_v24 }
 0x4a3   :  { %16308 = vmatprep.mubr.f32.mxu1 %v3847_v44  ;;  %16511 = vmatpush3.msra.mxu0 %v25229_v17  ;;  %v3886_v44 = vsub.f32 %v19288_v42, %v25234_v7  ;;  %v3895_v17 = vand.u32 4294901760, %v19315_v32  ;;  %v3877_v59 = vand.u32 4294901760, %v3876_v18  ;;  %v25237_v7 = vld [vmem:[#allocation41_spill] sm:$0xff] }
 0x4a4   :  { %16424 = vmatmul.mubr.f32.gmra.mxu0 %v19280_v16  ;;  %16339 = vmatpush3.msra.mxu1 %v25231_v43  ;;  %v3905_v43 = vand.u32 4294901760, %v19320_v56  ;;  %v3915_v18 = vand.u32 4294901760, %v19338_v58 }
 0x4a5   :  { %16426 = vmatprep.mubr.f32.mxu0 %v19288_v42  ;;  %16512 = vmatprep.subr.mxu0 %v25233_v39  ;;  %v3896_v6 = vsub.f32 %v19315_v32, %v3895_v17 }
 0x4a6   :  { %16309 = vmatmul.mubr.f32.gmra.mxu1 %v3857_v34  ;;  %16340 = vmatprep.subr.mxu1 %v25235_v30  ;;  %v3887_v34 = vand.u32 4294901760, %v3886_v44 }
 0x4a7   :  { %16311 = vmatprep.mubr.f32.mxu1 %v3867_v25  ;;  %16513 = vmatpush3.msra.mxu0 %v25233_v39  ;;  %v3906_v39 = vsub.f32 %v19320_v56, %v3905_v43  ;;  %v25239_v25 = vld [vmem:[#allocation45_spill] sm:$0xff]  ;;  %v3897_v44 = vand.u32 4294901760, %v3896_v6 }
 0x4a8   :  { %16427 = vmatmul.mubr.f32.gmra.mxu0 %v19315_v32  ;;  %16341 = vmatpush3.msra.mxu1 %v25235_v30  ;;  %v25238_v30 = vld [vmem:[#allocation46_spill] sm:$0xff] }
 0x4a9   :  { %16429 = vmatprep.mubr.f32.mxu0 %v19320_v56  ;;  %16514 = vmatprep.subr.mxu0 %v25236_v57 }
 0x4aa   :  { %16312 = vmatmul.mubr.f32.gmra.mxu1 %v3877_v59  ;;  %16342 = vmatprep.subr.mxu1 %v25237_v7  ;;  %v3907_v59 = vand.u32 4294901760, %v3906_v39  ;;  %v25242_v39 = vld [vmem:[#allocation50_spill] sm:$0xff] }
 0x4ab   :  { %16314 = vmatprep.mubr.f32.mxu1 %v3887_v34  ;;  %16515 = vmatpush3.msra.mxu0 %v25236_v57  ;;  %v3916_v34 = vsub.f32 %v19338_v58, %v3915_v18  ;;  %v25240_v57 = vld [vmem:[#allocation49_spill] sm:$0xff] }
 0x4ac   :  { %16343 = vmatpush3.msra.mxu1 %v25237_v7  ;;  %16430 = vmatmul.mubr.f32.gmra.mxu0 %v19338_v58  ;;  %v25241_v7 = vld [vmem:[#allocation48_spill] sm:$0xff] }
 0x4ad   :  { %16516 = vmatprep.subr.mxu0 %v25238_v30  ;;  %16344 = vmatprep.subr.mxu1 %v25239_v25  ;;  %v3917_v6 = vand.u32 4294901760, %v3916_v34 }
 0x4ae   :  { %16517 = vmatpush3.msra.mxu0 %v25238_v30  ;;  %16520 = vmatprep.mubr.f32.mxu0 %v19114_v4  ;;  %v25243_v30 = vld [vmem:[#allocation51_spill] sm:$0xff] }
 0x4af   :  { %16315 = vmatmul.mubr.f32.gmra.mxu1 %v3897_v44  ;;  %16518 = vmatprep.subr.mxu0 %v25240_v57  ;;  %v25253_v44 = vand.u32 4294901760, %v19152_v45 }
 0x4b0   :  { %16345 = vmatpush3.msra.mxu1 %v25239_v25  ;;  %16317 = vmatprep.mubr.f32.mxu1 %v3907_v59  ;;  %v25249_v25 = vand.u32 4294901760, %v19118_v52  ;;  %v25252_v52 = vand.u32 4294901760, %v19133_v22  ;;  %v25254_v22 = vand.u32 4294901760, %v19170_v29 }
 0x4b1   :  { %16346 = vmatprep.subr.mxu1 %v25241_v7  ;;  %16519 = vmatpush3.msra.mxu0 %v25240_v57 }
 0x4b2   :  { %16347 = vmatpush3.msra.mxu1 %v25241_v7  ;;  %16521 = vmatmul.mubr.f32.vlgmr.msra.gmra.mxu0 %v19129_v46 }
 0x4b3   :  { %16348 = vmatprep.subr.mxu1 %v25242_v39  ;;  %16523 = vmatprep.mubr.f32.mxu0 %v19140_v61 }
 0x4b4   :  { %16318 = vmatmul.mubr.f32.gmra.mxu1 %v3917_v6  ;;  %16600 = vmatprep.subr.mxu0 %v25139_v27 }
 0x4b5   :  { %16349 = vmatpush3.msra.mxu1 %v25242_v39  ;;  %16352 = vmatprep.mubr.f32.mxu1 %v19114_v4 }
 0x4b6   :  { %16350 = vmatprep.subr.mxu1 %v25243_v30  ;;  %16524 = vmatmul.mubr.f32.gmra.mxu0 %v19159_v62 }
 0x4b7   :  { %16351 = vmatpush3.msra.mxu1 %v25243_v30  ;;  %16526 = vmatprep.mubr.f32.mxu0 %v19177_v3 }
 0x4b8   :  { %16432 = vmatprep.subr.msk.mxu1 %vm18831_vm1, %v25133_v36  ;;  %16353 = vmatmul.mubr.f32.vlgmr.msra.gmra.mxu1 %v19129_v46 }
 0x4b9   :  { %16433 = vmatpush3.msk.msra.mxu1 %vm18831_vm1, %v25133_v36  ;;  %16355 = vmatprep.mubr.f32.mxu1 %v19140_v61 }
 0x4ba   :  { %16434 = vmatprep.subr.msk.mxu1 %vm18848_vm10, %v25133_v36  ;;  %16527 = vmatmul.mubr.f32.gmra.mxu0 %v19199_v55 }
 0x4bb   :  { %16435 = vmatpush3.msk.msra.mxu1 %vm18848_vm10, %v25133_v36  ;;  %16529 = vmatprep.mubr.f32.mxu0 %v19223_v5 }
 0x4bc   :  { %16436 = vmatprep.subr.msk.mxu1 %vm18864_vm11, %v25133_v36  ;;  %16356 = vmatmul.mubr.f32.gmra.mxu1 %v19159_v62 }
 0x4bd   :  { %16437 = vmatpush3.msk.msra.mxu1 %vm18864_vm11, %v25133_v36  ;;  %16358 = vmatprep.mubr.f32.mxu1 %v19177_v3 }
 0x4be   :  { %16438 = vmatprep.subr.msk.mxu1 %vm18882_vm0, %v25133_v36  ;;  %16530 = vmatmul.mubr.f32.gmra.mxu0 %v19250_v15 }
 0x4bf   :  { %16439 = vmatpush3.msk.msra.mxu1 %vm18882_vm0, %v25133_v36  ;;  %16532 = vmatprep.mubr.f32.mxu0 %v19203_v37 }
 0x4c0   :  { %16440 = vmatprep.subr.msk.mxu1 %vm18897_vm12, %v25133_v36  ;;  %16359 = vmatmul.mubr.f32.gmra.mxu1 %v19199_v55 }
 0x4c1   :  { %16441 = vmatpush3.msk.msra.mxu1 %vm18897_vm12, %v25133_v36  ;;  %16361 = vmatprep.mubr.f32.mxu1 %v19223_v5 }
 0x4c2   :  { %16442 = vmatprep.subr.msk.mxu1 %vm18909_vm13, %v25133_v36  ;;  %16533 = vmatmul.mubr.f32.gmra.mxu0 %v19219_v40 }
 0x4c3   :  { %16443 = vmatpush3.msk.msra.mxu1 %vm18909_vm13, %v25133_v36  ;;  %16535 = vmatprep.mubr.f32.mxu0 %v19232_v1 }
 0x4c4   :  { %16444 = vmatprep.subr.msk.mxu1 %vm18921_vm14, %v25133_v36  ;;  %16362 = vmatmul.mubr.f32.gmra.mxu1 %v19250_v15 }
 0x4c5   :  { %16445 = vmatpush3.msk.msra.mxu1 %vm18921_vm14, %v25133_v36  ;;  %16364 = vmatprep.mubr.f32.mxu1 %v19203_v37 }
 0x4c6   :  { %16446 = vmatprep.subr.msk.mxu1 %vm18932_vm15, %v25133_v36  ;;  %16536 = vmatmul.mubr.f32.gmra.mxu0 %v19255_v38 }
 0x4c7   :  { %16447 = vmatpush3.msk.msra.mxu1 %vm18932_vm15, %v25133_v36  ;;  %16538 = vmatprep.mubr.f32.mxu0 %v19262_v35 }
 0x4c8   :  { %16448 = vmatprep.subr.msk.mxu1 %vm17879_vm2, %v25133_v36  ;;  %16365 = vmatmul.mubr.f32.gmra.mxu1 %v19219_v40 }
 0x4c9   :  { %16449 = vmatpush3.msk.msra.mxu1 %vm17879_vm2, %v25133_v36  ;;  %16367 = vmatprep.mubr.f32.mxu1 %v19232_v1 }
 0x4ca   :  { %16450 = vmatprep.subr.msk.mxu1 %vm17893_vm3, %v25133_v36  ;;  %16539 = vmatmul.mubr.f32.gmra.mxu0 %v19291_v33 }
 0x4cb   :  { %16451 = vmatpush3.msk.msra.mxu1 %vm17893_vm3, %v25133_v36  ;;  %16541 = vmatprep.mubr.f32.mxu0 %v19297_v13 }
 0x4cc   :  { %16452 = vmatprep.subr.msk.mxu1 %vm17910_vm4, %v25133_v36  ;;  %16368 = vmatmul.mubr.f32.gmra.mxu1 %v19255_v38 }
 0x4cd   :  { %16453 = vmatpush3.msk.msra.mxu1 %vm17910_vm4, %v25133_v36  ;;  %16370 = vmatprep.mubr.f32.mxu1 %v19262_v35 }
 0x4ce   :  { %16454 = vmatprep.subr.msk.mxu1 %vm17929_vm5, %v25133_v36  ;;  %16542 = vmatmul.mubr.f32.gmra.mxu0 %v19322_v24 }
 0x4cf   :  { %16455 = vmatpush3.msk.msra.mxu1 %vm17929_vm5, %v25133_v36  ;;  %16601 = vmatpush3.msk.msra.mxu0 %vm25244_vm9, %v25133_v36  ;;  %vm25248_vm9 = vnez %v25192_v21 }
 0x4d0   :  { %16456 = vmatprep.subr.msk.mxu1 %vm25245_vm6, %v25133_v36  ;;  %16371 = vmatmul.mubr.f32.gmra.mxu1 %v19291_v33 }
 0x4d1   :  { %16457 = vmatpush3.msk.msra.mxu1 %vm25245_vm6, %v25133_v36  ;;  %16373 = vmatprep.mubr.f32.mxu1 %v19297_v13  ;;  %vm25251_vm6 = vmmov 0  }
 0x4d2   :  { %16458 = vmatprep.subr.msk.mxu1 %vm25246_vm7, %v25133_v36  ;;  %16602 = vmatprep.subr.mxu0 %v25139_v27 }
 0x4d3   :  { %16459 = vmatpush3.msk.msra.mxu1 %vm25246_vm7, %v25133_v36  ;;  %16603 = vmatpush3.msk.msra.mxu0 %vm25247_vm8, %v25133_v36  ;;  %vm25250_vm7 = vnez %v25193_v51 }
 0x4d4   :  { %16460 = vmatprep.subr.msk.mxu1 %vm25248_vm9, %v25133_v36  ;;  %16374 = vmatmul.mubr.f32.gmra.mxu1 %v19322_v24 }
 0x4d5   :  { %16461 = vmatpush3.msk.msra.mxu1 %vm25248_vm9, %v25133_v36  ;;  %16464 = vmatprep.mubr.f32.mxu1 %v25249_v25 }
 0x4d6   :  { %16462 = vmatprep.subr.msk.mxu1 %vm25250_vm7, %v25133_v36  ;;  %16604 = vmatprep.mubr.msk.f32.mxu0 %vm25251_vm6, %v25139_v27 }
 0x4d7   :  { %16463 = vmatpush3.msk.msra.mxu1 %vm25250_vm7, %v25133_v36  ;;  %16607 = vmatprep.subr.mxu0 %v25139_v27 }
 0x4d8   :  { %16544 = vmatprep.subr.msk.mxu1 %vm18831_vm1, %v25133_v36  ;;  %16465 = vmatmul.mubr.f32.vlgmr.msra.gmra.mxu1 %v25252_v52 }
 0x4d9   :  { %16545 = vmatpush3.msk.msra.mxu1 %vm18831_vm1, %v25133_v36  ;;  %16467 = vmatprep.mubr.f32.mxu1 %v25253_v44 }
 0x4da   :  { %16546 = vmatprep.subr.msk.mxu1 %vm18848_vm10, %v25133_v36 }
 0x4db   :  { %16547 = vmatpush3.msk.msra.mxu1 %vm18848_vm10, %v25133_v36 }
 0x4dc   :  { %16548 = vmatprep.subr.msk.mxu1 %vm18864_vm11, %v25133_v36  ;;  %16468 = vmatmul.mubr.f32.gmra.mxu1 %v25254_v22 }
 0x4dd   :  { %16549 = vmatpush3.msk.msra.mxu1 %vm18864_vm11, %v25133_v36  ;;  %16470 = vmatprep.mubr.f32.mxu1 %v25255_v50 }
 0x4de   :  { %16550 = vmatprep.subr.msk.mxu1 %vm18882_vm0, %v25133_v36 }
 0x4df   :  { %16551 = vmatpush3.msk.msra.mxu1 %vm18882_vm0, %v25133_v36  ;;  %vm25264_vm0 = vnez %v25190_v47 }
 0x4e0   :  { %16552 = vmatprep.subr.msk.mxu1 %vm18897_vm12, %v25133_v36  ;;  %16471 = vmatmul.mubr.f32.gmra.mxu1 %v25256_v41 }
 0x4e1   :  { %16553 = vmatpush3.msk.msra.mxu1 %vm18897_vm12, %v25133_v36  ;;  %16473 = vmatprep.mubr.f32.mxu1 %v25257_v14 }
 0x4e2   :  { %16554 = vmatprep.subr.msk.mxu1 %vm18909_vm13, %v25133_v36 }
 0x4e3   :  { %16555 = vmatpush3.msk.msra.mxu1 %vm18909_vm13, %v25133_v36 }
 0x4e4   :  { %16556 = vmatprep.subr.msk.mxu1 %vm18921_vm14, %v25133_v36  ;;  %16474 = vmatmul.mubr.f32.gmra.mxu1 %v25258_v19 }
 0x4e5   :  { %16557 = vmatpush3.msk.msra.mxu1 %vm18921_vm14, %v25133_v36  ;;  %16476 = vmatprep.mubr.f32.mxu1 %v25259_v63 }
 0x4e6   :  { %16558 = vmatprep.subr.msk.mxu1 %vm18932_vm15, %v25133_v36 }
 0x4e7   :  { %16559 = vmatpush3.msk.msra.mxu1 %vm18932_vm15, %v25133_v36 }
 0x4e8   :  { %16560 = vmatprep.subr.msk.mxu1 %vm17879_vm2, %v25133_v36  ;;  %16477 = vmatmul.mubr.f32.gmra.mxu1 %v25260_v0 }
 0x4e9   :  { %16561 = vmatpush3.msk.msra.mxu1 %vm17879_vm2, %v25133_v36  ;;  %16479 = vmatprep.mubr.f32.mxu1 %v25261_v48  ;;  %vm25265_vm2 = vnez %v25191_v28 }
 0x4ea   :  { %16562 = vmatprep.subr.msk.mxu1 %vm17893_vm3, %v25133_v36 }
 0x4eb   :  { %16563 = vmatpush3.msk.msra.mxu1 %vm17893_vm3, %v25133_v36  ;;  %vm25266_vm3 = vnez %v25144_v26 }
 0x4ec   :  { %16564 = vmatprep.subr.msk.mxu1 %vm17910_vm4, %v25133_v36  ;;  %16480 = vmatmul.mubr.f32.gmra.mxu1 %v25262_v54 }
 0x4ed   :  { %16565 = vmatpush3.msk.msra.mxu1 %vm17910_vm4, %v25133_v36  ;;  %16482 = vmatprep.mubr.f32.mxu1 %v25263_v53  ;;  %vm25280_vm4 = vcmask 130048  }
 0x4ee   :  { %16566 = vmatprep.subr.msk.mxu1 %vm17929_vm5, %v25133_v36  ;;  %vm25282_vm10 = vmmov %vm25280_vm4 }
 0x4ef   :  { %16567 = vmatpush3.msk.msra.mxu1 %vm17929_vm5, %v25133_v36  ;;  %vm25281_vm5 = vmmov %vm25280_vm4 }
 0x4f0   :  { %16568 = vmatprep.subr.msk.mxu1 %vm25264_vm0, %v25133_v36  ;;  %16483 = vmatmul.mubr.f32.gmra.mxu1 %v3895_v17  ;;  %vm25283_vm13 = vmmov %vm25280_vm4 }
 0x4f1   :  { %16569 = vmatpush3.msk.msra.mxu1 %vm25264_vm0, %v25133_v36  ;;  %16485 = vmatprep.mubr.f32.mxu1 %v3905_v43  ;;  %vm25284_vm14 = vmmov %vm25280_vm4 }
 0x4f2   :  { %16570 = vmatprep.subr.msk.mxu1 %vm25265_vm2, %v25133_v36  ;;  %vm25285_vm15 = vmmov %vm25280_vm4 }
 0x4f3   :  { %16571 = vmatpush3.msk.msra.mxu1 %vm25265_vm2, %v25133_v36  ;;  %vm25288_vm1 = vmmov %vm25280_vm4 }
 0x4f4   :  { %16572 = vmatprep.subr.msk.mxu1 %vm25248_vm9, %v25133_v36  ;;  %16486 = vmatmul.mubr.f32.gmra.mxu1 %v3915_v18  ;;  %vm25295_vm11 = vmmov %vm25288_vm1 }
 0x4f5   :  { %16573 = vmatpush3.msk.msra.mxu1 %vm25248_vm9, %v25133_v36  ;;  %16576 = vmatprep.mubr.f32.mxu1 %v19114_v4  ;;  %vm25298_vm12 = vmmov %vm25288_vm1 }
 0x4f6   :  { %16574 = vmatprep.subr.msk.mxu1 %vm25250_vm7, %v25133_v36  ;;  %vm25301_vm9 = vmmov %vm25288_vm1 }
 0x4f7   :  { %16575 = vmatpush3.msk.msra.mxu1 %vm25250_vm7, %v25133_v36  ;;  %vm25303_vm7 = vmmov %vm25288_vm1 }
 0x4f8   :  { %16577 = vmatmul.mubr.f32.vlgmr.msra.gmra.mxu1 %v19129_v46  ;;  %16635 = vmatprep.subr.mxu1 %v25139_v27  ;;  %vm25304_vm0 = vmmov %vm25288_vm1 }
 0x4f9   :  { %16579 = vmatprep.mubr.f32.mxu1 %v19140_v61  ;;  %16636 = vmatpush3.msk.msra.mxu1 %vm25266_vm3, %v25133_v36  ;;  %vm25305_vm2 = vmmov %vm25304_vm0 }
 0x4fa   :  { %16637 = vmatprep.subr.mxu1 %v25139_v27 }
 0x4fb   :  { %16638 = vmatpush3.msk.msra.mxu1 %vm25247_vm8, %v25133_v36 }
 0x4fc   :  { %16580 = vmatmul.mubr.f32.gmra.mxu1 %v19159_v62  ;;  %16649 = vmatprep.subr.mxu1 %v25139_v27 }
 0x4fd   :  { %16582 = vmatprep.mubr.f32.mxu1 %v19177_v3 }
 0x500   :  { %16583 = vmatmul.mubr.f32.gmra.mxu1 %v19199_v55 }
 0x501   :  { %16585 = vmatprep.mubr.f32.mxu1 %v19223_v5 }
 0x504   :  { %16586 = vmatmul.mubr.f32.gmra.mxu1 %v19250_v15 }
 0x505   :  { %16588 = vmatprep.mubr.f32.mxu1 %v19203_v37 }
 0x508   :  { %16589 = vmatmul.mubr.f32.gmra.mxu1 %v19219_v40 }
 0x509   :  { %16591 = vmatprep.mubr.f32.mxu1 %v19232_v1 }
 0x50c   :  { %16592 = vmatmul.mubr.f32.gmra.mxu1 %v19255_v38 }
 0x50d   :  { %16594 = vmatprep.mubr.f32.mxu1 %v19262_v35 }
 0x510   :  { %16595 = vmatmul.mubr.f32.gmra.mxu1 %v19291_v33 }
 0x511   :  { %16597 = vmatprep.mubr.f32.mxu1 %v19297_v13 }
 0x514   :  { %16598 = vmatmul.mubr.f32.gmra.mxu1 %v19322_v24 }
 0x515   :  { %16639 = vmatprep.mubr.msk.f32.mxu1 %vm25251_vm6, %v25139_v27 }
 0x544   :  { %v19670_v10 = vpop.f32.mrf.mxu0 }
 0x546   :  { %v19674_v47 = vpop.f32.mrf.mxu0 }
 0x54a   :  { %v16298_v32 = vpop.f32.mrf.mxu1 }
 0x54c   :  { %v19666_v12 = vpop.f32.mrf.mxu1  ;;  %v19676_v13 = vpop.f32.mrf.mxu0 }
 0x54e   :  { %v19682_v4 = vpop.f32.mrf.mxu0 }
 0x552   :  { %v16301_v37 = vpop.f32.mrf.mxu1 }
 0x554   :  { %v19668_v11 = vpop.f32.mrf.mxu1  ;;  %v19686_v61 = vpop.f32.mrf.mxu0 }
 0x556   :  { %v19692_v29 = vpop.f32.mrf.mxu0 }
 0x55a   :  { %v16304_v9 = vpop.f32.mrf.mxu1 }
 0x55c   :  { %v19672_v38 = vpop.f32.mrf.mxu1  ;;  %v19696_v20 = vpop.f32.mrf.mxu0 }
 0x55e   :  { %v19700_v2 = vpop.f32.mrf.mxu0 }
 0x560   :  { %v19706_v49 = vpop.f32.mrf.mxu0 }
 0x562   :  { %v16307_v28 = vpop.f32.mrf.mxu1  ;;  %v19708_v31 = vpop.f32.mrf.mxu0 }
 0x564   :  { %v19678_v21 = vpop.f32.mrf.mxu1  ;;  %v19710_v24 = vpop.f32.mrf.mxu0 }
 0x566   :  { %v19680_v51 = vpop.f32.mrf.mxu1  ;;  %v19712_v17 = vpop.f32.mrf.mxu0 }
 0x568   :  { %v19684_v46 = vpop.f32.mrf.mxu1  ;;  %v19716_v59 = vpop.f32.mrf.mxu0 }
 0x569   :  { %25269 = vst [vmem:[#allocation25_spill] sm:$0xff] %v19716_v59 }
 0x56a   :  { %v19688_v45 = vpop.f32.mrf.mxu1  ;;  %v19722_v7 = vpop.f32.mrf.mxu0 }
 0x56b   :  { %25270 = vst [vmem:[#allocation30_spill] sm:$0xff] %v19722_v7 }
 0x56c   :  { %v19690_v62 = vpop.f32.mrf.mxu1  ;;  %v19728_v30 = vpop.f32.mrf.mxu0 }
 0x56d   :  { %25271 = vst [vmem:[#allocation35_spill] sm:$0xff] %v19728_v30 }
 0x56e   :  { %v19734_v44 = vpop.f32.mrf.mxu0 }
 0x56f   :  { %v19694_v3 = vpop.f32.mrf.mxu1  ;;  %25272 = vst [vmem:[#allocation39_spill] sm:$0xff] %v19734_v44 }
 0x571   :  { %v19698_v55 = vpop.f32.mrf.mxu1 }
 0x572   :  { %v16522_v41 = vpop.f32.mrf.mxu0 }
 0x574   :  { %v19702_v40 = vpop.f32.mrf.mxu1  ;;  %v4697_v63 = vpop.f32.mrf.mxu0 }
 0x575   :  { %25267 = vst [vmem:[#allocation17_spill] sm:$0xff] %v19702_v40 }
 0x576   :  { %v19704_v5 = vpop.f32.mrf.mxu1  ;;  %v16525_v54 = vpop.f32.mrf.mxu0 }
 0x577   :  { %25268 = vst [vmem:[#allocation21_spill] sm:$0xff] %v19704_v5 }
 0x578   :  { %v16354_v1 = vpop.f32.mrf.mxu1 }
 0x579   :  { %v4077_v60 = vadd.f32 %v16354_v1, %v16298_v32 }
 0x57a   :  { %v4070_v15 = vpop.f32.mrf.mxu1 }
 0x57b   :  { %v4071_v36 = vadd.f32 %v4070_v15, %v19666_v12  ;;  %v4272_v5 = vadd.f32 %v19670_v10, %v4077_v60 }
 0x57c   :  { %v16357_v16 = vpop.f32.mrf.mxu1 }
 0x57d   :  { %v4089_v35 = vadd.f32 %v16357_v16, %v16301_v37  ;;  %v4709_v37 = vpop.f32.mrf.mxu0  ;;  %v4265_v7 = vadd.f32 %v19674_v47, %v4071_v36 }
 0x57e   :  { %v4082_v8 = vpop.f32.mrf.mxu1 }
 0x57f   :  { %v16528_v1 = vpop.f32.mrf.mxu0  ;;  %v4286_v15 = vadd.f32 %v19676_v13, %v4089_v35 }
 0x580   :  { %v16360_v42 = vpop.f32.mrf.mxu1 }
 0x581   :  { %v4101_v33 = vadd.f32 %v16360_v42, %v16304_v9 }
 0x582   :  { %v4094_v56 = vpop.f32.mrf.mxu1 }
 0x583   :  { %v4095_v12 = vadd.f32 %v4094_v56, %v19672_v38  ;;  %v4300_v47 = vadd.f32 %v19686_v61, %v4101_v33 }
 0x584   :  { %v16363_v58 = vpop.f32.mrf.mxu1 }
 0x585   :  { %v19714_v43 = vadd.f32 %v16363_v58, %v16307_v28  ;;  %v4721_v58 = vpop.f32.mrf.mxu0 }
 0x586   :  { %v4106_v18 = vpop.f32.mrf.mxu1 }
 0x587   :  { %v19749_v27 = vpop.f32.mrf.mxu0 }
 0x588   :  { %v19718_v34 = vpop.f32.mrf.mxu1 }
 0x589   :  { %v4733_v59 = vpop.f32.mrf.mxu0 }
 0x58a   :  { %v19720_v57 = vpop.f32.mrf.mxu1 }
 0x58b   :  { %v4119_v61 = vadd.f32 %v19720_v57, %v19684_v46 }
 0x58c   :  { %v19724_v6 = vpop.f32.mrf.mxu1 }
 0x58d   :  { %v4137_v46 = vadd.f32 %v19724_v6, %v19688_v45 }
 0x58e   :  { %v19726_v39 = vpop.f32.mrf.mxu1 }
 0x590   :  { %v19730_v25 = vpop.f32.mrf.mxu1 }
 0x592   :  { %v19732_v52 = vpop.f32.mrf.mxu1 }
 0x594   :  { %v19736_v22 = vpop.f32.mrf.mxu1 }
 0x595   :  { %25273 = vst [vmem:[#allocation44_spill] sm:$0xff] %v19736_v22 }
 0x596   :  { %v19738_v50 = vpop.f32.mrf.mxu1 }
 0x597   :  { %25274 = vst [vmem:[#allocation47_spill] sm:$0xff] %v19738_v50  ;;  %v4083_v50 = vadd.f32 %v4082_v8, %v19668_v11 }
 0x598   :  { %v16466_v14 = vpop.f32.mrf.mxu1 }
 0x599   :  { %v4467_v40 = vadd.f32 %v16466_v14, %v4272_v5  ;;  %v4107_v5 = vadd.f32 %v4106_v18, %v19678_v21  ;;  %v4314_v21 = vadd.f32 %v19696_v20, %v19714_v43 }
 0x59a   :  { %v4458_v19 = vpop.f32.mrf.mxu1 }
 0x59b   :  { %v4704_v60 = vadd.f32 %v16522_v41, %v4467_v40  ;;  %v4307_v40 = vadd.f32 %v19700_v2, %v4107_v5  ;;  %v4321_v2 = vadd.f32 %v19708_v31, %v4119_v61 }
 0x59c   :  { %v16469_v0 = vpop.f32.mrf.mxu1 }
 0x59d   :  { %v4483_v8 = vadd.f32 %v16469_v0, %v4286_v15 }
 0x59e   :  { %v4474_v48 = vpop.f32.mrf.mxu1  ;;  %v25294_v61 = vld [vmem:[#allocation47_spill] sm:$0xff] }
 0x5a0   :  { %v16472_v53 = vpop.f32.mrf.mxu1 }
 0x5a1   :  { %v4499_v13 = vadd.f32 %v16472_v53, %v4300_v47 }
 0x5a2   :  { %v4490_v32 = vpop.f32.mrf.mxu1 }
 0x5a4   :  { %v16475_v9 = vpop.f32.mrf.mxu1 }
 0x5a6   :  { %v4506_v28 = vpop.f32.mrf.mxu1 }
 0x5a7   :  { %v4507_v53 = vadd.f32 %v4506_v28, %v4307_v40 }
 0x5a8   :  { %v19740_v16 = vpop.f32.mrf.mxu1 }
 0x5a9   :  { %v4734_v6 = vadd.f32 %v4733_v59, %v4507_v53 }
 0x5aa   :  { %v19742_v42 = vpop.f32.mrf.mxu1 }
 0x5ab   :  { %v4523_v45 = vadd.f32 %v19742_v42, %v4321_v2 }
 0x5ac   :  { %v19744_v23 = vpop.f32.mrf.mxu1 }
 0x5ad   :  { %25275 = vst [vmem:[#allocation20_spill] sm:$0xff] %v19744_v23  ;;  %v4459_v23 = vadd.f32 %v4458_v19, %v4265_v7  ;;  %v4293_v7 = vadd.f32 %v19692_v29, %v4095_v12  ;;  %v4716_v19 = vadd.f32 %v16525_v54, %v4483_v8  ;;  %v4515_v54 = vadd.f32 %v16475_v9, %v4314_v21 }
 0x5ae   :  { %v19746_v26 = vpop.f32.mrf.mxu1 }
 0x5af   :  { %25276 = vst [vmem:[#allocation24_spill] sm:$0xff] %v19746_v26  ;;  %v4698_v36 = vadd.f32 %v4697_v63, %v4459_v23  ;;  %v4125_v23 = vadd.f32 %v19718_v34, %v19680_v51  ;;  %v4728_v63 = vadd.f32 %v16528_v1, %v4499_v13  ;;  %v4740_v31 = vadd.f32 %v19749_v27, %v4515_v54 }
 0x5b0   :  { %v19751_v44 = vpop.f32.mrf.mxu1 }
 0x5b1   :  { %25277 = vst [vmem:[#allocation29_spill] sm:$0xff] %v19751_v44  ;;  %v4279_v44 = vadd.f32 %v19682_v4, %v4083_v50  ;;  %v4491_v4 = vadd.f32 %v4490_v32, %v4293_v7  ;;  %v4328_v20 = vadd.f32 %v19706_v49, %v4125_v23  ;;  %v4131_v32 = vadd.f32 %v19726_v39, %v19690_v62  ;;  %v25293_v23 = vld [vmem:[#allocation21_spill] sm:$0xff] }
 0x5b2   :  { %v19753_v30 = vpop.f32.mrf.mxu1  ;;  %v4143_v62 = vadd.f32 %v19732_v52, %v19698_v55  ;;  %v4342_v39 = vadd.f32 %v19710_v24, %v4137_v46  ;;  %v25289_v52 = vld [vmem:[#allocation17_spill] sm:$0xff] }
 0x5b3   :  { %25278 = vst [vmem:[#allocation28_spill] sm:$0xff] %v19753_v30  ;;  %v19765_v30 = vpop.f32.mrf.mxu0  ;;  %v4475_v10 = vadd.f32 %v4474_v48, %v4279_v44  ;;  %v4722_v34 = vadd.f32 %v4721_v58, %v4491_v4  ;;  %v4531_v12 = vadd.f32 %v19740_v16, %v4328_v20  ;;  %v4335_v16 = vadd.f32 %v19712_v17, %v4131_v32  ;;  %v25291_v17 = vld [vmem:[#allocation25_spill] sm:$0xff]  ;;  %v25292_v4 = vld [vmem:[#allocation30_spill] sm:$0xff] }
 0x5b4   :  { %v19758_v22 = vpop.f32.mrf.mxu1  ;;  %v25286_v7 = vld [vmem:[#allocation20_spill] sm:$0xff] }
 0x5b5   :  { %25279 = vst [vmem:[#allocation34_spill] sm:$0xff] %v19758_v22  ;;  %v4745_v56 = vpop.f32.mrf.mxu0  ;;  %v4710_v0 = vadd.f32 %v4709_v37, %v4475_v10  ;;  %v4752_v27 = vadd.f32 %v19765_v30, %v4531_v12  ;;  %v4155_v30 = vadd.f32 %v25294_v61, %v25293_v23 }
 0x5b6   :  { %v19760_v26 = vpop.f32.mrf.mxu1  ;;  %v4746_v24 = vadd.f32 %v4745_v56, %v4523_v45 }
 0x5b8   :  { %v16578_v11 = vpop.f32.mrf.mxu1 }
 0x5b9   :  { %v4881_v14 = vadd.f32 %v16578_v11, %v4704_v60  ;;  %v4149_v11 = vadd.f32 %v19730_v25, %v19694_v3  ;;  %v4547_v3 = vadd.f32 %v25286_v7, %v4342_v39  ;;  %v25287_v25 = vld [vmem:[#allocation24_spill] sm:$0xff] }
 0x5ba   :  { %v4874_v22 = vpop.f32.mrf.mxu1 }
 0x5bb   :  { %v4875_v38 = vadd.f32 %v4874_v22, %v4698_v36  ;;  %v4969_v33 = vsel %vm25281_vm5, %v4881_v14, 0.0  ;;  %v16537_v22 = vpop.f32.mrf.mxu0  ;;  %v4539_v14 = vadd.f32 %v25287_v25, %v4335_v16  ;;  %vm25307_vm5 = vmmov %vm25304_vm0 }
 0x5bc   :  { %v16581_v35 = vpop.f32.mrf.mxu1  ;;  %v4764_v53 = vadd.f32 %v16537_v22, %v4547_v3  ;;  %v25302_v45 = vld [vmem:[#allocation34_spill] sm:$0xff] }
 0x5bd   :  { %v4968_v50 = vsel %vm25280_vm4, %v4875_v38, 0.0  ;;  %v4893_v18 = vadd.f32 %v16581_v35, %v4716_v19  ;;  %v4757_v28 = vpop.f32.mrf.mxu0  ;;  %v25290_v38 = vld [vmem:[#allocation44_spill] sm:$0xff]  ;;  %v4356_v35 = vadd.f32 %v25291_v17, %v4149_v11  ;;  %vm25306_vm4 = vmmov %vm25304_vm0 }
 0x5be   :  { %v4886_v29 = vpop.f32.mrf.mxu1  ;;  %v4970_v41 = vadd.f32 %v4969_v33, %v4968_v50  ;;  %v4161_v13 = vadd.f32 %v25290_v38, %v25289_v52  ;;  %v4349_v50 = vadd.f32 %v25292_v4, %v4143_v62 }
 0x5bf   :  { %v4887_v44 = vadd.f32 %v4886_v29, %v4710_v0  ;;  %v4973_v37 = vsel %vm25283_vm13, %v4893_v18, 0.0  ;;  %v16540_v47 = vpop.f32.mrf.mxu0  ;;  %v25296_v18 = vld [vmem:[#allocation29_spill] sm:$0xff]  ;;  %vm25309_vm13 = vmmov %vm25304_vm0 }
 0x5c0   :  { %v16584_v48 = vpop.f32.mrf.mxu1 }
 0x5c1   :  { %v4971_v51 = vsel %vm25282_vm10, %v4887_v44, 0.0  ;;  %v4905_v1 = vadd.f32 %v16584_v48, %v4728_v63  ;;  %v4769_v33 = vpop.f32.mrf.mxu0  ;;  %v4563_v44 = vadd.f32 %v25296_v18, %v4356_v35  ;;  %v25297_v63 = vld [vmem:[#allocation28_spill] sm:$0xff]  ;;  %vm25308_vm10 = vmmov %vm25304_vm0 }
 0x5c2   :  { %v4972_v43 = vadd.f32 %v4971_v51, %v4970_v41  ;;  %v4898_v57 = vpop.f32.mrf.mxu1  ;;  %v4555_v48 = vadd.f32 %v25297_v63, %v4349_v50  ;;  %v4758_v51 = vadd.f32 %v4757_v28, %v4539_v14  ;;  %v3545_v63 = vld [vmem:[%s24466_s8] sm:$0x1] }
 0x5c3   :  { %v4899_v9 = vadd.f32 %v4898_v57, %v4722_v34  ;;  %v4977_v60 = vsel %vm25285_vm15, %v4905_v1, 0.0  ;;  %v25299_v34 = vld [vmem:[#allocation35_spill] sm:$0xff] }
 0x5c4   :  { %v4974_v58 = vadd.f32 %v4973_v37, %v4972_v43  ;;  %v16587_v15 = vpop.f32.mrf.mxu1  ;;  %v4370_v46 = vadd.f32 %v25299_v34, %v4161_v13  ;;  %v25300_v43 = vld [vmem:[#allocation39_spill] sm:$0xff]  ;;  %v4770_v28 = vadd.f32 %v4769_v33, %v4555_v48 }
 0x5c5   :  { %v4975_v49 = vsel %vm25284_vm14, %v4899_v9, 0.0  ;;  %v4917_v42 = vadd.f32 %v16587_v15, %v4740_v31  ;;  %v4363_v57 = vadd.f32 %v25300_v43, %v4155_v30  ;;  %v16543_v9 = vpop.f32.mrf.mxu0  ;;  %vm25312_vm14 = vmmov %vm25304_vm0 }
 0x5c6   :  { %v4976_v8 = vadd.f32 %v4975_v49, %v4974_v58  ;;  %v4910_v10 = vpop.f32.mrf.mxu1  ;;  %v4776_v58 = vadd.f32 %v16540_v47, %v4563_v44  ;;  %v4579_v49 = vadd.f32 %v25302_v45, %v4370_v46  ;;  %v3544_v44 = vld [vmem:[%s24465_s7] sm:$0x1]  ;;  %v25310_v46 = vld [vmem:[#allocation66_spill] sm:$0xff] }
 0x5c7   :  { %v4911_v36 = vadd.f32 %v4910_v10, %v4734_v6  ;;  %v4981_v21 = vsel %vm25295_vm11, %v4917_v42, 0.0  ;;  %v4571_v31 = vadd.f32 %v19760_v26, %v4363_v57  ;;  %v4781_v16 = vpop.f32.mrf.mxu0 }
 0x5c8   :  { %v4978_v5 = vadd.f32 %v4977_v60, %v4976_v8  ;;  %v16590_v59 = vpop.f32.mrf.mxu1  ;;  %v4788_v47 = vadd.f32 %v16543_v9, %v4579_v49  ;;  %v25314_v9 = vmov 1.0   ;;  %v25317_v49 = vld [vmem:[#allocation62_spill] sm:$0xff] }
 0x5c9   :  { %v4979_v55 = vsel %vm25288_vm1, %v4911_v36, 0.0  ;;  %v4929_v29 = vadd.f32 %v16590_v59, %v4752_v27 }
 0x5ca   :  { %v4980_v19 = vadd.f32 %v4979_v55, %v4978_v5  ;;  %v4922_v0 = vpop.f32.mrf.mxu1  ;;  %v4782_v5 = vadd.f32 %v4781_v16, %v4571_v31  ;;  %v25318_v31 = vld [vmem:[#allocation63_spill] sm:$0xff]  ;;  %v7159_v16 = vld [vmem:[%s24467_s9 + $0x170] sm:$0xff] }
 0x5cb   :  { %v4923_v40 = vadd.f32 %v4922_v0, %v4746_v24  ;;  %v4990_v32 = vsel %vm25301_vm9, %v4929_v29, 0.0 }
 0x5cc   :  { %v4982_v56 = vadd.f32 %v4981_v21, %v4980_v19  ;;  %v16593_v41 = vpop.f32.mrf.mxu1 }
 0x5cd   :  { %v4989_v54 = vsel %vm25298_vm12, %v4923_v40, 0.0  ;;  %v4941_v37 = vadd.f32 %v16593_v41, %v4764_v53 }
 0x5ce   :  { %v4983_v20 = vrot.slane %v4982_v56, 4  ;;  %v4934_v2 = vpop.f32.mrf.mxu1  ;;  %v4991_v12 = vadd.f32 %v4990_v32, %v4989_v54  ;;  %v25313_v32 = vld [vmem:[#allocation67_spill] sm:$0xff] }
 0x5cf   :  { %v4935_v1 = vadd.f32 %v4934_v2, %v4758_v51  ;;  %v4994_v39 = vsel %vm25304_vm0, %v4941_v37, 0.0 }
 0x5d0   :  { %v16596_v15 = vpop.f32.mrf.mxu1  ;;  %v4984_v6 = vadd.f32 %v4983_v20, %v4982_v56  ;;  %v25311_v20 = vmov 0.0  }
 0x5d1   :  { %v4992_v22 = vsel %vm25303_vm7, %v4935_v1, 0.0  ;;  %v4953_v8 = vadd.f32 %v16596_v15, %v4776_v58 }
 0x5d2   :  { %v4993_v11 = vadd.f32 %v4992_v22, %v4991_v12  ;;  %v4946_v62 = vpop.f32.mrf.mxu1  ;;  %v4985_v27 = vrot.slane %v4984_v6, 2  ;;  %v25319_v22 = vld [vmem:[#allocation64_spill] sm:$0xff] }
 0x5d3   :  { %v4947_v10 = vadd.f32 %v4946_v62, %v4770_v28  ;;  %v4998_v7 = vsel %vm25306_vm4, %v4953_v8, 0.0  ;;  %v7144_v62 = vld [vmem:[%s24467_s9 + $0xf8] sm:$0xff] }
 0x5d4   :  { %v4995_v60 = vadd.f32 %v4994_v39, %v4993_v11  ;;  %v16599_v42 = vpop.f32.mrf.mxu1  ;;  %v4986_v24 = vadd.f32 %v4985_v27, %v4984_v6  ;;  %v25320_v6 = vld [vmem:[#allocation65_spill] sm:$0xff]  ;;  %v7160_v39 = vld [vmem:[%s24467_s9 + $0x178] sm:$0xff]  ;;  %v7157_v27 = vld [vmem:[%s24467_s9 + $0x160] sm:$0xff] }
 0x5d5   :  { %v4996_v36 = vsel %vm25305_vm2, %v4947_v10, 0.0  ;;  %v4965_v3 = vadd.f32 %v16599_v42, %v4788_v47  ;;  %v7128_v8 = vld [vmem:[%s24467_s9 + $0x78] sm:$0xff]  ;;  %v7143_v10 = vld [vmem:[%s24467_s9 + $0xf0] sm:$0xff]  ;;  %v7142_v42 = vld [vmem:[%s24467_s9 + $0xe8] sm:$0xff] }
 0x5d6   :  { %v4997_v59 = vadd.f32 %v4996_v36, %v4995_v60  ;;  %v4958_v26 = vpop.f32.mrf.mxu1  ;;  %v4987_v17 = vrot.slane %v4986_v24, 1  ;;  %v7127_v60 = vld [vmem:[%s24467_s9 + $0x70] sm:$0xff]  ;;  %v7158_v36 = vld [vmem:[%s24467_s9 + $0x168] sm:$0xff] }
 0x5d7   :  { %v4959_v25 = vadd.f32 %v4958_v26, %v4782_v5  ;;  %v5002_v38 = vsel %vm25308_vm10, %v4965_v3, 0.0  ;;  %v7126_v47 = vld [vmem:[%s24467_s9 + $0x68] sm:$0xff]  ;;  %v7141_v5 = vld [vmem:[%s24467_s9 + $0xe0] sm:$0xff]  ;;  %v7140_v26 = vld [vmem:[%s24467_s9 + $0xd8] sm:$0xff]  ;;  %vm25355_vm10 = vcmask 1040384  }
 0x5d8   :  { %v4999_v14 = vadd.f32 %v4998_v7, %v4997_v59  ;;  %v4988_v50 = vadd.f32 %v4987_v17, %v4986_v24  ;;  %v7125_v59 = vld [vmem:[%s24467_s9 + $0x60] sm:$0xff]  ;;  %v7156_v7 = vld [vmem:[%s24467_s9 + $0x158] sm:$0xff]  ;;  %v7138_v24 = vld [vmem:[%s24467_s9 + $0xc8] sm:$0xff] }
 0x5d9   :  { %v5000_v55 = vsel %vm25307_vm5, %v4959_v25, 0.0  ;;  %v7124_v3 = vld [vmem:[%s24467_s9 + $0x58] sm:$0xff]  ;;  %v7139_v25 = vld [vmem:[%s24467_s9 + $0xd0] sm:$0xff]  ;;  %v7153_v17 = vld [vmem:[%s24467_s9 + $0x140] sm:$0xff] }
 0x5da   :  { %v5001_v52 = vadd.f32 %v5000_v55, %v4999_v14  ;;  %v5010_v23 = vmul.f32 0.001953125, %v4988_v50  ;;  %v7155_v14 = vld [vmem:[%s24467_s9 + $0x150] sm:$0xff]  ;;  %v7152_v50 = vld [vmem:[%s24467_s9 + $0x138] sm:$0xff] }
 0x5db   :  { %v7123_v55 = vld [vmem:[%s24467_s9 + $0x50] sm:$0xff] }
 0x5dc   :  { %v5003_v13 = vadd.f32 %v5002_v38, %v5001_v52  ;;  %v5012_v21 = vmul.f32 %v5010_v23, %v5010_v23  ;;  %v7154_v52 = vld [vmem:[%s24467_s9 + $0x148] sm:$0xff] }
 0x5dd   :  { %v7122_v38 = vld [vmem:[%s24467_s9 + $0x48] sm:$0xff] }
 0x5de   :  { %v5004_v35 = vrot.slane %v5003_v13, 4 }
 0x5e0   :  { %v5005_v4 = vadd.f32 %v5004_v35, %v5003_v13  ;;  %v7137_v13 = vld [vmem:[%s24467_s9 + $0xc0] sm:$0xff] }
 0x5e1   :  { %v7121_v35 = vld [vmem:[%s24467_s9 + $0x40] sm:$0xff] }
 0x5e2   :  { %v5006_v19 = vrot.slane %v5005_v4, 2 }
 0x5e4   :  { %v5007_v0 = vadd.f32 %v5006_v19, %v5005_v4  ;;  %v7136_v4 = vld [vmem:[%s24467_s9 + $0xb8] sm:$0xff] }
 0x5e5   :  { %v7120_v19 = vld [vmem:[%s24467_s9 + $0x38] sm:$0xff] }
 0x5e6   :  { %v5008_v61 = vrot.slane %v5007_v0, 1 }
 0x5e8   :  { %v5009_v30 = vadd.f32 %v5008_v61, %v5007_v0  ;;  %v7135_v0 = vld [vmem:[%s24467_s9 + $0xb0] sm:$0xff] }
 0x5e9   :  { %v7119_v61 = vld [vmem:[%s24467_s9 + $0x30] sm:$0xff] }
 0x5ea   :  { %v5011_v29 = vmul.f32 0.001953125, %v5009_v30  ;;  %v7134_v30 = vld [vmem:[%s24467_s9 + $0xa8] sm:$0xff] }
 0x5ec   :  { %v5013_v40 = vsub.f32 %v5011_v29, %v5012_v21  ;;  %v7150_v21 = vld [vmem:[%s24467_s9 + $0x128] sm:$0xff] }
 0x5ed   :  { %v7118_v29 = vld [vmem:[%s24467_s9 + $0x28] sm:$0xff] }
 0x5ee   :  { %v5014_v33 = vmax.f32 %v5013_v40, 0.0  ;;  %v7133_v40 = vld [vmem:[%s24467_s9 + $0xa0] sm:$0xff] }
 0x5f0   :  { %v5015_v18 = vadd.f32 1e-05, %v5014_v33  ;;  %v7149_v33 = vld [vmem:[%s24467_s9 + $0x120] sm:$0xff] }
 0x5f2   :  { %17629 = vrsqrt.f32 %v5015_v18  ;;  %v7117_v18 = vld [vmem:[%s24467_s9 + $0x20] sm:$0xff] }
 0x5ff   :  { %v17630_v56 = vpop.eup %17629 }
 0x600   :  { %v5017_v41 = vmul.f32 %v17630_v56, %v3544_v44  ;;  %v7132_v44 = vld [vmem:[%s24467_s9 + $0x98] sm:$0xff] }
 0x601   :  { %v7148_v56 = vld [vmem:[%s24467_s9 + $0x118] sm:$0xff] }
 0x602   :  { %v5021_v48 = vsel %vm25309_vm13, %v5017_v41, 0  ;;  %v5018_v54 = vmul.f32 %v5017_v41, %v5010_v23  ;;  %v7151_v23 = vld [vmem:[%s24467_s9 + $0x130] sm:$0xff]  ;;  %v7116_v41 = vld [vmem:[%s24467_s9 + $0x18] sm:$0xff]  ;;  %vm25356_vm13 = vmmov %vm25355_vm10 }
 0x603   :  { %v5090_v53 = vand.u32 4294901760, %v5021_v48 }
 0x604   :  { %v5019_v51 = vsub.f32 %v3545_v63, %v5018_v54  ;;  %v7131_v63 = vld [vmem:[%s24467_s9 + $0x90] sm:$0xff] }
 0x605   :  { %v5091_v34 = vsub.f32 %v5021_v48, %v5090_v53  ;;  %16640 = vmatmul.mubr.f32.vlgmr.msra.gmra.mxu1 %v5090_v53  ;;  %v7147_v48 = vld [vmem:[%s24467_s9 + $0x110] sm:$0xff] }
 0x606   :  { %16650 = vmatpush3.msra.mxu1 %v25310_v46  ;;  %16653 = vmatprep.mubr.msk.f32.mxu1 %vm25251_vm6, %v25311_v20  ;;  %v5483_v2 = vsel %vm25312_vm14, %v5019_v51, 0  ;;  %v7115_v54 = vld [vmem:[%s24467_s9 + $0x10] sm:$0xff]  ;;  %v7146_v51 = vld [vmem:[%s24467_s9 + $0x108] sm:$0xff]  ;;  %vm25357_vm14 = vmmov %vm25355_vm10 }
 0x607   :  { %16651 = vmatprep.subr.mxu1 %v25311_v20  ;;  %v5552_v43 = vand.u32 4294901760, %v5483_v2  ;;  %v5092_v57 = vand.u32 4294901760, %v5091_v34 }
 0x608   :  { %16652 = vmatpush3.msra.mxu1 %v25313_v32 }
 0x609   :  { %v5553_v37 = vsub.f32 %v5483_v2, %v5552_v43  ;;  %16654 = vmatmul.mubr.f32.vlgmr.msra.gmra.mxu1 %v5552_v43  ;;  %16663 = vmatprep.subr.mxu1 %v25311_v20  ;;  %v5093_v1 = vsub.f32 %v5091_v34, %v5092_v57  ;;  %v7145_v2 = vld [vmem:[%s24467_s9 + $0x100] sm:$0xff] }
 0x60a   :  { %16664 = vmatpush3.msk.msra.mxu1 %vm25266_vm3, %v25314_v9  ;;  %16667 = vmatprep.mubr.msk.f32.mxu1 %vm25251_vm6, %v25311_v20 }
 0x60b   :  { %16665 = vmatprep.subr.mxu1 %v25311_v20  ;;  %v5094_v58 = vand.u32 4294901760, %v5093_v1  ;;  %v5554_v15 = vand.u32 4294901760, %v5553_v37 }
 0x60c   :  { %16666 = vmatpush3.msk.msra.mxu1 %vm25247_vm8, %v25314_v9 }
 0x60d   :  { %16605 = vmatmul.mubr.f32.vlgmr.msra.gmra.mxu0 %v5094_v58  ;;  %16668 = vmatmul.mubr.f32.vlgmr.msra.gmra.mxu1 %v5554_v15  ;;  %v5555_v28 = vsub.f32 %v5553_v37, %v5554_v15 }
 0x60e   :  { %16608 = vmatpush3.msra.mxu0 %v25310_v46  ;;  %16677 = vmatprep.subr.mxu1 %v25311_v20  ;;  %v7129_v46 = vld [vmem:[%s24467_s9 + $0x80] sm:$0xff] }
 0x60f   :  { %16609 = vmatprep.subr.mxu0 %v25311_v20  ;;  %16678 = vmatpush3.msk.msra.mxu1 %vm25266_vm3, %v25314_v9  ;;  %v5556_v11 = vand.u32 4294901760, %v5555_v28 }
 0x610   :  { %16610 = vmatpush3.msra.mxu0 %v25313_v32  ;;  %16679 = vmatprep.subr.mxu1 %v25311_v20 }
 0x611   :  { %16611 = vmatprep.mubr.msk.f32.mxu0 %vm25251_vm6, %v25311_v20  ;;  %16614 = vmatprep.subr.mxu0 %v25311_v20 }
 0x612   :  { %16680 = vmatpush3.msk.msra.mxu1 %vm25247_vm8, %v25314_v9  ;;  %16681 = vmatprep.mubr.msk.f32.mxu1 %vm25251_vm6, %v25311_v20 }
 0x613   :  { %16612 = vmatmul.mubr.f32.vlgmr.msra.gmra.mxu0 %v5090_v53  ;;  %16682 = vmatmul.mubr.f32.vlgmr.msra.gmra.mxu1 %v5552_v43 }
 0x614   :  { %16615 = vmatpush3.msra.mxu0 %v25317_v49  ;;  %16618 = vmatprep.mubr.msk.f32.mxu0 %vm25251_vm6, %v25311_v20 }
 0x615   :  { %16616 = vmatprep.subr.mxu0 %v25311_v20  ;;  %16684 = vmatprep.subr.mxu1 %v7160_v39 }
 0x616   :  { %16617 = vmatpush3.msra.mxu0 %v25318_v31  ;;  %16685 = vmatpush3.msra.mxu1 %v7160_v39 }
 0x617   :  { %16621 = vmatprep.subr.mxu0 %v25311_v20  ;;  %16619 = vmatmul.mubr.f32.vlgmr.msra.gmra.mxu0 %v5091_v34  ;;  %v7114_v34 = vld [vmem:[%s24467_s9 + $0x8] sm:$0xff] }
 0x618   :  { %16622 = vmatpush3.msk.msra.mxu0 %vm25266_vm3, %v25314_v9  ;;  %16625 = vmatprep.mubr.msk.f32.mxu0 %vm25251_vm6, %v25311_v20 }
 0x619   :  { %16623 = vmatprep.subr.mxu0 %v25311_v20  ;;  %16686 = vmatprep.subr.mxu1 %v7159_v16 }
 0x61a   :  { %16624 = vmatpush3.msk.msra.mxu0 %vm25247_vm8, %v25314_v9  ;;  %16687 = vmatpush3.msra.mxu1 %v7159_v16 }
 0x61b   :  { %16628 = vmatprep.subr.mxu0 %v25311_v20  ;;  %16626 = vmatmul.mubr.f32.vlgmr.msra.gmra.mxu0 %v5092_v57 }
 0x61c   :  { %16629 = vmatpush3.msra.mxu0 %v25319_v22  ;;  %16632 = vmatprep.mubr.msk.f32.mxu0 %vm25251_vm6, %v25311_v20 }
 0x61d   :  { %16630 = vmatprep.subr.mxu0 %v25311_v20  ;;  %16688 = vmatprep.subr.mxu1 %v7158_v36 }
 0x61e   :  { %16631 = vmatpush3.msra.mxu0 %v25320_v6  ;;  %16689 = vmatpush3.msra.mxu1 %v7158_v36 }
 0x61f   :  { %16642 = vmatprep.subr.mxu0 %v25311_v20  ;;  %16633 = vmatmul.mubr.f32.vlgmr.msra.gmra.mxu0 %v5090_v53  ;;  %v7130_v53 = vld [vmem:[%s24467_s9 + $0x88] sm:$0xff] }
 0x620   :  { %16643 = vmatpush3.msk.msra.mxu0 %vm25266_vm3, %v25314_v9  ;;  %16646 = vmatprep.mubr.msk.f32.mxu0 %vm25251_vm6, %v25311_v20 }
 0x621   :  { %16644 = vmatprep.subr.mxu0 %v25311_v20  ;;  %16690 = vmatprep.subr.mxu1 %v7157_v27 }
 0x622   :  { %16645 = vmatpush3.msk.msra.mxu0 %vm25247_vm8, %v25314_v9  ;;  %16691 = vmatpush3.msra.mxu1 %v7157_v27  ;;  %v25321_v27 = vld [vmem:[#allocation58_spill] sm:$0xff] }
 0x623   :  { %16656 = vmatprep.subr.mxu0 %v25311_v20  ;;  %16647 = vmatmul.mubr.f32.vlgmr.msra.gmra.mxu0 %v5556_v11 }
 0x624   :  { %16657 = vmatpush3.msra.mxu0 %v25317_v49  ;;  %16660 = vmatprep.mubr.msk.f32.mxu0 %vm25251_vm6, %v25311_v20 }
 0x625   :  { %16658 = vmatprep.subr.mxu0 %v25311_v20  ;;  %16692 = vmatprep.subr.mxu1 %v7156_v7 }
 0x626   :  { %16659 = vmatpush3.msra.mxu0 %v25318_v31  ;;  %16693 = vmatpush3.msra.mxu1 %v7156_v7 }
 0x627   :  { %16670 = vmatprep.subr.mxu0 %v25311_v20  ;;  %16661 = vmatmul.mubr.f32.vlgmr.msra.gmra.mxu0 %v5553_v37 }
 0x628   :  { %16671 = vmatpush3.msra.mxu0 %v25319_v22  ;;  %16674 = vmatprep.mubr.msk.f32.mxu0 %vm25251_vm6, %v25311_v20 }
 0x629   :  { %16672 = vmatprep.subr.mxu0 %v25311_v20  ;;  %16694 = vmatprep.subr.mxu1 %v7155_v14 }
 0x62a   :  { %16673 = vmatpush3.msra.mxu0 %v25320_v6  ;;  %16695 = vmatpush3.msra.mxu1 %v7155_v14  ;;  %v25324_v14 = vld [vmem:[#allocation53_spill] sm:$0xff] }
 0x62b   :  { %16675 = vmatmul.mubr.f32.vlgmr.msra.gmra.mxu0 %v5552_v43  ;;  %14872 = vmatprep.subr.mxu0 %v7144_v62  ;;  %v7113_v43 = vld [vmem:[%s24467_s9] sm:$0xff] }
 0x62c   :  { %14873 = vmatpush3.msra.mxu0 %v7128_v8  ;;  %16696 = vmatprep.subr.mxu1 %v7154_v52 }
 0x62d   :  { %14874 = vmatprep.subr.mxu0 %v7143_v10  ;;  %16697 = vmatpush3.msra.mxu1 %v7154_v52 }
 0x62e   :  { %14875 = vmatpush3.msra.mxu0 %v7127_v60  ;;  %16698 = vmatprep.subr.mxu1 %v7153_v17 }
 0x62f   :  { %14876 = vmatprep.subr.mxu0 %v7142_v42  ;;  %16699 = vmatpush3.msra.mxu1 %v7153_v17  ;;  %v25327_v17 = vld [vmem:[#allocation68_spill] sm:$0xff] }
 0x630   :  { %14877 = vmatpush3.msra.mxu0 %v7126_v47  ;;  %16700 = vmatprep.subr.mxu1 %v7152_v50 }
 0x631   :  { %14878 = vmatprep.subr.mxu0 %v7141_v5  ;;  %16701 = vmatpush3.msra.mxu1 %v7152_v50  ;;  %v25328_v50 = vld [vmem:[#allocation69_spill] sm:$0xff] }
 0x632   :  { %14879 = vmatpush3.msra.mxu0 %v7125_v59  ;;  %16702 = vmatprep.subr.mxu1 %v7151_v23  ;;  %v7568_v59 = vand.u32 7, %v25321_v27 }
 0x633   :  { %14880 = vmatprep.subr.mxu0 %v7140_v26  ;;  %16703 = vmatpush3.msra.mxu1 %v7151_v23  ;;  %v25322_v26 = vld [vmem:[#allocation57_spill] sm:$0xff] }
 0x634   :  { %14881 = vmatpush3.msra.mxu0 %v7124_v3  ;;  %16704 = vmatprep.subr.mxu1 %v7150_v21  ;;  %v7561_v7 = vand.u32 7, %v25322_v26  ;;  %v25323_v3 = vld [vmem:[#allocation54_spill] sm:$0xff]  ;;  %v25350_v26 = vld [vmem:[#allocation36_spill] sm:$0xff] }
 0x635   :  { %14882 = vmatprep.subr.mxu0 %v7139_v25  ;;  %16705 = vmatpush3.msra.mxu1 %v7150_v21  ;;  %v7554_v25 = vand.u32 7, %v25323_v3  ;;  %v25351_v3 = vld [vmem:[#allocation40_spill] sm:$0xff] }
 0x636   :  { %14883 = vmatpush3.msra.mxu0 %v7123_v55  ;;  %16706 = vmatprep.subr.mxu1 %v7149_v33 }
 0x637   :  { %14884 = vmatprep.subr.mxu0 %v7138_v24  ;;  %16707 = vmatpush3.msra.mxu1 %v7149_v33  ;;  %v25325_v24 = vld [vmem:[#allocation56_spill] sm:$0xff] }
 0x638   :  { %14885 = vmatpush3.msra.mxu0 %v7122_v38  ;;  %16708 = vmatprep.subr.mxu1 %v7148_v56  ;;  %v7547_v52 = vand.u32 7, %v25325_v24  ;;  %v25326_v38 = vld [vmem:[#allocation59_spill] sm:$0xff] }
 0x639   :  { %14886 = vmatprep.subr.mxu0 %v7137_v13  ;;  %16709 = vmatpush3.msra.mxu1 %v7148_v56  ;;  %v7540_v13 = vand.u32 7, %v25326_v38  ;;  %v25333_v56 = vld [vmem:[#allocation26_spill] sm:$0xff] }
 0x63a   :  { %14887 = vmatpush3.msra.mxu0 %v7121_v35  ;;  %16710 = vmatprep.subr.mxu1 %v7147_v48  ;;  %v7533_v35 = vand.u32 7, %v25327_v17  ;;  %v25352_v38 = vld [vmem:[#allocation42_spill] sm:$0xff] }
 0x63b   :  { %14888 = vmatprep.subr.mxu0 %v7136_v4  ;;  %16711 = vmatpush3.msra.mxu1 %v7147_v48 }
 0x63c   :  { %14889 = vmatpush3.msra.mxu0 %v7120_v19  ;;  %16712 = vmatprep.subr.mxu1 %v7146_v51  ;;  %v7526_v19 = vand.u32 7, %v25328_v50 }
 0x63d   :  { %14890 = vmatprep.subr.mxu0 %v7135_v0  ;;  %16713 = vmatpush3.msra.mxu1 %v7146_v51  ;;  %v25329_v0 = vld [vmem:[#allocation70_spill] sm:$0xff] }
 0x63e   :  { %14891 = vmatpush3.msra.mxu0 %v7119_v61  ;;  %16714 = vmatprep.subr.mxu1 %v7145_v2 }
 0x63f   :  { %14892 = vmatprep.subr.mxu0 %v7134_v30  ;;  %16715 = vmatpush3.msra.mxu1 %v7145_v2  ;;  %v25330_v30 = vld [vmem:[#allocation15_spill] sm:$0xff] }
 0x640   :  { %14893 = vmatpush3.msra.mxu0 %v7118_v29 }
 0x641   :  { %14894 = vmatprep.subr.mxu0 %v7133_v40  ;;  %v25331_v40 = vld [vmem:[#allocation18_spill] sm:$0xff] }
 0x642   :  { %14895 = vmatpush3.msra.mxu0 %v7117_v18  ;;  %v25332_v18 = vld [vmem:[#allocation22_spill] sm:$0xff] }
 0x643   :  { %14896 = vmatprep.subr.mxu0 %v7132_v44 }
 0x644   :  { %14897 = vmatpush3.msra.mxu0 %v7116_v41 }
 0x645   :  { %14898 = vmatprep.subr.mxu0 %v7131_v63  ;;  %v25334_v63 = vld [vmem:[#allocation31_spill] sm:$0xff] }
 0x646   :  { %14899 = vmatpush3.msra.mxu0 %v7115_v54 }
 0x647   :  { %14900 = vmatprep.subr.mxu0 %v7130_v53  ;;  %v25335_v53 = vld [vmem:[#allocation13_spill] sm:$0xff] }
 0x648   :  { %14901 = vmatpush3.msra.mxu0 %v7114_v34  ;;  %vm20064_vm8 = vcmp.eq.s32.totalorder %v7568_v59, %v25335_v53  ;;  %vm20069_vm3 = vcmp.eq.s32.totalorder %v7561_v7, %v25335_v53  ;;  %vm20074_vm15 = vcmp.eq.s32.totalorder %v7554_v25, %v25335_v53  ;;  %vm20088_vm1 = vcmp.eq.s32.totalorder %v7547_v52, %v25335_v53 }
 0x649   :  { %14902 = vmatprep.subr.mxu0 %v7129_v46  ;;  %16740 = vmatprep.subr.msk.mxu1 %vm20064_vm8, %v25314_v9  ;;  %vm20105_vm11 = vcmp.eq.s32.totalorder %v7540_v13, %v25335_v53  ;;  %vm20110_vm12 = vcmp.eq.s32.totalorder %v7533_v35, %v25335_v53  ;;  %vm20115_vm9 = vcmp.eq.s32.totalorder %v7526_v19, %v25335_v53 }
 0x64a   :  { %14903 = vmatpush3.msra.mxu0 %v7113_v43  ;;  %v14435_v43 = vsel %vm20064_vm8, 1.0, %v25311_v20 }
 0x6c5   :  { %v5478_v57 = vpop.f32.mrf.mxu1 }
 0x6c7   :  { %v16641_v32 = vpop.f32.mrf.mxu1 }
 0x6c8   :  { %v14433_v32 = vsel %vm20074_vm15, 1.0, %v25311_v20 }
 0x6c9   :  { %v5639_v37 = vpop.f32.mrf.mxu1 }
 0x6cb   :  { %v16655_v1 = vpop.f32.mrf.mxu1 }
 0x6cd   :  { %v5096_v12 = vpop.f32.mrf.mxu0  ;;  %v5790_v58 = vpop.f32.mrf.mxu1 }
 0x6cf   :  { %v16606_v15 = vpop.f32.mrf.mxu0  ;;  %v16669_v45 = vpop.f32.mrf.mxu1 }
 0x6d0   :  { %v20099_v45 = vsub.f32 %v14433_v32, %v14433_v32  ;;  %v25353_v32 = vld [vmem:[#allocation52_spill] sm:$0xff] }
 0x6d3   :  { %v5177_v49 = vpop.f32.mrf.mxu0  ;;  %v5940_v31 = vpop.f32.mrf.mxu1 }
 0x6d4   :  { %v5178_v62 = vadd.f32 %v5177_v49, %v5096_v12  ;;  %v20095_v12 = vsub.f32 %v14435_v43, %v14435_v43 }
 0x6d5   :  { %v16613_v22 = vpop.f32.mrf.mxu0  ;;  %v16683_v28 = vpop.f32.mrf.mxu1 }
 0x6d6   :  { %v14432_v22 = vsel %vm20088_vm1, 1.0, %v25311_v20 }
 0x6d7   :  { %v5253_v6 = vpop.f32.mrf.mxu0 }
 0x6d8   :  { %v5254_v8 = vadd.f32 %v5253_v6, %v5178_v62  ;;  %v20120_v62 = vand.u32 4294901760, %v20095_v12 }
 0x6d9   :  { %v16620_v11 = vpop.f32.mrf.mxu0 }
 0x6db   :  { %v5328_v39 = vpop.f32.mrf.mxu0 }
 0x6dc   :  { %v5329_v16 = vadd.f32 %v5328_v39, %v5254_v8  ;;  %v20126_v8 = vand.u32 4294901760, %v20099_v45 }
 0x6dd   :  { %v16627_v10 = vpop.f32.mrf.mxu0 }
 0x6de   :  { %v8149_v59 = vsub.f32 %v20099_v45, %v20126_v8 }
 0x6df   :  { %v5405_v60 = vpop.f32.mrf.mxu0 }
 0x6e0   :  { %v5406_v42 = vadd.f32 %v5405_v60, %v5329_v16  ;;  %v20128_v16 = vsub.f32 %v14432_v22, %v14432_v22  ;;  %v14431_v60 = vsel %vm20105_vm11, 1.0, %v25311_v20  ;;  %v20160_v50 = vand.u32 4294901760, %v8149_v59 }
 0x6e1   :  { %v16634_v36 = vpop.f32.mrf.mxu0  ;;  %v20150_v52 = vsub.f32 %v14431_v60, %v14431_v60 }
 0x6e2   :  { %v5479_v47 = vadd.f32 %v5478_v57, %v5406_v42  ;;  %v14434_v57 = vsel %vm20069_vm3, 1.0, %v25311_v20  ;;  %v14430_v42 = vsel %vm20110_vm12, 1.0, %v25311_v20  ;;  %v14429_v36 = vsel %vm20115_vm9, 1.0, %v25311_v20 }
 0x6e3   :  { %v5558_v5 = vpop.f32.mrf.mxu0  ;;  %v20097_v15 = vsub.f32 %v14434_v57, %v14434_v57  ;;  %v20148_v24 = vand.u32 4294901760, %v20128_v16  ;;  %v20156_v35 = vsub.f32 %v14430_v42, %v14430_v42 }
 0x6e4   :  { %v5947_v55 = vrot.slane %v5479_v47, %v25324_v14  ;;  %v5640_v61 = vadd.f32 %v5639_v37, %v5558_v5  ;;  %v8135_v5 = vsub.f32 %v20095_v12, %v20120_v62 }
 0x6e5   :  { %v16648_v4 = vpop.f32.mrf.mxu0  ;;  %v20123_v39 = vand.u32 4294901760, %v20097_v15  ;;  %v8156_v19 = vsub.f32 %v20128_v16, %v20148_v24 }
 0x6e6   :  { %v5948_v21 = vmul.f32 %v5947_v55, %v25330_v30  ;;  %v5949_v33 = vmul.f32 %v5947_v55, %v25331_v40  ;;  %v5950_v44 = vmul.f32 %v5947_v55, %v25332_v18  ;;  %v5951_v41 = vmul.f32 %v5947_v55, %v25333_v56 }
 0x6e7   :  { %v5715_v29 = vpop.f32.mrf.mxu0  ;;  %v5952_v48 = vmul.f32 %v5947_v55, %v25334_v63  ;;  %v8142_v27 = vsub.f32 %v20097_v15, %v20123_v39  ;;  %v5953_v7 = vmul.f32 %v5947_v55, %v25350_v26  ;;  %v5954_v25 = vmul.f32 %v5947_v55, %v25351_v3 }
 0x6e8   :  { %v5716_v54 = vadd.f32 %v5715_v29, %v5640_v61  ;;  %v5955_v13 = vmul.f32 %v5947_v55, %v25352_v38  ;;  %v20154_v17 = vand.u32 4294901760, %v8135_v5  ;;  %v20164_v61 = vsub.f32 %v14429_v36, %v14429_v36 }
 0x6e9   :  { %v16662_v2 = vpop.f32.mrf.mxu0  ;;  %v20158_v4 = vand.u32 4294901760, %v8142_v27 }
 0x6ea   :  { %v5791_v1 = vadd.f32 %v5790_v58, %v5716_v54  ;;  %16820 = vmatprep.subr.mxu0 %v20154_v17  ;;  %v20172_v54 = vand.u32 4294901760, %v20150_v52 }
 0x6eb   :  { %v5867_v49 = vpop.f32.mrf.mxu0 }
 0x6ec   :  { %v5868_v11 = vadd.f32 %v5867_v49, %v5791_v1 }
 0x6ed   :  { %v16676_v10 = vpop.f32.mrf.mxu0 }
 0x6ee   :  { %v5941_v47 = vadd.f32 %v5940_v31, %v5868_v11 }
 0x6f0   :  { %v5959_v31 = vrot.slane %v5941_v47, %v25324_v14 }
 0x6f2   :  { %v5960_v30 = vadd.f32 %v5959_v31, %v5948_v21  ;;  %v5961_v29 = vadd.f32 %v5959_v31, %v5949_v33  ;;  %v5962_v40 = vadd.f32 %v5959_v31, %v5950_v44  ;;  %v5963_v18 = vadd.f32 %v5959_v31, %v5951_v41 }
 0x6f3   :  { %v5964_v55 = vadd.f32 %v5959_v31, %v5952_v48  ;;  %v20167_v56 = vadd.f32 %v5959_v31, %v5954_v25  ;;  %v20169_v63 = vadd.f32 %v5959_v31, %v5955_v13  ;;  %v20180_v42 = vadd.f32 %v5959_v31, %v5953_v7 }
 0x6f4   :  { %vm5968_vm7 = vcmp.ge.f32.partialorder %v5960_v30, 0.0  ;;  %v5976_v2 = vmul.f32 0.2, %v5960_v30  ;;  %vm5969_vm0 = vcmp.ge.f32.partialorder %v5961_v29, 0.0  ;;  %v5977_v43 = vmul.f32 0.2, %v5961_v29 }
 0x6f5   :  { %vm5970_vm2 = vcmp.ge.f32.partialorder %v5962_v40, 0.0  ;;  %v5978_v57 = vmul.f32 0.2, %v5962_v40  ;;  %vm5971_vm4 = vcmp.ge.f32.partialorder %v5963_v18, 0.0  ;;  %v5979_v21 = vmul.f32 0.2, %v5963_v18 }
 0x6f6   :  { %v5984_v33 = vsel %vm5968_vm7, %v5960_v30, %v5976_v2  ;;  %v5985_v44 = vsel %vm5969_vm0, %v5961_v29, %v5977_v43  ;;  %vm5972_vm5 = vcmp.ge.f32.partialorder %v5964_v55, 0.0  ;;  %v5980_v41 = vmul.f32 0.2, %v5964_v55  ;;  %vm25358_vm7 = vmmov %vm25355_vm10 }
 0x6f7   :  { %v6000_v48 = vcombine.high %v5984_v33, %v5984_v33  ;;  %v6007_v1 = vrot.slane %v5984_v33, %v25353_v32  ;;  %v6049_v49 = vcombine.high %v5985_v44, %v5985_v44  ;;  %v6056_v22 = vrot.slane %v5985_v44, %v25353_v32  ;;  %vm20228_vm0 = vmneg %vm25358_vm7 }
 0x6f8   :  { %v5986_v11 = vsel %vm5970_vm2, %v5962_v40, %v5978_v57  ;;  %v20176_v10 = vsel %vm5971_vm4, %v5963_v18, %v5979_v21  ;;  %v20178_v60 = vsel %vm5972_vm5, %v5964_v55, %v5980_v41  ;;  %vm25361_vm2 = vmmov %vm25358_vm7  ;;  %vm25362_vm4 = vcmask 1046528  }
 0x6f9   :  { %v6014_v36 = vrot.slane %v6000_v48, %v25353_v32  ;;  %v6015_v47 = vcombine.high %v6007_v1, %v6007_v1  ;;  %v6023_v5 = vrot.slane %v6007_v1, %v25353_v32  ;;  %v6063_v27 = vrot.slane %v6049_v49, %v25353_v32  ;;  %vm25367_vm7 = vmmov %vm25361_vm2 }
 0x6fa   :  { %v6064_v59 = vcombine.high %v6056_v22, %v6056_v22  ;;  %v6072_v26 = vrot.slane %v6056_v22, %v25353_v32  ;;  %v6098_v3 = vcombine.high %v5986_v11, %v5986_v11  ;;  %v6105_v25 = vrot.slane %v5986_v11, %v25353_v32 }
 0x6fb   :  { %v6016_v38 = vcombine.high %v6014_v36, %v6014_v36  ;;  %v6030_v13 = vrot.slane %v6014_v36, %v25353_v32  ;;  %v6037_v30 = vrot.slane %v6015_v47, %v25353_v32  ;;  %v6045_v7 = vcombine.high %v6023_v5, %v6023_v5 }
 0x6fc   :  { %v6395_v31 = vrot.slane %v6023_v5, %v25324_v14  ;;  %v6065_v29 = vcombine.high %v6063_v27, %v6063_v27  ;;  %v6079_v40 = vrot.slane %v6063_v27, %v25353_v32  ;;  %v6086_v18 = vrot.slane %v6064_v59, %v25353_v32 }
 0x6fd   :  { %v6044_v55 = vrot.slane %v6016_v38, %v25353_v32  ;;  %v6046_v2 = vcombine.high %v6030_v13, %v6030_v13  ;;  %v6047_v43 = vcombine.high %v6037_v30, %v6037_v30  ;;  %v6399_v57 = vrot.slane %v6037_v30, %v25324_v14  ;;  %v25354_v30 = vld [vmem:[#allocation55_spill] sm:$0xff] }
 0x6fe   :  { %v6403_v21 = vrot.slane %v6045_v7, %v25324_v14  ;;  %v6411_v33 = vrot.slane %v6030_v13, %v25324_v14  ;;  %v6093_v44 = vrot.slane %v6065_v29, %v25353_v32  ;;  %v6094_v41 = vcombine.high %v6072_v26, %v6072_v26 }
 0x6ff   :  { %v6048_v48 = vcombine.high %v6044_v55, %v6044_v55  ;;  %v6407_v1 = vrot.slane %v6047_v43, %v25324_v14  ;;  %v6415_v49 = vrot.slane %v6044_v55, %v25324_v14  ;;  %v6419_v22 = vrot.slane %v6046_v2, %v25324_v14 }
 0x700   :  { %v6648_v11 = vcombine.low %v6395_v31, %v6399_v57  ;;  %v6095_v36 = vcombine.high %v6079_v40, %v6079_v40  ;;  %v6096_v47 = vcombine.high %v6086_v18, %v6086_v18  ;;  %v6097_v5 = vcombine.high %v6093_v44, %v6093_v44 }
 0x701   :  { %v6423_v27 = vrot.slane %v6048_v48, %v25324_v14  ;;  %v6649_v59 = vcombine.low %v6403_v21, %v6407_v1  ;;  %v6665_v38 = vcombine.low %v6411_v33, %v6415_v49  ;;  %v6427_v13 = vrot.slane %v6072_v26, %v25324_v14 }
 0x702   :  { %v6656_v7 = vrot.slane %v6648_v11, %v25354_v30  ;;  %v6431_v29 = vrot.slane %v6086_v18, %v25324_v14  ;;  %v6435_v43 = vrot.slane %v6094_v41, %v25324_v14  ;;  %v6439_v55 = vrot.slane %v6096_v47, %v25324_v14 }
 0x703   :  { %v6663_v2 = vrot.slane %v6649_v59, %v25354_v30  ;;  %v6666_v31 = vcombine.low %v6419_v22, %v6423_v27  ;;  %v6673_v57 = vrot.slane %v6665_v38, %v25354_v30  ;;  %v6443_v23 = vrot.slane %v6079_v40, %v25324_v14 }
 0x704   :  { %v6447_v21 = vrot.slane %v6093_v44, %v25324_v14  ;;  %v6451_v33 = vrot.slane %v6095_v36, %v25324_v14  ;;  %v6455_v26 = vrot.slane %v6097_v5, %v25324_v14  ;;  %v6682_v48 = vcombine.low %v6427_v13, %v6431_v29 }
 0x705   :  { %v6664_v1 = vcombine.low %v6656_v7, %v6663_v2  ;;  %v6680_v18 = vrot.slane %v6666_v31, %v25354_v30  ;;  %v6683_v41 = vcombine.low %v6435_v43, %v6439_v55  ;;  %v6112_v49 = vrot.slane %v6098_v3, %v25353_v32 }
 0x706   :  { %v6690_v11 = vrot.slane %v6682_v48, %v25354_v30  ;;  %v6699_v22 = vcombine.low %v6443_v23, %v6447_v21  ;;  %v6700_v47 = vcombine.low %v6451_v33, %v6455_v26  ;;  %v6113_v27 = vcombine.high %v6105_v25, %v6105_v25 }
 0x707   :  { %v6681_v59 = vcombine.low %v6673_v57, %v6680_v18  ;;  %v6920_v40 = vrot.slane %v6664_v1, 7  ;;  %v6697_v44 = vrot.slane %v6683_v41, %v25354_v30  ;;  %v6114_v38 = vcombine.high %v6112_v49, %v6112_v49 }
 0x708   :  { %v6707_v36 = vrot.slane %v6699_v22, %v25354_v30  ;;  %v6714_v5 = vrot.slane %v6700_v47, %v25354_v30  ;;  %v6121_v13 = vrot.slane %v6105_v25, %v25353_v32  ;;  %v6128_v7 = vrot.slane %v6112_v49, %v25353_v32 }
 0x709   :  { %v6921_v29 = vrot.slane %v6681_v59, 7  ;;  %v6968_v3 = vsel %vm25355_vm10, 0.0, %v6920_v40  ;;  %v6698_v43 = vcombine.low %v6690_v11, %v6697_v44  ;;  %v6135_v23 = vrot.slane %v6113_v27, %v25353_v32 }
 0x70a   :  { %v7001_v55 = vrot.slane %v6968_v3, 1  ;;  %v7057_v2 = vrot.slane %v6968_v3, 2  ;;  %v6715_v31 = vcombine.low %v6707_v36, %v6714_v5  ;;  %v6142_v57 = vrot.slane %v6114_v38, %v25353_v32 }
 0x70b   :  { %v6922_v21 = vsel %vm25356_vm13, %v6920_v40, %v6921_v29  ;;  %v6976_v33 = vsel %vm25357_vm14, %v6921_v29, 0.0  ;;  %v20225_v26 = vrot.slane %v6698_v43, 7  ;;  %v6143_v25 = vcombine.high %v6121_v13, %v6121_v13  ;;  %vm25365_vm13 = vmmov %vm25362_vm4 }
 0x70c   :  { %v7002_v48 = vrot.slane %v6922_v21, 1  ;;  %v7058_v1 = vrot.slane %v6922_v21, 2  ;;  %v7060_v18 = vrot.slane %v6976_v33, 2  ;;  %v7004_v41 = vrot.slane %v6976_v33, 1  ;;  %vm25366_vm14 = vmmov %vm25361_vm2 }
 0x70d   :  { %v6924_v11 = vrot.slane %v6715_v31, 7  ;;  %v6969_v22 = vsel %vm25361_vm2, 0.0, %v20225_v26  ;;  %v6144_v47 = vcombine.high %v6128_v7, %v6128_v7  ;;  %v6145_v27 = vcombine.high %v6135_v23, %v6135_v23 }
 0x70e   :  { %v7003_v59 = vsel %vm25362_vm4, %v7001_v55, %v7002_v48  ;;  %vm25363_vm5 = vcmask 1045504   ;;  %v7005_v36 = vsel %vm25365_vm13, %v7002_v48, %v7004_v41  ;;  %v7062_v29 = vrot.slane %v6969_v22, 2 }
 0x70f   :  { %v7059_v44 = vsel %vm25363_vm5, %v7057_v2, %v7058_v1  ;;  %vm25364_vm10 = vmmov %vm25363_vm5  ;;  %7231 = vmatprep.mubr.f32.mxu0 %v7003_v59  ;;  %v20240_v5 = vsel %vm25366_vm14, %v20225_v26, %v6924_v11  ;;  %v6977_v3 = vsel %vm25367_vm7, %v6924_v11, 0.0  ;;  %v7006_v43 = vrot.slane %v6969_v22, 1 }
 0x710   :  { %v7061_v38 = vsel %vm25364_vm10, %v7058_v1, %v7060_v18  ;;  %16716 = vmatprep.mubr.f32.mxu1 %v7059_v44  ;;  %14405 = vmatmul.mubr.msk.f32.vlgmr.msra.gmra.mxu0 %vm20228_vm0, %v6920_v40  ;;  %v7063_v55 = vrot.slane %v20240_v5, 2  ;;  %v7065_v2 = vrot.slane %v6977_v3, 2  ;;  %v7007_v31 = vrot.slane %v20240_v5, 1  ;;  %vm25368_vm2 = vmmov %vm25363_vm5 }
 0x711   :  { %16717 = vmatmul.mubr.f32.vlgmr.msra.gmra.mxu1 %v7061_v38  ;;  %v6146_v33 = vcombine.high %v6142_v57, %v6142_v57  ;;  %7236 = vmatprep.mubr.f32.mxu0 %v7005_v36  ;;  %v6459_v48 = vrot.slane %v6121_v13, %v25324_v14  ;;  %v6463_v1 = vrot.slane %v6135_v23, %v25324_v14  ;;  %vm25369_vm4 = vmmov %vm25368_vm2  ;;  %v7009_v38 = vrot.slane %v6977_v3, 1 }
 0x712   :  { %v6467_v18 = vrot.slane %v6143_v25, %v25324_v14  ;;  %v6471_v41 = vrot.slane %v6145_v27, %v25324_v14  ;;  %v7064_v11 = vsel %vm25368_vm2, %v7062_v29, %v7063_v55  ;;  %v7066_v40 = vsel %vm25369_vm4, %v7063_v55, %v7065_v2  ;;  %vm25370_vm5 = vmmov %vm25365_vm13  ;;  %16821 = vmatpush3.msra.mxu0 %v20154_v17 }
 0x713   :  { %v7008_v22 = vsel %vm25370_vm5, %v7006_v43, %v7007_v31  ;;  %v6475_v59 = vrot.slane %v6128_v7, %v25324_v14  ;;  %16719 = vmatprep.mubr.f32.mxu1 %v7064_v11  ;;  %v6479_v44 = vrot.slane %v6142_v57, %v25324_v14  ;;  %v6483_v13 = vrot.slane %v6144_v47, %v25324_v14  ;;  %vm25371_vm10 = vmmov %vm25370_vm5 }
 0x714   :  { %v6487_v23 = vrot.slane %v6146_v33, %v25324_v14  ;;  %v6716_v25 = vcombine.low %v6459_v48, %v6463_v1  ;;  %7237 = vmatmul.mubr.f32.gmra.mxu0 %v6922_v21  ;;  %v6717_v27 = vcombine.low %v6467_v18, %v6471_v41  ;;  %v6147_v36 = vcombine.high %v20176_v10, %v20176_v10  ;;  %vm25372_vm13 = vmmov %vm25367_vm7 }
 0x715   :  { %16720 = vmatmul.mubr.f32.gmra.mxu1 %v7066_v40  ;;  %v6154_v7 = vrot.slane %v20176_v10, %v25353_v32  ;;  %7241 = vmatprep.mubr.f32.mxu0 %v7008_v22  ;;  %v6733_v29 = vcombine.low %v6475_v59, %v6479_v44  ;;  %v6196_v47 = vcombine.high %v20178_v60, %v20178_v60  ;;  %vm25373_vm14 = vmmov %vm25367_vm7  ;;  %vm5973_vm2 = vcmp.ge.f32.partialorder %v20180_v42, 0.0 }
 0x716   :  { %v6724_v17 = vrot.slane %v6716_v25, %v25354_v30  ;;  %v6734_v57 = vcombine.low %v6483_v13, %v6487_v23  ;;  %v6731_v43 = vrot.slane %v6717_v27, %v25354_v30  ;;  %v7010_v21 = vsel %vm25371_vm10, %v7007_v31, %v7009_v38  ;;  %16822 = vmatprep.subr.mxu0 %v20158_v4  ;;  %vm25374_vm5 = vmmov %vm25369_vm4 }
 0x717   :  { %v6161_v3 = vrot.slane %v6147_v36, %v25353_v32  ;;  %v6162_v55 = vcombine.high %v6154_v7, %v6154_v7  ;;  %v6741_v2 = vrot.slane %v6733_v29, %v25354_v30  ;;  %v6170_v33 = vrot.slane %v6154_v7, %v25353_v32  ;;  %16823 = vmatpush3.msra.mxu0 %v20158_v4 }
 0x718   :  { %v6748_v10 = vrot.slane %v6734_v57, %v25354_v30  ;;  %v20275_v48 = vrot.slane %v20178_v60, %v25353_v32  ;;  %v6732_v1 = vcombine.low %v6724_v17, %v6731_v43  ;;  %14407 = vmatmul.mubr.msk.f32.gmra.mxu0 %vm20228_vm0, %v20225_v26  ;;  %v6210_v60 = vrot.slane %v6196_v47, %v25353_v32 }
 0x719   :  { %v6163_v31 = vcombine.high %v6161_v3, %v6161_v3  ;;  %v6177_v18 = vrot.slane %v6161_v3, %v25353_v32  ;;  %v6184_v41 = vrot.slane %v6162_v55, %v25353_v32  ;;  %7246 = vmatprep.mubr.f32.mxu0 %v7010_v21  ;;  %v6192_v40 = vcombine.high %v6170_v33, %v6170_v33 }
 0x71a   :  { %v6749_v11 = vcombine.low %v6741_v2, %v6748_v10  ;;  %v6491_v22 = vrot.slane %v6170_v33, %v25324_v14  ;;  %v6926_v59 = vrot.slane %v6732_v1, 7  ;;  %16824 = vmatprep.subr.mxu0 %v20160_v50  ;;  %16741 = vmatpush3.msk.msra.mxu1 %vm20064_vm8, %v25314_v9 }
 0x71b   :  { %v6191_v4 = vrot.slane %v6163_v31, %v25353_v32  ;;  %v6193_v44 = vcombine.high %v6177_v18, %v6177_v18  ;;  %v6194_v13 = vcombine.high %v6184_v41, %v6184_v41  ;;  %v6495_v23 = vrot.slane %v6184_v41, %v25324_v14  ;;  %16825 = vmatpush3.msra.mxu0 %v20160_v50 }
 0x71c   :  { %v6927_v26 = vrot.slane %v6749_v11, 7  ;;  %v6499_v25 = vrot.slane %v6192_v40, %v25324_v14  ;;  %v6507_v27 = vrot.slane %v6177_v18, %v25324_v14  ;;  %16742 = vmatprep.subr.msk.mxu1 %vm20069_vm3, %v25314_v9  ;;  %v6970_v38 = vsel %vm25372_vm13, 0.0, %v6926_v59  ;;  %7247 = vmatmul.mubr.f32.gmra.mxu0 %v20240_v5  ;;  %vm25375_vm13 = vmmov %vm25367_vm7 }
 0x71d   :  { %v6195_v36 = vcombine.high %v6191_v4, %v6191_v4  ;;  %v6503_v7 = vrot.slane %v6194_v13, %v25324_v14  ;;  %v6511_v17 = vrot.slane %v6191_v4, %v25324_v14  ;;  %16743 = vmatpush3.msk.msra.mxu1 %vm20069_vm3, %v25314_v9  ;;  %v7067_v50 = vrot.slane %v6970_v38, 2 }
 0x71e   :  { %v20305_v29 = vsel %vm25373_vm14, %v6926_v59, %v6927_v26  ;;  %v20308_v57 = vsel %vm25367_vm7, %v6927_v26, 0.0  ;;  %v6515_v47 = vrot.slane %v6193_v44, %v25324_v14  ;;  %16744 = vmatprep.subr.msk.mxu1 %vm20074_vm15, %v25314_v9  ;;  %v6750_v3 = vcombine.low %v6491_v22, %v6495_v23  ;;  %vm25376_vm14 = vmmov %vm25367_vm7 }
 0x71f   :  { %v7068_v43 = vrot.slane %v20305_v29, 2  ;;  %v7070_v5 = vrot.slane %v20308_v57, 2  ;;  %v6519_v21 = vrot.slane %v6195_v36, %v25324_v14  ;;  %16745 = vmatpush3.msk.msra.mxu1 %vm20074_vm15, %v25314_v9  ;;  %v6751_v55 = vcombine.low %v6499_v25, %v6503_v7 }
 0x720   :  { %v6767_v2 = vcombine.low %v6507_v27, %v6511_v17  ;;  %v7011_v10 = vrot.slane %v6970_v38, 1  ;;  %v7012_v33 = vrot.slane %v20305_v29, 1  ;;  %16746 = vmatprep.subr.msk.mxu1 %vm20088_vm1, %v25314_v9  ;;  %v6758_v18 = vrot.slane %v6750_v3, %v25354_v30 }
 0x721   :  { %v7069_v1 = vsel %vm25369_vm4, %v7067_v50, %v7068_v43  ;;  %v7071_v31 = vsel %vm25374_vm5, %v7068_v43, %v7070_v5  ;;  %v6768_v41 = vcombine.low %v6515_v47, %v6519_v21  ;;  %16747 = vmatpush3.msk.msra.mxu1 %vm20088_vm1, %v25314_v9  ;;  %v6765_v11 = vrot.slane %v6751_v55, %v25354_v30  ;;  %vm25377_vm4 = vmmov %vm25371_vm10 }
 0x722   :  { %16722 = vmatprep.mubr.f32.mxu1 %v7069_v1  ;;  %v6775_v40 = vrot.slane %v6767_v2, %v25354_v30  ;;  %v7013_v22 = vsel %vm25371_vm10, %v7011_v10, %v7012_v33  ;;  %v6211_v4 = vcombine.high %v20275_v48, %v20275_v48  ;;  %v6212_v13 = vcombine.high %v6210_v60, %v6210_v60  ;;  %vm25378_vm10 = vmmov %vm25374_vm5 }
 0x723   :  { %16723 = vmatmul.mubr.f32.gmra.mxu1 %v7071_v31  ;;  %v6782_v44 = vrot.slane %v6768_v41, %v25354_v30  ;;  %7251 = vmatprep.mubr.f32.mxu0 %v7013_v22  ;;  %v6219_v26 = vrot.slane %v20275_v48, %v25353_v32  ;;  %v7014_v23 = vrot.slane %v20308_v57, 1  ;;  %v6766_v25 = vcombine.low %v6758_v18, %v6765_v11 }
 0x724   :  { %v6226_v27 = vrot.slane %v6210_v60, %v25353_v32  ;;  %v6233_v38 = vrot.slane %v6211_v4, %v25353_v32  ;;  %14409 = vmatmul.mubr.msk.f32.gmra.mxu0 %vm20228_vm0, %v6926_v59  ;;  %v5981_v36 = vmul.f32 0.2, %v20180_v42  ;;  %16748 = vmatprep.subr.msk.mxu1 %vm20105_vm11, %v25314_v9  ;;  %v6240_v17 = vrot.slane %v6212_v13, %v25353_v32 }
 0x725   :  { %v6783_v7 = vcombine.low %v6775_v40, %v6782_v44  ;;  %v6241_v48 = vcombine.high %v6219_v26, %v6219_v26  ;;  %v6523_v50 = vrot.slane %v6219_v26, %v25324_v14  ;;  %16749 = vmatpush3.msk.msra.mxu1 %vm20105_vm11, %v25314_v9  ;;  %v6929_v60 = vrot.slane %v6766_v25, 7 }
 0x726   :  { %v6242_v57 = vcombine.high %v6226_v27, %v6226_v27  ;;  %v6243_v47 = vcombine.high %v6233_v38, %v6233_v38  ;;  %v6527_v59 = vrot.slane %v6233_v38, %v25324_v14  ;;  %16750 = vmatprep.subr.msk.mxu1 %vm20110_vm12, %v25314_v9  ;;  %v6244_v5 = vcombine.high %v6240_v17, %v6240_v17 }
 0x727   :  { %v6930_v43 = vrot.slane %v6783_v7, 7  ;;  %v6531_v21 = vrot.slane %v6241_v48, %v25324_v14  ;;  %v6539_v3 = vrot.slane %v6226_v27, %v25324_v14  ;;  %16751 = vmatpush3.msk.msra.mxu1 %vm20110_vm12, %v25314_v9  ;;  %v6971_v55 = vsel %vm25375_vm13, 0.0, %v6929_v60  ;;  %vm25379_vm13 = vmmov %vm25377_vm4 }
 0x728   :  { %v6535_v2 = vrot.slane %v6243_v47, %v25324_v14  ;;  %v6543_v10 = vrot.slane %v6240_v17, %v25324_v14  ;;  %v6547_v1 = vrot.slane %v6242_v57, %v25324_v14  ;;  %16752 = vmatprep.subr.msk.mxu1 %vm20115_vm9, %v25314_v9  ;;  %v7072_v18 = vrot.slane %v6971_v55, 2 }
 0x729   :  { %v20370_v31 = vsel %vm25376_vm14, %v6929_v60, %v6930_v43  ;;  %v20373_v41 = vsel %vm25367_vm7, %v6930_v43, 0.0  ;;  %v6551_v11 = vrot.slane %v6244_v5, %v25324_v14  ;;  %16753 = vmatpush3.msk.msra.mxu1 %vm20115_vm9, %v25314_v9  ;;  %v6784_v4 = vcombine.low %v6523_v50, %v6527_v59  ;;  %vm25380_vm14 = vmmov %vm25367_vm7 }
 0x72a   :  { %v7073_v40 = vrot.slane %v20370_v31, 2  ;;  %v7075_v22 = vrot.slane %v20373_v41, 2  ;;  %v6785_v44 = vcombine.low %v6531_v21, %v6535_v2  ;;  %v6801_v13 = vcombine.low %v6539_v3, %v6543_v10 }
 0x72b   :  { %v6802_v26 = vcombine.low %v6547_v1, %v6551_v11  ;;  %v7015_v25 = vsel %vm25377_vm4, %v7012_v33, %v7014_v23  ;;  %v5989_v27 = vsel %vm5973_vm2, %v20180_v42, %v5981_v36  ;;  %v6792_v17 = vrot.slane %v6784_v4, %v25354_v30  ;;  %vm25381_vm4 = vmmov %vm25367_vm7 }
 0x72c   :  { %v7074_v38 = vsel %vm25374_vm5, %v7072_v18, %v7073_v40  ;;  %v7076_v7 = vsel %vm25378_vm10, %v7073_v40, %v7075_v22  ;;  %v6799_v48 = vrot.slane %v6785_v44, %v25354_v30  ;;  %7256 = vmatprep.mubr.f32.mxu0 %v7015_v25  ;;  %v6809_v50 = vrot.slane %v6801_v13, %v25354_v30  ;;  %vm25382_vm10 = vmmov %vm25374_vm5 }
 0x72d   :  { %16725 = vmatprep.mubr.f32.mxu1 %v7074_v38  ;;  %v6816_v57 = vrot.slane %v6802_v26, %v25354_v30  ;;  %v6245_v47 = vcombine.high %v5989_v27, %v5989_v27  ;;  %v6252_v33 = vrot.slane %v5989_v27, %v25353_v32  ;;  %7257 = vmatmul.mubr.f32.gmra.mxu0 %v20305_v29  ;;  %v7016_v42 = vrot.slane %v6971_v55, 1 }
 0x72e   :  { %16726 = vmatmul.mubr.f32.gmra.mxu1 %v7076_v7  ;;  %v6800_v23 = vcombine.low %v6792_v17, %v6799_v48  ;;  %v7017_v36 = vrot.slane %v20370_v31, 1  ;;  %vm5974_vm2 = vcmp.ge.f32.partialorder %v20167_v56, 0.0  ;;  %v5982_v10 = vmul.f32 0.2, %v20167_v56 }
 0x72f   :  { %v6817_v59 = vcombine.low %v6809_v50, %v6816_v57  ;;  %v6259_v43 = vrot.slane %v6245_v47, %v25353_v32  ;;  %v6260_v5 = vcombine.high %v6252_v33, %v6252_v33  ;;  %v6268_v21 = vrot.slane %v6252_v33, %v25353_v32 }
 0x730   :  { %v20397_v3 = vrot.slane %v6800_v23, 7  ;;  %v7018_v2 = vsel %vm25379_vm13, %v7016_v42, %v7017_v36  ;;  %v7019_v1 = vrot.slane %v20373_v41, 1  ;;  %v5990_v44 = vsel %vm5974_vm2, %v20167_v56, %v5982_v10  ;;  %vm25383_vm2 = vmmov %vm25379_vm13 }
 0x731   :  { %v6933_v29 = vrot.slane %v6817_v59, 7  ;;  %v6261_v55 = vcombine.high %v6259_v43, %v6259_v43  ;;  %v6275_v18 = vrot.slane %v6259_v43, %v25353_v32  ;;  %v6282_v11 = vrot.slane %v6260_v5, %v25353_v32  ;;  %7261 = vmatprep.mubr.f32.mxu0 %v7018_v2 }
 0x732   :  { %v20406_v40 = vsel %vm25380_vm14, 0.0, %v20397_v3  ;;  %v6290_v22 = vcombine.high %v6268_v21, %v6268_v21  ;;  %v6555_v4 = vrot.slane %v6268_v21, %v25324_v14  ;;  %14411 = vmatmul.mubr.msk.f32.gmra.mxu0 %vm20228_vm0, %v6929_v60  ;;  %v6294_v5 = vcombine.high %v5990_v44, %v5990_v44  ;;  %vm25384_vm14 = vmmov %vm25381_vm4 }
 0x733   :  { %v20416_v41 = vsel %vm25367_vm7, %v20397_v3, %v6933_v29  ;;  %v7077_v13 = vrot.slane %v20406_v40, 2  ;;  %v20420_v26 = vsel %vm25381_vm4, %v6933_v29, 0.0  ;;  %v6289_v25 = vrot.slane %v6261_v55, %v25353_v32  ;;  %vm25385_vm7 = vmmov %vm25381_vm4 }
 0x734   :  { %v7078_v27 = vrot.slane %v20416_v41, 2  ;;  %v7080_v38 = vrot.slane %v20420_v26, 2  ;;  %v6291_v7 = vcombine.high %v6275_v18, %v6275_v18  ;;  %v6292_v56 = vcombine.high %v6282_v11, %v6282_v11 }
 0x735   :  { %v6293_v17 = vcombine.high %v6289_v25, %v6289_v25  ;;  %v6559_v60 = vrot.slane %v6282_v11, %v25324_v14  ;;  %v6563_v48 = vrot.slane %v6290_v22, %v25324_v14  ;;  %v6571_v50 = vrot.slane %v6275_v18, %v25324_v14 }
 0x736   :  { %v7079_v57 = vsel %vm25374_vm5, %v7077_v13, %v7078_v27  ;;  %v7081_v47 = vsel %vm25382_vm10, %v7078_v27, %v7080_v38  ;;  %v6567_v33 = vrot.slane %v6292_v56, %v25324_v14  ;;  %v6575_v23 = vrot.slane %v6289_v25, %v25324_v14  ;;  %vm25386_vm10 = vmmov %vm25374_vm5 }
 0x737   :  { %16728 = vmatprep.mubr.f32.mxu1 %v7079_v57  ;;  %v6579_v42 = vrot.slane %v6291_v7, %v25324_v14  ;;  %v6583_v59 = vrot.slane %v6293_v17, %v25324_v14  ;;  %v6818_v43 = vcombine.low %v6555_v4, %v6559_v60  ;;  %v6301_v10 = vrot.slane %v5990_v44, %v25353_v32 }
 0x738   :  { %16729 = vmatmul.mubr.f32.gmra.mxu1 %v7081_v47  ;;  %v6819_v21 = vcombine.low %v6563_v48, %v6567_v33  ;;  %v6835_v2 = vcombine.low %v6571_v50, %v6575_v23  ;;  %v7020_v29 = vsel %vm25383_vm2, %v7017_v36, %v7019_v1  ;;  %v6308_v11 = vrot.slane %v6294_v5, %v25353_v32 }
 0x739   :  { %v6826_v55 = vrot.slane %v6818_v43, %v25354_v30  ;;  %v6836_v18 = vcombine.low %v6579_v42, %v6583_v59  ;;  %7266 = vmatprep.mubr.f32.mxu0 %v7020_v29  ;;  %vm5975_vm13 = vcmp.ge.f32.partialorder %v20169_v63, 0.0  ;;  %v6309_v13 = vcombine.high %v6301_v10, %v6301_v10 }
 0x73a   :  { %v6833_v22 = vrot.slane %v6819_v21, %v25354_v30  ;;  %v6843_v4 = vrot.slane %v6835_v2, %v25354_v30  ;;  %v6317_v25 = vrot.slane %v6301_v10, %v25353_v32  ;;  %7267 = vmatmul.mubr.f32.gmra.mxu0 %v20370_v31  ;;  %v6310_v36 = vcombine.high %v6308_v11, %v6308_v11 }
 0x73b   :  { %v6850_v44 = vrot.slane %v6836_v18, %v25354_v30  ;;  %v6324_v1 = vrot.slane %v6308_v11, %v25353_v32  ;;  %v5983_v27 = vmul.f32 0.2, %v20169_v63  ;;  %v6331_v7 = vrot.slane %v6309_v13, %v25353_v32 }
 0x73c   :  { %v6834_v38 = vcombine.low %v6826_v55, %v6833_v22  ;;  %v6339_v56 = vcombine.high %v6317_v25, %v6317_v25  ;;  %v6587_v17 = vrot.slane %v6317_v25, %v25324_v14  ;;  %v6338_v48 = vrot.slane %v6310_v36, %v25353_v32 }
 0x73d   :  { %v6851_v60 = vcombine.low %v6843_v4, %v6850_v44  ;;  %v6340_v50 = vcombine.high %v6324_v1, %v6324_v1  ;;  %v6603_v57 = vrot.slane %v6324_v1, %v25324_v14  ;;  %v6341_v47 = vcombine.high %v6331_v7, %v6331_v7 }
 0x73e   :  { %v20450_v31 = vrot.slane %v6834_v38, 7  ;;  %v6591_v33 = vrot.slane %v6331_v7, %v25324_v14  ;;  %v6595_v23 = vrot.slane %v6339_v56, %v25324_v14  ;;  %v6342_v59 = vcombine.high %v6338_v48, %v6338_v48 }
 0x73f   :  { %v6936_v42 = vrot.slane %v6851_v60, 7  ;;  %v6607_v43 = vrot.slane %v6338_v48, %v25324_v14  ;;  %v6611_v5 = vrot.slane %v6340_v50, %v25324_v14  ;;  %v6599_v2 = vrot.slane %v6341_v47, %v25324_v14 }
 0x740   :  { %v20458_v21 = vsel %vm25384_vm14, 0.0, %v20450_v31  ;;  %v6852_v10 = vcombine.low %v6587_v17, %v6591_v33  ;;  %v5991_v29 = vsel %vm5975_vm13, %v20169_v63, %v5983_v27  ;;  %v6615_v22 = vrot.slane %v6342_v59, %v25324_v14  ;;  %vm25387_vm13 = vmmov %vm25381_vm4 }
 0x741   :  { %v20466_v55 = vsel %vm25385_vm7, %v20450_v31, %v6936_v42  ;;  %v7082_v18 = vrot.slane %v20458_v21, 2  ;;  %v20470_v11 = vsel %vm25381_vm4, %v6936_v42, 0.0  ;;  %v6853_v25 = vcombine.low %v6595_v23, %v6599_v2  ;;  %vm25388_vm14 = vmmov %vm25381_vm4 }
 0x742   :  { %v7083_v4 = vrot.slane %v20466_v55, 2  ;;  %v7085_v13 = vrot.slane %v20470_v11, 2  ;;  %v6860_v44 = vrot.slane %v6852_v10, %v25354_v30  ;;  %v6869_v36 = vcombine.low %v6603_v57, %v6607_v43  ;;  %vm25389_vm7 = vmmov %vm25381_vm4 }
 0x743   :  { %v6870_v63 = vcombine.low %v6611_v5, %v6615_v22  ;;  %v6343_v1 = vcombine.high %v5991_v29, %v5991_v29  ;;  %v6350_v27 = vrot.slane %v5991_v29, %v25353_v32  ;;  %v6867_v56 = vrot.slane %v6853_v25, %v25354_v30  ;;  %vm25390_vm4 = vmmov %vm25383_vm2 }
 0x744   :  { %v7084_v38 = vsel %vm25374_vm5, %v7082_v18, %v7083_v4  ;;  %v7086_v7 = vsel %vm25386_vm10, %v7083_v4, %v7085_v13  ;;  %v7021_v17 = vrot.slane %v20406_v40, 1  ;;  %v6877_v60 = vrot.slane %v6869_v36, %v25354_v30  ;;  %vm25391_vm10 = vmmov %vm25374_vm5 }
 0x745   :  { %16731 = vmatprep.mubr.f32.mxu1 %v7084_v38  ;;  %v6884_v48 = vrot.slane %v6870_v63, %v25354_v30  ;;  %v6357_v50 = vrot.slane %v6343_v1, %v25353_v32  ;;  %v6358_v57 = vcombine.high %v6350_v27, %v6350_v27  ;;  %v6868_v47 = vcombine.low %v6860_v44, %v6867_v56 }
 0x746   :  { %16732 = vmatmul.mubr.f32.gmra.mxu1 %v7086_v7  ;;  %v6366_v33 = vrot.slane %v6350_v27, %v25353_v32  ;;  %v7022_v23 = vrot.slane %v20416_v41, 1  ;;  %v7024_v42 = vrot.slane %v20420_v26, 1 }
 0x747   :  { %v6885_v59 = vcombine.low %v6877_v60, %v6884_v48  ;;  %v6359_v43 = vcombine.high %v6357_v50, %v6357_v50  ;;  %v6373_v40 = vrot.slane %v6357_v50, %v25353_v32  ;;  %v6380_v5 = vrot.slane %v6358_v57, %v25353_v32 }
 0x748   :  { %v20489_v2 = vrot.slane %v6868_v47, 7  ;;  %v6388_v10 = vcombine.high %v6366_v33, %v6366_v33  ;;  %v6619_v29 = vrot.slane %v6366_v33, %v25324_v14  ;;  %v7023_v18 = vsel %vm25383_vm2, %v7021_v17, %v7022_v23 }
 0x749   :  { %v6939_v22 = vrot.slane %v6885_v59, 7  ;;  %v6387_v4 = vrot.slane %v6359_v43, %v25353_v32  ;;  %v6389_v13 = vcombine.high %v6373_v40, %v6373_v40  ;;  %v6390_v25 = vcombine.high %v6380_v5, %v6380_v5  ;;  %7271 = vmatprep.mubr.f32.mxu0 %v7023_v18 }
 0x74a   :  { %v20496_v26 = vsel %vm25387_vm13, 0.0, %v20489_v2  ;;  %v6623_v44 = vrot.slane %v6380_v5, %v25324_v14  ;;  %v6627_v36 = vrot.slane %v6388_v10, %v25324_v14  ;;  %v6635_v63 = vrot.slane %v6373_v40, %v25324_v14  ;;  %14413 = vmatmul.mubr.msk.f32.gmra.mxu0 %vm20228_vm0, %v20397_v3  ;;  %vm25392_vm13 = vmmov %vm25383_vm2 }
 0x74b   :  { %v20506_v32 = vsel %vm25388_vm14, %v20489_v2, %v6939_v22  ;;  %v7087_v1 = vrot.slane %v20496_v26, 2  ;;  %v20510_v27 = vsel %vm25389_vm7, %v6939_v22, 0.0  ;;  %v6391_v38 = vcombine.high %v6387_v4, %v6387_v4 }
 0x74c   :  { %v7088_v7 = vrot.slane %v20506_v32, 2  ;;  %v7090_v56 = vrot.slane %v20510_v27, 2  ;;  %v6631_v17 = vrot.slane %v6390_v25, %v25324_v14  ;;  %v6639_v60 = vrot.slane %v6387_v4, %v25324_v14 }
 0x74d   :  { %v6643_v3 = vrot.slane %v6389_v13, %v25324_v14  ;;  %v6647_v48 = vrot.slane %v6391_v38, %v25324_v14  ;;  %v6886_v50 = vcombine.low %v6619_v29, %v6623_v44  ;;  %v7025_v57 = vsel %vm25390_vm4, %v7022_v23, %v7024_v42  ;;  %vm25399_vm4 = vmmov %vm25389_vm7 }
 0x74e   :  { %v7089_v47 = vsel %vm25374_vm5, %v7087_v1, %v7088_v7  ;;  %v6887_v33 = vcombine.low %v6627_v36, %v6631_v17  ;;  %v6903_v59 = vcombine.low %v6635_v63, %v6639_v60  ;;  %7276 = vmatprep.mubr.f32.mxu0 %v7025_v57  ;;  %v20521_v43 = vand.u32 4294901760, %v20156_v35  ;;  %vm25400_vm5 = vmmov %vm25399_vm4 }
 0x74f   :  { %16734 = vmatprep.mubr.f32.mxu1 %v7089_v47  ;;  %v7091_v40 = vsel %vm25391_vm10, %v7088_v7, %v7090_v56  ;;  %v6904_v5 = vcombine.low %v6643_v3, %v6647_v48  ;;  %7277 = vmatmul.mubr.f32.gmra.mxu0 %v20416_v41  ;;  %v7026_v10 = vrot.slane %v20458_v21, 1  ;;  %v7027_v29 = vrot.slane %v20466_v55, 1  ;;  %v25397_v3 = vld [vmem:[#allocation12_spill] sm:$0xff]  ;;  %v25398_v47 = vld [vmem:[#allocation14_spill] sm:$0xff]  ;;  %vm25401_vm10 = vmmov %vm25383_vm2 }
 0x750   :  { %16735 = vmatmul.mubr.f32.gmra.mxu1 %v7091_v40  ;;  %v6894_v23 = vrot.slane %v6886_v50, %v25354_v30  ;;  %v6901_v42 = vrot.slane %v6887_v33, %v25354_v30  ;;  %v7029_v18 = vrot.slane %v20470_v11, 1  ;;  %v20531_v22 = vand.u32 4294901760, %v20164_v61 }
 0x751   :  { %v6911_v4 = vrot.slane %v6903_v59, %v25354_v30  ;;  %v6918_v13 = vrot.slane %v6904_v5, %v25354_v30  ;;  %v7028_v41 = vsel %vm25383_vm2, %v7026_v10, %v7027_v29  ;;  %v7031_v21 = vrot.slane %v20496_v26, 1 }
 0x752   :  { %v6902_v25 = vcombine.low %v6894_v23, %v6901_v42  ;;  %7281 = vmatprep.mubr.f32.mxu0 %v7028_v41  ;;  %v8157_v44 = vand.u32 4294901760, %v8156_v19  ;;  %v8163_v11 = vsub.f32 %v20150_v52, %v20172_v54  ;;  %v7030_v30 = vsel %vm25392_vm13, %v7027_v29, %v7029_v18 }
 0x753   :  { %v6919_v36 = vcombine.low %v6911_v4, %v6918_v13  ;;  %14415 = vmatmul.mubr.msk.f32.gmra.mxu0 %vm20228_vm0, %v20450_v31  ;;  %v7032_v63 = vrot.slane %v20506_v32, 1  ;;  %v8170_v1 = vsub.f32 %v20156_v35, %v20521_v43  ;;  %v8177_v38 = vsub.f32 %v20164_v61, %v20531_v22  ;;  %v25409_v4 = vld [vmem:[#allocation16_spill] sm:$0xff] }
 0x754   :  { %v20549_v26 = vrot.slane %v6902_v25, 7  ;;  %7286 = vmatprep.mubr.f32.mxu0 %v7030_v30  ;;  %16826 = vmatprep.subr.mxu0 %v8157_v44  ;;  %v8164_v19 = vand.u32 4294901760, %v8163_v11  ;;  %v25393_v7 = vand.u32 7, %v25329_v0  ;;  %v25394_v31 = vmov 0 }
 0x755   :  { %v6942_v56 = vrot.slane %v6919_v36, 7  ;;  %16827 = vmatpush3.msra.mxu0 %v8157_v44  ;;  %v8171_v17 = vand.u32 4294901760, %v8170_v1  ;;  %v7512_v48 = vand.u32 7, %v25397_v3  ;;  %v7034_v50 = vrot.slane %v20510_v27, 1 }
 0x756   :  { %vm20556_vm14 = vcmp.eq.s32.totalorder %v25393_v7, %v25335_v53  ;;  %v6975_v0 = vsel %vm25389_vm7, 0.0, %v20549_v26  ;;  %16828 = vmatprep.subr.mxu0 %v8164_v19  ;;  %v7505_v33 = vand.u32 7, %v25398_v47  ;;  %v7033_v5 = vsel %vm25401_vm10, %v7031_v21, %v7032_v63 }
 0x757   :  { %v25395_v31 = vsel %vm20556_vm14, 4294967295, %v25394_v31  ;;  %v14428_v60 = vsel %vm20556_vm14, 1.0, %v25311_v20  ;;  %16754 = vmatprep.subr.msk.mxu1 %vm20556_vm14, %v25314_v9  ;;  %v20578_v59 = vsel %vm25399_vm4, %v20549_v26, %v6942_v56  ;;  %v6983_v40 = vsel %vm25400_vm5, %v6942_v56, 0.0  ;;  %7287 = vmatmul.mubr.f32.gmra.mxu0 %v20466_v55  ;;  %vm25412_vm5 = vmmov %vm25401_vm10 }
 0x758   :  { %25396 = vst [vmem:[#allocation33_spill] sm:$0xff] %v25395_v31  ;;  %v20570_v57 = vsub.f32 %v14428_v60, %v14428_v60  ;;  %16755 = vmatpush3.msk.msra.mxu1 %vm20556_vm14, %v25314_v9  ;;  %v7092_v27 = vrot.slane %v6975_v0, 2  ;;  %v7093_v10 = vrot.slane %v20578_v59, 2  ;;  %v7095_v29 = vrot.slane %v6983_v40, 2  ;;  %7291 = vmatprep.mubr.f32.mxu0 %v7033_v5 }
 0x759   :  { %16829 = vmatpush3.msra.mxu0 %v8164_v19  ;;  %v8178_v23 = vand.u32 4294901760, %v8177_v38  ;;  %vm20588_vm2 = vcmp.eq.s32.totalorder %v7512_v48, %v25335_v53  ;;  %v25403_v18 = vmov 0  ;;  %vm20593_vm13 = vcmp.eq.s32.totalorder %v7505_v33, %v25335_v53  ;;  %v25416_v38 = vld [vmem:[#allocation19_spill] sm:$0xff] }
 0x75a   :  { %16830 = vmatprep.subr.mxu0 %v8171_v17  ;;  %v20585_v42 = vand.u32 4294901760, %v20570_v57  ;;  %v25404_v18 = vsel %vm20588_vm2, 4294967295, %v25403_v18  ;;  %v25406_v55 = vmov 0  ;;  %v7498_v13 = vand.u32 7, %v25409_v4  ;;  %16756 = vmatprep.subr.msk.mxu1 %vm20588_vm2, %v25314_v9 }
 0x75b   :  { %25405 = vst [vmem:[#allocation37_spill] sm:$0xff] %v25404_v18  ;;  %v25407_v55 = vsel %vm20593_vm13, 4294967295, %v25406_v55  ;;  %vm25410_vm7 = vcmask 1045504   ;;  %v7035_v21 = vsel %vm25412_vm5, %v7032_v63, %v7034_v50  ;;  %v7037_v44 = vrot.slane %v20578_v59, 1  ;;  %16831 = vmatpush3.msra.mxu0 %v8171_v17  ;;  %16757 = vmatpush3.msk.msra.mxu1 %vm20588_vm2, %v25314_v9 }
 0x75c   :  { %25402 = vst [vmem:[#allocation38_spill] sm:$0xff] %v20585_v42  ;;  %25408 = vst [vmem:[#allocation43_spill] sm:$0xff] %v25407_v55  ;;  %v7094_v41 = vsel %vm25410_vm7, %v7092_v27, %v7093_v10  ;;  %14417 = vmatmul.mubr.msk.f32.gmra.mxu0 %vm20228_vm0, %v20489_v2  ;;  %v8184_v11 = vsub.f32 %v20570_v57, %v20585_v42  ;;  %v14427_v36 = vsel %vm20588_vm2, 1.0, %v25311_v20  ;;  %v14426_v30 = vsel %vm20593_vm13, 1.0, %v25311_v20 }
 0x75d   :  { %vm25411_vm4 = vmmov %vm25410_vm7  ;;  %16737 = vmatprep.mubr.f32.mxu1 %v7094_v41  ;;  %vm20614_vm10 = vcmp.eq.s32.totalorder %v7498_v13, %v25335_v53  ;;  %v25413_v63 = vmov 0  ;;  %7296 = vmatprep.mubr.f32.mxu0 %v7035_v21  ;;  %v20618_v1 = vsub.f32 %v14427_v36, %v14427_v36  ;;  %v20620_v2 = vsub.f32 %v14426_v30, %v14426_v30  ;;  %v25425_v13 = vld [vmem:[#allocation23_spill] sm:$0xff] }
 0x75e   :  { %v7096_v25 = vsel %vm25411_vm4, %v7093_v10, %v7095_v29  ;;  %v25414_v63 = vsel %vm20614_vm10, 4294967295, %v25413_v63  ;;  %v14425_v19 = vsel %vm20614_vm10, 1.0, %v25311_v20  ;;  %v7491_v7 = vand.u32 7, %v25416_v38  ;;  %16832 = vmatprep.subr.mxu0 %v8178_v23  ;;  %vm25422_vm4 = vmmov %vm25412_vm5  ;;  %16758 = vmatprep.subr.msk.mxu1 %vm20593_vm13, %v25314_v9  ;;  %v25427_v21 = vld [vmem:[#allocation27_spill] sm:$0xff] }
 0x75f   :  { %25415 = vst [vmem:[#allocation41_spill] sm:$0xff] %v25414_v63  ;;  %16738 = vmatmul.mubr.f32.gmra.mxu1 %v7096_v25  ;;  %v7036_v56 = vrot.slane %v6975_v0, 1  ;;  %v8185_v17 = vand.u32 4294901760, %v8184_v11  ;;  %v20626_v60 = vsub.f32 %v14425_v19, %v14425_v19  ;;  %16833 = vmatpush3.msra.mxu0 %v8178_v23  ;;  %v20632_v3 = vand.u32 4294901760, %v20618_v1  ;;  %vm25426_vm5 = vmmov %vm25422_vm4  ;;  %v25434_v19 = vld [vmem:[#allocation32_spill] sm:$0xff] }
 0x760   :  { %v20635_v48 = vand.u32 4294901760, %v20620_v2  ;;  %vm20638_vm7 = vcmp.eq.s32.totalorder %v7491_v7, %v25335_v53  ;;  %v25419_v50 = vmov 0  ;;  %7297 = vmatmul.mubr.f32.gmra.mxu0 %v20506_v32  ;;  %v7039_v47 = vrot.slane %v6983_v40, 1  ;;  %16759 = vmatpush3.msk.msra.mxu1 %vm20593_vm13, %v25314_v9 }
 0x761   :  { %25417 = vst [vmem:[#allocation46_spill] sm:$0xff] %v20632_v3  ;;  %v25420_v50 = vsel %vm20638_vm7, 4294967295, %v25419_v50  ;;  %v7038_v0 = vsel %vm25422_vm4, %v7036_v56, %v7037_v44  ;;  %16834 = vmatprep.subr.mxu0 %v8185_v17  ;;  %v20648_v33 = vand.u32 4294901760, %v20626_v60  ;;  %v14424_v5 = vsel %vm20638_vm7, 1.0, %v25311_v20  ;;  %16760 = vmatprep.subr.msk.mxu1 %vm20614_vm10, %v25314_v9 }
 0x762   :  { %25418 = vst [vmem:[#allocation45_spill] sm:$0xff] %v20635_v48  ;;  %25421 = vst [vmem:[#allocation49_spill] sm:$0xff] %v25420_v50  ;;  %7301 = vmatprep.mubr.f32.mxu0 %v7038_v0  ;;  %16835 = vmatpush3.msra.mxu0 %v8185_v17  ;;  %v8191_v27 = vsub.f32 %v20618_v1, %v20632_v3  ;;  %v8198_v10 = vsub.f32 %v20620_v2, %v20635_v48  ;;  %v7484_v41 = vand.u32 7, %v25425_v13  ;;  %v25428_v30 = vmov 0 }
 0x763   :  { %25423 = vst [vmem:[#allocation48_spill] sm:$0xff] %v20648_v33  ;;  %v20657_v32 = vsub.f32 %v14424_v5, %v14424_v5  ;;  %v8205_v40 = vsub.f32 %v20626_v60, %v20648_v33  ;;  %v7040_v25 = vsel %vm25426_vm5, %v7037_v44, %v7039_v47  ;;  %v7477_v11 = vand.u32 7, %v25427_v21  ;;  %16761 = vmatpush3.msk.msra.mxu1 %vm20614_vm10, %v25314_v9  ;;  %v25441_v21 = vld [vmem:[#allocation11_spill] sm:$0xff] }
 0x764   :  { %v8192_v29 = vand.u32 4294901760, %v8191_v27  ;;  %v8199_v23 = vand.u32 4294901760, %v8198_v10  ;;  %14419 = vmatmul.mubr.msk.f32.gmra.mxu0 %vm20228_vm0, %v20549_v26  ;;  %vm20682_vm4 = vcmp.eq.s32.totalorder %v7484_v41, %v25335_v53  ;;  %v25431_v44 = vmov 0  ;;  %16762 = vmatprep.subr.msk.mxu1 %vm20638_vm7, %v25314_v9 }
 0x765   :  { %v20665_v4 = vand.u32 4294901760, %v20657_v32  ;;  %7306 = vmatprep.mubr.f32.mxu0 %v7040_v25  ;;  %v25429_v30 = vsel %vm20682_vm4, 4294967295, %v25428_v30  ;;  %v8206_v49 = vand.u32 4294901760, %v8205_v40  ;;  %v14423_v26 = vsel %vm20682_vm4, 1.0, %v25311_v20  ;;  %16763 = vmatpush3.msk.msra.mxu1 %vm20638_vm7, %v25314_v9 }
 0x766   :  { %16836 = vmatprep.subr.mxu0 %v8192_v29  ;;  %25430 = vst [vmem:[#allocation51_spill] sm:$0xff] %v25429_v30  ;;  %vm20690_vm0 = vcmp.eq.s32.totalorder %v7477_v11, %v25335_v53  ;;  %v7470_v38 = vand.u32 7, %v25434_v19  ;;  %v20698_v7 = vsub.f32 %v14423_v26, %v14423_v26  ;;  %v25435_v47 = vmov 0  ;;  %16764 = vmatprep.subr.msk.mxu1 %vm20682_vm4, %v25314_v9 }
 0x767   :  { %25424 = vst [vmem:[#allocation50_spill] sm:$0xff] %v20665_v4  ;;  %v8212_v36 = vsub.f32 %v20657_v32, %v20665_v4  ;;  %16837 = vmatpush3.msra.mxu0 %v8192_v29  ;;  %v25432_v44 = vsel %vm20690_vm0, 4294967295, %v25431_v44  ;;  %v14422_v56 = vsel %vm20690_vm0, 1.0, %v25311_v20  ;;  %16765 = vmatpush3.msk.msra.mxu1 %vm20682_vm4, %v25314_v9  ;;  %v7463_v11 = vand.u32 7, %v25441_v21 }
 0x768   :  { %25433 = vst [vmem:[#allocation20_spill] sm:$0xff] %v25432_v44  ;;  %16838 = vmatprep.subr.mxu0 %v8199_v23  ;;  %7307 = vmatmul.mubr.f32.gmra.mxu0 %v20578_v59  ;;  %v20707_v0 = vsub.f32 %v14422_v56, %v14422_v56  ;;  %vm20710_vm5 = vcmp.eq.s32.totalorder %v7470_v38, %v25335_v53  ;;  %v20718_v5 = vand.u32 4294901760, %v20698_v7 }
 0x769   :  { %v8213_v17 = vand.u32 4294901760, %v8212_v36  ;;  %v25436_v47 = vsel %vm20710_vm5, 4294967295, %v25435_v47  ;;  %16839 = vmatpush3.msra.mxu0 %v8199_v23  ;;  %v14421_v59 = vsel %vm20710_vm5, 1.0, %v25311_v20  ;;  %16766 = vmatprep.subr.msk.mxu1 %vm20690_vm0, %v25314_v9  ;;  %vm20757_vm6 = vcmp.eq.s32.totalorder %v7463_v11, %v25335_v53 }
 0x76a   :  { %25437 = vst [vmem:[#allocation24_spill] sm:$0xff] %v25436_v47  ;;  %25438 = vst [vmem:[#allocation17_spill] sm:$0xff] %v20718_v5  ;;  %16840 = vmatprep.subr.mxu0 %v8206_v49  ;;  %v20727_v27 = vand.u32 4294901760, %v20707_v0  ;;  %v20729_v10 = vsub.f32 %v14421_v59, %v14421_v59  ;;  %v8219_v40 = vsub.f32 %v20698_v7, %v20718_v5  ;;  %16767 = vmatpush3.msk.msra.mxu1 %vm20690_vm0, %v25314_v9 }
 0x76b   :  { %16841 = vmatpush3.msra.mxu0 %v8206_v49  ;;  %16768 = vmatprep.subr.msk.mxu1 %vm20710_vm5, %v25314_v9  ;;  %v25442_v49 = vmov 0  ;;  %v14420_v26 = vsel %vm20757_vm6, 1.0, %v25311_v20 }
 0x76c   :  { %25439 = vst [vmem:[#allocation44_spill] sm:$0xff] %v20727_v27  ;;  %16842 = vmatprep.subr.mxu0 %v8213_v17  ;;  %v8226_v29 = vsub.f32 %v20707_v0, %v20727_v27  ;;  %v20742_v23 = vand.u32 4294901760, %v20729_v10  ;;  %v8220_v13 = vand.u32 4294901760, %v8219_v40  ;;  %16769 = vmatpush3.msk.msra.mxu1 %vm20710_vm5, %v25314_v9  ;;  %v25443_v49 = vsel %vm20757_vm6, 4294967295, %v25442_v49 }
 0x76d   :  { %16843 = vmatpush3.msra.mxu0 %v8213_v17  ;;  %25444 = vst [vmem:[#allocation30_spill] sm:$0xff] %v25443_v49  ;;  %16770 = vmatprep.subr.msk.mxu1 %vm20757_vm6, %v25314_v9  ;;  %v20767_v19 = vsub.f32 %v14420_v26, %v14420_v26 }
 0x76e   :  { %25440 = vst [vmem:[#allocation25_spill] sm:$0xff] %v20742_v23  ;;  %v8227_v41 = vand.u32 4294901760, %v8226_v29  ;;  %v8233_v25 = vsub.f32 %v20729_v10, %v20742_v23  ;;  %16844 = vmatprep.subr.mxu0 %v8220_v13  ;;  %16771 = vmatpush3.msk.msra.mxu1 %vm20757_vm6, %v25314_v9 }
 0x76f   :  { %16845 = vmatpush3.msra.mxu0 %v8220_v13  ;;  %16900 = vmatprep.subr.mxu1 %v20095_v12  ;;  %v20774_v38 = vand.u32 4294901760, %v20767_v19  ;;  %v20784_v13 = vld [vmem:[%s24468_s10] ss:$0 sm:$0xff] }
 0x770   :  { %v8234_v36 = vand.u32 4294901760, %v8233_v25  ;;  %16846 = vmatprep.subr.mxu0 %v8227_v41 }
 0x771   :  { %16847 = vmatpush3.msra.mxu0 %v8227_v41  ;;  %25445 = vst [vmem:[#allocation21_spill] sm:$0xff] %v20774_v38  ;;  %v8240_v56 = vsub.f32 %v20767_v19, %v20774_v38 }
 0x772   :  { %16848 = vmatprep.subr.mxu0 %v8234_v36 }
 0x773   :  { %16849 = vmatpush3.msra.mxu0 %v8234_v36  ;;  %v8241_v17 = vand.u32 4294901760, %v8240_v56 }
 0x775   :  { %16850 = vmatprep.subr.mxu0 %v8241_v17 }
 0x776   :  { %16851 = vmatpush3.msra.mxu0 %v8241_v17 }
 0x777   :  { %16980 = vmatprep.subr.msk.mxu0 %vm20064_vm8, %v25314_v9 }
 0x7d0   :  { %v14904_v59 = vpop.f32.mrf.mxu0 }
 0x7d1   :  { %v16718_v40 = vpop.f32.mrf.mxu1 }
 0x7d2   :  { %v14905_v29 = vpop.f32.mrf.mxu0 }
 0x7d3   :  { %v14906_v41 = vadd.f32 %v14905_v29, %v14904_v59  ;;  %v7378_v36 = vpop.f32.mrf.mxu1 }
 0x7d4   :  { %v14907_v25 = vpop.f32.mrf.mxu0 }
 0x7d5   :  { %v7234_v11 = vadd.f32 %v14906_v41, %v20784_v13  ;;  %v16721_v20 = vpop.f32.mrf.mxu1 }
 0x7d6   :  { %v14908_v26 = vpop.f32.mrf.mxu0 }
 0x7d7   :  { %v20787_v56 = vadd.f32 %v7378_v36, %v7234_v11  ;;  %v14909_v17 = vadd.f32 %v14908_v26, %v14907_v25  ;;  %v7388_v36 = vpop.f32.mrf.mxu1 }
 0x7d8   :  { %v14910_v14 = vpop.f32.mrf.mxu0 }
 0x7d9   :  { %25446 = vst [vmem:[#allocation47_spill] sm:$0xff] %v20787_v56  ;;  %v7239_v21 = vadd.f32 %v14909_v17, %v20784_v13  ;;  %v20791_v53 = vand.u32 4294901760, %v20787_v56 }
 0x7da   :  { %v14911_v38 = vpop.f32.mrf.mxu0 }
 0x7db   :  { %25447 = vst [vmem:[#allocation29_spill] sm:$0xff] %v20791_v53  ;;  %v20793_v23 = vadd.f32 %v16718_v40, %v7239_v21  ;;  %v14912_v27 = vadd.f32 %v14911_v38, %v14910_v14  ;;  %16852 = vmatprep.mubr.f32.mxu0 %v20791_v53  ;;  %v20798_v59 = vsub.f32 %v20787_v56, %v20791_v53 }
 0x7dc   :  { %v14913_v29 = vpop.f32.mrf.mxu0 }
 0x7dd   :  { %25448 = vst [vmem:[#allocation28_spill] sm:$0xff] %v20793_v23  ;;  %v20801_v41 = vand.u32 4294901760, %v20793_v23  ;;  %v7244_v25 = vadd.f32 %v14912_v27, %v20784_v13  ;;  %v24649_v11 = vand.u32 4294901760, %v20798_v59  ;;  %v7715_v50 = vmul.f32 %v20793_v23, %v20793_v23 }
 0x7de   :  { %v14914_v26 = vpop.f32.mrf.mxu0 }
 0x7df   :  { %25449 = vst [vmem:[#allocation35_spill] sm:$0xff] %v20801_v41  ;;  %v20807_v21 = vsub.f32 %v20793_v23, %v20801_v41  ;;  %v20809_v14 = vadd.f32 %v7388_v36, %v7244_v25  ;;  %v14915_v38 = vadd.f32 %v14914_v26, %v14913_v29  ;;  %16853 = vmatmul.mubr.f32.vlgmr.msra.gmra.mxu0 %v20801_v41 }
 0x7e0   :  { %v7814_v40 = vsub.f32 %v20798_v59, %v24649_v11  ;;  %16981 = vmatpush3.msk.msra.mxu0 %vm20064_vm8, %v25314_v9 }
 0x7e1   :  { %25450 = vst [vmem:[#allocation39_spill] sm:$0xff] %v20809_v14  ;;  %v24648_v27 = vand.u32 4294901760, %v20807_v21  ;;  %v7249_v17 = vadd.f32 %v14915_v38, %v20784_v13  ;;  %v20821_v5 = vand.u32 4294901760, %v20809_v14  ;;  %16982 = vmatprep.subr.msk.mxu0 %vm20069_vm3, %v25314_v9  ;;  %v7716_v33 = vmul.f32 %v20809_v14, %v20809_v14 }
 0x7e2   :  { %v7815_v53 = vand.u32 4294901760, %v7814_v40  ;;  %16983 = vmatpush3.msk.msra.mxu0 %vm20069_vm3, %v25314_v9 }
 0x7e3   :  { %25451 = vst [vmem:[#allocation34_spill] sm:$0xff] %v20821_v5  ;;  %v20829_v29 = vadd.f32 %v16721_v20, %v7249_v17  ;;  %16855 = vmatprep.mubr.f32.mxu0 %v20821_v5  ;;  %v7824_v36 = vsub.f32 %v20807_v21, %v24648_v27  ;;  %v20837_v26 = vsub.f32 %v20809_v14, %v20821_v5  ;;  %v16724_v38 = vpop.f32.mrf.mxu1  ;;  %v21142_v14 = vand.u32 4294901760, %v7716_v33 }
 0x7e4   :  { %v14916_v25 = vpop.f32.mrf.mxu0  ;;  %16772 = vmatprep.mubr.f32.mxu1 %v7815_v53  ;;  %16984 = vmatprep.subr.msk.mxu0 %vm20074_vm15, %v25314_v9 }
 0x7e5   :  { %25452 = vst [vmem:[#allocation66_spill] sm:$0xff] %v20829_v29  ;;  %v7825_v20 = vand.u32 4294901760, %v7824_v36  ;;  %v20843_v17 = vand.u32 4294901760, %v20829_v29  ;;  %v24652_v53 = vand.u32 4294901760, %v20837_v26  ;;  %16985 = vmatpush3.msk.msra.mxu0 %vm20074_vm15, %v25314_v9  ;;  %v7717_v48 = vmul.f32 %v20829_v29, %v20829_v29  ;;  %25478 = vst [vmem:[#allocation12_spill] sm:$0xff] %v21142_v14 }
 0x7e6   :  { %v14917_v40 = vpop.f32.mrf.mxu0  ;;  %16986 = vmatprep.subr.msk.mxu0 %vm20088_vm1, %v25314_v9 }
 0x7e7   :  { %25453 = vst [vmem:[#allocation67_spill] sm:$0xff] %v20843_v17  ;;  %v14918_v27 = vadd.f32 %v14917_v40, %v14916_v25  ;;  %16773 = vmatmul.mubr.f32.vlgmr.msra.gmra.mxu1 %v7825_v20  ;;  %16856 = vmatmul.mubr.f32.gmra.mxu0 %v20843_v17  ;;  %v7834_v36 = vsub.f32 %v20837_v26, %v24652_v53  ;;  %v7398_v25 = vpop.f32.mrf.mxu1 }
 0x7e8   :  { %v20858_v11 = vsub.f32 %v20829_v29, %v20843_v17  ;;  %16901 = vmatpush3.msra.mxu1 %v20095_v12  ;;  %16987 = vmatpush3.msk.msra.mxu0 %vm20088_vm1, %v25314_v9 }
 0x7e9   :  { %v7254_v5 = vadd.f32 %v14918_v27, %v20784_v13  ;;  %v7835_v40 = vand.u32 4294901760, %v7834_v36  ;;  %16902 = vmatprep.subr.mxu1 %v20097_v15  ;;  %16988 = vmatprep.subr.msk.mxu0 %vm20105_vm11, %v25314_v9 }
 0x7ea   :  { %v24653_v20 = vand.u32 4294901760, %v20858_v11  ;;  %16903 = vmatpush3.msra.mxu1 %v20097_v15  ;;  %16989 = vmatpush3.msk.msra.mxu0 %vm20105_vm11, %v25314_v9 }
 0x7eb   :  { %v20870_v53 = vadd.f32 %v7398_v25, %v7254_v5  ;;  %16775 = vmatprep.mubr.f32.mxu1 %v7835_v40  ;;  %16904 = vmatprep.subr.mxu1 %v20099_v45 }
 0x7ec   :  { %v7844_v12 = vsub.f32 %v20858_v11, %v24653_v20  ;;  %16905 = vmatpush3.msra.mxu1 %v20099_v45  ;;  %16990 = vmatprep.subr.msk.mxu0 %vm20110_vm12, %v25314_v9 }
 0x7ed   :  { %25454 = vst [vmem:[#allocation61_spill] sm:$0xff] %v20870_v53  ;;  %v20881_v27 = vand.u32 4294901760, %v20870_v53  ;;  %v14919_v15 = vpop.f32.mrf.mxu0  ;;  %16906 = vmatprep.subr.mxu1 %v20128_v16  ;;  %16991 = vmatpush3.msk.msra.mxu0 %vm20110_vm12, %v25314_v9 }
 0x7ee   :  { %v7845_v5 = vand.u32 4294901760, %v7844_v12  ;;  %16907 = vmatpush3.msra.mxu1 %v20128_v16  ;;  %16992 = vmatprep.subr.msk.mxu0 %vm20115_vm9, %v25314_v9 }
 0x7ef   :  { %25455 = vst [vmem:[#allocation60_spill] sm:$0xff] %v20881_v27  ;;  %16858 = vmatprep.mubr.f32.mxu0 %v20881_v27  ;;  %v20894_v36 = vsub.f32 %v20870_v53, %v20881_v27  ;;  %v14920_v45 = vpop.f32.mrf.mxu0  ;;  %16908 = vmatprep.subr.mxu1 %v20150_v52 }
 0x7f0   :  { %16776 = vmatmul.mubr.f32.gmra.mxu1 %v7845_v5  ;;  %v14921_v25 = vadd.f32 %v14920_v45, %v14919_v15  ;;  %16993 = vmatpush3.msk.msra.mxu0 %vm20115_vm9, %v25314_v9 }
 0x7f1   :  { %v24654_v40 = vand.u32 4294901760, %v20894_v36  ;;  %16909 = vmatpush3.msra.mxu1 %v20150_v52  ;;  %16994 = vmatprep.subr.msk.mxu0 %vm20556_vm14, %v25314_v9  ;;  %v16727_v52 = vpop.f32.mrf.mxu1 }
 0x7f2   :  { %v14922_v12 = vpop.f32.mrf.mxu0  ;;  %16910 = vmatprep.subr.mxu1 %v20156_v35  ;;  %v7259_v16 = vadd.f32 %v14921_v25, %v20784_v13  ;;  %16995 = vmatpush3.msk.msra.mxu0 %vm20556_vm14, %v25314_v9 }
 0x7f3   :  { %v7854_v15 = vsub.f32 %v20894_v36, %v24654_v40  ;;  %16911 = vmatpush3.msra.mxu1 %v20156_v35  ;;  %16996 = vmatprep.subr.msk.mxu0 %vm20588_vm2, %v25314_v9 }
 0x7f4   :  { %v14923_v5 = vpop.f32.mrf.mxu0  ;;  %16912 = vmatprep.subr.mxu1 %v20164_v61  ;;  %v20919_v45 = vadd.f32 %v16724_v38, %v7259_v16  ;;  %16997 = vmatpush3.msk.msra.mxu0 %vm20588_vm2, %v25314_v9  ;;  %v7408_v38 = vpop.f32.mrf.mxu1 }
 0x7f5   :  { %v14924_v25 = vadd.f32 %v14923_v5, %v14922_v12  ;;  %v7855_v20 = vand.u32 4294901760, %v7854_v15  ;;  %16913 = vmatpush3.msra.mxu1 %v20164_v61  ;;  %16998 = vmatprep.subr.msk.mxu0 %vm20593_vm13, %v25314_v9 }
 0x7f6   :  { %25456 = vst [vmem:[#allocation62_spill] sm:$0xff] %v20919_v45  ;;  %16914 = vmatprep.subr.mxu1 %v20570_v57  ;;  %v20931_v40 = vand.u32 4294901760, %v20919_v45  ;;  %16999 = vmatpush3.msk.msra.mxu0 %vm20593_vm13, %v25314_v9 }
 0x7f7   :  { %v7264_v35 = vadd.f32 %v14924_v25, %v20784_v13  ;;  %16778 = vmatprep.mubr.f32.mxu1 %v7855_v20  ;;  %16915 = vmatpush3.msra.mxu1 %v20570_v57 }
 0x7f8   :  { %25457 = vst [vmem:[#allocation63_spill] sm:$0xff] %v20931_v40  ;;  %16916 = vmatprep.subr.mxu1 %v20618_v1  ;;  %16859 = vmatmul.mubr.f32.gmra.mxu0 %v20931_v40  ;;  %v20943_v12 = vsub.f32 %v20919_v45, %v20931_v40 }
 0x7f9   :  { %v20938_v61 = vadd.f32 %v7408_v38, %v7264_v35  ;;  %16917 = vmatpush3.msra.mxu1 %v20618_v1  ;;  %17000 = vmatprep.subr.msk.mxu0 %vm20614_vm10, %v25314_v9 }
 0x7fa   :  { %v14925_v20 = vpop.f32.mrf.mxu0  ;;  %16918 = vmatprep.subr.mxu1 %v20620_v2  ;;  %v24656_v16 = vand.u32 4294901760, %v20943_v12  ;;  %17001 = vmatpush3.msk.msra.mxu0 %vm20614_vm10, %v25314_v9  ;;  %v25502_v51 = vand.u32 4294901760, %v20943_v12 }
 0x7fb   :  { %25458 = vst [vmem:[#allocation64_spill] sm:$0xff] %v20938_v61  ;;  %v20951_v57 = vand.u32 4294901760, %v20938_v61  ;;  %16919 = vmatpush3.msra.mxu1 %v20620_v2  ;;  %17002 = vmatprep.subr.msk.mxu0 %vm20638_vm7, %v25314_v9 }
 0x7fc   :  { %v14926_v15 = vpop.f32.mrf.mxu0  ;;  %16920 = vmatprep.subr.mxu1 %v20626_v60  ;;  %v7864_v5 = vsub.f32 %v20943_v12, %v24656_v16  ;;  %17003 = vmatpush3.msk.msra.mxu0 %vm20638_vm7, %v25314_v9 }
 0x7fd   :  { %25459 = vst [vmem:[#allocation65_spill] sm:$0xff] %v20951_v57  ;;  %v14927_v1 = vadd.f32 %v14926_v15, %v14925_v20  ;;  %16861 = vmatprep.mubr.f32.mxu0 %v20951_v57  ;;  %v20968_v2 = vsub.f32 %v20938_v61, %v20951_v57  ;;  %16921 = vmatpush3.msra.mxu1 %v20626_v60 }
 0x7fe   :  { %16922 = vmatprep.subr.mxu1 %v20657_v32  ;;  %v7865_v35 = vand.u32 4294901760, %v7864_v5  ;;  %17004 = vmatprep.subr.msk.mxu0 %vm20682_vm4, %v25314_v9  ;;  %v16730_v5 = vpop.f32.mrf.mxu1 }
 0x7ff   :  { %v7269_v25 = vadd.f32 %v14927_v1, %v20784_v13  ;;  %v24655_v38 = vand.u32 4294901760, %v20968_v2  ;;  %16923 = vmatpush3.msra.mxu1 %v20657_v32  ;;  %17005 = vmatpush3.msk.msra.mxu0 %vm20682_vm4, %v25314_v9 }
 0x800   :  { %16924 = vmatprep.subr.mxu1 %v20698_v7  ;;  %16779 = vmatmul.mubr.f32.gmra.mxu1 %v7865_v35 }
 0x801   :  { %v20985_v60 = vadd.f32 %v16727_v52, %v7269_v25  ;;  %v7874_v20 = vsub.f32 %v20968_v2, %v24655_v38  ;;  %16925 = vmatpush3.msra.mxu1 %v20698_v7  ;;  %17006 = vmatprep.subr.msk.mxu0 %vm20690_vm0, %v25314_v9  ;;  %v7418_v38 = vpop.f32.mrf.mxu1 }
 0x802   :  { %16926 = vmatprep.subr.mxu1 %v20707_v0  ;;  %17007 = vmatpush3.msk.msra.mxu0 %vm20690_vm0, %v25314_v9 }
 0x803   :  { %25460 = vst [vmem:[#allocation58_spill] sm:$0xff] %v20985_v60  ;;  %v20998_v32 = vand.u32 4294901760, %v20985_v60  ;;  %v7875_v52 = vand.u32 4294901760, %v7874_v20  ;;  %16927 = vmatpush3.msra.mxu1 %v20707_v0  ;;  %17008 = vmatprep.subr.msk.mxu0 %vm20710_vm5, %v25314_v9 }
 0x804   :  { %17009 = vmatpush3.msk.msra.mxu0 %vm20710_vm5, %v25314_v9  ;;  %16928 = vmatprep.subr.mxu1 %v20729_v10 }
 0x805   :  { %25461 = vst [vmem:[#allocation57_spill] sm:$0xff] %v20998_v32  ;;  %16862 = vmatmul.mubr.f32.gmra.mxu0 %v20998_v32  ;;  %16781 = vmatprep.mubr.f32.mxu1 %v7875_v52  ;;  %v21011_v7 = vsub.f32 %v20985_v60, %v20998_v32 }
 0x806   :  { %17010 = vmatprep.subr.msk.mxu0 %vm20757_vm6, %v25314_v9  ;;  %16929 = vmatpush3.msra.mxu1 %v20729_v10  ;;  %v16733_v27 = vpop.f32.mrf.mxu1 }
 0x807   :  { %v24657_v15 = vand.u32 4294901760, %v21011_v7  ;;  %17011 = vmatpush3.msk.msra.mxu0 %vm20757_vm6, %v25314_v9  ;;  %16930 = vmatprep.subr.mxu1 %v20767_v19  ;;  %v25504_v34 = vand.u32 4294901760, %v21011_v7 }
 0x808   :  { %16931 = vmatpush3.msra.mxu1 %v20767_v19  ;;  %17140 = vmatprep.subr.msk.mxu0 %vm20064_vm8, %v25314_v9 }
 0x809   :  { %v7884_v0 = vsub.f32 %v21011_v7, %v24657_v15  ;;  %17060 = vmatprep.subr.mxu1 %v20120_v62 }
 0x80a   :  { %v14928_v1 = vpop.f32.mrf.mxu0 }
 0x80b   :  { %v7885_v10 = vand.u32 4294901760, %v7884_v0 }
 0x80c   :  { %v14929_v25 = vpop.f32.mrf.mxu0 }
 0x80d   :  { %v14930_v35 = vadd.f32 %v14929_v25, %v14928_v1  ;;  %16782 = vmatmul.mubr.f32.gmra.mxu1 %v7885_v10 }
 0x80f   :  { %v7274_v20 = vadd.f32 %v14930_v35, %v20784_v13  ;;  %v14931_v52 = vpop.f32.mrf.mxu0 }
 0x811   :  { %v21035_v16 = vadd.f32 %v7418_v38, %v7274_v20  ;;  %v14932_v15 = vpop.f32.mrf.mxu0 }
 0x812   :  { %v14933_v19 = vadd.f32 %v14932_v15, %v14931_v52  ;;  %v7428_v52 = vpop.f32.mrf.mxu1 }
 0x813   :  { %25462 = vst [vmem:[#allocation54_spill] sm:$0xff] %v21035_v16  ;;  %v14934_v32 = vpop.f32.mrf.mxu0  ;;  %v21038_v57 = vand.u32 4294901760, %v21035_v16  ;;  %v7722_v42 = vmul.f32 %v21035_v16, %v21035_v16 }
 0x814   :  { %v7279_v40 = vadd.f32 %v14933_v19, %v20784_v13  ;;  %v16736_v47 = vpop.f32.mrf.mxu1 }
 0x815   :  { %25463 = vst [vmem:[#allocation56_spill] sm:$0xff] %v21038_v57  ;;  %v14935_v0 = vpop.f32.mrf.mxu0  ;;  %16864 = vmatprep.mubr.f32.mxu0 %v21038_v57  ;;  %v21044_v1 = vsub.f32 %v21035_v16, %v21038_v57  ;;  %v21228_v31 = vand.u32 4294901760, %v7722_v42 }
 0x816   :  { %v21046_v10 = vadd.f32 %v16730_v5, %v7279_v40  ;;  %v14936_v38 = vadd.f32 %v14935_v0, %v14934_v32 }
 0x817   :  { %v14937_v25 = vpop.f32.mrf.mxu0  ;;  %v24676_v15 = vand.u32 4294901760, %v21044_v1  ;;  %25489 = vst [vmem:[#allocation72_spill] sm:$0xff] %v21228_v31 }
 0x818   :  { %25464 = vst [vmem:[#allocation59_spill] sm:$0xff] %v21046_v10  ;;  %v7284_v35 = vadd.f32 %v14936_v38, %v20784_v13  ;;  %v21051_v20 = vand.u32 4294901760, %v21046_v10 }
 0x819   :  { %v14938_v19 = vpop.f32.mrf.mxu0  ;;  %v7894_v17 = vsub.f32 %v21044_v1, %v24676_v15 }
 0x81a   :  { %25465 = vst [vmem:[#allocation68_spill] sm:$0xff] %v21051_v20  ;;  %v21056_v41 = vadd.f32 %v7428_v52, %v7284_v35  ;;  %v14939_v57 = vadd.f32 %v14938_v19, %v14937_v25  ;;  %16865 = vmatmul.mubr.f32.gmra.mxu0 %v21051_v20  ;;  %v21061_v40 = vsub.f32 %v21046_v10, %v21051_v20 }
 0x81b   :  { %v7895_v5 = vand.u32 4294901760, %v7894_v17 }
 0x81c   :  { %25466 = vst [vmem:[#allocation69_spill] sm:$0xff] %v21056_v41  ;;  %v14940_v32 = vpop.f32.mrf.mxu0  ;;  %v7289_v0 = vadd.f32 %v14939_v57, %v20784_v13  ;;  %v21065_v38 = vand.u32 4294901760, %v21056_v41  ;;  %v24681_v49 = vand.u32 4294901760, %v21061_v40  ;;  %v25506_v46 = vand.u32 4294901760, %v21061_v40 }
 0x81d   :  { %16784 = vmatprep.mubr.f32.mxu1 %v7895_v5 }
 0x81e   :  { %25467 = vst [vmem:[#allocation70_spill] sm:$0xff] %v21065_v38  ;;  %v14941_v15 = vpop.f32.mrf.mxu0  ;;  %v21068_v35 = vadd.f32 %v16733_v27, %v7289_v0  ;;  %16867 = vmatprep.mubr.f32.mxu0 %v21065_v38  ;;  %v7904_v52 = vsub.f32 %v21061_v40, %v24681_v49  ;;  %v21076_v17 = vsub.f32 %v21056_v41, %v21065_v38 }
 0x81f   :  { %v14942_v25 = vadd.f32 %v14941_v15, %v14940_v32  ;;  %v7438_v15 = vpop.f32.mrf.mxu1 }
 0x820   :  { %25468 = vst [vmem:[#allocation15_spill] sm:$0xff] %v21068_v35  ;;  %v14943_v57 = vpop.f32.mrf.mxu0  ;;  %v7905_v20 = vand.u32 4294901760, %v7904_v52  ;;  %v21080_v44 = vand.u32 4294901760, %v21068_v35  ;;  %v24688_v27 = vand.u32 4294901760, %v21076_v17 }
 0x821   :  { %v7294_v19 = vadd.f32 %v14942_v25, %v20784_v13 }
 0x822   :  { %25469 = vst [vmem:[#allocation18_spill] sm:$0xff] %v21080_v44  ;;  %v14944_v32 = vpop.f32.mrf.mxu0  ;;  %16785 = vmatmul.mubr.f32.gmra.mxu1 %v7905_v20  ;;  %16868 = vmatmul.mubr.f32.gmra.mxu0 %v21080_v44  ;;  %v7914_v49 = vsub.f32 %v21076_v17, %v24688_v27  ;;  %v21091_v25 = vsub.f32 %v21068_v35, %v21080_v44 }
 0x823   :  { %v21083_v5 = vadd.f32 %v7438_v15, %v7294_v19  ;;  %v14945_v0 = vadd.f32 %v14944_v32, %v14943_v57  ;;  %v16739_v19 = vpop.f32.mrf.mxu1  ;;  %v7714_v15 = vmul.f32 %v20787_v56, %v20787_v56 }
 0x824   :  { %v14946_v38 = vpop.f32.mrf.mxu0  ;;  %v7915_v30 = vand.u32 4294901760, %v7914_v49  ;;  %v24700_v20 = vand.u32 4294901760, %v21091_v25  ;;  %v25508_v37 = vand.u32 4294901760, %v21091_v25 }
 0x825   :  { %25470 = vst [vmem:[#allocation22_spill] sm:$0xff] %v21083_v5  ;;  %v7299_v52 = vadd.f32 %v14945_v0, %v20784_v13  ;;  %v21095_v4 = vand.u32 4294901760, %v21083_v5 }
 0x826   :  { %v14947_v57 = vpop.f32.mrf.mxu0  ;;  %16787 = vmatprep.mubr.f32.mxu1 %v7915_v30  ;;  %v7924_v44 = vsub.f32 %v21091_v25, %v24700_v20 }
 0x827   :  { %25471 = vst [vmem:[#allocation26_spill] sm:$0xff] %v21095_v4  ;;  %v21100_v32 = vadd.f32 %v16736_v47, %v7299_v52  ;;  %v14948_v27 = vadd.f32 %v14947_v57, %v14946_v38  ;;  %16870 = vmatprep.mubr.f32.mxu0 %v21095_v4  ;;  %v21105_v0 = vsub.f32 %v21083_v5, %v21095_v4  ;;  %v7448_v38 = vpop.f32.mrf.mxu1  ;;  %v21117_v4 = vand.u32 4294901760, %v7714_v15 }
 0x828   :  { %v14949_v49 = vpop.f32.mrf.mxu0  ;;  %v7925_v57 = vand.u32 4294901760, %v7924_v44  ;;  %v21131_v44 = vand.u32 4294901760, %v7715_v50 }
 0x829   :  { %25472 = vst [vmem:[#allocation31_spill] sm:$0xff] %v21100_v32  ;;  %v7304_v56 = vadd.f32 %v14948_v27, %v20784_v13  ;;  %v21114_v47 = vand.u32 4294901760, %v21100_v32  ;;  %v24704_v30 = vand.u32 4294901760, %v21105_v0  ;;  %25474 = vst [vmem:[#allocation40_spill] sm:$0xff] %v21117_v4 }
 0x82a   :  { %v14950_v52 = vpop.f32.mrf.mxu0  ;;  %16788 = vmatmul.mubr.f32.gmra.mxu1 %v7925_v57  ;;  %25476 = vst [vmem:[#allocation52_spill] sm:$0xff] %v21131_v44  ;;  %v21145_v57 = vsub.f32 %v7714_v15, %v21117_v4  ;;  %v7720_v15 = vmul.f32 %v20938_v61, %v20938_v61 }
 0x82b   :  { %25473 = vst [vmem:[#allocation36_spill] sm:$0xff] %v21114_v47  ;;  %v21121_v63 = vadd.f32 %v7448_v38, %v7304_v56  ;;  %v14951_v20 = vadd.f32 %v14950_v52, %v14949_v49  ;;  %16871 = vmatmul.mubr.f32.gmra.mxu0 %v21114_v47  ;;  %v7934_v27 = vsub.f32 %v21105_v0, %v24704_v30 }
 0x82c   :  { %v21129_v23 = vsub.f32 %v21100_v32, %v21114_v47  ;;  %v7718_v56 = vmul.f32 %v20870_v53, %v20870_v53  ;;  %v21160_v53 = vand.u32 4294901760, %v7717_v48 }
 0x82d   :  { %25475 = vst [vmem:[#allocation42_spill] sm:$0xff] %v21121_v63  ;;  %v7309_v49 = vadd.f32 %v14951_v20, %v20784_v13  ;;  %v7935_v38 = vand.u32 4294901760, %v7934_v27  ;;  %v21139_v52 = vand.u32 4294901760, %v21121_v63  ;;  %v21158_v27 = vsub.f32 %v7715_v50, %v21131_v44 }
 0x82e   :  { %v24709_v30 = vand.u32 4294901760, %v21129_v23  ;;  %25480 = vst [vmem:[#allocation16_spill] sm:$0xff] %v21160_v53  ;;  %v21170_v29 = vand.u32 4294901760, %v7718_v56  ;;  %v21174_v50 = vsub.f32 %v7716_v33, %v21142_v14  ;;  %v21190_v33 = vand.u32 4294901760, %v7720_v15 }
 0x82f   :  { %25477 = vst [vmem:[#allocation55_spill] sm:$0xff] %v21139_v52  ;;  %v21147_v47 = vadd.f32 %v16739_v19, %v7309_v49  ;;  %16790 = vmatprep.mubr.f32.mxu1 %v7935_v38  ;;  %16873 = vmatprep.mubr.f32.mxu0 %v21139_v52  ;;  %v21155_v20 = vsub.f32 %v21121_v63, %v21139_v52  ;;  %v25510_v28 = vand.u32 4294901760, %v21129_v23  ;;  %v25515_v58 = vand.u32 4294901760, %v21158_v27 }
 0x830   :  { %v7944_v13 = vsub.f32 %v21129_v23, %v24709_v30  ;;  %v7719_v19 = vmul.f32 %v20919_v45, %v20919_v45  ;;  %25482 = vst [vmem:[#allocation23_spill] sm:$0xff] %v21170_v29  ;;  %25483 = vst [vmem:[#allocation27_spill] sm:$0xff] %v21174_v50  ;;  %v21186_v45 = vsub.f32 %v7717_v48, %v21160_v53 }
 0x831   :  { %25479 = vst [vmem:[#allocation14_spill] sm:$0xff] %v21147_v47  ;;  %v21167_v38 = vand.u32 4294901760, %v21147_v47  ;;  %v24719_v30 = vand.u32 4294901760, %v21155_v20  ;;  %25485 = vst [vmem:[#allocation71_spill] sm:$0xff] %v21190_v33  ;;  %v21217_v18 = vsub.f32 %v7720_v15, %v21190_v33  ;;  %v7724_v15 = vmul.f32 %v21056_v41, %v21056_v41 }
 0x832   :  { %v7945_v49 = vand.u32 4294901760, %v7944_v13  ;;  %v21188_v52 = vand.u32 4294901760, %v7719_v19 }
 0x833   :  { %25481 = vst [vmem:[#allocation19_spill] sm:$0xff] %v21167_v38  ;;  %16874 = vmatmul.mubr.f32.gmra.mxu0 %v21167_v38  ;;  %v7954_v61 = vsub.f32 %v21155_v20, %v24719_v30  ;;  %v21182_v13 = vsub.f32 %v21147_v47, %v21167_v38  ;;  %v21197_v38 = vsub.f32 %v7718_v56, %v21170_v29 }
 0x834   :  { %16791 = vmatmul.mubr.f32.gmra.mxu1 %v7945_v49  ;;  %16876 = vmatprep.mubr.f32.mxu0 %v21117_v4  ;;  %25484 = vst [vmem:[#allocation32_spill] sm:$0xff] %v21188_v52  ;;  %v7721_v49 = vmul.f32 %v20985_v60, %v20985_v60  ;;  %v25486_v4 = vand.u32 4294901760, %v21145_v57  ;;  %v21211_v56 = vsub.f32 %v7719_v19, %v21188_v52  ;;  %v25488_v19 = vand.u32 4294901760, %v21174_v50 }
 0x835   :  { %v7955_v55 = vand.u32 4294901760, %v7954_v61  ;;  %v24732_v3 = vand.u32 4294901760, %v21182_v13  ;;  %v25491_v41 = vand.u32 4294901760, %v21197_v38  ;;  %v25512_v6 = vand.u32 4294901760, %v21182_v13 }
 0x836   :  { %v7974_v48 = vsub.f32 %v21145_v57, %v25486_v4  ;;  %v21214_v4 = vand.u32 4294901760, %v7721_v49  ;;  %v7994_v30 = vsub.f32 %v21174_v50, %v25488_v19  ;;  %v24749_v19 = vand.u32 4294901760, %v21211_v56 }
 0x837   :  { %16793 = vmatprep.mubr.f32.mxu1 %v7955_v55  ;;  %16877 = vmatmul.mubr.f32.gmra.mxu0 %v21131_v44  ;;  %v7964_v61 = vsub.f32 %v21182_v13, %v24732_v3  ;;  %v25487_v55 = vand.u32 4294901760, %v21158_v27  ;;  %v7723_v3 = vmul.f32 %v21046_v10, %v21046_v10  ;;  %v24750_v44 = vand.u32 4294901760, %v21217_v18 }
 0x838   :  { %16879 = vmatprep.mubr.f32.mxu0 %v21142_v14  ;;  %v7975_v14 = vand.u32 4294901760, %v7974_v48  ;;  %v21238_v48 = vsub.f32 %v7721_v49, %v21214_v4  ;;  %v21249_v50 = vand.u32 4294901760, %v7724_v15  ;;  %v21252_v49 = vsub.f32 %v7722_v42, %v21228_v31 }
 0x839   :  { %v7965_v16 = vand.u32 4294901760, %v7964_v61  ;;  %v7984_v60 = vsub.f32 %v21158_v27, %v25487_v55  ;;  %v25490_v61 = vand.u32 4294901760, %v21186_v45 }
 0x83a   :  { %v24755_v42 = vand.u32 4294901760, %v21238_v48 }
 0x83b   :  { %16794 = vmatmul.mubr.f32.gmra.mxu1 %v7965_v16  ;;  %16880 = vmatmul.mubr.f32.gmra.mxu0 %v21160_v53  ;;  %v8004_v55 = vsub.f32 %v21186_v45, %v25490_v61  ;;  %v7985_v10 = vand.u32 4294901760, %v7984_v60  ;;  %v8014_v16 = vsub.f32 %v21197_v38, %v25491_v41  ;;  %v21245_v53 = vand.u32 4294901760, %v7723_v3 }
 0x83c   :  { %16796 = vmatprep.mubr.f32.mxu1 %v7975_v14  ;;  %16882 = vmatprep.mubr.f32.mxu0 %v21170_v29  ;;  %v7725_v14 = vmul.f32 %v21068_v35, %v21068_v35  ;;  %v7995_v29 = vand.u32 4294901760, %v7994_v30  ;;  %v7726_v61 = vmul.f32 %v21083_v5, %v21083_v5  ;;  %v8024_v60 = vsub.f32 %v21211_v56, %v24749_v19 }
 0x83d   :  { %25492 = vst [vmem:[#allocation73_spill] sm:$0xff] %v21245_v53  ;;  %v8005_v41 = vand.u32 4294901760, %v8004_v55  ;;  %v8034_v30 = vsub.f32 %v21217_v18, %v24750_v44  ;;  %v8015_v35 = vand.u32 4294901760, %v8014_v16  ;;  %v21266_v5 = vsub.f32 %v7723_v3, %v21245_v53 }
 0x83e   :  { %v21276_v19 = vsub.f32 %v7724_v15, %v21249_v50  ;;  %v7728_v44 = vmul.f32 %v21121_v63, %v21121_v63  ;;  %v8025_v3 = vand.u32 4294901760, %v8024_v60  ;;  %v8044_v55 = vsub.f32 %v21238_v48, %v24755_v42 }
 0x83f   :  { %16797 = vmatmul.mubr.f32.gmra.mxu1 %v7985_v10  ;;  %16883 = vmatmul.mubr.f32.gmra.mxu0 %v21188_v52  ;;  %v21268_v10 = vand.u32 4294901760, %v7725_v14  ;;  %v8035_v16 = vand.u32 4294901760, %v8034_v30  ;;  %v24761_v15 = vand.u32 4294901760, %v21266_v5 }
 0x840   :  { %16799 = vmatprep.mubr.f32.mxu1 %v7995_v29  ;;  %16885 = vmatprep.mubr.f32.mxu0 %v21190_v33  ;;  %v7727_v29 = vmul.f32 %v21100_v32, %v21100_v32  ;;  %v21273_v33 = vand.u32 4294901760, %v7726_v61  ;;  %v21297_v30 = vand.u32 4294901760, %v7728_v44 }
 0x841   :  { %25493 = vst [vmem:[#allocation74_spill] sm:$0xff] %v21268_v10  ;;  %v21286_v32 = vsub.f32 %v7725_v14, %v21268_v10  ;;  %v8045_v14 = vand.u32 4294901760, %v8044_v55 }
 0x842   :  { %v21289_v52 = vand.u32 4294901760, %v7727_v29  ;;  %v21300_v42 = vsub.f32 %v7726_v61, %v21273_v33  ;;  %v21318_v55 = vsub.f32 %v7728_v44, %v21297_v30 }
 0x843   :  { %16800 = vmatmul.mubr.f32.gmra.mxu1 %v8005_v41  ;;  %16886 = vmatmul.mubr.f32.gmra.mxu0 %v21214_v4  ;;  %v7729_v41 = vmul.f32 %v21147_v47, %v21147_v47  ;;  %v8064_v47 = vsub.f32 %v21266_v5, %v24761_v15  ;;  %v8083_v60 = vand.u32 4294901760, %v21286_v32 }
 0x844   :  { %16802 = vmatprep.mubr.f32.mxu1 %v8015_v35  ;;  %16888 = vmatprep.mubr.f32.mxu0 %v21228_v31  ;;  %v25494_v35 = vand.u32 4294901760, %v21252_v49  ;;  %v25496_v44 = vand.u32 4294901760, %v21300_v42 }
 0x845   :  { %v21311_v31 = vand.u32 4294901760, %v7729_v41 }
 0x846   :  { %v8054_v63 = vsub.f32 %v21252_v49, %v25494_v35  ;;  %v21308_v35 = vsub.f32 %v7727_v29, %v21289_v52  ;;  %v8065_v29 = vand.u32 4294901760, %v8064_v47 }
 0x847   :  { %16803 = vmatmul.mubr.f32.gmra.mxu1 %v8025_v3  ;;  %16889 = vmatmul.mubr.f32.gmra.mxu0 %v21245_v53  ;;  %v25495_v3 = vand.u32 4294901760, %v21276_v19  ;;  %v21326_v15 = vsub.f32 %v7729_v41, %v21311_v31 }
 0x848   :  { %16805 = vmatprep.mubr.f32.mxu1 %v8035_v16  ;;  %16891 = vmatprep.mubr.f32.mxu0 %v21249_v50  ;;  %v8055_v61 = vand.u32 4294901760, %v8054_v63  ;;  %v8084_v63 = vsub.f32 %v21286_v32, %v8083_v60 }
 0x849   :  { %v8074_v53 = vsub.f32 %v21276_v19, %v25495_v3  ;;  %v24764_v3 = vand.u32 4294901760, %v21308_v35 }
 0x84a   :  { %v8085_v47 = vand.u32 4294901760, %v8084_v63 }
 0x84b   :  { %16806 = vmatmul.mubr.f32.gmra.mxu1 %v8045_v14  ;;  %16892 = vmatmul.mubr.f32.gmra.mxu0 %v21268_v10  ;;  %v8075_v16 = vand.u32 4294901760, %v8074_v53  ;;  %v8094_v14 = vsub.f32 %v21300_v42, %v25496_v44  ;;  %v24765_v10 = vand.u32 4294901760, %v21318_v55  ;;  %v8104_v41 = vsub.f32 %v21308_v35, %v24764_v3 }
 0x84c   :  { %16808 = vmatprep.mubr.f32.mxu1 %v8055_v61  ;;  %16894 = vmatprep.mubr.f32.mxu0 %v21273_v33  ;;  %v8123_v61 = vand.u32 4294901760, %v21326_v15 }
 0x84d   :  { %v8095_v53 = vand.u32 4294901760, %v8094_v14  ;;  %v8114_v44 = vsub.f32 %v21318_v55, %v24765_v10  ;;  %v25498_v14 = vand.u32 4294901760, %v20807_v21  ;;  %v25499_v10 = vand.u32 4294901760, %v20837_v26 }
 0x84e   :  { %v8124_v63 = vsub.f32 %v21326_v15, %v8123_v61 }
 0x84f   :  { %16809 = vmatmul.mubr.f32.gmra.mxu1 %v8065_v29  ;;  %16895 = vmatmul.mubr.f32.gmra.mxu0 %v21289_v52  ;;  %v8105_v29 = vand.u32 4294901760, %v8104_v41  ;;  %v8115_v3 = vand.u32 4294901760, %v8114_v44  ;;  %v25500_v41 = vand.u32 4294901760, %v20858_v11  ;;  %v25545_v44 = vld [vmem:[#allocation25_spill] sm:$0xff] }
 0x850   :  { %16811 = vmatprep.mubr.f32.mxu1 %v8075_v16  ;;  %16897 = vmatprep.mubr.f32.mxu0 %v21297_v30  ;;  %v25497_v16 = vand.u32 4294901760, %v20798_v59 }
 0x853   :  { %16812 = vmatmul.mubr.f32.gmra.mxu1 %v8085_v47  ;;  %16898 = vmatmul.mubr.f32.gmra.mxu0 %v21311_v31  ;;  %v8125_v47 = vand.u32 4294901760, %v8124_v63  ;;  %v25551_v63 = vld [vmem:[#allocation60_spill] sm:$0xff] }
 0x854   :  { %16814 = vmatprep.mubr.f32.mxu1 %v8095_v53  ;;  %17012 = vmatprep.mubr.f32.mxu0 %v25497_v16  ;;  %v25549_v16 = vmov 0.0  }
 0x857   :  { %16815 = vmatmul.mubr.f32.gmra.mxu1 %v8105_v29  ;;  %17013 = vmatmul.mubr.f32.vlgmr.msra.gmra.mxu0 %v25498_v14  ;;  %v25550_v29 = vld [vmem:[#allocation67_spill] sm:$0xff]  ;;  %v25554_v14 = vld [vmem:[#allocation57_spill] sm:$0xff] }
 0x858   :  { %16817 = vmatprep.mubr.f32.mxu1 %v8115_v3  ;;  %17015 = vmatprep.mubr.f32.mxu0 %v25499_v10  ;;  %v25501_v3 = vand.u32 4294901760, %v20894_v36 }
 0x859   :  { %17141 = vmatpush3.msk.msra.mxu0 %vm20064_vm8, %v25314_v9 }
 0x85a   :  { %17142 = vmatprep.subr.msk.mxu0 %vm20069_vm3, %v25314_v9 }
 0x85b   :  { %16818 = vmatmul.mubr.f32.gmra.mxu1 %v8125_v47  ;;  %17016 = vmatmul.mubr.f32.gmra.mxu0 %v25500_v41  ;;  %v25556_v47 = vld [vmem:[#allocation68_spill] sm:$0xff]  ;;  %v25557_v41 = vld [vmem:[#allocation70_spill] sm:$0xff] }
 0x85c   :  { %16932 = vmatprep.mubr.f32.mxu1 %v20798_v59  ;;  %17018 = vmatprep.mubr.f32.mxu0 %v25501_v3  ;;  %v25503_v59 = vand.u32 4294901760, %v20968_v2 }
 0x85d   :  { %17143 = vmatpush3.msk.msra.mxu0 %vm20069_vm3, %v25314_v9  ;;  %vm9704_vm3 = vcmask 64512  }
 0x85e   :  { %17144 = vmatprep.subr.msk.mxu0 %vm20074_vm15, %v25314_v9 }
 0x85f   :  { %16933 = vmatmul.mubr.f32.vlgmr.msra.gmra.mxu1 %v20807_v21  ;;  %17019 = vmatmul.mubr.f32.gmra.mxu0 %v25502_v51 }
 0x860   :  { %17061 = vmatpush3.msra.mxu1 %v20120_v62  ;;  %16935 = vmatprep.mubr.f32.mxu1 %v20837_v26  ;;  %v25505_v62 = vand.u32 4294901760, %v21044_v1  ;;  %v25518_v26 = vld [vmem:[#allocation38_spill] sm:$0xff] }
 0x861   :  { %17021 = vmatprep.mubr.f32.mxu0 %v25503_v59  ;;  %17062 = vmatprep.subr.mxu1 %v20123_v39 }
 0x862   :  { %17063 = vmatpush3.msra.mxu1 %v20123_v39  ;;  %17145 = vmatpush3.msk.msra.mxu0 %vm20074_vm15, %v25314_v9  ;;  %v25507_v39 = vand.u32 4294901760, %v21076_v17 }
 0x863   :  { %16936 = vmatmul.mubr.f32.gmra.mxu1 %v20858_v11  ;;  %17022 = vmatmul.mubr.f32.gmra.mxu0 %v25504_v34  ;;  %v25558_v34 = vld [vmem:[#allocation18_spill] sm:$0xff]  ;;  %v25563_v11 = vld [vmem:[#allocation40_spill] sm:$0xff] }
 0x864   :  { %16938 = vmatprep.mubr.f32.mxu1 %v20894_v36  ;;  %17024 = vmatprep.mubr.f32.mxu0 %v25505_v62  ;;  %v25559_v62 = vld [vmem:[#allocation26_spill] sm:$0xff]  ;;  %v25568_v36 = vld [vmem:[#allocation32_spill] sm:$0xff] }
 0x865   :  { %17064 = vmatprep.subr.mxu1 %v20126_v8  ;;  %17146 = vmatprep.subr.msk.mxu0 %vm20088_vm1, %v25314_v9 }
 0x866   :  { %17065 = vmatpush3.msra.mxu1 %v20126_v8  ;;  %17147 = vmatpush3.msk.msra.mxu0 %vm20088_vm1, %v25314_v9  ;;  %v25509_v8 = vand.u32 4294901760, %v21105_v0 }
 0x867   :  { %16939 = vmatmul.mubr.f32.gmra.mxu1 %v20943_v12  ;;  %17025 = vmatmul.mubr.f32.gmra.mxu0 %v25506_v46  ;;  %v25522_v12 = vld [vmem:[#allocation46_spill] sm:$0xff]  ;;  %v25560_v46 = vld [vmem:[#allocation36_spill] sm:$0xff] }
 0x868   :  { %16941 = vmatprep.mubr.f32.mxu1 %v20968_v2  ;;  %17027 = vmatprep.mubr.f32.mxu0 %v25507_v39 }
 0x869   :  { %17066 = vmatprep.subr.mxu1 %v20148_v24  ;;  %17148 = vmatprep.subr.msk.mxu0 %vm20105_vm11, %v25314_v9 }
 0x86a   :  { %17067 = vmatpush3.msra.mxu1 %v20148_v24  ;;  %17149 = vmatpush3.msk.msra.mxu0 %vm20105_vm11, %v25314_v9  ;;  %v25511_v24 = vand.u32 4294901760, %v21155_v20 }
 0x86b   :  { %16942 = vmatmul.mubr.f32.gmra.mxu1 %v21011_v7  ;;  %17028 = vmatmul.mubr.f32.gmra.mxu0 %v25508_v37  ;;  %v25524_v7 = vand.u32 4294901760, %v21211_v56 }
 0x86c   :  { %16944 = vmatprep.mubr.f32.mxu1 %v21044_v1  ;;  %17030 = vmatprep.mubr.f32.mxu0 %v25509_v8  ;;  %v25525_v1 = vand.u32 4294901760, %v21217_v18  ;;  %v25561_v8 = vld [vmem:[#allocation55_spill] sm:$0xff] }
 0x86d   :  { %17068 = vmatprep.subr.mxu1 %v20172_v54  ;;  %17150 = vmatprep.subr.msk.mxu0 %vm20110_vm12, %v25314_v9 }
 0x86e   :  { %17069 = vmatpush3.msra.mxu1 %v20172_v54  ;;  %17151 = vmatpush3.msk.msra.mxu0 %vm20110_vm12, %v25314_v9  ;;  %v25513_v54 = vand.u32 4294901760, %v21145_v57 }
 0x86f   :  { %16945 = vmatmul.mubr.f32.gmra.mxu1 %v21061_v40  ;;  %17031 = vmatmul.mubr.f32.gmra.mxu0 %v25510_v28  ;;  %v25526_v40 = vld [vmem:[#allocation45_spill] sm:$0xff] }
 0x870   :  { %16947 = vmatprep.mubr.f32.mxu1 %v21076_v17  ;;  %17033 = vmatprep.mubr.f32.mxu0 %v25511_v24  ;;  %v25571_v17 = vld [vmem:[#allocation73_spill] sm:$0xff] }
 0x871   :  { %17070 = vmatprep.subr.mxu1 %v20521_v43  ;;  %17152 = vmatprep.subr.msk.mxu0 %vm20115_vm9, %v25314_v9 }
 0x872   :  { %17071 = vmatpush3.msra.mxu1 %v20521_v43  ;;  %17153 = vmatpush3.msk.msra.mxu0 %vm20115_vm9, %v25314_v9  ;;  %v25516_v43 = vld [vmem:[#allocation27_spill] sm:$0xff] }
 0x873   :  { %16948 = vmatmul.mubr.f32.gmra.mxu1 %v21091_v25  ;;  %17034 = vmatmul.mubr.f32.gmra.mxu0 %v25512_v6  ;;  %v25517_v21 = vand.u32 4294901760, %v25516_v43  ;;  %v25528_v25 = vand.u32 4294901760, %v21238_v48 }
 0x874   :  { %16950 = vmatprep.mubr.f32.mxu1 %v21105_v0  ;;  %17036 = vmatprep.mubr.f32.mxu0 %v25513_v54  ;;  %v25529_v0 = vand.u32 4294901760, %v21252_v49  ;;  %v25562_v54 = vld [vmem:[#allocation19_spill] sm:$0xff] }
 0x875   :  { %17072 = vmatprep.subr.mxu1 %v20531_v22  ;;  %17154 = vmatprep.subr.msk.mxu0 %vm20556_vm14, %v25314_v9 }
 0x876   :  { %17073 = vmatpush3.msra.mxu1 %v20531_v22  ;;  %17155 = vmatpush3.msk.msra.mxu0 %vm20556_vm14, %v25314_v9  ;;  %v25520_v22 = vand.u32 4294901760, %v21186_v45 }
 0x877   :  { %16951 = vmatmul.mubr.f32.gmra.mxu1 %v21129_v23  ;;  %17037 = vmatmul.mubr.f32.gmra.mxu0 %v25515_v58  ;;  %v25521_v23 = vand.u32 4294901760, %v21197_v38  ;;  %v25564_v58 = vld [vmem:[#allocation52_spill] sm:$0xff] }
 0x878   :  { %16953 = vmatprep.mubr.f32.mxu1 %v21155_v20  ;;  %17039 = vmatprep.mubr.f32.mxu0 %v25517_v21  ;;  %v25566_v21 = vld [vmem:[#allocation16_spill] sm:$0xff] }
 0x879   :  { %17074 = vmatprep.subr.mxu1 %v25518_v26  ;;  %17156 = vmatprep.subr.msk.mxu0 %vm20588_vm2, %v25314_v9 }
 0x87a   :  { %17075 = vmatpush3.msra.mxu1 %v25518_v26  ;;  %17157 = vmatpush3.msk.msra.mxu0 %vm20588_vm2, %v25314_v9  ;;  %v25567_v26 = vld [vmem:[#allocation23_spill] sm:$0xff]  ;;  %vm25713_vm2 = vcmask 1040384  }
 0x87b   :  { %16954 = vmatmul.mubr.f32.gmra.mxu1 %v21182_v13  ;;  %17040 = vmatmul.mubr.f32.gmra.mxu0 %v25520_v22  ;;  %v25569_v22 = vld [vmem:[#allocation71_spill] sm:$0xff] }
 0x87c   :  { %16956 = vmatprep.mubr.f32.mxu1 %v21145_v57  ;;  %17042 = vmatprep.mubr.f32.mxu0 %v25521_v23  ;;  %v25530_v57 = vld [vmem:[#allocation48_spill] sm:$0xff] }
 0x87d   :  { %17076 = vmatprep.subr.mxu1 %v25522_v12  ;;  %17158 = vmatprep.subr.msk.mxu0 %vm20593_vm13, %v25314_v9 }
 0x87e   :  { %17077 = vmatpush3.msra.mxu1 %v25522_v12  ;;  %17159 = vmatpush3.msk.msra.mxu0 %vm20593_vm13, %v25314_v9  ;;  %vm25715_vm13 = vmmov %vm25713_vm2 }
 0x87f   :  { %16957 = vmatmul.mubr.f32.gmra.mxu1 %v21158_v27  ;;  %17043 = vmatmul.mubr.f32.gmra.mxu0 %v25524_v7  ;;  %v25533_v27 = vand.u32 4294901760, %v21276_v19 }
 0x880   :  { %16959 = vmatprep.mubr.f32.mxu1 %v25516_v43  ;;  %17045 = vmatprep.mubr.f32.mxu0 %v25525_v1  ;;  %v25565_v43 = vld [vmem:[#allocation12_spill] sm:$0xff] }
 0x881   :  { %17078 = vmatprep.subr.mxu1 %v25526_v40  ;;  %17160 = vmatprep.subr.msk.mxu0 %vm20614_vm10, %v25314_v9 }
 0x882   :  { %17079 = vmatpush3.msra.mxu1 %v25526_v40  ;;  %17161 = vmatpush3.msk.msra.mxu0 %vm20614_vm10, %v25314_v9  ;;  %v25570_v40 = vld [vmem:[#allocation72_spill] sm:$0xff]  ;;  %vm25717_vm10 = vmmov %vm25713_vm2 }
 0x883   :  { %16960 = vmatmul.mubr.f32.gmra.mxu1 %v21186_v45  ;;  %17046 = vmatmul.mubr.f32.gmra.mxu0 %v25528_v25  ;;  %v25532_v45 = vand.u32 4294901760, %v21266_v5  ;;  %v25572_v25 = vld [vmem:[#allocation74_spill] sm:$0xff] }
 0x884   :  { %16962 = vmatprep.mubr.f32.mxu1 %v21197_v38  ;;  %17048 = vmatprep.mubr.f32.mxu0 %v25529_v0  ;;  %v25534_v38 = vld [vmem:[#allocation50_spill] sm:$0xff] }
 0x885   :  { %17080 = vmatprep.subr.mxu1 %v25530_v57  ;;  %17162 = vmatprep.subr.msk.mxu0 %vm20638_vm7, %v25314_v9 }
 0x886   :  { %17081 = vmatpush3.msra.mxu1 %v25530_v57  ;;  %17163 = vmatpush3.msk.msra.mxu0 %vm20638_vm7, %v25314_v9  ;;  %vm25721_vm7 = vmmov %vm25713_vm2 }
 0x887   :  { %16963 = vmatmul.mubr.f32.gmra.mxu1 %v21211_v56  ;;  %17049 = vmatmul.mubr.f32.gmra.mxu0 %v25532_v45  ;;  %v25537_v56 = vld [vmem:[#allocation17_spill] sm:$0xff] }
 0x888   :  { %16965 = vmatprep.mubr.f32.mxu1 %v21217_v18  ;;  %17051 = vmatprep.mubr.f32.mxu0 %v25533_v27  ;;  %v25536_v18 = vand.u32 4294901760, %v21300_v42 }
 0x889   :  { %17082 = vmatprep.subr.mxu1 %v25534_v38  ;;  %17164 = vmatprep.subr.msk.mxu0 %vm20682_vm4, %v25314_v9 }
 0x88a   :  { %17083 = vmatpush3.msra.mxu1 %v25534_v38  ;;  %17165 = vmatpush3.msk.msra.mxu0 %vm20682_vm4, %v25314_v9  ;;  %vm25723_vm4 = vmmov %vm25713_vm2 }
 0x88b   :  { %16966 = vmatmul.mubr.f32.gmra.mxu1 %v21238_v48  ;;  %17052 = vmatmul.mubr.f32.gmra.mxu0 %v8083_v60  ;;  %v25539_v48 = vand.u32 4294901760, %v21308_v35  ;;  %v25541_v60 = vld [vmem:[#allocation44_spill] sm:$0xff] }
 0x88c   :  { %16968 = vmatprep.mubr.f32.mxu1 %v21252_v49  ;;  %17054 = vmatprep.mubr.f32.mxu0 %v25536_v18  ;;  %v25540_v49 = vand.u32 4294901760, %v21318_v55 }
 0x88d   :  { %17084 = vmatprep.subr.mxu1 %v25537_v56  ;;  %17166 = vmatprep.subr.msk.mxu0 %vm20690_vm0, %v25314_v9 }
 0x88e   :  { %17085 = vmatpush3.msra.mxu1 %v25537_v56  ;;  %17167 = vmatpush3.msk.msra.mxu0 %vm20690_vm0, %v25314_v9  ;;  %vm25725_vm0 = vcmask 1046528  }
 0x88f   :  { %16969 = vmatmul.mubr.f32.gmra.mxu1 %v21266_v5  ;;  %17055 = vmatmul.mubr.f32.gmra.mxu0 %v25539_v48  ;;  %v25543_v5 = vld [vmem:[#allocation29_spill] sm:$0xff] }
 0x890   :  { %16971 = vmatprep.mubr.f32.mxu1 %v21276_v19  ;;  %17057 = vmatprep.mubr.f32.mxu0 %v25540_v49 }
 0x891   :  { %17086 = vmatprep.subr.mxu1 %v25541_v60  ;;  %17168 = vmatprep.subr.msk.mxu0 %vm20710_vm5, %v25314_v9 }
 0x892   :  { %17087 = vmatpush3.msra.mxu1 %v25541_v60  ;;  %17169 = vmatpush3.msk.msra.mxu0 %vm20710_vm5, %v25314_v9  ;;  %vm25726_vm5 = vmmov %vm25725_vm0 }
 0x893   :  { %16972 = vmatmul.mubr.f32.gmra.mxu1 %v21286_v32  ;;  %17058 = vmatmul.mubr.f32.gmra.mxu0 %v8123_v61  ;;  %v25546_v32 = vld [vmem:[#allocation35_spill] sm:$0xff]  ;;  %v25548_v61 = vld [vmem:[#allocation21_spill] sm:$0xff] }
 0x894   :  { %16974 = vmatprep.mubr.f32.mxu1 %v21300_v42  ;;  %17172 = vmatprep.mubr.f32.mxu0 %v25543_v5  ;;  %v25547_v42 = vld [vmem:[#allocation34_spill] sm:$0xff] }
 0x895   :  { %17170 = vmatprep.subr.msk.mxu0 %vm20757_vm6, %v25314_v9  ;;  %17088 = vmatprep.subr.mxu1 %v25545_v44 }
 0x896   :  { %17171 = vmatpush3.msk.msra.mxu0 %vm20757_vm6, %v25314_v9  ;;  %17089 = vmatpush3.msra.mxu1 %v25545_v44  ;;  %vm25573_vm6 = vmmov 0  }
 0x897   :  { %16975 = vmatmul.mubr.f32.gmra.mxu1 %v21308_v35  ;;  %17173 = vmatmul.mubr.f32.vlgmr.msra.gmra.mxu0 %v25546_v32  ;;  %v25552_v35 = vld [vmem:[#allocation63_spill] sm:$0xff] }
 0x898   :  { %16977 = vmatprep.mubr.f32.mxu1 %v21318_v55  ;;  %17175 = vmatprep.mubr.f32.mxu0 %v25547_v42  ;;  %v25553_v55 = vld [vmem:[#allocation65_spill] sm:$0xff] }
 0x899   :  { %17090 = vmatprep.subr.mxu1 %v25548_v61  ;;  %17260 = vmatprep.subr.mxu0 %v25549_v16 }
 0x89a   :  { %17091 = vmatpush3.msra.mxu1 %v25548_v61 }
 0x89b   :  { %16978 = vmatmul.mubr.f32.gmra.mxu1 %v21326_v15  ;;  %17176 = vmatmul.mubr.f32.gmra.mxu0 %v25550_v29  ;;  %v25555_v15 = vld [vmem:[#allocation56_spill] sm:$0xff] }
 0x89c   :  { %17092 = vmatprep.mubr.f32.mxu1 %v25543_v5  ;;  %17178 = vmatprep.mubr.f32.mxu0 %v25551_v63 }
 0x89d   :  { %17220 = vmatprep.subr.mxu1 %v25549_v16 }
 0x89f   :  { %17093 = vmatmul.mubr.f32.vlgmr.msra.gmra.mxu1 %v25546_v32  ;;  %17179 = vmatmul.mubr.f32.gmra.mxu0 %v25552_v35  ;;  %v16854_v3 = vpop.f32.mrf.mxu0 }
 0x8a0   :  { %17095 = vmatprep.mubr.f32.mxu1 %v25547_v42  ;;  %17181 = vmatprep.mubr.f32.mxu0 %v25553_v55 }
 0x8a1   :  { %v21594_v39 = vpop.f32.mrf.mxu0 }
 0x8a3   :  { %17096 = vmatmul.mubr.f32.gmra.mxu1 %v25550_v29  ;;  %17182 = vmatmul.mubr.f32.gmra.mxu0 %v25554_v14 }
 0x8a4   :  { %17098 = vmatprep.mubr.f32.mxu1 %v25551_v63  ;;  %17184 = vmatprep.mubr.f32.mxu0 %v25555_v15 }
 0x8a7   :  { %17099 = vmatmul.mubr.f32.gmra.mxu1 %v25552_v35  ;;  %17185 = vmatmul.mubr.f32.gmra.mxu0 %v25556_v47  ;;  %v16774_v51 = vpop.f32.mrf.mxu1  ;;  %v16857_v28 = vpop.f32.mrf.mxu0 }
 0x8a8   :  { %17101 = vmatprep.mubr.f32.mxu1 %v25553_v55  ;;  %17187 = vmatprep.mubr.f32.mxu0 %v25557_v41  ;;  %v21586_v59 = vadd.f32 %v16854_v3, %v16774_v51 }
 0x8a9   :  { %v21596_v37 = vpop.f32.mrf.mxu1  ;;  %v21618_v23 = vpop.f32.mrf.mxu0 }
 0x8ab   :  { %17102 = vmatmul.mubr.f32.gmra.mxu1 %v25554_v14  ;;  %17188 = vmatmul.mubr.f32.gmra.mxu0 %v25558_v34 }
 0x8ac   :  { %17104 = vmatprep.mubr.f32.mxu1 %v25555_v15  ;;  %17190 = vmatprep.mubr.f32.mxu0 %v25559_v62 }
 0x8af   :  { %17105 = vmatmul.mubr.f32.gmra.mxu1 %v25556_v47  ;;  %17191 = vmatmul.mubr.f32.gmra.mxu0 %v25560_v46 }
 0x8b0   :  { %17107 = vmatprep.mubr.f32.mxu1 %v25557_v41  ;;  %17193 = vmatprep.mubr.f32.mxu0 %v25561_v8  ;;  %v16777_v24 = vpop.f32.mrf.mxu1 }
 0x8b1   :  { %v21600_v6 = vadd.f32 %v16857_v28, %v16777_v24 }
 0x8b2   :  { %v21620_v12 = vpop.f32.mrf.mxu1 }
 0x8b3   :  { %17108 = vmatmul.mubr.f32.gmra.mxu1 %v25558_v34  ;;  %17194 = vmatmul.mubr.f32.gmra.mxu0 %v25562_v54 }
 0x8b4   :  { %17110 = vmatprep.mubr.f32.mxu1 %v25559_v62  ;;  %17196 = vmatprep.mubr.f32.mxu0 %v25563_v11 }
 0x8b7   :  { %17111 = vmatmul.mubr.f32.gmra.mxu1 %v25560_v46  ;;  %17197 = vmatmul.mubr.f32.gmra.mxu0 %v25564_v58 }
 0x8b8   :  { %17113 = vmatprep.mubr.f32.mxu1 %v25561_v8  ;;  %17199 = vmatprep.mubr.f32.mxu0 %v25565_v43  ;;  %v16860_v2 = vpop.f32.mrf.mxu0 }
 0x8ba   :  { %v21636_v0 = vpop.f32.mrf.mxu0 }
 0x8bb   :  { %17114 = vmatmul.mubr.f32.gmra.mxu1 %v25562_v54  ;;  %17200 = vmatmul.mubr.f32.gmra.mxu0 %v25566_v21 }
 0x8bc   :  { %17116 = vmatprep.mubr.f32.mxu1 %v25563_v11  ;;  %17202 = vmatprep.mubr.f32.mxu0 %v25567_v26 }
 0x8bf   :  { %17117 = vmatmul.mubr.f32.gmra.mxu1 %v25564_v58  ;;  %17203 = vmatmul.mubr.f32.gmra.mxu0 %v25568_v36 }
 0x8c0   :  { %17119 = vmatprep.mubr.f32.mxu1 %v25565_v43  ;;  %17205 = vmatprep.mubr.f32.mxu0 %v25569_v22  ;;  %v16780_v7 = vpop.f32.mrf.mxu1 }
 0x8c1   :  { %v21624_v1 = vadd.f32 %v16860_v2, %v16780_v7 }
 0x8c2   :  { %v21638_v57 = vpop.f32.mrf.mxu1 }
 0x8c3   :  { %17120 = vmatmul.mubr.f32.gmra.mxu1 %v25566_v21  ;;  %17206 = vmatmul.mubr.f32.gmra.mxu0 %v21214_v4 }
 0x8c4   :  { %17122 = vmatprep.mubr.f32.mxu1 %v25567_v26  ;;  %17208 = vmatprep.mubr.f32.mxu0 %v25570_v40 }
 0x8c5   :  { %v16863_v20 = vpop.f32.mrf.mxu0 }
 0x8c7   :  { %17123 = vmatmul.mubr.f32.gmra.mxu1 %v25568_v36  ;;  %17209 = vmatmul.mubr.f32.gmra.mxu0 %v25571_v17 }
 0x8c8   :  { %17125 = vmatprep.mubr.f32.mxu1 %v25569_v22  ;;  %17211 = vmatprep.mubr.f32.mxu0 %v21249_v50 }
 0x8cb   :  { %17126 = vmatmul.mubr.f32.gmra.mxu1 %v21214_v4  ;;  %17212 = vmatmul.mubr.f32.gmra.mxu0 %v25572_v25 }
 0x8cc   :  { %17128 = vmatprep.mubr.f32.mxu1 %v25570_v40  ;;  %17214 = vmatprep.mubr.f32.mxu0 %v21273_v33 }
 0x8cd   :  { %v16783_v45 = vpop.f32.mrf.mxu1 }
 0x8ce   :  { %v21642_v27 = vadd.f32 %v16863_v20, %v16783_v45 }
 0x8cf   :  { %17129 = vmatmul.mubr.f32.gmra.mxu1 %v25571_v17  ;;  %17215 = vmatmul.mubr.f32.gmra.mxu0 %v21289_v52  ;;  %v21658_v38 = vpop.f32.mrf.mxu1 }
 0x8d0   :  { %17131 = vmatprep.mubr.f32.mxu1 %v21249_v50  ;;  %17217 = vmatprep.mubr.f32.mxu0 %v21297_v30  ;;  %v21656_v50 = vpop.f32.mrf.mxu0 }
 0x8d3   :  { %17132 = vmatmul.mubr.f32.gmra.mxu1 %v25572_v25  ;;  %17218 = vmatmul.mubr.f32.gmra.mxu0 %v21311_v31 }
 0x8d4   :  { %17134 = vmatprep.mubr.f32.mxu1 %v21273_v33  ;;  %17262 = vmatprep.mubr.msk.f32.mxu0 %vm25573_vm6, %v25549_v16 }
 0x8d7   :  { %17135 = vmatmul.mubr.f32.gmra.mxu1 %v21289_v52 }
 0x8d8   :  { %17137 = vmatprep.mubr.f32.mxu1 %v21297_v30 }
 0x8da   :  { %v16866_v4 = vpop.f32.mrf.mxu0 }
 0x8db   :  { %17138 = vmatmul.mubr.f32.gmra.mxu1 %v21311_v31 }
 0x8dc   :  { %17222 = vmatprep.mubr.msk.f32.mxu1 %vm25573_vm6, %v25549_v16  ;;  %v21662_v33 = vpop.f32.mrf.mxu0 }
 0x8e2   :  { %v16786_v13 = vpop.f32.mrf.mxu1  ;;  %v16869_v56 = vpop.f32.mrf.mxu0 }
 0x8e3   :  { %v21660_v18 = vadd.f32 %v16866_v4, %v16786_v13 }
 0x8e4   :  { %v21664_v10 = vpop.f32.mrf.mxu1  ;;  %v21666_v52 = vpop.f32.mrf.mxu0 }
 0x8ea   :  { %v16789_v30 = vpop.f32.mrf.mxu1 }
 0x8eb   :  { %v21668_v31 = vadd.f32 %v16869_v56, %v16789_v30  ;;  %v16872_v48 = vpop.f32.mrf.mxu0 }
 0x8ec   :  { %v21670_v49 = vpop.f32.mrf.mxu1 }
 0x8ed   :  { %v21672_v60 = vpop.f32.mrf.mxu0 }
 0x8f3   :  { %v16875_v5 = vpop.f32.mrf.mxu0 }
 0x8f4   :  { %v16792_v53 = vpop.f32.mrf.mxu1 }
 0x8f5   :  { %v21674_v19 = vadd.f32 %v16872_v48, %v16792_v53  ;;  %v21676_v44 = vpop.f32.mrf.mxu0 }
 0x8f6   :  { %v21678_v42 = vpop.f32.mrf.mxu1 }
 0x8f7   :  { %v16878_v32 = vpop.f32.mrf.mxu0 }
 0x8f9   :  { %v21680_v61 = vpop.f32.mrf.mxu0 }
 0x8fb   :  { %v16795_v29 = vpop.f32.mrf.mxu1  ;;  %v16881_v63 = vpop.f32.mrf.mxu0 }
 0x8fc   :  { %v21682_v35 = vadd.f32 %v16875_v5, %v16795_v29 }
 0x8fd   :  { %v21684_v55 = vpop.f32.mrf.mxu1  ;;  %v21686_v14 = vpop.f32.mrf.mxu0 }
 0x8fe   :  { %25574 = vst [vmem:[#allocation33_spill] sm:$0xff] %v21686_v14 }
 0x8ff   :  { %v16798_v15 = vpop.f32.mrf.mxu1  ;;  %v16884_v47 = vpop.f32.mrf.mxu0 }
 0x900   :  { %v21688_v41 = vadd.f32 %v16878_v32, %v16798_v15 }
 0x901   :  { %v21690_v3 = vpop.f32.mrf.mxu1  ;;  %v21692_v51 = vpop.f32.mrf.mxu0 }
 0x902   :  { %25575 = vst [vmem:[#allocation27_spill] sm:$0xff] %v21692_v51 }
 0x903   :  { %v16801_v34 = vpop.f32.mrf.mxu1  ;;  %v16887_v62 = vpop.f32.mrf.mxu0 }
 0x904   :  { %v21694_v46 = vadd.f32 %v16881_v63, %v16801_v34 }
 0x905   :  { %v21696_v8 = vpop.f32.mrf.mxu1  ;;  %v21698_v28 = vpop.f32.mrf.mxu0 }
 0x906   :  { %25576 = vst [vmem:[#allocation38_spill] sm:$0xff] %v21696_v8  ;;  %25577 = vst [vmem:[#allocation37_spill] sm:$0xff] %v21698_v28 }
 0x907   :  { %v16804_v24 = vpop.f32.mrf.mxu1  ;;  %v16890_v54 = vpop.f32.mrf.mxu0 }
 0x908   :  { %v21700_v11 = vadd.f32 %v16884_v47, %v16804_v24  ;;  %v25587_v47 = vld [vmem:[#allocation13_spill] sm:$0xff] }
 0x909   :  { %v21702_v58 = vpop.f32.mrf.mxu1  ;;  %v21704_v43 = vpop.f32.mrf.mxu0  ;;  %v7703_v34 = vand.u32 7, %v25587_v47 }
 0x90a   :  { %25578 = vst [vmem:[#allocation46_spill] sm:$0xff] %v21702_v58  ;;  %25579 = vst [vmem:[#allocation43_spill] sm:$0xff] %v21704_v43 }
 0x90b   :  { %v16807_v21 = vpop.f32.mrf.mxu1  ;;  %v16893_v26 = vpop.f32.mrf.mxu0 }
 0x90c   :  { %v21706_v36 = vadd.f32 %v16887_v62, %v16807_v21  ;;  %v25589_v21 = vld [vmem:[#allocation11_spill] sm:$0xff] }
 0x90d   :  { %v21708_v22 = vpop.f32.mrf.mxu1  ;;  %v21710_v2 = vpop.f32.mrf.mxu0  ;;  %vm21738_vm8 = vcmp.eq.s32.totalorder %v7703_v34, %v25589_v21 }
 0x90e   :  { %25580 = vst [vmem:[#allocation45_spill] sm:$0xff] %v21708_v22  ;;  %25581 = vst [vmem:[#allocation41_spill] sm:$0xff] %v21710_v2  ;;  %17221 = vmatpush3.msk.msra.mxu1 %vm21738_vm8, %v25314_v9 }
 0x90f   :  { %v16810_v7 = vpop.f32.mrf.mxu1  ;;  %v16896_v40 = vpop.f32.mrf.mxu0  ;;  %17225 = vmatprep.subr.mxu1 %v25549_v16 }
 0x910   :  { %v21712_v17 = vadd.f32 %v16890_v54, %v16810_v7 }
 0x911   :  { %v21714_v25 = vpop.f32.mrf.mxu1  ;;  %v21716_v20 = vpop.f32.mrf.mxu0 }
 0x912   :  { %25582 = vst [vmem:[#allocation48_spill] sm:$0xff] %v21714_v25  ;;  %25583 = vst [vmem:[#allocation49_spill] sm:$0xff] %v21716_v20 }
 0x913   :  { %v16813_v45 = vpop.f32.mrf.mxu1  ;;  %v16899_v4 = vpop.f32.mrf.mxu0 }
 0x914   :  { %v21718_v13 = vadd.f32 %v16893_v26, %v16813_v45  ;;  %v25590_v26 = vmov 0 }
 0x915   :  { %v21720_v56 = vpop.f32.mrf.mxu1  ;;  %v21722_v30 = vpop.f32.mrf.mxu0  ;;  %v25591_v26 = vsel %vm21738_vm8, 4294967295, %v25590_v26 }
 0x916   :  { %25584 = vst [vmem:[#allocation50_spill] sm:$0xff] %v21720_v56  ;;  %25585 = vst [vmem:[#allocation51_spill] sm:$0xff] %v21722_v30 }
 0x917   :  { %v16816_v48 = vpop.f32.mrf.mxu1  ;;  %v17014_v53 = vpop.f32.mrf.mxu0  ;;  %25592 = vst [vmem:[#allocation44_spill] sm:$0xff] %v25591_v26 }
 0x918   :  { %v21724_v5 = vadd.f32 %v16896_v40, %v16816_v48 }
 0x919   :  { %v21726_v32 = vpop.f32.mrf.mxu1  ;;  %v21728_v29 = vpop.f32.mrf.mxu0 }
 0x91a   :  { %25586 = vst [vmem:[#allocation17_spill] sm:$0xff] %v21726_v32 }
 0x91b   :  { %v16819_v63 = vpop.f32.mrf.mxu1  ;;  %v17017_v15 = vpop.f32.mrf.mxu0 }
 0x91c   :  { %v21731_v62 = vadd.f32 %v16899_v4, %v16819_v63 }
 0x91d   :  { %v21733_v24 = vpop.f32.mrf.mxu1  ;;  %v21735_v54 = vpop.f32.mrf.mxu0 }
 0x91e   :  { %25588 = vst [vmem:[#allocation20_spill] sm:$0xff] %v21733_v24 }
 0x91f   :  { %v16934_v7 = vpop.f32.mrf.mxu1  ;;  %v17020_v40 = vpop.f32.mrf.mxu0 }
 0x920   :  { %v8576_v45 = vadd.f32 %v16934_v7, %v21586_v59 }
 0x921   :  { %v21747_v4 = vpop.f32.mrf.mxu1  ;;  %v21749_v48 = vpop.f32.mrf.mxu0 }
 0x922   :  { %v21751_v63 = vadd.f32 %v17014_v53, %v8576_v45 }
 0x923   :  { %v16937_v47 = vpop.f32.mrf.mxu1  ;;  %v17023_v34 = vpop.f32.mrf.mxu0 }
 0x924   :  { %v8590_v21 = vadd.f32 %v16937_v47, %v21600_v6 }
 0x925   :  { %v21754_v30 = vpop.f32.mrf.mxu1  ;;  %v21756_v24 = vpop.f32.mrf.mxu0 }
 0x926   :  { %v21758_v9 = vadd.f32 %v17017_v15, %v8590_v21 }
 0x927   :  { %v16940_v20 = vpop.f32.mrf.mxu1  ;;  %v17026_v32 = vpop.f32.mrf.mxu0 }
 0x928   :  { %v8604_v59 = vadd.f32 %v16940_v20, %v21624_v1 }
 0x929   :  { %v21761_v7 = vpop.f32.mrf.mxu1  ;;  %v21763_v2 = vpop.f32.mrf.mxu0 }
 0x92a   :  { %v21765_v53 = vadd.f32 %v17020_v40, %v8604_v59 }
 0x92b   :  { %v16943_v45 = vpop.f32.mrf.mxu1  ;;  %v17029_v56 = vpop.f32.mrf.mxu0 }
 0x92c   :  { %v8618_v6 = vadd.f32 %v16943_v45, %v21642_v27 }
 0x92d   :  { %v21768_v47 = vpop.f32.mrf.mxu1  ;;  %v21770_v43 = vpop.f32.mrf.mxu0 }
 0x92e   :  { %v21772_v15 = vadd.f32 %v17023_v34, %v8618_v6 }
 0x92f   :  { %v16946_v21 = vpop.f32.mrf.mxu1  ;;  %v17032_v25 = vpop.f32.mrf.mxu0 }
 0x930   :  { %v8632_v1 = vadd.f32 %v16946_v21, %v21660_v18 }
 0x931   :  { %v21775_v20 = vpop.f32.mrf.mxu1  ;;  %v21777_v28 = vpop.f32.mrf.mxu0 }
 0x932   :  { %v21779_v40 = vadd.f32 %v17026_v32, %v8632_v1 }
 0x933   :  { %v16949_v59 = vpop.f32.mrf.mxu1  ;;  %v17035_v22 = vpop.f32.mrf.mxu0 }
 0x934   :  { %v8646_v27 = vadd.f32 %v16949_v59, %v21668_v31  ;;  %v14436_v31 = vsel %vm21738_vm8, 1.0, %v25549_v16 }
 0x935   :  { %v21782_v45 = vpop.f32.mrf.mxu1  ;;  %v21784_v51 = vpop.f32.mrf.mxu0 }
 0x936   :  { %25593 = vst [vmem:[#allocation24_spill] sm:$0xff] %v21784_v51  ;;  %v21786_v34 = vadd.f32 %v17029_v56, %v8646_v27  ;;  %v21799_v56 = vsub.f32 %v14436_v31, %v14436_v31 }
 0x937   :  { %v16952_v6 = vpop.f32.mrf.mxu1  ;;  %v17038_v58 = vpop.f32.mrf.mxu0 }
 0x938   :  { %v8660_v18 = vadd.f32 %v16952_v6, %v21674_v19  ;;  %25595 = vst [vmem:[#allocation30_spill] sm:$0xff] %v21799_v56  ;;  %17261 = vmatpush3.msra.mxu0 %v21799_v56 }
 0x939   :  { %v21789_v21 = vpop.f32.mrf.mxu1  ;;  %v21791_v14 = vpop.f32.mrf.mxu0  ;;  %17270 = vmatprep.subr.mxu0 %v25549_v16 }
 0x93a   :  { %25594 = vst [vmem:[#allocation29_spill] sm:$0xff] %v21791_v14  ;;  %v21793_v32 = vadd.f32 %v17032_v25, %v8660_v18 }
 0x93b   :  { %v16955_v1 = vpop.f32.mrf.mxu1  ;;  %v17041_v8 = vpop.f32.mrf.mxu0 }
 0x93c   :  { %v8674_v59 = vadd.f32 %v16955_v1, %v21682_v35 }
 0x93d   :  { %v21801_v27 = vpop.f32.mrf.mxu1  ;;  %v21803_v51 = vpop.f32.mrf.mxu0 }
 0x93e   :  { %25596 = vst [vmem:[#allocation25_spill] sm:$0xff] %v21803_v51  ;;  %v21805_v19 = vadd.f32 %v17035_v22, %v8674_v59 }
 0x93f   :  { %v16958_v25 = vpop.f32.mrf.mxu1  ;;  %v17044_v6 = vpop.f32.mrf.mxu0 }
 0x940   :  { %25597 = vst [vmem:[#allocation35_spill] sm:$0xff] %v21805_v19  ;;  %v8688_v18 = vadd.f32 %v16958_v25, %v21688_v41 }
 0x941   :  { %v21810_v26 = vpop.f32.mrf.mxu1  ;;  %v21812_v14 = vpop.f32.mrf.mxu0 }
 0x942   :  { %25598 = vst [vmem:[#allocation34_spill] sm:$0xff] %v21810_v26  ;;  %25599 = vst [vmem:[#allocation21_spill] sm:$0xff] %v21812_v14  ;;  %v21814_v35 = vadd.f32 %v17038_v58, %v8688_v18 }
 0x943   :  { %v16961_v1 = vpop.f32.mrf.mxu1  ;;  %v17047_v31 = vpop.f32.mrf.mxu0 }
 0x944   :  { %25600 = vst [vmem:[#allocation67_spill] sm:$0xff] %v21814_v35  ;;  %v8702_v51 = vadd.f32 %v16961_v1, %v21694_v46 }
 0x945   :  { %v21817_v22 = vpop.f32.mrf.mxu1  ;;  %v21819_v59 = vpop.f32.mrf.mxu0 }
 0x946   :  { %25601 = vst [vmem:[#allocation60_spill] sm:$0xff] %v21819_v59  ;;  %v21821_v56 = vadd.f32 %v17041_v8, %v8702_v51 }
 0x947   :  { %v16964_v19 = vpop.f32.mrf.mxu1  ;;  %v17050_v16 = vpop.f32.mrf.mxu0 }
 0x948   :  { %25602 = vst [vmem:[#allocation63_spill] sm:$0xff] %v21821_v56  ;;  %v8716_v41 = vadd.f32 %v16964_v19, %v21700_v11 }
 0x949   :  { %v21824_v25 = vpop.f32.mrf.mxu1  ;;  %v21826_v26 = vpop.f32.mrf.mxu0 }
 0x94a   :  { %25603 = vst [vmem:[#allocation65_spill] sm:$0xff] %v21826_v26  ;;  %v21828_v58 = vadd.f32 %v17044_v6, %v8716_v41 }
 0x94b   :  { %v16967_v18 = vpop.f32.mrf.mxu1  ;;  %v17053_v14 = vpop.f32.mrf.mxu0 }
 0x94c   :  { %25604 = vst [vmem:[#allocation57_spill] sm:$0xff] %v21828_v58  ;;  %v8730_v46 = vadd.f32 %v16967_v18, %v21706_v36 }
 0x94d   :  { %v21831_v1 = vpop.f32.mrf.mxu1  ;;  %v21833_v35 = vpop.f32.mrf.mxu0 }
 0x94e   :  { %25605 = vst [vmem:[#allocation56_spill] sm:$0xff] %v21833_v35  ;;  %v21835_v51 = vadd.f32 %v17047_v31, %v8730_v46 }
 0x94f   :  { %v16970_v8 = vpop.f32.mrf.mxu1  ;;  %v17056_v59 = vpop.f32.mrf.mxu0 }
 0x950   :  { %25606 = vst [vmem:[#allocation68_spill] sm:$0xff] %v21835_v51  ;;  %v8744_v11 = vadd.f32 %v16970_v8, %v21712_v17 }
 0x951   :  { %v21838_v19 = vpop.f32.mrf.mxu1  ;;  %v21840_v56 = vpop.f32.mrf.mxu0 }
 0x952   :  { %25607 = vst [vmem:[#allocation70_spill] sm:$0xff] %v21840_v56  ;;  %v21842_v6 = vadd.f32 %v17050_v16, %v8744_v11  ;;  %v8279_v16 = vadd.f32 %v21594_v39, %v21596_v37 }
 0x953   :  { %v16973_v41 = vpop.f32.mrf.mxu1  ;;  %v17059_v26 = vpop.f32.mrf.mxu0 }
 0x954   :  { %v8758_v36 = vadd.f32 %v16973_v41, %v21718_v13  ;;  %v8569_v41 = vadd.f32 %v21747_v4, %v8279_v16  ;;  %v8303_v4 = vadd.f32 %v21636_v0, %v21638_v57 }
 0x955   :  { %v21845_v18 = vpop.f32.mrf.mxu1  ;;  %v21847_v58 = vpop.f32.mrf.mxu0 }
 0x956   :  { %25608 = vst [vmem:[#allocation18_spill] sm:$0xff] %v21847_v58  ;;  %v21849_v31 = vadd.f32 %v17053_v14, %v8758_v36  ;;  %v8597_v16 = vadd.f32 %v21761_v7, %v8303_v4 }
 0x957   :  { %v16976_v46 = vpop.f32.mrf.mxu1  ;;  %v17174_v35 = vpop.f32.mrf.mxu0 }
 0x958   :  { %25609 = vst [vmem:[#allocation26_spill] sm:$0xff] %v21849_v31  ;;  %v8772_v17 = vadd.f32 %v16976_v46, %v21724_v5  ;;  %v8291_v5 = vadd.f32 %v21618_v23, %v21620_v12 }
 0x959   :  { %v21852_v8 = vpop.f32.mrf.mxu1  ;;  %v9514_v51 = vpop.f32.mrf.mxu0 }
 0x95a   :  { %25610 = vst [vmem:[#allocation36_spill] sm:$0xff] %v21852_v8  ;;  %v21856_v11 = vadd.f32 %v17056_v59, %v8772_v17  ;;  %v8583_v39 = vadd.f32 %v21754_v30, %v8291_v5  ;;  %v8875_v59 = vadd.f32 %v21728_v29, %v8569_v41 }
 0x95b   :  { %v16979_v56 = vpop.f32.mrf.mxu1  ;;  %v17177_v13 = vpop.f32.mrf.mxu0 }
 0x95c   :  { %25611 = vst [vmem:[#allocation55_spill] sm:$0xff] %v21856_v11  ;;  %v8786_v58 = vadd.f32 %v16979_v56, %v21731_v62  ;;  %v8891_v30 = vadd.f32 %v21735_v54, %v8583_v39 }
 0x95d   :  { %v21860_v14 = vpop.f32.mrf.mxu1  ;;  %v9526_v36 = vpop.f32.mrf.mxu0 }
 0x95e   :  { %v21864_v46 = vadd.f32 %v17059_v26, %v8786_v58 }
 0x95f   :  { %v17094_v31 = vpop.f32.mrf.mxu1  ;;  %v17180_v8 = vpop.f32.mrf.mxu0 }
 0x960   :  { %v9248_v37 = vadd.f32 %v17094_v31, %v21751_v63  ;;  %v8315_v63 = vadd.f32 %v21656_v50, %v21658_v38  ;;  %v8327_v50 = vadd.f32 %v21662_v33, %v21664_v10  ;;  %v8339_v33 = vadd.f32 %v21666_v52, %v21670_v49 }
 0x961   :  { %v9241_v62 = vpop.f32.mrf.mxu1  ;;  %v9538_v56 = vpop.f32.mrf.mxu0  ;;  %v8351_v52 = vadd.f32 %v21672_v60, %v21678_v42  ;;  %v8363_v60 = vadd.f32 %v21676_v44, %v21684_v55  ;;  %v8375_v44 = vadd.f32 %v21680_v61, %v21690_v3  ;;  %v25615_v61 = vld [vmem:[#allocation38_spill] sm:$0xff]  ;;  %v25616_v3 = vld [vmem:[#allocation33_spill] sm:$0xff] }
 0x962   :  { %v9242_v17 = vadd.f32 %v9241_v62, %v8875_v59  ;;  %v9521_v12 = vadd.f32 %v17174_v35, %v9248_v37  ;;  %v8611_v41 = vadd.f32 %v21768_v47, %v8315_v63  ;;  %v8907_v35 = vadd.f32 %v21749_v48, %v8597_v16 }
 0x963   :  { %v17097_v11 = vpop.f32.mrf.mxu1  ;;  %v17183_v23 = vpop.f32.mrf.mxu0  ;;  %v8625_v47 = vadd.f32 %v21775_v20, %v8327_v50  ;;  %v8639_v63 = vadd.f32 %v21782_v45, %v8339_v33  ;;  %v25612_v33 = vld [vmem:[#allocation34_spill] sm:$0xff] }
 0x964   :  { %v9515_v26 = vadd.f32 %v9514_v51, %v9242_v17  ;;  %v9260_v58 = vadd.f32 %v17097_v11, %v21758_v9  ;;  %v9706_v51 = vsel %vm9704_vm3, %v9521_v12, 0.0  ;;  %v8923_v16 = vadd.f32 %v21756_v24, %v8611_v41 }
 0x965   :  { %v9253_v29 = vpop.f32.mrf.mxu1  ;;  %v9550_v31 = vpop.f32.mrf.mxu0  ;;  %v8955_v50 = vadd.f32 %v21770_v43, %v8639_v63 }
 0x966   :  { %v9705_v0 = vsel %vm9704_vm3, %v9515_v26, 0.0  ;;  %v9254_v57 = vadd.f32 %v9253_v29, %v8891_v30  ;;  %v9533_v9 = vadd.f32 %v17177_v13, %v9260_v58 }
 0x967   :  { %v17100_v7 = vpop.f32.mrf.mxu1  ;;  %v17186_v5 = vpop.f32.mrf.mxu0  ;;  %v9707_v38 = vadd.f32 %v9706_v51, %v9705_v0 }
 0x968   :  { %v9527_v11 = vadd.f32 %v9526_v36, %v9254_v57  ;;  %v9272_v54 = vadd.f32 %v17100_v7, %v21765_v53  ;;  %v9710_v13 = vsel %vm9704_vm3, %v9533_v9, 0.0  ;;  %v8939_v57 = vadd.f32 %v21763_v2, %v8625_v47 }
 0x969   :  { %v9265_v39 = vpop.f32.mrf.mxu1  ;;  %v9562_v37 = vpop.f32.mrf.mxu0  ;;  %v8653_v9 = vadd.f32 %v21789_v21, %v8351_v52  ;;  %v8667_v47 = vadd.f32 %v21801_v27, %v8363_v60 }
 0x96a   :  { %v9708_v59 = vsel %vm9704_vm3, %v9527_v11, 0.0  ;;  %v9266_v4 = vadd.f32 %v9265_v39, %v8907_v35  ;;  %v9545_v36 = vadd.f32 %v17180_v8, %v9272_v54 }
 0x96b   :  { %v9709_v62 = vadd.f32 %v9708_v59, %v9707_v38  ;;  %v17103_v17 = vpop.f32.mrf.mxu1  ;;  %v17189_v48 = vpop.f32.mrf.mxu0 }
 0x96c   :  { %v9539_v53 = vadd.f32 %v9538_v56, %v9266_v4  ;;  %v9284_v12 = vadd.f32 %v17103_v17, %v21772_v15  ;;  %v9714_v8 = vsel %vm9704_vm3, %v9545_v36, 0.0 }
 0x96d   :  { %v9711_v10 = vadd.f32 %v9710_v13, %v9709_v62  ;;  %v9277_v26 = vpop.f32.mrf.mxu1  ;;  %v9574_v58 = vpop.f32.mrf.mxu0 }
 0x96e   :  { %v9712_v30 = vsel %vm9704_vm3, %v9539_v53, 0.0  ;;  %v9278_v20 = vadd.f32 %v9277_v26, %v8923_v16  ;;  %v9557_v56 = vadd.f32 %v17183_v23, %v9284_v12  ;;  %v8971_v16 = vadd.f32 %v21777_v28, %v8653_v9  ;;  %v25617_v9 = vld [vmem:[#allocation29_spill] sm:$0xff] }
 0x96f   :  { %v9713_v29 = vadd.f32 %v9712_v30, %v9711_v10  ;;  %v17106_v0 = vpop.f32.mrf.mxu1  ;;  %v17192_v24 = vpop.f32.mrf.mxu0  ;;  %v8681_v10 = vadd.f32 %v25612_v33, %v8375_v44  ;;  %v25623_v44 = vld [vmem:[#allocation45_spill] sm:$0xff] }
 0x970   :  { %v9551_v15 = vadd.f32 %v9550_v31, %v9278_v20  ;;  %v9296_v41 = vadd.f32 %v17106_v0, %v21779_v40  ;;  %v9718_v23 = vsel %vm9704_vm3, %v9557_v56, 0.0  ;;  %v25613_v20 = vld [vmem:[#allocation24_spill] sm:$0xff] }
 0x971   :  { %v9715_v49 = vadd.f32 %v9714_v8, %v9713_v29  ;;  %v9289_v7 = vpop.f32.mrf.mxu1  ;;  %v9586_v35 = vpop.f32.mrf.mxu0  ;;  %v8987_v63 = vadd.f32 %v25613_v20, %v8667_v47  ;;  %v25614_v29 = vld [vmem:[#allocation35_spill] sm:$0xff] }
 0x972   :  { %v9716_v51 = vsel %vm9704_vm3, %v9551_v15, 0.0  ;;  %v9290_v45 = vadd.f32 %v9289_v7, %v8939_v57  ;;  %v9569_v31 = vadd.f32 %v17186_v5, %v9296_v41  ;;  %v8387_v57 = vadd.f32 %v25616_v3, %v25615_v61  ;;  %v25628_v61 = vld [vmem:[#allocation43_spill] sm:$0xff] }
 0x973   :  { %v9717_v11 = vadd.f32 %v9716_v51, %v9715_v49  ;;  %v17109_v54 = vpop.f32.mrf.mxu1  ;;  %v17195_v2 = vpop.f32.mrf.mxu0 }
 0x974   :  { %v9563_v40 = vadd.f32 %v9562_v37, %v9290_v45  ;;  %v9308_v38 = vadd.f32 %v17109_v54, %v21786_v34  ;;  %v9722_v5 = vsel %vm9704_vm3, %v9569_v31, 0.0  ;;  %v8695_v49 = vadd.f32 %v21817_v22, %v8387_v57  ;;  %v25619_v31 = vld [vmem:[#allocation46_spill] sm:$0xff] }
 0x975   :  { %v9719_v42 = vadd.f32 %v9718_v23, %v9717_v11  ;;  %v9301_v39 = vpop.f32.mrf.mxu1  ;;  %v9598_v59 = vpop.f32.mrf.mxu0  ;;  %v9003_v11 = vadd.f32 %v25617_v9, %v8681_v10  ;;  %v25629_v9 = vld [vmem:[#allocation60_spill] sm:$0xff] }
 0x976   :  { %v9720_v4 = vsel %vm9704_vm3, %v9563_v40, 0.0  ;;  %v9302_v21 = vadd.f32 %v9301_v39, %v8955_v50  ;;  %v9581_v37 = vadd.f32 %v17189_v48, %v9308_v38  ;;  %v25618_v50 = vld [vmem:[#allocation67_spill] sm:$0xff] }
 0x977   :  { %v9721_v62 = vadd.f32 %v9720_v4, %v9719_v42  ;;  %v17112_v17 = vpop.f32.mrf.mxu1  ;;  %v17198_v43 = vpop.f32.mrf.mxu0  ;;  %v25620_v40 = vld [vmem:[#allocation27_spill] sm:$0xff] }
 0x978   :  { %v9575_v34 = vadd.f32 %v9574_v58, %v9302_v21  ;;  %v9320_v13 = vadd.f32 %v17112_v17, %v21793_v32  ;;  %v9726_v48 = vsel %vm9704_vm3, %v9581_v37, 0.0  ;;  %v8399_v38 = vadd.f32 %v25620_v40, %v25619_v31 }
 0x979   :  { %v9723_v55 = vadd.f32 %v9722_v5, %v9721_v62  ;;  %v9313_v36 = vpop.f32.mrf.mxu1  ;;  %v9610_v53 = vpop.f32.mrf.mxu0 }
 0x97a   :  { %v9724_v12 = vsel %vm9704_vm3, %v9575_v34, 0.0  ;;  %v9314_v27 = vadd.f32 %v9313_v36, %v8971_v16  ;;  %v9593_v58 = vadd.f32 %v17192_v24, %v9320_v13  ;;  %v8709_v21 = vadd.f32 %v21824_v25, %v8399_v38  ;;  %v25621_v16 = vld [vmem:[#allocation25_spill] sm:$0xff]  ;;  %v25622_v34 = vld [vmem:[#allocation63_spill] sm:$0xff] }
 0x97b   :  { %v9725_v26 = vadd.f32 %v9724_v12, %v9723_v55  ;;  %v17115_v30 = vpop.f32.mrf.mxu1  ;;  %v17201_v28 = vpop.f32.mrf.mxu0  ;;  %v9019_v5 = vadd.f32 %v25621_v16, %v8695_v49  ;;  %v25624_v55 = vld [vmem:[#allocation37_spill] sm:$0xff] }
 0x97c   :  { %v9587_v32 = vadd.f32 %v9586_v35, %v9314_v27  ;;  %v9332_v0 = vadd.f32 %v17115_v30, %v25614_v29  ;;  %v9730_v24 = vsel %vm9704_vm3, %v9593_v58, 0.0  ;;  %v8411_v36 = vadd.f32 %v25624_v55, %v25623_v44 }
 0x97d   :  { %v9727_v8 = vadd.f32 %v9726_v48, %v9725_v26  ;;  %v9325_v56 = vpop.f32.mrf.mxu1  ;;  %v9622_v15 = vpop.f32.mrf.mxu0 }
 0x97e   :  { %v9728_v41 = vsel %vm9704_vm3, %v9587_v32, 0.0  ;;  %v9326_v52 = vadd.f32 %v9325_v56, %v8987_v63  ;;  %v9605_v35 = vadd.f32 %v17195_v2, %v9332_v0  ;;  %v8723_v26 = vadd.f32 %v21831_v1, %v8411_v36  ;;  %v25625_v63 = vld [vmem:[#allocation21_spill] sm:$0xff]  ;;  %v25627_v0 = vld [vmem:[#allocation48_spill] sm:$0xff] }
 0x97f   :  { %v9729_v7 = vadd.f32 %v9728_v41, %v9727_v8  ;;  %v17118_v51 = vpop.f32.mrf.mxu1  ;;  %v17204_v45 = vpop.f32.mrf.mxu0  ;;  %v9035_v48 = vadd.f32 %v25625_v63, %v8709_v21  ;;  %v25626_v32 = vld [vmem:[#allocation57_spill] sm:$0xff]  ;;  %v8423_v3 = vadd.f32 %v25628_v61, %v25627_v0 }
 0x980   :  { %v9599_v54 = vadd.f32 %v9598_v59, %v9326_v52  ;;  %v9344_v23 = vadd.f32 %v17118_v51, %v25618_v50  ;;  %v9734_v2 = vsel %vm9704_vm3, %v9605_v35, 0.0  ;;  %v25630_v35 = vld [vmem:[#allocation68_spill] sm:$0xff]  ;;  %v25631_v50 = vld [vmem:[#allocation50_spill] sm:$0xff] }
 0x981   :  { %v9731_v60 = vadd.f32 %v9730_v24, %v9729_v7  ;;  %v9337_v42 = vpop.f32.mrf.mxu1  ;;  %v9634_v39 = vpop.f32.mrf.mxu0  ;;  %v8737_v1 = vadd.f32 %v21838_v19, %v8423_v3 }
 0x982   :  { %v9732_v4 = vsel %vm9704_vm3, %v9599_v54, 0.0  ;;  %v9338_v22 = vadd.f32 %v9337_v42, %v9003_v11  ;;  %v9617_v59 = vadd.f32 %v17198_v43, %v9344_v23  ;;  %v9051_v11 = vadd.f32 %v25629_v9, %v8723_v26  ;;  %v25632_v23 = vld [vmem:[#allocation41_spill] sm:$0xff]  ;;  %v25637_v26 = vld [vmem:[#allocation56_spill] sm:$0xff]  ;;  %v25642_v9 = vld [vmem:[#allocation55_spill] sm:$0xff] }
 0x983   :  { %v9733_v47 = vadd.f32 %v9732_v4, %v9731_v60  ;;  %v17121_v62 = vpop.f32.mrf.mxu1  ;;  %v17207_v17 = vpop.f32.mrf.mxu0  ;;  %v8435_v31 = vadd.f32 %v25632_v23, %v25631_v50 }
 0x984   :  { %v9611_v37 = vadd.f32 %v9610_v53, %v9338_v22  ;;  %v9356_v13 = vadd.f32 %v17121_v62, %v25622_v34  ;;  %v9743_v43 = vsel %vm9704_vm3, %v9617_v59, 0.0  ;;  %v25635_v59 = vld [vmem:[#allocation49_spill] sm:$0xff] }
 0x985   :  { %v21932_v12 = vadd.f32 %v9734_v2, %v9733_v47  ;;  %v9349_v27 = vpop.f32.mrf.mxu1  ;;  %v9646_v33 = vpop.f32.mrf.mxu0  ;;  %v8751_v19 = vadd.f32 %v21845_v18, %v8435_v31  ;;  %v25633_v47 = vld [vmem:[#allocation65_spill] sm:$0xff]  ;;  %v25636_v18 = vld [vmem:[#allocation36_spill] sm:$0xff]  ;;  %v25643_v31 = vld [vmem:[#allocation18_spill] sm:$0xff] }
 0x986   :  { %v9742_v25 = vsel %vm9704_vm3, %v9611_v37, 0.0  ;;  %v9350_v10 = vadd.f32 %v9349_v27, %v9019_v5  ;;  %v9629_v53 = vadd.f32 %v17201_v28, %v9356_v13  ;;  %v9067_v62 = vadd.f32 %v25633_v47, %v8737_v1  ;;  %v25634_v2 = vld [vmem:[#allocation17_spill] sm:$0xff]  ;;  %v25641_v1 = vld [vmem:[#allocation70_spill] sm:$0xff] }
 0x987   :  { %v17124_v30 = vpop.f32.mrf.mxu1  ;;  %v17210_v20 = vpop.f32.mrf.mxu0  ;;  %v9744_v57 = vadd.f32 %v9743_v43, %v9742_v25  ;;  %v8447_v37 = vadd.f32 %v25635_v59, %v25634_v2  ;;  %v25639_v43 = vld [vmem:[#allocation20_spill] sm:$0xff] }
 0x988   :  { %v9623_v58 = vadd.f32 %v9622_v15, %v9350_v10  ;;  %v9368_v29 = vadd.f32 %v17124_v30, %v25626_v32  ;;  %v9747_v28 = vsel %vm9704_vm3, %v9629_v53, 0.0  ;;  %v9083_v30 = vadd.f32 %v25637_v26, %v8751_v19  ;;  %v25640_v53 = vld [vmem:[#allocation51_spill] sm:$0xff] }
 0x989   :  { %v9361_v8 = vpop.f32.mrf.mxu1  ;;  %v9658_v56 = vpop.f32.mrf.mxu0  ;;  %v8765_v36 = vadd.f32 %v25636_v18, %v8447_v37 }
 0x98a   :  { %v9745_v41 = vsel %vm9704_vm3, %v9623_v58, 0.0  ;;  %v9362_v52 = vadd.f32 %v9361_v8, %v9035_v48  ;;  %v9641_v15 = vadd.f32 %v17204_v45, %v9368_v29  ;;  %v8459_v58 = vadd.f32 %v25640_v53, %v25639_v43 }
 0x98b   :  { %v9746_v49 = vadd.f32 %v9745_v41, %v9744_v57  ;;  %v17127_v7 = vpop.f32.mrf.mxu1  ;;  %v17213_v51 = vpop.f32.mrf.mxu0  ;;  %v9736_v57 = vrot.slane %v21932_v12, 4 }
 0x98c   :  { %v9635_v24 = vadd.f32 %v9634_v39, %v9362_v52  ;;  %v9380_v54 = vadd.f32 %v17127_v7, %v25630_v35  ;;  %v9751_v45 = vsel %vm9704_vm3, %v9641_v15, 0.0  ;;  %v8779_v3 = vadd.f32 %v21860_v14, %v8459_v58  ;;  %v7458_v58 = vld [vmem:[%s24470_s12] sm:$0x1] }
 0x98d   :  { %v9748_v40 = vadd.f32 %v9747_v28, %v9746_v49  ;;  %v9373_v38 = vpop.f32.mrf.mxu1  ;;  %v9670_v22 = vpop.f32.mrf.mxu0  ;;  %v9737_v14 = vadd.f32 %v9736_v57, %v21932_v12 }
 0x98e   :  { %v9749_v60 = vsel %vm9704_vm3, %v9635_v24, 0.0  ;;  %v9374_v42 = vadd.f32 %v9373_v38, %v9051_v11  ;;  %v9653_v39 = vadd.f32 %v17207_v17, %v9380_v54 }
 0x98f   :  { %v9750_v4 = vadd.f32 %v9749_v60, %v9748_v40  ;;  %v17130_v21 = vpop.f32.mrf.mxu1  ;;  %v17216_v25 = vpop.f32.mrf.mxu0  ;;  %v9115_v40 = vadd.f32 %v25643_v31, %v8779_v3  ;;  %v9738_v47 = vrot.slane %v9737_v14, 2  ;;  %v11014_v31 = vld [vmem:[%s24471_s13 + $0xf0] sm:$0xff] }
 0x990   :  { %v9647_v16 = vadd.f32 %v9646_v33, %v9374_v42  ;;  %v9392_v5 = vadd.f32 %v17130_v21, %v21842_v6  ;;  %v9755_v17 = vsel %vm9704_vm3, %v9653_v39, 0.0  ;;  %v25638_v6 = vld [vmem:[#allocation26_spill] sm:$0xff] }
 0x991   :  { %v9752_v34 = vadd.f32 %v9751_v45, %v9750_v4  ;;  %v9385_v13 = vpop.f32.mrf.mxu1  ;;  %v9682_v41 = vpop.f32.mrf.mxu0  ;;  %v9739_v59 = vadd.f32 %v9738_v47, %v9737_v14 }
 0x992   :  { %v9753_v44 = vsel %vm9704_vm3, %v9647_v16, 0.0  ;;  %v9386_v55 = vadd.f32 %v9385_v13, %v9067_v62  ;;  %v9665_v33 = vadd.f32 %v17210_v20, %v9392_v5  ;;  %v9099_v20 = vadd.f32 %v25641_v1, %v8765_v36 }
 0x993   :  { %v9754_v27 = vadd.f32 %v9753_v44, %v9752_v34  ;;  %v17133_v10 = vpop.f32.mrf.mxu1  ;;  %v17219_v54 = vpop.f32.mrf.mxu0  ;;  %v9740_v13 = vrot.slane %v9739_v59, 1 }
 0x994   :  { %v9659_v63 = vadd.f32 %v9658_v56, %v9386_v55  ;;  %v9404_v48 = vadd.f32 %v17133_v10, %v25638_v6  ;;  %v9759_v56 = vsel %vm9704_vm3, %v9665_v33, 0.0 }
 0x995   :  { %v9756_v32 = vadd.f32 %v9755_v17, %v9754_v27  ;;  %v9397_v29 = vpop.f32.mrf.mxu1  ;;  %v9694_v62 = vpop.f32.mrf.mxu0  ;;  %v9741_v18 = vadd.f32 %v9740_v13, %v9739_v59 }
 0x996   :  { %v9757_v0 = vsel %vm9704_vm3, %v9659_v63, 0.0  ;;  %v9398_v61 = vadd.f32 %v9397_v29, %v9083_v30  ;;  %v9677_v49 = vadd.f32 %v17213_v51, %v9404_v48  ;;  %v7457_v48 = vld [vmem:[%s24469_s11] sm:$0x1] }
 0x997   :  { %v9758_v8 = vadd.f32 %v9757_v0, %v9756_v32  ;;  %v17136_v52 = vpop.f32.mrf.mxu1  ;;  %v25644_v0 = vld [vmem:[#allocation30_spill] sm:$0xff] }
 0x998   :  { %v9671_v7 = vadd.f32 %v9670_v22, %v9398_v61  ;;  %v9416_v11 = vadd.f32 %v17136_v52, %v25642_v9  ;;  %v9763_v38 = vsel %vm9704_vm3, %v9677_v49, 0.0  ;;  %v9901_v61 = vand.u32 4294901760, %v25644_v0 }
 0x999   :  { %v9760_v28 = vadd.f32 %v9759_v56, %v9758_v8  ;;  %v9409_v15 = vpop.f32.mrf.mxu1 }
 0x99a   :  { %v9761_v24 = vsel %vm9704_vm3, %v9671_v7, 0.0  ;;  %v9410_v35 = vadd.f32 %v9409_v15, %v9099_v20  ;;  %v9689_v60 = vadd.f32 %v17216_v25, %v9416_v11  ;;  %v9779_v25 = vmul.f32 0.00048828125, %v9741_v18  ;;  %v11011_v18 = vld [vmem:[%s24471_s13 + $0xd8] sm:$0xff] }
 0x99b   :  { %v9762_v50 = vadd.f32 %v9761_v24, %v9760_v28  ;;  %v17139_v23 = vpop.f32.mrf.mxu1  ;;  %v9902_v52 = vsub.f32 %v25644_v0, %v9901_v61  ;;  %v25645_v11 = vmov 0.0   ;;  %v25646_v28 = vmov 1.0  }
 0x99c   :  { %v9683_v42 = vadd.f32 %v9682_v41, %v9410_v35  ;;  %v9428_v51 = vadd.f32 %v17139_v23, %v21864_v46  ;;  %v9767_v12 = vsel %vm9704_vm3, %v9689_v60, 0.0  ;;  %v9781_v30 = vmul.f32 %v9779_v25, %v9779_v25  ;;  %v10999_v23 = vld [vmem:[%s24471_s13 + $0x78] sm:$0xff] }
 0x99d   :  { %v9764_v19 = vadd.f32 %v9763_v38, %v9762_v50  ;;  %v9421_v4 = vpop.f32.mrf.mxu1  ;;  %v9903_v7 = vand.u32 4294901760, %v9902_v52  ;;  %v22044_v38 = vand.u32 4294901760, %v11014_v31 }
 0x99e   :  { %v9765_v22 = vsel %vm9704_vm3, %v9683_v42, 0.0  ;;  %v9422_v21 = vadd.f32 %v9421_v4, %v9115_v40  ;;  %v9701_v39 = vadd.f32 %v17219_v54, %v9428_v51  ;;  %v11015_v54 = vld [vmem:[%s24471_s13 + $0xf8] sm:$0xff]  ;;  %v22042_v40 = vand.u32 4294901760, %v10999_v23  ;;  %v10998_v42 = vld [vmem:[%s24471_s13 + $0x70] sm:$0xff]  ;;  %v11013_v51 = vld [vmem:[%s24471_s13 + $0xe8] sm:$0xff] }
 0x99f   :  { %v9766_v45 = vadd.f32 %v9765_v22, %v9764_v19  ;;  %v22034_v50 = vand.u32 4294901760, %v11015_v54  ;;  %v22060_v4 = vsub.f32 %v11014_v31, %v22044_v38  ;;  %v22062_v22 = vand.u32 4294901760, %v10998_v42  ;;  %v11008_v31 = vld [vmem:[%s24471_s13 + $0xc0] sm:$0xff] }
 0x9a0   :  { %v9695_v16 = vadd.f32 %v9694_v62, %v9422_v21  ;;  %v9771_v34 = vsel %vm9704_vm3, %v9701_v39, 0.0  ;;  %v22057_v19 = vsub.f32 %v10999_v23, %v22042_v40  ;;  %v22064_v21 = vand.u32 4294901760, %v11013_v51  ;;  %v10993_v23 = vld [vmem:[%s24471_s13 + $0x48] sm:$0xff] }
 0x9a1   :  { %v9768_v5 = vadd.f32 %v9767_v12, %v9766_v45  ;;  %25648 = vst [vmem:[#allocation19_spill] sm:$0xff] %v22034_v50  ;;  %v22047_v60 = vsub.f32 %v11015_v54, %v22034_v50  ;;  %v24788_v45 = vand.u32 4294901760, %v22060_v4  ;;  %v22072_v12 = vsub.f32 %v10998_v42, %v22062_v22  ;;  %v10992_v42 = vld [vmem:[%s24471_s13 + $0x40] sm:$0xff] }
 0x9a2   :  { %v9769_v2 = vsel %vm9704_vm3, %v9695_v16, 0.0  ;;  %v24789_v62 = vand.u32 4294901760, %v22057_v19  ;;  %v22075_v39 = vsub.f32 %v11013_v51, %v22064_v21  ;;  %v10997_v16 = vld [vmem:[%s24471_s13 + $0x68] sm:$0xff] }
 0x9a3   :  { %v9770_v37 = vadd.f32 %v9769_v2, %v9768_v5  ;;  %25649 = vst [vmem:[#allocation40_spill] sm:$0xff] %v22047_v60  ;;  %v24792_v47 = vand.u32 4294901760, %v22047_v60  ;;  %25650 = vst [vmem:[#allocation52_spill] sm:$0xff] %v22072_v12  ;;  %v11012_v5 = vld [vmem:[%s24471_s13 + $0xe0] sm:$0xff]  ;;  %v22087_v59 = vand.u32 4294901760, %v10997_v16  ;;  %v11498_v13 = vsub.f32 %v22060_v4, %v24788_v45 }
 0x9a5   :  { %v9772_v46 = vadd.f32 %v9771_v34, %v9770_v37  ;;  %v11491_v2 = vsub.f32 %v22047_v60, %v24792_v47  ;;  %25651 = vst [vmem:[#allocation12_spill] sm:$0xff] %v22087_v59  ;;  %v22089_v37 = vand.u32 4294901760, %v11012_v5  ;;  %v10996_v34 = vld [vmem:[%s24471_s13 + $0x60] sm:$0xff] }
 0x9a7   :  { %v9773_v44 = vrot.slane %v9772_v46, 4  ;;  %25652 = vst [vmem:[#allocation16_spill] sm:$0xff] %v22089_v37 }
 0x9a9   :  { %v9774_v55 = vadd.f32 %v9773_v44, %v9772_v46  ;;  %v11379_v46 = vsub.f32 %v22057_v19, %v24789_v62  ;;  %v24787_v44 = vand.u32 4294901760, %v22072_v12 }
 0x9ab   :  { %v9775_v36 = vrot.slane %v9774_v55, 2 }
 0x9ad   :  { %v9776_v27 = vadd.f32 %v9775_v36, %v9774_v55  ;;  %v24786_v55 = vand.u32 4294901760, %v22075_v39  ;;  %v11492_v36 = vand.u32 4294901760, %v11491_v2  ;;  %v22196_v2 = vand.u32 4294901760, %v11008_v31 }
 0x9af   :  { %v9777_v10 = vrot.slane %v9776_v27, 1  ;;  %25655 = vst [vmem:[#allocation71_spill] sm:$0xff] %v22196_v2 }
 0x9b1   :  { %v9778_v26 = vadd.f32 %v9777_v10, %v9776_v27  ;;  %v22107_v27 = vsub.f32 %v10997_v16, %v22087_v59  ;;  %v22112_v10 = vand.u32 4294901760, %v10996_v34 }
 0x9b3   :  { %v9780_v17 = vmul.f32 0.00048828125, %v9778_v26  ;;  %25653 = vst [vmem:[#allocation23_spill] sm:$0xff] %v22112_v10  ;;  %v11380_v26 = vand.u32 4294901760, %v11379_v46 }
 0x9b5   :  { %v9782_v33 = vsub.f32 %v9780_v17, %v9781_v30  ;;  %v11499_v30 = vand.u32 4294901760, %v11498_v13  ;;  %v11386_v17 = vsub.f32 %v22072_v12, %v24787_v44 }
 0x9b7   :  { %v9783_v63 = vmax.f32 %v9782_v33, 0.0  ;;  %v11505_v33 = vsub.f32 %v22075_v39, %v24786_v55  ;;  %v11002_v55 = vld [vmem:[%s24471_s13 + $0x90] sm:$0xff] }
 0x9b8   :  { %v22352_v45 = vand.u32 4294901760, %v11002_v55 }
 0x9b9   :  { %v9784_v6 = vadd.f32 1e-05, %v9783_v63  ;;  %v10995_v63 = vld [vmem:[%s24471_s13 + $0x58] sm:$0xff] }
 0x9ba   :  { %25678 = vst [vmem:[#allocation60_spill] sm:$0xff] %v22352_v45 }
 0x9bb   :  { %17631 = vrsqrt.f32 %v9784_v6  ;;  %v11010_v6 = vld [vmem:[%s24471_s13 + $0xd0] sm:$0xff] }
 0x9c8   :  { %v17632_v43 = vpop.eup %17631 }
 0x9c9   :  { %v9786_v53 = vmul.f32 %v17632_v43, %v7457_v48  ;;  %v24783_v48 = vand.u32 4294901760, %v22107_v27 }
 0x9cb   :  { %v9787_v32 = vmul.f32 %v9786_v53, %v9779_v25  ;;  %v9790_v29 = vsel %vm9704_vm3, %v9786_v53, 0  ;;  %v22110_v25 = vsub.f32 %v11012_v5, %v22089_v37  ;;  %v22131_v53 = vsub.f32 %v10996_v34, %v22112_v10 }
 0x9cc   :  { %v9858_v3 = vand.u32 4294901760, %v9790_v29  ;;  %v22194_v5 = vand.u32 4294901760, %v10993_v23 }
 0x9cd   :  { %v9788_v57 = vsub.f32 %v7458_v58, %v9787_v32  ;;  %v24782_v43 = vand.u32 4294901760, %v22110_v25  ;;  %v22133_v58 = vand.u32 4294901760, %v11011_v18  ;;  %v10994_v32 = vld [vmem:[%s24471_s13 + $0x50] sm:$0xff]  ;;  %v24780_v52 = vand.u32 4294901760, %v22131_v53 }
 0x9ce   :  { %v9859_v8 = vsub.f32 %v9790_v29, %v9858_v3  ;;  %v11009_v29 = vld [vmem:[%s24471_s13 + $0xc8] sm:$0xff] }
 0x9cf   :  { %v10239_v41 = vsel %vm9704_vm3, %v9788_v57, 0  ;;  %v22144_v57 = vand.u32 4294901760, %v11010_v6 }
 0x9d0   :  { %v10307_v1 = vand.u32 4294901760, %v10239_v41  ;;  %v9860_v20 = vand.u32 4294901760, %v9859_v8 }
 0x9d2   :  { %v10308_v56 = vsub.f32 %v10239_v41, %v10307_v1  ;;  %v9861_v49 = vsub.f32 %v9859_v8, %v9860_v20  ;;  %v11512_v41 = vsub.f32 %v22110_v25, %v24782_v43 }
 0x9d4   :  { %17263 = vmatmul.mubr.f32.vlgmr.msra.gmra.mxu0 %v10308_v56  ;;  %v9862_v9 = vand.u32 4294901760, %v9861_v49  ;;  %v10309_v24 = vand.u32 4294901760, %v10308_v56  ;;  %v22163_v49 = vand.u32 4294901760, %v10994_v32 }
 0x9d5   :  { %17271 = vmatpush3.msra.mxu0 %v9901_v61  ;;  %17272 = vmatprep.mubr.msk.f32.mxu0 %vm25573_vm6, %v25645_v11 }
 0x9d6   :  { %17223 = vmatmul.mubr.f32.vlgmr.msra.gmra.mxu1 %v9862_v9  ;;  %v10310_v35 = vsub.f32 %v10308_v56, %v10309_v24  ;;  %15296 = vmatprep.subr.mxu0 %v22034_v50  ;;  %v22161_v56 = vsub.f32 %v11010_v6, %v22144_v57  ;;  %v11006_v6 = vld [vmem:[%s24471_s13 + $0xb0] sm:$0xff] }
 0x9d7   :  { %17226 = vmatpush3.msra.mxu1 %v9903_v7  ;;  %17227 = vmatprep.mubr.msk.f32.mxu1 %vm25573_vm6, %v25645_v11 }
 0x9d8   :  { %17273 = vmatmul.mubr.f32.vlgmr.msra.gmra.mxu0 %v10307_v1  ;;  %17230 = vmatprep.subr.mxu1 %v25645_v11  ;;  %v10311_v14 = vand.u32 4294901760, %v10310_v35  ;;  %v24776_v35 = vand.u32 4294901760, %v22161_v56 }
 0x9d9   :  { %15297 = vmatpush3.msra.mxu0 %v22042_v40 }
 0x9da   :  { %17228 = vmatmul.mubr.f32.vlgmr.msra.gmra.mxu1 %v9858_v3  ;;  %15298 = vmatprep.subr.mxu0 %v22044_v38  ;;  %v11526_v46 = vsub.f32 %v22161_v56, %v24776_v35 }
 0x9db   :  { %17231 = vmatpush3.msra.mxu1 %v25644_v0  ;;  %17232 = vmatprep.mubr.msk.f32.mxu1 %vm25573_vm6, %v25645_v11  ;;  %v11387_v0 = vand.u32 4294901760, %v11386_v17  ;;  %v22214_v17 = vsub.f32 %v11008_v31, %v22196_v2 }
 0x9dc   :  { %17235 = vmatprep.subr.mxu1 %v25645_v11  ;;  %15299 = vmatpush3.msra.mxu0 %v22062_v22 }
 0x9dd   :  { %15300 = vmatprep.subr.mxu0 %v22064_v21  ;;  %25657 = vst [vmem:[#allocation73_spill] sm:$0xff] %v22214_v17 }
 0x9de   :  { %17233 = vmatmul.mubr.f32.vlgmr.msra.gmra.mxu1 %v9859_v8  ;;  %15301 = vmatpush3.msra.mxu0 %v22087_v59  ;;  %v11393_v8 = vsub.f32 %v22107_v27, %v24783_v48 }
 0x9df   :  { %17236 = vmatpush3.msk.msra.mxu1 %vm21738_vm8, %v25646_v28  ;;  %17237 = vmatprep.mubr.msk.f32.mxu1 %vm25573_vm6, %v25645_v11 }
 0x9e0   :  { %17240 = vmatprep.subr.mxu1 %v25645_v11  ;;  %15302 = vmatprep.subr.mxu0 %v22089_v37  ;;  %v11394_v9 = vand.u32 4294901760, %v11393_v8 }
 0x9e1   :  { %15303 = vmatpush3.msra.mxu0 %v22112_v10 }
 0x9e2   :  { %17238 = vmatmul.mubr.f32.vlgmr.msra.gmra.mxu1 %v9860_v20  ;;  %15304 = vmatprep.subr.mxu0 %v22133_v58 }
 0x9e3   :  { %17241 = vmatpush3.msra.mxu1 %v9901_v61  ;;  %17242 = vmatprep.mubr.msk.f32.mxu1 %vm25573_vm6, %v25645_v11  ;;  %v11506_v61 = vand.u32 4294901760, %v11505_v33  ;;  %v22216_v33 = vand.u32 4294901760, %v10992_v42 }
 0x9e4   :  { %17245 = vmatprep.subr.mxu1 %v25645_v11 }
 0x9e5   :  { %25658 = vst [vmem:[#allocation74_spill] sm:$0xff] %v22216_v33 }
 0x9e6   :  { %17243 = vmatmul.mubr.f32.vlgmr.msra.gmra.mxu1 %v9858_v3 }
 0x9e7   :  { %17246 = vmatpush3.msk.msra.mxu1 %vm21738_vm8, %v25646_v28  ;;  %17247 = vmatprep.mubr.msk.f32.mxu1 %vm25573_vm6, %v25645_v11 }
 0x9e8   :  { %17250 = vmatprep.subr.mxu1 %v25645_v11 }
 0x9ea   :  { %17248 = vmatmul.mubr.f32.vlgmr.msra.gmra.mxu1 %v9858_v3  ;;  %v22142_v3 = vand.u32 4294901760, %v10995_v63 }
 0x9eb   :  { %17251 = vmatpush3.msk.msra.mxu1 %vm21738_vm8, %v25646_v28  ;;  %17252 = vmatprep.mubr.msk.f32.mxu1 %vm25573_vm6, %v25645_v11 }
 0x9ec   :  { %17255 = vmatprep.subr.mxu1 %v25645_v11  ;;  %v22158_v20 = vsub.f32 %v10995_v63, %v22142_v3  ;;  %15305 = vmatpush3.msra.mxu0 %v22142_v3  ;;  %v10991_v63 = vld [vmem:[%s24471_s13 + $0x38] sm:$0xff] }
 0x9ed   :  { %15306 = vmatprep.subr.mxu0 %v22144_v57 }
 0x9ee   :  { %17253 = vmatmul.mubr.f32.vlgmr.msra.gmra.mxu1 %v10311_v14  ;;  %v22176_v14 = vsub.f32 %v10994_v32, %v22163_v49  ;;  %15307 = vmatpush3.msra.mxu0 %v22163_v49 }
 0x9ef   :  { %17256 = vmatpush3.msra.mxu1 %v9903_v7  ;;  %17257 = vmatprep.mubr.msk.f32.mxu1 %vm25573_vm6, %v25645_v11  ;;  %v22165_v7 = vand.u32 4294901760, %v11009_v29 }
 0x9f0   :  { %17265 = vmatprep.subr.mxu1 %v25645_v11  ;;  %v24775_v13 = vand.u32 4294901760, %v22176_v14 }
 0x9f1   :  { %v22179_v54 = vsub.f32 %v11009_v29, %v22165_v7  ;;  %15308 = vmatprep.subr.mxu0 %v22165_v7  ;;  %v11527_v29 = vand.u32 4294901760, %v11526_v46 }
 0x9f2   :  { %17258 = vmatmul.mubr.f32.vlgmr.msra.gmra.mxu1 %v10307_v1  ;;  %15309 = vmatpush3.msra.mxu0 %v22194_v5 }
 0x9f3   :  { %17266 = vmatpush3.msk.msra.mxu1 %vm21738_vm8, %v25646_v28  ;;  %17267 = vmatprep.mubr.msk.f32.mxu1 %vm25573_vm6, %v25645_v11  ;;  %25654 = vst [vmem:[#allocation32_spill] sm:$0xff] %v22179_v54 }
 0x9f4   :  { %17275 = vmatprep.subr.mxu1 %v25645_v11  ;;  %15310 = vmatprep.subr.mxu0 %v22196_v2 }
 0x9f5   :  { %15311 = vmatpush3.msra.mxu0 %v22216_v33 }
 0x9f6   :  { %17268 = vmatmul.mubr.f32.vlgmr.msra.gmra.mxu1 %v10309_v24  ;;  %v24777_v24 = vand.u32 4294901760, %v22158_v20 }
 0x9f7   :  { %17276 = vmatpush3.msk.msra.mxu1 %vm21738_vm8, %v25646_v28  ;;  %17277 = vmatprep.mubr.msk.f32.mxu1 %vm25573_vm6, %v25645_v11  ;;  %v11513_v11 = vand.u32 4294901760, %v11512_v41  ;;  %v11400_v28 = vsub.f32 %v22131_v53, %v24780_v52  ;;  %v24773_v41 = vand.u32 4294901760, %v22214_v17  ;;  %vm25730_vm6 = vmmov %vm25725_vm0 }
 0x9f8   :  { %15376 = vmatprep.subr.mxu1 %v11492_v36  ;;  %v11407_v34 = vsub.f32 %v22158_v20, %v24777_v24  ;;  %v11007_v36 = vld [vmem:[%s24471_s13 + $0xb8] sm:$0xff]  ;;  %vm25731_vm8 = vmmov %vm25713_vm2 }
 0x9f9   :  { %v11401_v51 = vand.u32 4294901760, %v11400_v28  ;;  %v10990_v28 = vld [vmem:[%s24471_s13 + $0x30] sm:$0xff]  ;;  %v11540_v46 = vsub.f32 %v22214_v17, %v24773_v41  ;;  %v10989_v41 = vld [vmem:[%s24471_s13 + $0x28] sm:$0xff] }
 0x9fa   :  { %17278 = vmatmul.mubr.f32.vlgmr.msra.gmra.mxu1 %v10307_v1  ;;  %v22154_v1 = vsub.f32 %v11011_v18, %v22133_v58  ;;  %v24772_v18 = vand.u32 4294901760, %v22179_v54  ;;  %v11408_v32 = vand.u32 4294901760, %v11407_v34  ;;  %v22248_v34 = vand.u32 4294901760, %v11006_v6 }
 0x9fb   :  { %15377 = vmatpush3.msra.mxu1 %v11380_v26 }
 0x9fc   :  { %15378 = vmatprep.subr.mxu1 %v11499_v30  ;;  %v24778_v15 = vand.u32 4294901760, %v22154_v1  ;;  %v22211_v30 = vsub.f32 %v10993_v23, %v22194_v5  ;;  %v11005_v23 = vld [vmem:[%s24471_s13 + $0xa8] sm:$0xff]  ;;  %25662 = vst [vmem:[#allocation24_spill] sm:$0xff] %v22248_v34 }
 0x9fd   :  { %15379 = vmatpush3.msra.mxu1 %v11387_v0  ;;  %v11414_v0 = vsub.f32 %v22176_v14, %v24775_v13 }
 0x9fe   :  { %15380 = vmatprep.subr.mxu1 %v11506_v61  ;;  %v11519_v16 = vsub.f32 %v22154_v1, %v24778_v15  ;;  %25656 = vst [vmem:[#allocation72_spill] sm:$0xff] %v22211_v30  ;;  %v11533_v61 = vsub.f32 %v22179_v54, %v24772_v18  ;;  %v24774_v8 = vand.u32 4294901760, %v22211_v30 }
 0x9ff   :  { %15381 = vmatpush3.msra.mxu1 %v11394_v9  ;;  %v22235_v9 = vsub.f32 %v10992_v42, %v22216_v33  ;;  %v11415_v31 = vand.u32 4294901760, %v11414_v0  ;;  %v22267_v0 = vand.u32 4294901760, %v10990_v28 }
 0xa00   :  { %15382 = vmatprep.subr.mxu1 %v11513_v11  ;;  %v11520_v26 = vand.u32 4294901760, %v11519_v16  ;;  %v22237_v11 = vand.u32 4294901760, %v11007_v36  ;;  %v22246_v16 = vand.u32 4294901760, %v10991_v63  ;;  %v11421_v42 = vsub.f32 %v22211_v30, %v24774_v8 }
 0xa01   :  { %15383 = vmatpush3.msra.mxu1 %v11401_v51  ;;  %25659 = vst [vmem:[#allocation13_spill] sm:$0xff] %v22235_v9  ;;  %v11534_v51 = vand.u32 4294901760, %v11533_v61  ;;  %25666 = vst [vmem:[#allocation29_spill] sm:$0xff] %v22267_v0  ;;  %v22269_v61 = vand.u32 4294901760, %v11005_v23  ;;  %v22286_v24 = vsub.f32 %v10990_v28, %v22267_v0 }
 0xa02   :  { %15384 = vmatprep.subr.mxu1 %v11520_v26  ;;  %25660 = vst [vmem:[#allocation11_spill] sm:$0xff] %v22237_v11  ;;  %25661 = vst [vmem:[#allocation34_spill] sm:$0xff] %v22246_v16  ;;  %v24779_v26 = vand.u32 4294901760, %v22235_v9  ;;  %v22258_v18 = vsub.f32 %v11007_v36, %v22237_v11  ;;  %15312 = vmatprep.subr.mxu0 %v22237_v11  ;;  %v11004_v36 = vld [vmem:[%s24471_s13 + $0xa0] sm:$0xff] }
 0xa03   :  { %15385 = vmatpush3.msra.mxu1 %v11408_v32  ;;  %v22262_v32 = vsub.f32 %v10991_v63, %v22246_v16  ;;  %25667 = vst [vmem:[#allocation67_spill] sm:$0xff] %v22269_v61  ;;  %15313 = vmatpush3.msra.mxu0 %v22246_v16  ;;  %v11422_v63 = vand.u32 4294901760, %v11421_v42  ;;  %25668 = vst [vmem:[#allocation46_spill] sm:$0xff] %v22286_v24  ;;  %v22289_v15 = vsub.f32 %v11005_v23, %v22269_v61 }
 0xa04   :  { %15386 = vmatprep.subr.mxu1 %v11527_v29  ;;  %25663 = vst [vmem:[#allocation35_spill] sm:$0xff] %v22258_v18  ;;  %v22265_v29 = vsub.f32 %v11006_v6, %v22248_v34  ;;  %v11428_v6 = vsub.f32 %v22235_v9, %v24779_v26  ;;  %v24781_v8 = vand.u32 4294901760, %v22258_v18  ;;  %15314 = vmatprep.subr.mxu0 %v22248_v34  ;;  %v22298_v26 = vand.u32 4294901760, %v10989_v41 }
 0xa05   :  { %15387 = vmatpush3.msra.mxu1 %v11415_v31  ;;  %25664 = vst [vmem:[#allocation38_spill] sm:$0xff] %v22262_v32  ;;  %v11541_v31 = vand.u32 4294901760, %v11540_v46  ;;  %v24784_v13 = vand.u32 4294901760, %v22262_v32  ;;  %25669 = vst [vmem:[#allocation27_spill] sm:$0xff] %v22289_v15  ;;  %15315 = vmatpush3.msra.mxu0 %v22267_v0  ;;  %v22300_v52 = vand.u32 4294901760, %v11004_v36 }
 0xa06   :  { %25665 = vst [vmem:[#allocation33_spill] sm:$0xff] %v22265_v29  ;;  %15388 = vmatprep.subr.mxu1 %v11534_v51  ;;  %v24785_v35 = vand.u32 4294901760, %v22265_v29  ;;  %v10988_v51 = vld [vmem:[%s24471_s13 + $0x20] sm:$0xff]  ;;  %v11429_v42 = vand.u32 4294901760, %v11428_v6  ;;  %v11547_v46 = vsub.f32 %v22258_v18, %v24781_v8  ;;  %25670 = vst [vmem:[#allocation25_spill] sm:$0xff] %v22298_v26  ;;  %15316 = vmatprep.subr.mxu0 %v22269_v61  ;;  %v24790_v6 = vand.u32 4294901760, %v22289_v15 }
 0xa07   :  { %15389 = vmatpush3.msra.mxu1 %v11422_v63  ;;  %25671 = vst [vmem:[#allocation63_spill] sm:$0xff] %v22300_v52  ;;  %v11435_v28 = vsub.f32 %v22262_v32, %v24784_v13  ;;  %v24791_v63 = vand.u32 4294901760, %v22286_v24  ;;  %v11003_v8 = vld [vmem:[%s24471_s13 + $0x98] sm:$0xff]  ;;  %v22318_v48 = vsub.f32 %v11004_v36, %v22300_v52  ;;  %v22320_v13 = vand.u32 4294901760, %v10988_v51  ;;  %15317 = vmatpush3.msra.mxu0 %v22298_v26 }
 0xa08   :  { %15390 = vmatprep.subr.mxu1 %v11541_v31  ;;  %v11554_v23 = vsub.f32 %v22265_v29, %v24785_v35  ;;  %v11548_v43 = vand.u32 4294901760, %v11547_v46  ;;  %v22315_v31 = vsub.f32 %v10989_v41, %v22298_v26  ;;  %v10987_v35 = vld [vmem:[%s24471_s13 + $0x18] sm:$0xff]  ;;  %v11561_v36 = vsub.f32 %v22289_v15, %v24790_v6  ;;  %15318 = vmatprep.subr.mxu0 %v22300_v52  ;;  %v11001_v6 = vld [vmem:[%s24471_s13 + $0x88] sm:$0xff] }
 0xa09   :  { %15391 = vmatpush3.msra.mxu1 %v11429_v42  ;;  %25673 = vst [vmem:[#allocation37_spill] sm:$0xff] %v22318_v48  ;;  %25674 = vst [vmem:[#allocation21_spill] sm:$0xff] %v22320_v13  ;;  %v11436_v42 = vand.u32 4294901760, %v11435_v28  ;;  %v11442_v41 = vsub.f32 %v22286_v24, %v24791_v63  ;;  %v22339_v62 = vsub.f32 %v10988_v51, %v22320_v13  ;;  %v22341_v28 = vand.u32 4294901760, %v11003_v8 }
 0xa0a   :  { %25672 = vst [vmem:[#allocation45_spill] sm:$0xff] %v22315_v31  ;;  %v11555_v46 = vand.u32 4294901760, %v11554_v23  ;;  %15392 = vmatprep.subr.mxu1 %v11548_v43  ;;  %v24801_v44 = vand.u32 4294901760, %v22315_v31  ;;  %v10986_v23 = vld [vmem:[%s24471_s13 + $0x10] sm:$0xff]  ;;  %15319 = vmatpush3.msra.mxu0 %v22320_v13  ;;  %v11562_v63 = vand.u32 4294901760, %v11561_v36  ;;  %v22350_v47 = vand.u32 4294901760, %v10987_v35 }
 0xa0b   :  { %25675 = vst [vmem:[#allocation57_spill] sm:$0xff] %v22339_v62  ;;  %25676 = vst [vmem:[#allocation48_spill] sm:$0xff] %v22341_v28  ;;  %15393 = vmatpush3.msra.mxu1 %v11436_v42  ;;  %v11443_v43 = vand.u32 4294901760, %v11442_v41  ;;  %v25679_v52 = vand.u32 4294901760, %v22318_v48  ;;  %v24810_v61 = vand.u32 4294901760, %v22339_v62  ;;  %v22362_v13 = vsub.f32 %v11003_v8, %v22341_v28  ;;  %15320 = vmatprep.subr.mxu0 %v22341_v28  ;;  %v11000_v8 = vld [vmem:[%s24471_s13 + $0x80] sm:$0xff] }
 0xa0c   :  { %25677 = vst [vmem:[#allocation43_spill] sm:$0xff] %v22350_v47  ;;  %15394 = vmatprep.subr.mxu1 %v11555_v46  ;;  %v11449_v51 = vsub.f32 %v22315_v31, %v24801_v44  ;;  %v22366_v42 = vsub.f32 %v10987_v35, %v22350_v47  ;;  %v22369_v46 = vsub.f32 %v11002_v55, %v22352_v45  ;;  %v22371_v41 = vand.u32 4294901760, %v10986_v23 }
 0xa0d   :  { %v11568_v26 = vsub.f32 %v22318_v48, %v25679_v52  ;;  %25680 = vst [vmem:[#allocation68_spill] sm:$0xff] %v22362_v13  ;;  %15395 = vmatpush3.msra.mxu1 %v11443_v43  ;;  %v22373_v36 = vand.u32 4294901760, %v11001_v6  ;;  %v10985_v52 = vld [vmem:[%s24471_s13 + $0x8] sm:$0xff]  ;;  %15321 = vmatpush3.msra.mxu0 %v22350_v47  ;;  %v11456_v55 = vsub.f32 %v22339_v62, %v24810_v61  ;;  %v24813_v44 = vand.u32 4294901760, %v22362_v13  ;;  %v25694_v62 = vld [vmem:[#allocation53_spill] sm:$0xff] }
 0xa0e   :  { %25681 = vst [vmem:[#allocation50_spill] sm:$0xff] %v22366_v42  ;;  %25682 = vst [vmem:[#allocation41_spill] sm:$0xff] %v22369_v46  ;;  %15396 = vmatprep.subr.mxu1 %v11562_v63  ;;  %v11450_v35 = vand.u32 4294901760, %v11449_v51  ;;  %15322 = vmatprep.subr.mxu0 %v22352_v45  ;;  %v24818_v28 = vand.u32 4294901760, %v22366_v42  ;;  %v22390_v31 = vsub.f32 %v10986_v23, %v22371_v41  ;;  %v22402_v61 = vand.u32 4294901760, %v10985_v52 }
 0xa0f   :  { %25683 = vst [vmem:[#allocation65_spill] sm:$0xff] %v22371_v41  ;;  %25684 = vst [vmem:[#allocation17_spill] sm:$0xff] %v22373_v36  ;;  %v11569_v43 = vand.u32 4294901760, %v11568_v26  ;;  %v22393_v47 = vsub.f32 %v11001_v6, %v22373_v36  ;;  %v10984_v26 = vld [vmem:[%s24471_s13] sm:$0xff]  ;;  %15323 = vmatpush3.msra.mxu0 %v22371_v41  ;;  %v11457_v63 = vand.u32 4294901760, %v11456_v55  ;;  %v11575_v51 = vsub.f32 %v22362_v13, %v24813_v44 }
 0xa10   :  { %25685 = vst [vmem:[#allocation49_spill] sm:$0xff] %v22390_v31  ;;  %15397 = vmatpush3.msra.mxu1 %v11450_v35  ;;  %25687 = vst [vmem:[#allocation56_spill] sm:$0xff] %v22402_v61  ;;  %v22404_v48 = vand.u32 4294901760, %v11000_v8  ;;  %15324 = vmatprep.subr.mxu0 %v22373_v36  ;;  %v11463_v6 = vsub.f32 %v22366_v42, %v24818_v28  ;;  %v25689_v23 = vand.u32 4294901760, %v22369_v46  ;;  %v24822_v55 = vand.u32 4294901760, %v22390_v31 }
 0xa11   :  { %25686 = vst [vmem:[#allocation36_spill] sm:$0xff] %v22393_v47  ;;  %15398 = vmatprep.subr.mxu1 %v11569_v43  ;;  %v24821_v41 = vand.u32 4294901760, %v22393_v47  ;;  %v11576_v44 = vand.u32 4294901760, %v11575_v51  ;;  %v22416_v45 = vsub.f32 %v10985_v52, %v22402_v61  ;;  %v22421_v43 = vand.u32 4294901760, %v10984_v26  ;;  %15325 = vmatpush3.msra.mxu0 %v22402_v61 }
 0xa12   :  { %25688 = vst [vmem:[#allocation26_spill] sm:$0xff] %v22404_v48  ;;  %v11582_v35 = vsub.f32 %v22369_v46, %v25689_v23  ;;  %15399 = vmatpush3.msra.mxu1 %v11457_v63  ;;  %v22419_v36 = vsub.f32 %v11000_v8, %v22404_v48  ;;  %v11464_v28 = vand.u32 4294901760, %v11463_v6  ;;  %v11470_v23 = vsub.f32 %v22390_v31, %v24822_v55 }
 0xa13   :  { %25690 = vst [vmem:[#allocation20_spill] sm:$0xff] %v22416_v45  ;;  %25692 = vst [vmem:[#allocation70_spill] sm:$0xff] %v22421_v43  ;;  %v11589_v63 = vsub.f32 %v22393_v47, %v24821_v41  ;;  %15326 = vmatprep.subr.mxu0 %v22404_v48  ;;  %15400 = vmatprep.subr.mxu1 %v11576_v44  ;;  %v24825_v52 = vand.u32 4294901760, %v22416_v45  ;;  %v22434_v51 = vsub.f32 %v10984_v26, %v22421_v43 }
 0xa14   :  { %25691 = vst [vmem:[#allocation51_spill] sm:$0xff] %v22419_v36  ;;  %v11583_v42 = vand.u32 4294901760, %v11582_v35  ;;  %v24826_v8 = vand.u32 4294901760, %v22419_v36  ;;  %15327 = vmatpush3.msra.mxu0 %v22421_v43  ;;  %15401 = vmatpush3.msra.mxu1 %v11464_v28  ;;  %v11471_v6 = vand.u32 4294901760, %v11470_v23 }
 0xa15   :  { %25693 = vst [vmem:[#allocation55_spill] sm:$0xff] %v22434_v51  ;;  %v11590_v35 = vand.u32 4294901760, %v11589_v63  ;;  %15456 = vmatprep.subr.mxu0 %v22047_v60  ;;  %v11477_v41 = vsub.f32 %v22416_v45, %v24825_v52  ;;  %v24836_v55 = vand.u32 4294901760, %v22434_v51 }
 0xa16   :  { %15402 = vmatprep.subr.mxu1 %v11583_v42  ;;  %v11596_v44 = vsub.f32 %v22419_v36, %v24826_v8 }
 0xa17   :  { %15403 = vmatpush3.msra.mxu1 %v11471_v6  ;;  %v11478_v26 = vand.u32 4294901760, %v11477_v41  ;;  %v11484_v28 = vsub.f32 %v22434_v51, %v24836_v55 }
 0xa18   :  { %15404 = vmatprep.subr.mxu1 %v11590_v35  ;;  %v11597_v43 = vand.u32 4294901760, %v11596_v44 }
 0xa19   :  { %15405 = vmatpush3.msra.mxu1 %v11478_v26  ;;  %v11485_v42 = vand.u32 4294901760, %v11484_v28 }
 0xa1a   :  { %15406 = vmatprep.subr.mxu1 %v11597_v43 }
 0xa1b   :  { %15407 = vmatpush3.msra.mxu1 %v11485_v42 }
 0xa1c   :  { %15536 = vmatprep.subr.mxu1 %v22034_v50 }
 0xa94   :  { %v10463_v23 = vpop.f32.mrf.mxu0 }
 0xa96   :  { %v9864_v63 = vpop.f32.mrf.mxu1  ;;  %v17264_v52 = vpop.f32.mrf.mxu0 }
 0xa98   :  { %v17224_v8 = vpop.f32.mrf.mxu1  ;;  %v10611_v60 = vpop.f32.mrf.mxu0 }
 0xa9a   :  { %v9940_v36 = vpop.f32.mrf.mxu1  ;;  %v17274_v6 = vpop.f32.mrf.mxu0 }
 0xa9b   :  { %v9941_v28 = vadd.f32 %v9940_v36, %v9864_v63  ;;  %v25695_v63 = vld [vmem:[#allocation47_spill] sm:$0xff] }
 0xa9c   :  { %v17229_v35 = vpop.f32.mrf.mxu1 }
 0xa9e   :  { %v10014_v41 = vpop.f32.mrf.mxu1 }
 0xa9f   :  { %v10015_v42 = vadd.f32 %v10014_v41, %v9941_v28 }
 0xaa0   :  { %v17234_v44 = vpop.f32.mrf.mxu1 }
 0xaa2   :  { %v10088_v45 = vpop.f32.mrf.mxu1 }
 0xaa3   :  { %v10089_v50 = vadd.f32 %v10088_v45, %v10015_v42  ;;  %v25696_v45 = vld [vmem:[#allocation28_spill] sm:$0xff] }
 0xaa4   :  { %v17239_v48 = vpop.f32.mrf.mxu1 }
 0xaa6   :  { %v10162_v47 = vpop.f32.mrf.mxu1 }
 0xaa7   :  { %v10163_v31 = vadd.f32 %v10162_v47, %v10089_v50 }
 0xaa8   :  { %v17244_v55 = vpop.f32.mrf.mxu1 }
 0xaaa   :  { %v10234_v26 = vpop.f32.mrf.mxu1 }
 0xaab   :  { %v10235_v8 = vadd.f32 %v10234_v26, %v10163_v31  ;;  %v25698_v31 = vld [vmem:[#allocation66_spill] sm:$0xff]  ;;  %v25701_v26 = vld [vmem:[#allocation64_spill] sm:$0xff] }
 0xaac   :  { %v17249_v43 = vpop.f32.mrf.mxu1 }
 0xaad   :  { %v22450_v44 = vrot.slane %v10235_v8, %v25694_v62  ;;  %v25702_v43 = vld [vmem:[#allocation58_spill] sm:$0xff] }
 0xaae   :  { %v10313_v51 = vpop.f32.mrf.mxu1 }
 0xaaf   :  { %v10691_v41 = vmul.f32 %v22450_v44, %v25695_v63  ;;  %v10692_v50 = vmul.f32 %v22450_v44, %v25696_v45  ;;  %v10697_v28 = vmul.f32 %v22450_v44, %v25701_v26  ;;  %v10698_v42 = vmul.f32 %v22450_v44, %v25702_v43  ;;  %v25707_v63 = vld [vmem:[#allocation22_spill] sm:$0xff]  ;;  %v25709_v43 = vld [vmem:[#allocation31_spill] sm:$0xff] }
 0xab0   :  { %v17254_v61 = vpop.f32.mrf.mxu1  ;;  %v22489_v45 = vmul.f32 %v22450_v44, %v25707_v63 }
 0xab1   :  { %v25697_v61 = vld [vmem:[#allocation39_spill] sm:$0xff] }
 0xab2   :  { %v10389_v52 = vpop.f32.mrf.mxu1  ;;  %25708 = vst [vmem:[#allocation18_spill] sm:$0xff] %v22489_v45 }
 0xab3   :  { %v10390_v46 = vadd.f32 %v10389_v52, %v10313_v51  ;;  %v25699_v51 = vld [vmem:[#allocation61_spill] sm:$0xff]  ;;  %v25703_v52 = vld [vmem:[#allocation54_spill] sm:$0xff] }
 0xab4   :  { %v17259_v13 = vpop.f32.mrf.mxu1  ;;  %v22473_v8 = vmul.f32 %v22450_v44, %v25703_v52  ;;  %v22499_v52 = vmul.f32 %v22450_v44, %v25709_v43 }
 0xab5   :  { %v10464_v6 = vadd.f32 %v10463_v23, %v10390_v46  ;;  %v10693_v13 = vmul.f32 %v22450_v44, %v25697_v61  ;;  %v10694_v46 = vmul.f32 %v22450_v44, %v25698_v31  ;;  %v10695_v23 = vmul.f32 %v22450_v44, %v25699_v51 }
 0xab6   :  { %v10537_v35 = vpop.f32.mrf.mxu1  ;;  %25710 = vst [vmem:[#allocation30_spill] sm:$0xff] %v22499_v52 }
 0xab7   :  { %v10538_v48 = vadd.f32 %v10537_v35, %v10464_v6  ;;  %v25704_v6 = vld [vmem:[#allocation59_spill] sm:$0xff] }
 0xab8   :  { %v17269_v15 = vpop.f32.mrf.mxu1  ;;  %v22477_v35 = vmul.f32 %v22450_v44, %v25704_v6  ;;  %v25711_v6 = vld [vmem:[#allocation42_spill] sm:$0xff] }
 0xab9   :  { %v10612_v55 = vadd.f32 %v10611_v60, %v10538_v48  ;;  %v25700_v15 = vld [vmem:[#allocation62_spill] sm:$0xff]  ;;  %v25705_v48 = vld [vmem:[#allocation69_spill] sm:$0xff] }
 0xaba   :  { %v10683_v0 = vpop.f32.mrf.mxu1  ;;  %v10696_v60 = vmul.f32 %v22450_v44, %v25700_v15 }
 0xabb   :  { %v10684_v36 = vadd.f32 %v10683_v0, %v10612_v55  ;;  %v22481_v55 = vmul.f32 %v22450_v44, %v25705_v48  ;;  %v22503_v48 = vmul.f32 %v22450_v44, %v25711_v6 }
 0xabc   :  { %v17279_v47 = vpop.f32.mrf.mxu1 }
 0xabd   :  { %v22465_v0 = vrot.slane %v10684_v36, %v25694_v62  ;;  %v25706_v62 = vld [vmem:[#allocation15_spill] sm:$0xff]  ;;  %25712 = vst [vmem:[#allocation44_spill] sm:$0xff] %v22503_v48 }
 0xabe   :  { %v22485_v36 = vmul.f32 %v22450_v44, %v25706_v62 }
 0xabf   :  { %v10711_v47 = vadd.f32 %v22465_v0, %v10691_v41  ;;  %v10712_v61 = vadd.f32 %v22465_v0, %v10692_v50  ;;  %v10713_v31 = vadd.f32 %v22465_v0, %v10693_v13  ;;  %v10714_v51 = vadd.f32 %v22465_v0, %v10694_v46 }
 0xac0   :  { %v10715_v15 = vadd.f32 %v22465_v0, %v10695_v23  ;;  %v10716_v26 = vadd.f32 %v22465_v0, %v10696_v60  ;;  %v22506_v60 = vadd.f32 %v22465_v0, %v10697_v28  ;;  %v22509_v63 = vadd.f32 %v22465_v0, %v10698_v42 }
 0xac1   :  { %vm10727_vm15 = vcmp.ge.f32.partialorder %v10711_v47, 0.0  ;;  %vm10728_vm1 = vcmp.ge.f32.partialorder %v10712_v61, 0.0  ;;  %v10743_v41 = vmul.f32 0.2, %v10711_v47  ;;  %v10744_v50 = vmul.f32 0.2, %v10712_v61 }
 0xac2   :  { %vm10729_vm11 = vcmp.ge.f32.partialorder %v10713_v31, 0.0  ;;  %vm10730_vm12 = vcmp.ge.f32.partialorder %v10714_v51, 0.0  ;;  %v10745_v13 = vmul.f32 0.2, %v10713_v31  ;;  %v10746_v46 = vmul.f32 0.2, %v10714_v51 }
 0xac3   :  { %v10759_v62 = vsel %vm10727_vm15, %v10711_v47, %v10743_v41  ;;  %v10760_v23 = vsel %vm10728_vm1, %v10712_v61, %v10744_v50  ;;  %vm10731_vm9 = vcmp.ge.f32.partialorder %v10715_v15, 0.0  ;;  %vm10732_vm14 = vcmp.ge.f32.partialorder %v10716_v26, 0.0  ;;  %vm25735_vm15 = vmmov %vm25725_vm0 }
 0xac4   :  { %v10791_v43 = vrot.slane %v10759_v62, 7  ;;  %v10792_v24 = vrot.slane %v10760_v23, 7  ;;  %v10761_v6 = vsel %vm10729_vm11, %v10713_v31, %v10745_v13  ;;  %v10762_v48 = vsel %vm10730_vm12, %v10714_v51, %v10746_v46  ;;  %vm25739_vm1 = vmmov %vm25713_vm2 }
 0xac5   :  { %v10794_v34 = vrot.slane %v10761_v6, 7  ;;  %v10795_v29 = vrot.slane %v10762_v48, 7  ;;  %v10747_v61 = vmul.f32 0.2, %v10715_v15  ;;  %vm10733_vm3 = vcmp.ge.f32.partialorder %v22506_v60, 0.0  ;;  %vm25741_vm11 = vmmov %vm25739_vm1 }
 0xac6   :  { %v22512_v16 = vsel %vm25713_vm2, %v10791_v43, %v10792_v24  ;;  %v22515_v47 = vsel %vm25715_vm13, 0.0, %v10791_v43  ;;  %v22518_v28 = vsel %vm25717_vm10, %v10792_v24, 0.0  ;;  %v10748_v24 = vmul.f32 0.2, %v10716_v26  ;;  %vm25744_vm12 = vmmov %vm25725_vm0 }
 0xac7   :  { %25714 = vst [vmem:[#allocation53_spill] sm:$0xff] %v22512_v16  ;;  %25716 = vst [vmem:[#allocation47_spill] sm:$0xff] %v22515_v47  ;;  %v10872_v42 = vrot.slane %v22515_v47, 1  ;;  %v10873_v41 = vrot.slane %v22512_v16, 1  ;;  %v22523_v31 = vand.u32 4294901760, %v22515_v47  ;;  %v10875_v51 = vrot.slane %v22518_v28, 1 }
 0xac8   :  { %25718 = vst [vmem:[#allocation28_spill] sm:$0xff] %v22518_v28  ;;  %v22527_v48 = vand.u32 4294901760, %v22512_v16  ;;  %v22530_v50 = vsel %vm25721_vm7, %v10794_v34, %v10795_v29  ;;  %v22533_v13 = vsel %vm25723_vm4, 0.0, %v10794_v34  ;;  %v10763_v18 = vsel %vm10731_vm9, %v10715_v15, %v10747_v61  ;;  %vm25745_vm9 = vmmov %vm25739_vm1 }
 0xac9   :  { %25719 = vst [vmem:[#allocation39_spill] sm:$0xff] %v22523_v31  ;;  %25722 = vst [vmem:[#allocation61_spill] sm:$0xff] %v22530_v50  ;;  %v10874_v46 = vsel %vm25725_vm0, %v10872_v42, %v10873_v41  ;;  %v10876_v62 = vsel %vm25726_vm5, %v10873_v41, %v10875_v51  ;;  %v10877_v23 = vrot.slane %v22533_v13, 1  ;;  %v10878_v43 = vrot.slane %v22530_v50, 1 }
 0xaca   :  { %25720 = vst [vmem:[#allocation66_spill] sm:$0xff] %v22527_v48  ;;  %25724 = vst [vmem:[#allocation62_spill] sm:$0xff] %v22533_v13  ;;  %v22539_v6 = vand.u32 4294901760, %v10874_v46  ;;  %v22541_v28 = vand.u32 4294901760, %v10876_v62  ;;  %v22545_v32 = vsub.f32 %v22515_v47, %v22523_v31  ;;  %v22548_v34 = vand.u32 4294901760, %v22533_v13 }
 0xacb   :  { %v10879_v52 = vsel %vm25730_vm6, %v10877_v23, %v10878_v43  ;;  %v22552_v42 = vsel %vm25731_vm8, %v10795_v29, 0.0  ;;  %v22556_v41 = vsub.f32 %v22512_v16, %v22527_v48  ;;  %v22559_v51 = vand.u32 4294901760, %v22530_v50  ;;  %vm25749_vm2 = vmmov %vm25725_vm0 }
 0xacc   :  { %25727 = vst [vmem:[#allocation64_spill] sm:$0xff] %v22539_v6  ;;  %25728 = vst [vmem:[#allocation58_spill] sm:$0xff] %v22541_v28  ;;  %11600 = vmatprep.mubr.f32.mxu1 %v22539_v6  ;;  %v22562_v45 = vand.u32 4294901760, %v10879_v52  ;;  %v22565_v47 = vsub.f32 %v10874_v46, %v22539_v6  ;;  %v24876_v11 = vand.u32 4294901760, %v22545_v32  ;;  %v22569_v23 = vsub.f32 %v10876_v62, %v22541_v28 }
 0xacd   :  { %25729 = vst [vmem:[#allocation54_spill] sm:$0xff] %v22548_v34  ;;  %25732 = vst [vmem:[#allocation59_spill] sm:$0xff] %v22552_v42  ;;  %11602 = vmatmul.mubr.f32.vlgmr.msra.gmra.mxu1 %v22523_v31  ;;  %v10880_v29 = vrot.slane %v22552_v42, 1  ;;  %v10764_v9 = vsel %vm10732_vm14, %v10716_v26, %v10748_v24  ;;  %v25736_v26 = vand.u32 4294901760, %v22556_v41  ;;  %v10797_v24 = vrot.slane %v10763_v18, 7 }
 0xace   :  { %25733 = vst [vmem:[#allocation69_spill] sm:$0xff] %v22559_v51  ;;  %25734 = vst [vmem:[#allocation15_spill] sm:$0xff] %v22562_v45  ;;  %11607 = vmatprep.mubr.f32.mxu1 %v22541_v28  ;;  %v24881_v46 = vand.u32 4294901760, %v22565_v47  ;;  %v11143_v62 = vsub.f32 %v22545_v32, %v24876_v11  ;;  %15537 = vmatpush3.msra.mxu1 %v22042_v40  ;;  %v22585_v16 = vsub.f32 %v10879_v52, %v22562_v45 }
 0xacf   :  { %v10881_v15 = vsel %vm25735_vm15, %v10878_v43, %v10880_v29  ;;  %v11158_v61 = vsub.f32 %v22556_v41, %v25736_v26  ;;  %v10798_v42 = vrot.slane %v10764_v9, 7  ;;  %15538 = vmatprep.subr.mxu1 %v22044_v38  ;;  %v25737_v28 = vand.u32 4294901760, %v22569_v23  ;;  %vm25753_vm13 = vmmov %vm25739_vm1 }
 0xad0   :  { %v11137_v11 = vsub.f32 %v22565_v47, %v24881_v46  ;;  %v11144_v31 = vand.u32 4294901760, %v11143_v62  ;;  %v22598_v6 = vand.u32 4294901760, %v10881_v15  ;;  %15539 = vmatpush3.msra.mxu1 %v22062_v22  ;;  %v24886_v18 = vand.u32 4294901760, %v22585_v16  ;;  %vm25755_vm10 = vmmov %vm25739_vm1 }
 0xad1   :  { %v11152_v52 = vsub.f32 %v22569_v23, %v25737_v28  ;;  %11609 = vmatmul.mubr.f32.gmra.mxu1 %v22527_v48  ;;  %v11159_v43 = vand.u32 4294901760, %v11158_v61  ;;  %v22604_v9 = vsel %vm25739_vm1, %v10797_v24, %v10798_v42  ;;  %v22607_v29 = vsel %vm25741_vm11, 0.0, %v10797_v24  ;;  %15540 = vmatprep.subr.mxu1 %v22064_v21  ;;  %vm25758_vm7 = vmmov %vm25739_vm1 }
 0xad2   :  { %25738 = vst [vmem:[#allocation22_spill] sm:$0xff] %v22598_v6  ;;  %25740 = vst [vmem:[#allocation31_spill] sm:$0xff] %v22604_v9  ;;  %11614 = vmatprep.mubr.f32.mxu1 %v22562_v45  ;;  %v11138_v28 = vand.u32 4294901760, %v11137_v11  ;;  %v10882_v26 = vrot.slane %v22607_v29, 1  ;;  %v10883_v46 = vrot.slane %v22604_v9, 1  ;;  %15541 = vmatpush3.msra.mxu1 %v22087_v59  ;;  %v11167_v61 = vsub.f32 %v22585_v16, %v24886_v18 }
 0xad3   :  { %25742 = vst [vmem:[#allocation42_spill] sm:$0xff] %v22607_v29  ;;  %v11153_v62 = vand.u32 4294901760, %v11152_v52  ;;  %v22619_v24 = vsub.f32 %v22533_v13, %v22548_v34  ;;  %v22622_v48 = vand.u32 4294901760, %v22607_v29  ;;  %v22625_v11 = vsub.f32 %v10881_v15, %v22598_v6  ;;  %15542 = vmatprep.subr.mxu1 %v22089_v37  ;;  %vm25762_vm6 = vmmov %vm25725_vm0 }
 0xad4   :  { %11139 = vmatprep.mubr.f32.mxu0 %v11138_v28  ;;  %v10884_v52 = vsel %vm25744_vm12, %v10882_v26, %v10883_v46  ;;  %v22630_v45 = vsel %vm25745_vm9, %v10798_v42, 0.0  ;;  %v22634_v18 = vsub.f32 %v22530_v50, %v22559_v51  ;;  %v22637_v13 = vand.u32 4294901760, %v22604_v9  ;;  %15543 = vmatpush3.msra.mxu1 %v22112_v10  ;;  %vm25765_vm8 = vmmov %vm25739_vm1 }
 0xad5   :  { %25743 = vst [vmem:[#allocation75_spill] sm:$0xff] %v22622_v48  ;;  %25746 = vst [vmem:[#allocation76_spill] sm:$0xff] %v22630_v45  ;;  %11145 = vmatmul.mubr.f32.vlgmr.msra.gmra.mxu0 %v11144_v31  ;;  %11616 = vmatmul.mubr.f32.gmra.mxu1 %v22548_v34  ;;  %v11168_v15 = vand.u32 4294901760, %v11167_v61  ;;  %v22641_v37 = vand.u32 4294901760, %v10884_v52  ;;  %v24896_v28 = vand.u32 4294901760, %v22619_v24  ;;  %v24897_v42 = vand.u32 4294901760, %v22625_v11 }
 0xad6   :  { %25747 = vst [vmem:[#allocation77_spill] sm:$0xff] %v22637_v13  ;;  %15457 = vmatpush3.msra.mxu0 %v22057_v19  ;;  %11154 = vmatprep.mubr.f32.mxu0 %v11153_v62  ;;  %v10885_v26 = vrot.slane %v22630_v45, 1  ;;  %vm10734_vm14 = vcmp.ge.f32.partialorder %v22509_v63, 0.0  ;;  %v10749_v31 = vmul.f32 0.2, %v22506_v60  ;;  %vm25769_vm15 = vmmov %vm25739_vm1 }
 0xad7   :  { %25748 = vst [vmem:[#allocation78_spill] sm:$0xff] %v22641_v37  ;;  %11621 = vmatprep.mubr.f32.mxu1 %v22598_v6  ;;  %15458 = vmatprep.subr.mxu0 %v22060_v4  ;;  %v11173_v61 = vsub.f32 %v22619_v24, %v24896_v28  ;;  %v11182_v62 = vsub.f32 %v22625_v11, %v24897_v42  ;;  %v10750_v50 = vmul.f32 0.2, %v22509_v63  ;;  %v25750_v6 = vand.u32 4294901760, %v22634_v18  ;;  %vm25776_vm12 = vmmov %vm25725_vm0 }
 0xad8   :  { %v22659_v45 = vsub.f32 %v10884_v52, %v22641_v37  ;;  %15459 = vmatpush3.msra.mxu0 %v22072_v12  ;;  %v10886_v34 = vsel %vm25749_vm2, %v10883_v46, %v10885_v26  ;;  %v10765_v28 = vsel %vm10733_vm3, %v22506_v60, %v10749_v31  ;;  %v22672_v42 = vsub.f32 %v22607_v29, %v22622_v48  ;;  %v25752_v26 = vld [vmem:[#allocation14_spill] sm:$0xff]  ;;  %vm25767_vm3 = vmmov %vm25739_vm1 }
 0xad9   :  { %v11188_v10 = vsub.f32 %v22634_v18, %v25750_v6  ;;  %11160 = vmatmul.mubr.f32.gmra.mxu0 %v11159_v43  ;;  %11623 = vmatmul.mubr.f32.gmra.mxu1 %v22559_v51  ;;  %v11174_v52 = vand.u32 4294901760, %v11173_v61  ;;  %v22675_v59 = vand.u32 4294901760, %v10886_v34  ;;  %v22680_v12 = vmul.f32 %v22450_v44, %v25752_v26  ;;  %vm25773_vm1 = vmmov %vm25725_vm0 }
 0xada   :  { %v24901_v46 = vand.u32 4294901760, %v22659_v45  ;;  %11169 = vmatprep.mubr.f32.mxu0 %v11168_v15  ;;  %11628 = vmatprep.mubr.f32.mxu1 %v22641_v37  ;;  %v11183_v60 = vand.u32 4294901760, %v11182_v62  ;;  %v10766_v6 = vsel %vm10734_vm14, %v22509_v63, %v10750_v50  ;;  %v10800_v43 = vrot.slane %v10765_v28, 7  ;;  %vm25787_vm14 = vmmov %vm25767_vm3 }
 0xadb   :  { %25751 = vst [vmem:[#allocation79_spill] sm:$0xff] %v22675_v59  ;;  %v24902_v31 = vand.u32 4294901760, %v22672_v42  ;;  %15460 = vmatprep.subr.mxu0 %v22075_v39  ;;  %v10801_v29 = vrot.slane %v10766_v6, 7  ;;  %v22692_v44 = vsub.f32 %v10886_v34, %v22675_v59  ;;  %15544 = vmatprep.subr.mxu1 %v22133_v58  ;;  %v22697_v15 = vsub.f32 %v22604_v9, %v22637_v13  ;;  %vm25788_vm2 = vmmov %vm25767_vm3 }
 0xadc   :  { %v11197_v61 = vsub.f32 %v22659_v45, %v24901_v46  ;;  %15461 = vmatpush3.msra.mxu0 %v22107_v27  ;;  %v11189_v63 = vand.u32 4294901760, %v11188_v10  ;;  %v22701_v50 = vsel %vm25753_vm13, 0.0, %v10800_v43  ;;  %15545 = vmatpush3.msra.mxu1 %v22142_v3  ;;  %v10719_v28 = vadd.f32 %v22465_v0, %v22473_v8  ;;  %vm25793_vm13 = vmmov %vm25788_vm2 }
 0xadd   :  { %25754 = vst [vmem:[#allocation14_spill] sm:$0xff] %v22701_v50  ;;  %v10720_v34 = vadd.f32 %v22465_v0, %v22477_v35  ;;  %11175 = vmatmul.mubr.f32.gmra.mxu0 %v11174_v52  ;;  %11630 = vmatmul.mubr.f32.gmra.mxu1 %v22622_v48  ;;  %v22710_v26 = vsel %vm25755_vm10, %v10800_v43, %v10801_v29  ;;  %v10887_v10 = vrot.slane %v22701_v50, 1  ;;  %v22719_v35 = vand.u32 4294901760, %v22701_v50  ;;  %vm25797_vm10 = vmmov %vm25725_vm0 }
 0xade   :  { %v11198_v62 = vand.u32 4294901760, %v11197_v61  ;;  %25756 = vst [vmem:[#allocation80_spill] sm:$0xff] %v22710_v26  ;;  %v11203_v6 = vsub.f32 %v22672_v42, %v24902_v31  ;;  %11184 = vmatprep.mubr.f32.mxu0 %v11183_v60  ;;  %11635 = vmatprep.mubr.f32.mxu1 %v22675_v59  ;;  %v10888_v8 = vrot.slane %v22710_v26, 1  ;;  %v24909_v52 = vand.u32 4294901760, %v22692_v44 }
 0xadf   :  { %25757 = vst [vmem:[#allocation81_spill] sm:$0xff] %v22719_v35  ;;  %v22723_v61 = vsel %vm25758_vm7, %v10801_v29, 0.0  ;;  %15462 = vmatprep.subr.mxu0 %v22110_v25  ;;  %v22729_v60 = vand.u32 4294901760, %v22710_v26  ;;  %vm10735_vm4 = vcmp.ge.f32.partialorder %v10719_v28, 0.0  ;;  %15546 = vmatprep.subr.mxu1 %v22144_v57  ;;  %vm10736_vm5 = vcmp.ge.f32.partialorder %v10720_v34, 0.0 }
 0xae0   :  { %25759 = vst [vmem:[#allocation82_spill] sm:$0xff] %v22723_v61  ;;  %v10890_v43 = vrot.slane %v22723_v61, 1  ;;  %15463 = vmatpush3.msra.mxu0 %v22131_v53  ;;  %v10889_v31 = vsel %vm25725_vm0, %v10887_v10, %v10888_v8  ;;  %v11212_v29 = vsub.f32 %v22692_v44, %v24909_v52  ;;  %v10751_v9 = vmul.f32 0.2, %v10719_v28  ;;  %15547 = vmatpush3.msra.mxu1 %v22163_v49 }
 0xae1   :  { %25760 = vst [vmem:[#allocation83_spill] sm:$0xff] %v22729_v60  ;;  %11190 = vmatmul.mubr.f32.gmra.mxu0 %v11189_v63  ;;  %11637 = vmatmul.mubr.f32.gmra.mxu1 %v22637_v13  ;;  %v22739_v46 = vand.u32 4294901760, %v10889_v31  ;;  %v25763_v59 = vand.u32 4294901760, %v22697_v15  ;;  %v10752_v10 = vmul.f32 0.2, %v10720_v34  ;;  %v11204_v52 = vand.u32 4294901760, %v11203_v6 }
 0xae2   :  { %v10891_v61 = vsel %vm25762_vm6, %v10888_v8, %v10890_v43  ;;  %11199 = vmatprep.mubr.f32.mxu0 %v11198_v62  ;;  %15464 = vmatprep.subr.mxu0 %v22154_v1  ;;  %v10767_v51 = vsel %vm10735_vm4, %v10719_v28, %v10751_v9  ;;  %v22751_v63 = vsub.f32 %v22701_v50, %v22719_v35  ;;  %v11213_v8 = vand.u32 4294901760, %v11212_v29 }
 0xae3   :  { %25761 = vst [vmem:[#allocation84_spill] sm:$0xff] %v22739_v46  ;;  %v11218_v48 = vsub.f32 %v22697_v15, %v25763_v59  ;;  %v22746_v37 = vand.u32 4294901760, %v10891_v61  ;;  %11642 = vmatprep.mubr.f32.mxu1 %v22739_v46  ;;  %15465 = vmatpush3.msra.mxu0 %v22158_v20  ;;  %v22756_v59 = vsub.f32 %v10889_v31, %v22739_v46  ;;  %v10803_v43 = vrot.slane %v10767_v51, 7 }
 0xae4   :  { %v10768_v62 = vsel %vm10736_vm5, %v10720_v34, %v10752_v10  ;;  %15466 = vmatprep.subr.mxu0 %v22161_v56  ;;  %v24915_v9 = vand.u32 4294901760, %v22751_v63  ;;  %15548 = vmatprep.subr.mxu1 %v22165_v7  ;;  %v22767_v50 = vsub.f32 %v22710_v26, %v22729_v60  ;;  %v10721_v29 = vadd.f32 %v22465_v0, %v22481_v55 }
 0xae5   :  { %25764 = vst [vmem:[#allocation85_spill] sm:$0xff] %v22746_v37  ;;  %v10804_v6 = vrot.slane %v10768_v62, 7  ;;  %v22762_v28 = vsub.f32 %v10891_v61, %v22746_v37  ;;  %11205 = vmatmul.mubr.f32.gmra.mxu0 %v11204_v52  ;;  %11644 = vmatmul.mubr.f32.gmra.mxu1 %v22719_v35  ;;  %v11219_v31 = vand.u32 4294901760, %v11218_v48  ;;  %v24917_v51 = vand.u32 4294901760, %v22756_v59 }
 0xae6   :  { %v22772_v34 = vsel %vm25765_vm8, 0.0, %v10803_v43  ;;  %11214 = vmatprep.mubr.f32.mxu0 %v11213_v8  ;;  %11649 = vmatprep.mubr.f32.mxu1 %v22746_v37  ;;  %v11233_v48 = vsub.f32 %v22751_v63, %v24915_v9  ;;  %v10722_v52 = vadd.f32 %v22465_v0, %v22485_v36  ;;  %vm10737_vm11 = vcmp.ge.f32.partialorder %v10721_v29, 0.0  ;;  %vm25813_vm8 = vmmov %vm25788_vm2 }
 0xae7   :  { %25766 = vst [vmem:[#allocation86_spill] sm:$0xff] %v22772_v34  ;;  %v22778_v61 = vsel %vm25767_vm3, %v10803_v43, %v10804_v6  ;;  %v10892_v10 = vrot.slane %v22772_v34, 1  ;;  %15467 = vmatpush3.msra.mxu0 %v22176_v14  ;;  %v11227_v55 = vsub.f32 %v22756_v59, %v24917_v51  ;;  %v22793_v43 = vsel %vm25769_vm15, %v10804_v6, 0.0  ;;  %15549 = vmatpush3.msra.mxu1 %v22194_v5  ;;  %vm25814_vm3 = vmmov %vm25788_vm2 }
 0xae8   :  { %25768 = vst [vmem:[#allocation87_spill] sm:$0xff] %v22778_v61  ;;  %v10893_v8 = vrot.slane %v22778_v61, 1  ;;  %25770 = vst [vmem:[#allocation88_spill] sm:$0xff] %v22793_v43  ;;  %15468 = vmatprep.subr.mxu0 %v22179_v54  ;;  %v22798_v9 = vand.u32 4294901760, %v22772_v34  ;;  %v10895_v36 = vrot.slane %v22793_v43, 1  ;;  %v22803_v51 = vand.u32 4294901760, %v22778_v61  ;;  %15550 = vmatprep.subr.mxu1 %v22196_v2 }
 0xae9   :  { %11220 = vmatmul.mubr.f32.gmra.mxu0 %v11219_v31  ;;  %11651 = vmatmul.mubr.f32.gmra.mxu1 %v22729_v60  ;;  %v11228_v6 = vand.u32 4294901760, %v11227_v55  ;;  %v25774_v37 = vand.u32 4294901760, %v22762_v28  ;;  %v25777_v43 = vand.u32 4294901760, %v22767_v50  ;;  %vm10738_vm9 = vcmp.ge.f32.partialorder %v10722_v52, 0.0  ;;  %vm25819_vm15 = vmmov %vm25788_vm2 }
 0xaea   :  { %25771 = vst [vmem:[#allocation89_spill] sm:$0xff] %v22798_v9  ;;  %25772 = vst [vmem:[#allocation90_spill] sm:$0xff] %v22803_v51  ;;  %v10894_v62 = vsel %vm25773_vm1, %v10892_v10, %v10893_v8  ;;  %15469 = vmatpush3.msra.mxu0 %v22211_v30  ;;  %v10896_v26 = vsel %vm25776_vm12, %v10893_v8, %v10895_v36  ;;  %15551 = vmatpush3.msra.mxu1 %v22216_v33  ;;  %v11234_v10 = vand.u32 4294901760, %v11233_v48  ;;  %v25779_v30 = vld [vmem:[#allocation13_spill] sm:$0xff] }
 0xaeb   :  { %v11242_v35 = vsub.f32 %v22762_v28, %v25774_v37  ;;  %v22811_v46 = vand.u32 4294901760, %v10894_v62  ;;  %v11248_v31 = vsub.f32 %v22767_v50, %v25777_v43  ;;  %11229 = vmatprep.mubr.f32.mxu0 %v11228_v6  ;;  %v22819_v55 = vand.u32 4294901760, %v10896_v26  ;;  %15470 = vmatprep.subr.mxu0 %v22214_v17  ;;  %v25796_v17 = vld [vmem:[#allocation24_spill] sm:$0xff]  ;;  %vm25824_vm1 = vmmov %vm25725_vm0 }
 0xaec   :  { %v10753_v37 = vmul.f32 0.2, %v10721_v29  ;;  %v10754_v60 = vmul.f32 0.2, %v10722_v52  ;;  %15471 = vmatpush3.msra.mxu0 %v25779_v30  ;;  %v22829_v43 = vsub.f32 %v22772_v34, %v22798_v9  ;;  %v22833_v48 = vsub.f32 %v22778_v61, %v22803_v51  ;;  %vm25836_vm12 = vmmov %vm25788_vm2 }
 0xaed   :  { %25775 = vst [vmem:[#allocation91_spill] sm:$0xff] %v22811_v46  ;;  %25778 = vst [vmem:[#allocation92_spill] sm:$0xff] %v22819_v55  ;;  %11656 = vmatprep.mubr.f32.mxu1 %v22811_v46  ;;  %v11243_v13 = vand.u32 4294901760, %v11242_v35  ;;  %v22825_v8 = vsub.f32 %v10894_v62, %v22811_v46  ;;  %11235 = vmatmul.mubr.f32.gmra.mxu0 %v11234_v10  ;;  %v11249_v36 = vand.u32 4294901760, %v11248_v31  ;;  %v25783_v10 = vld [vmem:[#allocation35_spill] sm:$0xff]  ;;  %v25789_v31 = vld [vmem:[#allocation38_spill] sm:$0xff] }
 0xaee   :  { %25780 = vst [vmem:[#allocation93_spill] sm:$0xff] %v22829_v43  ;;  %25781 = vst [vmem:[#allocation94_spill] sm:$0xff] %v22833_v48  ;;  %11658 = vmatmul.mubr.f32.gmra.mxu1 %v22798_v9  ;;  %v10769_v6 = vsel %vm10737_vm11, %v10721_v29, %v10753_v37  ;;  %v10770_v35 = vsel %vm10738_vm9, %v10722_v52, %v10754_v60  ;;  %v22839_v30 = vsub.f32 %v10896_v26, %v22819_v55  ;;  %v25784_v9 = vld [vmem:[#allocation11_spill] sm:$0xff]  ;;  %v25785_v29 = vld [vmem:[#allocation18_spill] sm:$0xff] }
 0xaef   :  { %11244 = vmatprep.mubr.f32.mxu0 %v11243_v13  ;;  %11663 = vmatprep.mubr.f32.mxu1 %v22819_v55  ;;  %v24936_v62 = vand.u32 4294901760, %v22825_v8  ;;  %v10806_v34 = vrot.slane %v10769_v6, 7  ;;  %v10807_v46 = vrot.slane %v10770_v35, 7  ;;  %v24939_v61 = vand.u32 4294901760, %v22829_v43  ;;  %v25786_v13 = vld [vmem:[#allocation30_spill] sm:$0xff]  ;;  %vm25830_vm11 = vmmov %vm25725_vm0 }
 0xaf0   :  { %25782 = vst [vmem:[#allocation95_spill] sm:$0xff] %v22839_v30  ;;  %15472 = vmatprep.subr.mxu0 %v25783_v10  ;;  %15552 = vmatprep.subr.mxu1 %v25784_v9  ;;  %v10723_v26 = vadd.f32 %v22465_v0, %v25785_v29  ;;  %v10724_v52 = vadd.f32 %v22465_v0, %v25786_v13  ;;  %v25790_v29 = vld [vmem:[#allocation34_spill] sm:$0xff]  ;;  %vm25840_vm9 = vmmov %vm25788_vm2 }
 0xaf1   :  { %v11257_v37 = vsub.f32 %v22825_v8, %v24936_v62  ;;  %v22856_v6 = vsel %vm25787_vm14, %v10806_v34, %v10807_v46  ;;  %v22859_v35 = vsel %vm25788_vm2, 0.0, %v10806_v34  ;;  %v11263_v60 = vsub.f32 %v22829_v43, %v24939_v61  ;;  %15473 = vmatpush3.msra.mxu0 %v25789_v31  ;;  %15553 = vmatpush3.msra.mxu1 %v25790_v29  ;;  %v25794_v29 = vld [vmem:[#allocation33_spill] sm:$0xff]  ;;  %vm25844_vm14 = vmmov %vm25788_vm2 }
 0xaf2   :  { %11250 = vmatmul.mubr.f32.gmra.mxu0 %v11249_v36  ;;  %11665 = vmatmul.mubr.f32.gmra.mxu1 %v22803_v51  ;;  %v10897_v13 = vrot.slane %v22859_v35, 1  ;;  %v10898_v62 = vrot.slane %v22856_v6, 1  ;;  %v22870_v55 = vand.u32 4294901760, %v22859_v35  ;;  %v25792_v34 = vand.u32 4294901760, %v22839_v30  ;;  %vm25850_vm2 = vmmov %vm25725_vm0 }
 0xaf3   :  { %v11258_v9 = vand.u32 4294901760, %v11257_v37  ;;  %v11264_v61 = vand.u32 4294901760, %v11263_v60  ;;  %v22876_v31 = vsel %vm25793_vm13, %v10807_v46, 0.0  ;;  %15474 = vmatprep.subr.mxu0 %v25794_v29  ;;  %v25795_v36 = vand.u32 4294901760, %v22833_v48  ;;  %15554 = vmatprep.subr.mxu1 %v25796_v17  ;;  %v25799_v60 = vld [vmem:[#allocation46_spill] sm:$0xff]  ;;  %v25800_v46 = vld [vmem:[#allocation29_spill] sm:$0xff]  ;;  %vm25854_vm13 = vmmov %vm25725_vm0 }
 0xaf4   :  { %25791 = vst [vmem:[#allocation18_spill] sm:$0xff] %v22870_v55  ;;  %v11272_v10 = vsub.f32 %v22839_v30, %v25792_v34  ;;  %v10899_v43 = vsel %vm25797_vm10, %v10897_v13, %v10898_v62  ;;  %v10900_v2 = vrot.slane %v22876_v31, 1  ;;  %v22886_v34 = vand.u32 4294901760, %v22856_v6  ;;  %15475 = vmatpush3.msra.mxu0 %v25799_v60  ;;  %15555 = vmatpush3.msra.mxu1 %v25800_v46  ;;  %v25804_v60 = vld [vmem:[#allocation67_spill] sm:$0xff]  ;;  %v25809_v46 = vld [vmem:[#allocation45_spill] sm:$0xff] }
 0xaf5   :  { %v11278_v51 = vsub.f32 %v22833_v48, %v25795_v36  ;;  %11259 = vmatprep.mubr.f32.mxu0 %v11258_v9  ;;  %v22890_v37 = vand.u32 4294901760, %v10899_v43  ;;  %vm10739_vm7 = vcmp.ge.f32.partialorder %v10723_v26, 0.0  ;;  %vm10740_vm4 = vcmp.ge.f32.partialorder %v10724_v52, 0.0  ;;  %v25802_v36 = vld [vmem:[#allocation27_spill] sm:$0xff]  ;;  %15556 = vmatprep.subr.mxu1 %v25804_v60 }
 0xaf6   :  { %v11273_v33 = vand.u32 4294901760, %v11272_v10  ;;  %25798 = vst [vmem:[#allocation30_spill] sm:$0xff] %v22886_v34  ;;  %15476 = vmatprep.subr.mxu0 %v25802_v36  ;;  %11265 = vmatmul.mubr.f32.gmra.mxu0 %v11264_v61  ;;  %v10901_v10 = vsel %vm25725_vm0, %v10898_v62, %v10900_v2  ;;  %v10755_v13 = vmul.f32 0.2, %v10723_v26  ;;  %v10756_v17 = vmul.f32 0.2, %v10724_v52 }
 0xaf7   :  { %25801 = vst [vmem:[#allocation96_spill] sm:$0xff] %v22890_v37  ;;  %v11279_v29 = vand.u32 4294901760, %v11278_v51  ;;  %v22896_v48 = vsub.f32 %v22859_v35, %v22870_v55  ;;  %11670 = vmatprep.mubr.f32.mxu1 %v22890_v37  ;;  %v22900_v9 = vand.u32 4294901760, %v10901_v10  ;;  %v22903_v51 = vsub.f32 %v10899_v43, %v22890_v37  ;;  %v25808_v2 = vld [vmem:[#allocation44_spill] sm:$0xff]  ;;  %15477 = vmatpush3.msra.mxu0 %v25809_v46 }
 0xaf8   :  { %11274 = vmatprep.mubr.f32.mxu0 %v11273_v33  ;;  %v22907_v61 = vsub.f32 %v22856_v6, %v22886_v34  ;;  %v10725_v62 = vadd.f32 %v22465_v0, %v25808_v2  ;;  %11672 = vmatmul.mubr.f32.gmra.mxu1 %v22870_v55  ;;  %v10771_v36 = vsel %vm10739_vm7, %v10723_v26, %v10755_v13  ;;  %v25811_v55 = vld [vmem:[#allocation25_spill] sm:$0xff]  ;;  %vm25896_vm10 = vcmask 1045504  }
 0xaf9   :  { %25803 = vst [vmem:[#allocation97_spill] sm:$0xff] %v22896_v48  ;;  %25805 = vst [vmem:[#allocation98_spill] sm:$0xff] %v22900_v9  ;;  %v10772_v60 = vsel %vm10740_vm4, %v10724_v52, %v10756_v17  ;;  %v24956_v33 = vand.u32 4294901760, %v22896_v48  ;;  %v10726_v43 = vadd.f32 %v22465_v0, %v22680_v12  ;;  %11677 = vmatprep.mubr.f32.mxu1 %v22900_v9  ;;  %v24957_v37 = vand.u32 4294901760, %v22903_v51  ;;  %v25812_v26 = vld [vmem:[#allocation37_spill] sm:$0xff] }
 0xafa   :  { %25806 = vst [vmem:[#allocation99_spill] sm:$0xff] %v22903_v51  ;;  %25807 = vst [vmem:[#allocation100_spill] sm:$0xff] %v22907_v61  ;;  %v10809_v30 = vrot.slane %v10771_v36, 7  ;;  %v10810_v54 = vrot.slane %v10772_v60, 7  ;;  %v22921_v2 = vsub.f32 %v10901_v10, %v22900_v9  ;;  %15557 = vmatpush3.msra.mxu1 %v25811_v55  ;;  %11280 = vmatmul.mubr.f32.gmra.mxu0 %v11279_v29  ;;  %vm10741_vm5 = vcmp.ge.f32.partialorder %v10725_v62, 0.0  ;;  %v25815_v36 = vld [vmem:[#allocation57_spill] sm:$0xff] }
 0xafb   :  { %v11293_v17 = vsub.f32 %v22896_v48, %v24956_v33  ;;  %15478 = vmatprep.subr.mxu0 %v25812_v26  ;;  %vm10742_vm6 = vcmp.ge.f32.partialorder %v10726_v43, 0.0  ;;  %v11287_v0 = vsub.f32 %v22903_v51, %v24957_v37  ;;  %v25816_v10 = vld [vmem:[#allocation63_spill] sm:$0xff]  ;;  %v25818_v9 = vld [vmem:[#allocation68_spill] sm:$0xff]  ;;  %v10757_v48 = vmul.f32 0.2, %v10725_v62  ;;  %vm25900_vm7 = vmmov %vm25896_vm10 }
 0xafc   :  { %25810 = vst [vmem:[#allocation44_spill] sm:$0xff] %v22921_v2  ;;  %v22933_v52 = vsel %vm25813_vm8, %v10809_v30, %v10810_v54  ;;  %v22936_v60 = vsel %vm25814_vm3, 0.0, %v10809_v30  ;;  %v24964_v29 = vand.u32 4294901760, %v22921_v2  ;;  %15479 = vmatpush3.msra.mxu0 %v25815_v36  ;;  %15558 = vmatprep.subr.mxu1 %v25816_v10  ;;  %v22952_v36 = vsel %vm25819_vm15, %v10810_v54, 0.0  ;;  %v25822_v10 = vld [vmem:[#allocation21_spill] sm:$0xff]  ;;  %vm25910_vm4 = vmmov %vm25900_vm7 }
 0xafd   :  { %11679 = vmatmul.mubr.f32.gmra.mxu1 %v22886_v34  ;;  %v10902_v13 = vrot.slane %v22936_v60, 1  ;;  %v10903_v33 = vrot.slane %v22933_v52, 1  ;;  %v11294_v12 = vand.u32 4294901760, %v11293_v17  ;;  %v22945_v37 = vand.u32 4294901760, %v22936_v60  ;;  %15480 = vmatprep.subr.mxu0 %v25818_v9  ;;  %25820 = vst [vmem:[#allocation102_spill] sm:$0xff] %v22952_v36  ;;  %v25823_v17 = vld [vmem:[#allocation50_spill] sm:$0xff]  ;;  %vm25914_vm0 = vmmov %vm25910_vm4 }
 0xafe   :  { %v11288_v30 = vand.u32 4294901760, %v11287_v0  ;;  %v11302_v26 = vsub.f32 %v22921_v2, %v24964_v29  ;;  %v25821_v34 = vand.u32 4294901760, %v22907_v61  ;;  %15559 = vmatpush3.msra.mxu1 %v25822_v10  ;;  %15481 = vmatpush3.msra.mxu0 %v25823_v17  ;;  %v10905_v9 = vrot.slane %v22952_v36, 1  ;;  %v25826_v29 = vld [vmem:[#allocation48_spill] sm:$0xff]  ;;  %v25827_v54 = vld [vmem:[#allocation41_spill] sm:$0xff]  ;;  %v25829_v10 = vld [vmem:[#allocation43_spill] sm:$0xff] }
 0xaff   :  { %25817 = vst [vmem:[#allocation101_spill] sm:$0xff] %v22945_v37  ;;  %v10904_v55 = vsel %vm25824_vm1, %v10902_v13, %v10903_v33  ;;  %v22962_v0 = vand.u32 4294901760, %v22933_v52  ;;  %15560 = vmatprep.subr.mxu1 %v25826_v29  ;;  %15482 = vmatprep.subr.mxu0 %v25827_v54  ;;  %v10773_v17 = vsel %vm10741_vm5, %v10725_v62, %v10757_v48  ;;  %v25832_v36 = vld [vmem:[#allocation60_spill] sm:$0xff]  ;;  %vm25917_vm5 = vmmov %vm25914_vm0 }
 0xb00   :  { %v11308_v46 = vsub.f32 %v22907_v61, %v25821_v34  ;;  %11289 = vmatprep.mubr.f32.mxu0 %v11288_v30  ;;  %v22966_v2 = vand.u32 4294901760, %v10904_v55  ;;  %v11303_v34 = vand.u32 4294901760, %v11302_v26  ;;  %v10758_v61 = vmul.f32 0.2, %v10726_v43  ;;  %15561 = vmatpush3.msra.mxu1 %v25829_v10  ;;  %vm26032_vm8 = vmmov %vm25914_vm0 }
 0xb01   :  { %25825 = vst [vmem:[#allocation103_spill] sm:$0xff] %v22962_v0  ;;  %11295 = vmatmul.mubr.f32.gmra.mxu0 %v11294_v12  ;;  %v10906_v13 = vsel %vm25830_vm11, %v10903_v33, %v10905_v9  ;;  %v22973_v51 = vsub.f32 %v22936_v60, %v22945_v37  ;;  %15562 = vmatprep.subr.mxu1 %v25832_v36  ;;  %v10812_v54 = vrot.slane %v10773_v17, 7  ;;  %v25835_v36 = vld [vmem:[#allocation49_spill] sm:$0xff]  ;;  %vm26037_vm3 = vmmov %vm25914_vm0 }
 0xb02   :  { %25828 = vst [vmem:[#allocation104_spill] sm:$0xff] %v22966_v2  ;;  %11684 = vmatprep.mubr.f32.mxu1 %v22966_v2  ;;  %11304 = vmatprep.mubr.f32.mxu0 %v11303_v34  ;;  %v22977_v30 = vand.u32 4294901760, %v10906_v13  ;;  %v22980_v26 = vsub.f32 %v10904_v55, %v22966_v2  ;;  %v10774_v12 = vsel %vm10742_vm6, %v10726_v43, %v10758_v61  ;;  %v11309_v48 = vand.u32 4294901760, %v11308_v46  ;;  %v25839_v46 = vld [vmem:[#allocation65_spill] sm:$0xff]  ;;  %vm25927_vm6 = vmmov %vm25914_vm0 }
 0xb03   :  { %25831 = vst [vmem:[#allocation105_spill] sm:$0xff] %v22973_v51  ;;  %11686 = vmatmul.mubr.f32.gmra.mxu1 %v22945_v37  ;;  %v10813_v9 = vrot.slane %v10774_v12, 7  ;;  %v24978_v62 = vand.u32 4294901760, %v22973_v51  ;;  %v22987_v33 = vsub.f32 %v22933_v52, %v22962_v0  ;;  %15483 = vmatpush3.msra.mxu0 %v25835_v36  ;;  %v22993_v34 = vsel %vm25836_vm12, 0.0, %v10812_v54  ;;  %v25842_v37 = vld [vmem:[#allocation17_spill] sm:$0xff]  ;;  %v25846_v36 = vld [vmem:[#allocation56_spill] sm:$0xff]  ;;  %vm26040_vm15 = vmmov %vm25914_vm0 }
 0xb04   :  { %25833 = vst [vmem:[#allocation106_spill] sm:$0xff] %v22977_v30  ;;  %25834 = vst [vmem:[#allocation107_spill] sm:$0xff] %v22980_v26  ;;  %11691 = vmatprep.mubr.f32.mxu1 %v22977_v30  ;;  %v22996_v61 = vsub.f32 %v10906_v13, %v22977_v30  ;;  %15563 = vmatpush3.msra.mxu1 %v25839_v46  ;;  %v10907_v17 = vrot.slane %v22993_v34, 1  ;;  %v23007_v55 = vand.u32 4294901760, %v22993_v34  ;;  %v25843_v13 = vand.u32 4294901760, %v22980_v26  ;;  %v25847_v46 = vld [vmem:[#allocation36_spill] sm:$0xff] }
 0xb05   :  { %25837 = vst [vmem:[#allocation108_spill] sm:$0xff] %v22993_v34  ;;  %11310 = vmatmul.mubr.f32.gmra.mxu0 %v11309_v48  ;;  %v23000_v43 = vsel %vm25840_vm9, %v10812_v54, %v10813_v9  ;;  %v11323_v12 = vsub.f32 %v22973_v51, %v24978_v62  ;;  %15564 = vmatprep.subr.mxu1 %v25842_v37  ;;  %v23016_v2 = vsel %vm25844_vm14, %v10813_v9, 0.0  ;;  %v25852_v51 = vld [vmem:[#allocation70_spill] sm:$0xff]  ;;  %vm26044_vm1 = vmmov %vm25914_vm0 }
 0xb06   :  { %25838 = vst [vmem:[#allocation109_spill] sm:$0xff] %v22996_v61  ;;  %25841 = vst [vmem:[#allocation110_spill] sm:$0xff] %v23007_v55  ;;  %v11317_v30 = vsub.f32 %v22980_v26, %v25843_v13  ;;  %v10908_v48 = vrot.slane %v23000_v43, 1  ;;  %15565 = vmatpush3.msra.mxu1 %v25846_v36  ;;  %15484 = vmatprep.subr.mxu0 %v25847_v46  ;;  %v10910_v62 = vrot.slane %v23016_v2, 1  ;;  %v23024_v10 = vand.u32 4294901760, %v23000_v43  ;;  %v25849_v13 = vld [vmem:[#allocation26_spill] sm:$0xff] }
 0xb07   :  { %25845 = vst [vmem:[#allocation111_spill] sm:$0xff] %v23016_v2  ;;  %11693 = vmatmul.mubr.f32.gmra.mxu1 %v22962_v0  ;;  %15566 = vmatprep.subr.mxu1 %v25849_v13  ;;  %v25851_v9 = vand.u32 4294901760, %v22996_v61  ;;  %v23034_v0 = vsub.f32 %v22993_v34, %v23007_v55  ;;  %v25853_v46 = vld [vmem:[#allocation20_spill] sm:$0xff]  ;;  %v11324_v26 = vand.u32 4294901760, %v11323_v12  ;;  %v25856_v2 = vld [vmem:[#allocation51_spill] sm:$0xff]  ;;  %vm26050_vm11 = vmmov %vm25914_vm0 }
 0xb08   :  { %25848 = vst [vmem:[#allocation112_spill] sm:$0xff] %v23024_v10  ;;  %v11318_v29 = vand.u32 4294901760, %v11317_v30  ;;  %v10909_v54 = vsel %vm25850_vm2, %v10907_v17, %v10908_v48  ;;  %15567 = vmatpush3.msra.mxu1 %v25852_v51  ;;  %15485 = vmatpush3.msra.mxu0 %v25853_v46  ;;  %v10911_v13 = vsel %vm25854_vm13, %v10908_v48, %v10910_v62  ;;  %v25855_v30 = vand.u32 4294901760, %v22987_v33  ;;  %v25858_v12 = vld [vmem:[#allocation55_spill] sm:$0xff]  ;;  %vm26056_vm12 = vmmov %vm25914_vm0 }
 0xb09   :  { %v11332_v36 = vsub.f32 %v22996_v61, %v25851_v9  ;;  %v23037_v37 = vand.u32 4294901760, %v10909_v54  ;;  %15486 = vmatprep.subr.mxu0 %v25856_v2  ;;  %v25857_v9 = vld [vmem:[#allocation19_spill] sm:$0xff]  ;;  %v23045_v61 = vand.u32 4294901760, %v10911_v13  ;;  %v24991_v34 = vand.u32 4294901760, %v23034_v0  ;;  %vm26057_vm9 = vmmov %vm25914_vm0 }
 0xb0a   :  { %v11338_v17 = vsub.f32 %v22987_v33, %v25855_v30  ;;  %15696 = vmatprep.subr.mxu1 %v25857_v9  ;;  %11319 = vmatprep.mubr.f32.mxu0 %v11318_v29  ;;  %v23050_v46 = vsub.f32 %v23000_v43, %v23024_v10  ;;  %v25859_v30 = vld [vmem:[#allocation40_spill] sm:$0xff]  ;;  %vm26063_vm14 = vmmov %vm25914_vm0 }
 0xb0b   :  { %v11333_v51 = vand.u32 4294901760, %v11332_v36  ;;  %15487 = vmatpush3.msra.mxu0 %v25858_v12  ;;  %11698 = vmatprep.mubr.f32.mxu1 %v23037_v37  ;;  %v23055_v62 = vsub.f32 %v10909_v54, %v23037_v37  ;;  %v23059_v29 = vsub.f32 %v10911_v13, %v23045_v61  ;;  %v25860_v9 = vand.u32 4294901760, %v25859_v30  ;;  %vm26067_vm2 = vmmov %vm25914_vm0 }
 0xb0c   :  { %11325 = vmatmul.mubr.f32.gmra.mxu0 %v11324_v26  ;;  %11700 = vmatmul.mubr.f32.gmra.mxu1 %v23007_v55  ;;  %v11339_v36 = vand.u32 4294901760, %v11338_v17  ;;  %v11353_v26 = vsub.f32 %v23034_v0, %v24991_v34  ;;  %v11367_v55 = vand.u32 4294901760, %v23050_v46  ;;  %v25861_v30 = vand.u32 4294901760, %v22565_v47  ;;  %vm26070_vm13 = vmmov %vm25914_vm0 }
 0xb0d   :  { %11334 = vmatprep.mubr.f32.mxu0 %v11333_v51  ;;  %11705 = vmatprep.mubr.f32.mxu1 %v23045_v61  ;;  %v24992_v48 = vand.u32 4294901760, %v23055_v62  ;;  %v24995_v54 = vand.u32 4294901760, %v23059_v29 }
 0xb0e   :  { %15616 = vmatprep.subr.mxu0 %v25860_v9  ;;  %v11354_v9 = vand.u32 4294901760, %v11353_v26  ;;  %v11368_v34 = vsub.f32 %v23050_v46, %v11367_v55  ;;  %v25864_v26 = vand.u32 4294901760, %v22556_v41 }
 0xb0f   :  { %v11347_v51 = vsub.f32 %v23055_v62, %v24992_v48  ;;  %v11362_v13 = vsub.f32 %v23059_v29, %v24995_v54  ;;  %v25862_v48 = vand.u32 4294901760, %v22545_v32 }
 0xb10   :  { %11340 = vmatmul.mubr.f32.gmra.mxu0 %v11339_v36  ;;  %11707 = vmatmul.mubr.f32.gmra.mxu1 %v23024_v10  ;;  %v25863_v10 = vand.u32 4294901760, %v22569_v23  ;;  %v11369_v54 = vand.u32 4294901760, %v11368_v34  ;;  %v25870_v34 = vld [vmem:[#allocation52_spill] sm:$0xff] }
 0xb11   :  { %v11348_v17 = vand.u32 4294901760, %v11347_v51  ;;  %12084 = vmatprep.mubr.f32.mxu1 %v25861_v30  ;;  %v11363_v36 = vand.u32 4294901760, %v11362_v13  ;;  %v25865_v51 = vand.u32 4294901760, %v22585_v16  ;;  %v25903_v30 = vld [vmem:[#allocation95_spill] sm:$0xff] }
 0xb13   :  { %11349 = vmatprep.mubr.f32.mxu0 %v11348_v17  ;;  %v10959_v17 = vrot.slane %v22933_v52, 2  ;;  %v25911_v52 = vld [vmem:[#allocation13_spill] sm:$0xff] }
 0xb14   :  { %11355 = vmatmul.mubr.f32.gmra.mxu0 %v11354_v9  ;;  %12088 = vmatmul.mubr.f32.vlgmr.msra.gmra.mxu1 %v25862_v48  ;;  %v25877_v48 = vand.u32 4294901760, %v22107_v27  ;;  %v25882_v27 = vand.u32 4294901760, %v22131_v53  ;;  %v25886_v53 = vand.u32 4294901760, %v22158_v20  ;;  %v25890_v20 = vand.u32 4294901760, %v22176_v14  ;;  %v25895_v14 = vld [vmem:[#allocation71_spill] sm:$0xff] }
 0xb15   :  { %11364 = vmatprep.mubr.f32.mxu0 %v11363_v36  ;;  %12095 = vmatprep.mubr.f32.mxu1 %v25863_v10  ;;  %v25866_v10 = vand.u32 4294901760, %v22619_v24  ;;  %v25904_v9 = vand.u32 4294901760, %v25903_v30 }
 0xb16   :  { %15697 = vmatpush3.msra.mxu1 %v22042_v40  ;;  %v25867_v40 = vand.u32 4294901760, %v22057_v19  ;;  %v25874_v19 = vand.u32 4294901760, %v22659_v45 }
 0xb17   :  { %15698 = vmatprep.subr.mxu1 %v22044_v38  ;;  %v25868_v38 = vand.u32 4294901760, %v22625_v11 }
 0xb18   :  { %11370 = vmatmul.mubr.f32.gmra.mxu0 %v11369_v54  ;;  %12099 = vmatmul.mubr.f32.gmra.mxu1 %v25864_v26  ;;  %v25878_v54 = vld [vmem:[#allocation23_spill] sm:$0xff]  ;;  %v25906_v26 = vld [vmem:[#allocation108_spill] sm:$0xff] }
 0xb19   :  { %11842 = vmatprep.mubr.f32.mxu0 %v22565_v47  ;;  %12106 = vmatprep.mubr.f32.mxu1 %v25865_v51  ;;  %v25869_v47 = vand.u32 4294901760, %v22060_v4  ;;  %v25876_v4 = vld [vmem:[#allocation16_spill] sm:$0xff]  ;;  %v10963_v51 = vrot.slane %v25906_v26, 2  ;;  %v25953_v26 = vld [vmem:[#allocation37_spill] sm:$0xff] }
 0xb1a   :  { %15699 = vmatpush3.msra.mxu1 %v22062_v22  ;;  %v25871_v22 = vand.u32 4294901760, %v25870_v34  ;;  %v25912_v34 = vand.u32 4294901760, %v25911_v52 }
 0xb1b   :  { %15700 = vmatprep.subr.mxu1 %v22064_v21  ;;  %v25872_v21 = vld [vmem:[#allocation12_spill] sm:$0xff] }
 0xb1c   :  { %11845 = vmatmul.mubr.f32.vlgmr.msra.gmra.mxu0 %v22545_v32  ;;  %12110 = vmatmul.mubr.f32.gmra.mxu1 %v25866_v10  ;;  %v25873_v32 = vand.u32 4294901760, %v22634_v18  ;;  %v25907_v10 = vld [vmem:[#allocation73_spill] sm:$0xff] }
 0xb1d   :  { %15617 = vmatpush3.msra.mxu0 %v25867_v40  ;;  %11851 = vmatprep.mubr.f32.mxu0 %v22569_v23  ;;  %v25875_v23 = vand.u32 4294901760, %v22075_v39  ;;  %v25881_v39 = vand.u32 4294901760, %v22110_v25  ;;  %v25885_v25 = vand.u32 4294901760, %v22154_v1  ;;  %v25889_v1 = vand.u32 4294901760, %v22161_v56 }
 0xb1e   :  { %12117 = vmatprep.mubr.f32.mxu1 %v25868_v38  ;;  %15618 = vmatprep.subr.mxu0 %v25869_v47  ;;  %v25892_v56 = vand.u32 4294901760, %v22825_v8  ;;  %v25908_v40 = vand.u32 4294901760, %v25907_v10  ;;  %v25909_v38 = vld [vmem:[#allocation11_spill] sm:$0xff]  ;;  %v10964_v47 = vrot.slane %v23000_v43, 2  ;;  %v25955_v10 = vld [vmem:[#allocation48_spill] sm:$0xff] }
 0xb1f   :  { %15619 = vmatpush3.msra.mxu0 %v25871_v22  ;;  %15701 = vmatpush3.msra.mxu1 %v25872_v21  ;;  %v25915_v21 = vld [vmem:[#allocation94_spill] sm:$0xff] }
 0xb20   :  { %11854 = vmatmul.mubr.f32.gmra.mxu0 %v22556_v41  ;;  %12121 = vmatmul.mubr.f32.gmra.mxu1 %v25873_v32  ;;  %v25879_v41 = vand.u32 4294901760, %v22672_v42  ;;  %v25916_v32 = vand.u32 4294901760, %v25915_v21 }
 0xb21   :  { %11860 = vmatprep.mubr.f32.mxu0 %v22585_v16  ;;  %12128 = vmatprep.mubr.f32.mxu1 %v25874_v19  ;;  %v25880_v16 = vand.u32 4294901760, %v22692_v44  ;;  %v23204_v19 = vsel %vm25917_vm5, %v10963_v51, %v10964_v47  ;;  %v25954_v51 = vand.u32 4294901760, %v25953_v26 }
 0xb22   :  { %15620 = vmatprep.subr.mxu0 %v25875_v23  ;;  %15702 = vmatprep.subr.mxu1 %v25876_v4  ;;  %v25918_v23 = vld [vmem:[#allocation99_spill] sm:$0xff] }
 0xb23   :  { %15621 = vmatpush3.msra.mxu0 %v25877_v48  ;;  %15703 = vmatpush3.msra.mxu1 %v25878_v54  ;;  %v25919_v43 = vand.u32 4294901760, %v25918_v23  ;;  %v25920_v4 = vld [vmem:[#allocation111_spill] sm:$0xff] }
 0xb24   :  { %11863 = vmatmul.mubr.f32.gmra.mxu0 %v22619_v24  ;;  %12132 = vmatmul.mubr.f32.gmra.mxu1 %v25879_v41  ;;  %v25883_v24 = vand.u32 4294901760, %v22697_v15  ;;  %v10966_v48 = vrot.slane %v25920_v4, 2  ;;  %v25921_v54 = vld [vmem:[#allocation35_spill] sm:$0xff]  ;;  %v25964_v4 = vld [vmem:[#allocation60_spill] sm:$0xff] }
 0xb25   :  { %11869 = vmatprep.mubr.f32.mxu0 %v22625_v11  ;;  %12139 = vmatprep.mubr.f32.mxu1 %v25880_v16  ;;  %v25884_v11 = vand.u32 4294901760, %v22756_v59  ;;  %v25922_v41 = vand.u32 4294901760, %v25921_v54  ;;  %v25923_v16 = vld [vmem:[#allocation24_spill] sm:$0xff] }
 0xb26   :  { %15622 = vmatprep.subr.mxu0 %v25881_v39  ;;  %15704 = vmatprep.subr.mxu1 %v22133_v58  ;;  %v25887_v58 = vand.u32 4294901760, %v22751_v63  ;;  %v25924_v39 = vld [vmem:[#allocation38_spill] sm:$0xff] }
 0xb27   :  { %15623 = vmatpush3.msra.mxu0 %v25882_v27  ;;  %15705 = vmatpush3.msra.mxu1 %v22142_v3  ;;  %v25888_v3 = vand.u32 4294901760, %v22762_v28  ;;  %v25926_v27 = vld [vmem:[#allocation29_spill] sm:$0xff] }
 0xb28   :  { %11872 = vmatmul.mubr.f32.gmra.mxu0 %v22634_v18  ;;  %12143 = vmatmul.mubr.f32.gmra.mxu1 %v25883_v24  ;;  %v25893_v18 = vld [vmem:[#allocation32_spill] sm:$0xff]  ;;  %v23217_v24 = vsel %vm25927_vm6, %v10964_v47, %v10966_v48  ;;  %v25957_v47 = vld [vmem:[#allocation57_spill] sm:$0xff] }
 0xb29   :  { %11878 = vmatprep.mubr.f32.mxu0 %v22659_v45  ;;  %12150 = vmatprep.mubr.f32.mxu1 %v25884_v11  ;;  %v10954_v45 = vrot.slane %v22856_v6, 2  ;;  %v25899_v6 = vld [vmem:[#allocation74_spill] sm:$0xff]  ;;  %v25958_v52 = vand.u32 4294901760, %v25957_v47 }
 0xb2a   :  { %15624 = vmatprep.subr.mxu0 %v25885_v25  ;;  %15706 = vmatprep.subr.mxu1 %v22144_v57  ;;  %v10953_v57 = vrot.slane %v22859_v35, 2  ;;  %v25930_v25 = vld [vmem:[#allocation44_spill] sm:$0xff] }
 0xb2b   :  { %15625 = vmatpush3.msra.mxu0 %v25886_v53  ;;  %15707 = vmatpush3.msra.mxu1 %v22163_v49  ;;  %v25891_v49 = vand.u32 4294901760, %v22767_v50  ;;  %v25931_v53 = vand.u32 4294901760, %v25930_v25 }
 0xb2c   :  { %11881 = vmatmul.mubr.f32.gmra.mxu0 %v22672_v42  ;;  %12154 = vmatmul.mubr.f32.gmra.mxu1 %v25887_v58  ;;  %v25894_v42 = vand.u32 4294901760, %v25893_v18  ;;  %v25932_v58 = vld [vmem:[#allocation33_spill] sm:$0xff]  ;;  %v25940_v18 = vld [vmem:[#allocation107_spill] sm:$0xff] }
 0xb2d   :  { %11887 = vmatprep.mubr.f32.mxu0 %v22692_v44  ;;  %12161 = vmatprep.mubr.f32.mxu1 %v25888_v3  ;;  %v10958_v44 = vrot.slane %v22936_v60, 2  ;;  %v25905_v60 = vld [vmem:[#allocation102_spill] sm:$0xff]  ;;  %v25933_v3 = vand.u32 4294901760, %v25932_v58  ;;  %v25973_v58 = vld [vmem:[#allocation17_spill] sm:$0xff] }
 0xb2e   :  { %15626 = vmatprep.subr.mxu0 %v25889_v1  ;;  %15708 = vmatprep.subr.mxu1 %v22165_v7  ;;  %v10956_v7 = vrot.slane %v22876_v31, 2  ;;  %v25901_v31 = vld [vmem:[#allocation93_spill] sm:$0xff]  ;;  %v10961_v36 = vrot.slane %v25905_v60, 2  ;;  %v25934_v1 = vld [vmem:[#allocation67_spill] sm:$0xff] }
 0xb2f   :  { %15627 = vmatpush3.msra.mxu0 %v25890_v20  ;;  %15709 = vmatpush3.msra.mxu1 %v22194_v5  ;;  %v23169_v5 = vsel %vm25896_vm10, %v10953_v57, %v10954_v45  ;;  %v25902_v13 = vand.u32 4294901760, %v25901_v31  ;;  %v25935_v57 = vld [vmem:[#allocation46_spill] sm:$0xff]  ;;  %v25951_v60 = vld [vmem:[#allocation109_spill] sm:$0xff]  ;;  %vm26137_vm10 = vcmask 130048  }
 0xb30   :  { %11890 = vmatmul.mubr.f32.gmra.mxu0 %v22697_v15  ;;  %12165 = vmatmul.mubr.f32.gmra.mxu1 %v25891_v49  ;;  %v25897_v15 = vld [vmem:[#allocation72_spill] sm:$0xff]  ;;  %v23198_v22 = vsel %vm25914_vm0, %v10959_v17, %v10961_v36  ;;  %v25936_v20 = vand.u32 4294901760, %v25935_v57  ;;  %v25937_v49 = vld [vmem:[#allocation25_spill] sm:$0xff]  ;;  %v25952_v36 = vand.u32 4294901760, %v25951_v60 }
 0xb31   :  { %11896 = vmatprep.mubr.f32.mxu0 %v22756_v59  ;;  %12172 = vmatprep.mubr.f32.mxu1 %v25892_v56  ;;  %v25898_v35 = vand.u32 4294901760, %v25897_v15  ;;  %v23176_v59 = vsel %vm25900_vm7, %v10954_v45, %v10956_v7  ;;  %v11031_v45 = vld [vmem:[%s24471_s13 + $0x178] sm:$0xff]  ;;  %v25938_v56 = vld [vmem:[#allocation100_spill] sm:$0xff]  ;;  %v25944_v15 = vld [vmem:[#allocation63_spill] sm:$0xff] }
 0xb32   :  { %15628 = vmatprep.subr.mxu0 %v25894_v42  ;;  %15710 = vmatprep.subr.mxu1 %v25895_v14  ;;  %v25939_v7 = vand.u32 4294901760, %v25938_v56  ;;  %v25941_v42 = vand.u32 4294901760, %v25940_v18  ;;  %v25942_v14 = vld [vmem:[#allocation27_spill] sm:$0xff]  ;;  %v25975_v57 = vld [vmem:[#allocation49_spill] sm:$0xff]  ;;  %vm26138_vm7 = vmmov %vm26137_vm10 }
 0xb33   :  { %15629 = vmatpush3.msra.mxu0 %v25898_v35  ;;  %15711 = vmatpush3.msra.mxu1 %v25899_v6  ;;  %v23243_v35 = vand.u32 4294901760, %v11031_v45  ;;  %v25946_v6 = vld [vmem:[#allocation45_spill] sm:$0xff] }
 0xb34   :  { %11899 = vmatmul.mubr.f32.gmra.mxu0 %v22751_v63  ;;  %12176 = vmatmul.mubr.f32.gmra.mxu1 %v25902_v13  ;;  %v23191_v63 = vsel %vm25910_vm4, %v10958_v44, %v10959_v17  ;;  %v25943_v44 = vand.u32 4294901760, %v25942_v14  ;;  %v25948_v13 = vld [vmem:[#allocation21_spill] sm:$0xff]  ;;  %v25980_v14 = vld [vmem:[#allocation36_spill] sm:$0xff]  ;;  %vm26139_vm4 = vmmov %vm26138_vm7 }
 0xb35   :  { %11905 = vmatprep.mubr.f32.mxu0 %v22762_v28  ;;  %12183 = vmatprep.mubr.f32.mxu1 %v25904_v9  ;;  %v25913_v28 = vld [vmem:[#allocation34_spill] sm:$0xff]  ;;  %25945 = vst [vmem:[#allocation51_spill] sm:$0xff] %v23243_v35  ;;  %v11030_v17 = vld [vmem:[%s24471_s13 + $0x170] sm:$0xff]  ;;  %vm26140_vm0 = vmmov %vm26139_vm4 }
 0xb36   :  { %15630 = vmatprep.subr.mxu0 %v25908_v40  ;;  %15712 = vmatprep.subr.mxu1 %v25909_v38  ;;  %v23261_v40 = vsub.f32 %v11031_v45, %v23243_v35  ;;  %v23263_v38 = vand.u32 4294901760, %v11030_v17  ;;  %vm26141_vm5 = vmmov %vm26140_vm0 }
 0xb37   :  { %15631 = vmatpush3.msra.mxu0 %v25912_v34  ;;  %15713 = vmatpush3.msra.mxu1 %v25913_v28  ;;  %v25959_v34 = vld [vmem:[#allocation43_spill] sm:$0xff]  ;;  %v25960_v28 = vand.u32 4294901760, %v22987_v33  ;;  %vm26142_vm6 = vmmov %vm26140_vm0 }
 0xb38   :  { %11908 = vmatmul.mubr.f32.gmra.mxu0 %v22767_v50  ;;  %12187 = vmatmul.mubr.f32.gmra.mxu1 %v25916_v32  ;;  %v25925_v50 = vand.u32 4294901760, %v25924_v39  ;;  %25956 = vst [vmem:[#allocation19_spill] sm:$0xff] %v23263_v38  ;;  %v25961_v32 = vand.u32 4294901760, %v23055_v62  ;;  %v23281_v48 = vand.u32 4294901760, %v23261_v40  ;;  %v23284_v54 = vsub.f32 %v11030_v17, %v23263_v38  ;;  %v25968_v39 = vld [vmem:[#allocation65_spill] sm:$0xff] }
 0xb39   :  { %11914 = vmatprep.mubr.f32.mxu0 %v22825_v8  ;;  %12194 = vmatprep.mubr.f32.mxu1 %v25919_v43  ;;  %v25928_v8 = vld [vmem:[#allocation97_spill] sm:$0xff] }
 0xb3a   :  { %15632 = vmatprep.subr.mxu0 %v25922_v41  ;;  %15714 = vmatprep.subr.mxu1 %v25923_v16  ;;  %v25929_v11 = vand.u32 4294901760, %v25928_v8  ;;  %25965 = vst [vmem:[#allocation55_spill] sm:$0xff] %v23281_v48  ;;  %v25966_v41 = vld [vmem:[#allocation50_spill] sm:$0xff] }
 0xb3b   :  { %15633 = vmatpush3.msra.mxu0 %v25925_v50  ;;  %15715 = vmatpush3.msra.mxu1 %v25926_v27  ;;  %v25967_v16 = vand.u32 4294901760, %v25966_v41  ;;  %v25969_v27 = vand.u32 4294901760, %v23034_v0 }
 0xb3c   :  { %11917 = vmatmul.mubr.f32.gmra.mxu0 %v25901_v31  ;;  %12198 = vmatmul.mubr.f32.gmra.mxu1 %v25929_v11  ;;  %v25947_v31 = vand.u32 4294901760, %v25946_v6  ;;  %v25970_v11 = vand.u32 4294901760, %v23059_v29  ;;  %v25982_v6 = vld [vmem:[#allocation70_spill] sm:$0xff] }
 0xb3d   :  { %11923 = vmatprep.mubr.f32.mxu0 %v25903_v30  ;;  %12205 = vmatprep.mubr.f32.mxu1 %v25931_v53  ;;  %v25949_v30 = vld [vmem:[#allocation105_spill] sm:$0xff] }
 0xb3e   :  { %15634 = vmatprep.subr.mxu0 %v25933_v3  ;;  %15716 = vmatprep.subr.mxu1 %v25934_v1  ;;  %v25950_v9 = vand.u32 4294901760, %v25949_v30  ;;  %v12985_v3 = vsub.f32 %v23261_v40, %v23281_v48  ;;  %v23306_v1 = vand.u32 4294901760, %v23284_v54 }
 0xb3f   :  { %15635 = vmatpush3.msra.mxu0 %v25936_v20  ;;  %15717 = vmatpush3.msra.mxu1 %v25937_v49  ;;  %v25976_v20 = vand.u32 4294901760, %v25975_v57  ;;  %v25977_v49 = vld [vmem:[#allocation56_spill] sm:$0xff] }
 0xb40   :  { %11926 = vmatmul.mubr.f32.gmra.mxu0 %v25915_v21  ;;  %12209 = vmatmul.mubr.f32.gmra.mxu1 %v25939_v7  ;;  %v11029_v21 = vld [vmem:[%s24471_s13 + $0x168] sm:$0xff]  ;;  %25974 = vst [vmem:[#allocation40_spill] sm:$0xff] %v23306_v1  ;;  %v11027_v7 = vld [vmem:[%s24471_s13 + $0x158] sm:$0xff] }
 0xb41   :  { %11932 = vmatprep.mubr.f32.mxu0 %v25918_v23  ;;  %12216 = vmatprep.mubr.f32.mxu1 %v25941_v42  ;;  %v25962_v23 = vld [vmem:[#allocation68_spill] sm:$0xff]  ;;  %v23289_v50 = vand.u32 4294901760, %v11029_v21  ;;  %v25979_v42 = vld [vmem:[#allocation26_spill] sm:$0xff]  ;;  %v23338_v17 = vand.u32 4294901760, %v11027_v7 }
 0xb42   :  { %15636 = vmatprep.subr.mxu0 %v25943_v44  ;;  %15718 = vmatprep.subr.mxu1 %v25944_v15  ;;  %v25963_v43 = vand.u32 4294901760, %v25962_v23  ;;  %v25981_v44 = vand.u32 4294901760, %v25980_v14  ;;  %v12986_v15 = vand.u32 4294901760, %v12985_v3  ;;  %v11024_v23 = vld [vmem:[%s24471_s13 + $0x140] sm:$0xff] }
 0xb43   :  { %15637 = vmatpush3.msra.mxu0 %v25947_v31  ;;  %15719 = vmatpush3.msra.mxu1 %v25948_v13  ;;  %v23312_v45 = vsub.f32 %v11029_v21, %v23289_v50  ;;  %v23357_v47 = vsub.f32 %v11027_v7, %v23338_v17  ;;  %v23388_v41 = vand.u32 4294901760, %v11024_v23  ;;  %v11022_v7 = vld [vmem:[%s24471_s13 + $0x130] sm:$0xff] }
 0xb44   :  { %11935 = vmatmul.mubr.f32.gmra.mxu0 %v25928_v8  ;;  %12220 = vmatmul.mubr.f32.gmra.mxu1 %v25950_v9  ;;  %v11028_v8 = vld [vmem:[%s24471_s13 + $0x160] sm:$0xff]  ;;  %v11026_v9 = vld [vmem:[%s24471_s13 + $0x150] sm:$0xff]  ;;  %v23426_v14 = vand.u32 4294901760, %v11022_v7 }
 0xb45   :  { %11941 = vmatprep.mubr.f32.mxu0 %v25930_v25  ;;  %12227 = vmatprep.mubr.f32.mxu1 %v25952_v36  ;;  %v25971_v25 = vld [vmem:[#allocation41_spill] sm:$0xff]  ;;  %v23333_v13 = vand.u32 4294901760, %v23312_v45  ;;  %v25988_v36 = vand.u32 4294901760, %v25856_v2  ;;  %v11025_v2 = vld [vmem:[%s24471_s13 + $0x148] sm:$0xff] }
 0xb46   :  { %15638 = vmatprep.subr.mxu0 %v25954_v51  ;;  %15720 = vmatprep.subr.mxu1 %v25955_v10  ;;  %v25972_v53 = vand.u32 4294901760, %v25971_v25  ;;  %v25989_v51 = vand.u32 4294901760, %v25858_v12  ;;  %v25991_v12 = vld [vmem:[#allocation66_spill] sm:$0xff] }
 0xb47   :  { %15639 = vmatpush3.msra.mxu0 %v25958_v52  ;;  %15721 = vmatpush3.msra.mxu1 %v25959_v34  ;;  %25985 = vst [vmem:[#allocation52_spill] sm:$0xff] %v23333_v13  ;;  %v25992_v52 = vld [vmem:[#allocation15_spill] sm:$0xff]  ;;  %v23369_v34 = vand.u32 4294901760, %v11025_v2  ;;  %v11023_v25 = vld [vmem:[%s24471_s13 + $0x138] sm:$0xff] }
 0xb48   :  { %11944 = vmatmul.mubr.f32.gmra.mxu0 %v25938_v56  ;;  %12231 = vmatmul.mubr.f32.gmra.mxu1 %v25960_v28  ;;  %v23314_v56 = vand.u32 4294901760, %v11028_v8 }
 0xb49   :  { %11950 = vmatprep.mubr.f32.mxu0 %v25940_v18  ;;  %12238 = vmatprep.mubr.f32.mxu1 %v25961_v32  ;;  %v25978_v18 = vld [vmem:[#allocation64_spill] sm:$0xff]  ;;  %v23374_v32 = vand.u32 4294901760, %v23357_v47 }
 0xb4a   :  { %15640 = vmatprep.subr.mxu0 %v25963_v43  ;;  %15722 = vmatprep.subr.mxu1 %v25964_v4  ;;  %v25994_v43 = vld [vmem:[#allocation54_spill] sm:$0xff] }
 0xb4b   :  { %15641 = vmatpush3.msra.mxu0 %v25967_v16  ;;  %15723 = vmatpush3.msra.mxu1 %v25968_v39  ;;  %25993 = vst [vmem:[#allocation16_spill] sm:$0xff] %v23374_v32  ;;  %v25995_v4 = vld [vmem:[#allocation22_spill] sm:$0xff]  ;;  %v13013_v39 = vsub.f32 %v23357_v47, %v23374_v32 }
 0xb4c   :  { %11953 = vmatmul.mubr.f32.gmra.mxu0 %v25949_v30  ;;  %12242 = vmatmul.mubr.f32.gmra.mxu1 %v25969_v27  ;;  %v25986_v30 = vld [vmem:[#allocation39_spill] sm:$0xff] }
 0xb4d   :  { %11959 = vmatprep.mubr.f32.mxu0 %v25951_v60  ;;  %12249 = vmatprep.mubr.f32.mxu1 %v25970_v11  ;;  %v25987_v60 = vld [vmem:[#allocation58_spill] sm:$0xff]  ;;  %v25997_v11 = vld [vmem:[#allocation69_spill] sm:$0xff]  ;;  %v13014_v3 = vand.u32 4294901760, %v13013_v39  ;;  %v26010_v39 = vld [vmem:[#allocation91_spill] sm:$0xff] }
 0xb4e   :  { %15642 = vmatprep.subr.mxu0 %v25972_v53  ;;  %15724 = vmatprep.subr.mxu1 %v25973_v58  ;;  %v25998_v53 = vld [vmem:[#allocation78_spill] sm:$0xff]  ;;  %v23408_v58 = vsub.f32 %v11024_v23, %v23388_v41 }
 0xb4f   :  { %15643 = vmatpush3.msra.mxu0 %v25976_v20  ;;  %15725 = vmatpush3.msra.mxu1 %v25977_v49  ;;  %v23416_v49 = vand.u32 4294901760, %v11023_v25 }
 0xb50   :  { %11962 = vmatmul.mubr.f32.gmra.mxu0 %v22987_v33  ;;  %12253 = vmatmul.mubr.f32.gmra.mxu1 %v11367_v55  ;;  %v12992_v33 = vsub.f32 %v23284_v54, %v23306_v1  ;;  %v25983_v55 = vld [vmem:[#allocation20_spill] sm:$0xff] }
 0xb51   :  { %11968 = vmatprep.mubr.f32.mxu0 %v23055_v62  ;;  %12628 = vmatprep.mubr.f32.mxu1 %v25978_v18  ;;  %v25984_v31 = vand.u32 4294901760, %v25983_v55  ;;  %v23336_v62 = vsub.f32 %v11028_v8, %v23314_v56  ;;  %v23397_v8 = vsub.f32 %v11025_v2, %v23369_v34  ;;  %v26003_v55 = vld [vmem:[#allocation77_spill] sm:$0xff] }
 0xb52   :  { %15726 = vmatprep.subr.mxu1 %v25979_v42  ;;  %15644 = vmatprep.subr.mxu0 %v25981_v44  ;;  %v12993_v26 = vand.u32 4294901760, %v12992_v33  ;;  %v26001_v42 = vld [vmem:[#allocation79_spill] sm:$0xff]  ;;  %v23432_v33 = vand.u32 4294901760, %v23408_v58  ;;  %v26006_v2 = vld [vmem:[#allocation81_spill] sm:$0xff] }
 0xb53   :  { %15727 = vmatpush3.msra.mxu1 %v25982_v6  ;;  %15645 = vmatpush3.msra.mxu0 %v25984_v31  ;;  %v23354_v10 = vand.u32 4294901760, %v23336_v62  ;;  %v23414_v20 = vand.u32 4294901760, %v23397_v8  ;;  %v23435_v6 = vsub.f32 %v11023_v25, %v23416_v49  ;;  %v11021_v31 = vld [vmem:[%s24471_s13 + $0x128] sm:$0xff] }
 0xb54   :  { %11971 = vmatmul.mubr.f32.gmra.mxu0 %v23034_v0  ;;  %12630 = vmatmul.mubr.f32.vlgmr.msra.gmra.mxu1 %v25986_v30  ;;  %v12999_v0 = vsub.f32 %v23312_v45, %v23333_v13  ;;  %26002 = vst [vmem:[#allocation71_spill] sm:$0xff] %v23432_v33  ;;  %v26048_v13 = vld [vmem:[#allocation112_spill] sm:$0xff] }
 0xb55   :  { %11977 = vmatprep.mubr.f32.mxu0 %v23059_v29  ;;  %12635 = vmatprep.mubr.f32.mxu1 %v25987_v60  ;;  %25990 = vst [vmem:[#allocation12_spill] sm:$0xff] %v23354_v10  ;;  %v23359_v29 = vand.u32 4294901760, %v11026_v9  ;;  %v13006_v21 = vsub.f32 %v23336_v62, %v23354_v10  ;;  %25999 = vst [vmem:[#allocation32_spill] sm:$0xff] %v23414_v20 }
 0xb56   :  { %15646 = vmatprep.subr.mxu0 %v25988_v36  ;;  %17336 = vmatprep.subr.mxu1 %v12986_v15  ;;  %v13000_v28 = vand.u32 4294901760, %v12999_v0  ;;  %v13034_v36 = vsub.f32 %v23408_v58, %v23432_v33  ;;  %v11020_v0 = vld [vmem:[%s24471_s13 + $0x120] sm:$0xff]  ;;  %v26029_v33 = vld [vmem:[#allocation28_spill] sm:$0xff] }
 0xb57   :  { %15647 = vmatpush3.msra.mxu0 %v25989_v51  ;;  %17337 = vmatpush3.msra.mxu1 %v12986_v15  ;;  %v13007_v16 = vand.u32 4294901760, %v13006_v21  ;;  %v13027_v15 = vsub.f32 %v23397_v8, %v23414_v20  ;;  %v23454_v51 = vand.u32 4294901760, %v11021_v31 }
 0xb58   :  { %11980 = vmatmul.mubr.f32.gmra.mxu0 %v23050_v46  ;;  %12637 = vmatmul.mubr.f32.gmra.mxu1 %v25991_v12  ;;  %v23377_v46 = vsub.f32 %v11026_v9, %v23359_v29  ;;  %v23446_v9 = vsub.f32 %v11022_v7, %v23426_v14  ;;  %v11018_v7 = vld [vmem:[%s24471_s13 + $0x110] sm:$0xff] }
 0xb59   :  { %12419 = vmatprep.mubr.f32.mxu0 %v25978_v18  ;;  %12642 = vmatprep.mubr.f32.mxu1 %v25992_v52  ;;  %v26000_v18 = vld [vmem:[#allocation75_spill] sm:$0xff] }
 0xb5a   :  { %17280 = vmatprep.subr.mxu0 %v23243_v35  ;;  %17338 = vmatprep.subr.mxu1 %v12993_v26  ;;  %v23394_v27 = vand.u32 4294901760, %v23377_v46  ;;  %v23470_v23 = vand.u32 4294901760, %v23446_v9 }
 0xb5b   :  { %17339 = vmatpush3.msra.mxu1 %v12993_v26  ;;  %v23452_v26 = vand.u32 4294901760, %v23435_v6 }
 0xb5c   :  { %12421 = vmatmul.mubr.f32.vlgmr.msra.gmra.mxu0 %v25986_v30  ;;  %12644 = vmatmul.mubr.f32.gmra.mxu1 %v25994_v43  ;;  %25996 = vst [vmem:[#allocation23_spill] sm:$0xff] %v23394_v27  ;;  %v13020_v57 = vsub.f32 %v23377_v46, %v23394_v27  ;;  %v26004_v30 = vld [vmem:[#allocation84_spill] sm:$0xff]  ;;  %26008 = vst [vmem:[#allocation74_spill] sm:$0xff] %v23470_v23  ;;  %v26035_v27 = vld [vmem:[#allocation61_spill] sm:$0xff] }
 0xb5d   :  { %17281 = vmatpush3.msra.mxu0 %v23243_v35  ;;  %12426 = vmatprep.mubr.f32.mxu0 %v25987_v60  ;;  %v13028_v60 = vand.u32 4294901760, %v13027_v15  ;;  %26005 = vst [vmem:[#allocation72_spill] sm:$0xff] %v23452_v26  ;;  %v13041_v21 = vsub.f32 %v23435_v6, %v23452_v26 }
 0xb5e   :  { %12649 = vmatprep.mubr.f32.mxu1 %v25995_v4  ;;  %17282 = vmatprep.subr.mxu0 %v23263_v38  ;;  %v13021_v44 = vand.u32 4294901760, %v13020_v57 }
 0xb5f   :  { %17283 = vmatpush3.msra.mxu0 %v23263_v38  ;;  %17340 = vmatprep.subr.mxu1 %v13000_v28  ;;  %v13042_v25 = vand.u32 4294901760, %v13041_v21 }
 0xb60   :  { %12428 = vmatmul.mubr.f32.gmra.mxu0 %v25991_v12  ;;  %12651 = vmatmul.mubr.f32.gmra.mxu1 %v25997_v11  ;;  %v26007_v12 = vld [vmem:[#allocation85_spill] sm:$0xff] }
 0xb61   :  { %12433 = vmatprep.mubr.f32.mxu0 %v25992_v52  ;;  %12656 = vmatprep.mubr.f32.mxu1 %v25998_v53  ;;  %v23464_v52 = vand.u32 4294901760, %v11020_v0 }
 0xb62   :  { %17284 = vmatprep.subr.mxu0 %v23289_v50  ;;  %17341 = vmatpush3.msra.mxu1 %v13000_v28  ;;  %v13035_v28 = vand.u32 4294901760, %v13034_v36  ;;  %v26015_v36 = vld [vmem:[#allocation90_spill] sm:$0xff] }
 0xb63   :  { %17285 = vmatpush3.msra.mxu0 %v23289_v50  ;;  %17342 = vmatprep.subr.mxu1 %v13007_v16 }
 0xb64   :  { %12435 = vmatmul.mubr.f32.gmra.mxu0 %v25994_v43  ;;  %12658 = vmatmul.mubr.f32.gmra.mxu1 %v26000_v18  ;;  %v23473_v43 = vsub.f32 %v11021_v31, %v23454_v51 }
 0xb65   :  { %12440 = vmatprep.mubr.f32.mxu0 %v25995_v4  ;;  %12663 = vmatprep.mubr.f32.mxu1 %v26001_v42  ;;  %v26009_v4 = vld [vmem:[#allocation83_spill] sm:$0xff] }
 0xb66   :  { %17286 = vmatprep.subr.mxu0 %v23314_v56  ;;  %17343 = vmatpush3.msra.mxu1 %v13007_v16  ;;  %v11019_v16 = vld [vmem:[%s24471_s13 + $0x118] sm:$0xff] }
 0xb67   :  { %17287 = vmatpush3.msra.mxu0 %v23314_v56  ;;  %17344 = vmatprep.subr.mxu1 %v13014_v3  ;;  %v23492_v57 = vand.u32 4294901760, %v11019_v16 }
 0xb68   :  { %12442 = vmatmul.mubr.f32.gmra.mxu0 %v25997_v11  ;;  %12665 = vmatmul.mubr.f32.gmra.mxu1 %v26003_v55  ;;  %v23484_v11 = vsub.f32 %v11020_v0, %v23464_v52  ;;  %v26016_v0 = vld [vmem:[#allocation96_spill] sm:$0xff] }
 0xb69   :  { %12447 = vmatprep.mubr.f32.mxu0 %v25998_v53  ;;  %12670 = vmatprep.mubr.f32.mxu1 %v26004_v30  ;;  %v13048_v53 = vsub.f32 %v23446_v9, %v23470_v23 }
 0xb6a   :  { %17288 = vmatprep.subr.mxu0 %v23338_v17  ;;  %17345 = vmatpush3.msra.mxu1 %v13014_v3  ;;  %v23490_v3 = vand.u32 4294901760, %v23473_v43  ;;  %v23508_v31 = vand.u32 4294901760, %v23484_v11 }
 0xb6b   :  { %17289 = vmatpush3.msra.mxu0 %v23338_v17  ;;  %17346 = vmatprep.subr.mxu1 %v13021_v44  ;;  %v13049_v15 = vand.u32 4294901760, %v13048_v53 }
 0xb6c   :  { %12449 = vmatmul.mubr.f32.gmra.mxu0 %v26000_v18  ;;  %12672 = vmatmul.mubr.f32.gmra.mxu1 %v26006_v2  ;;  %26011 = vst [vmem:[#allocation93_spill] sm:$0xff] %v23490_v3  ;;  %v26012_v18 = vld [vmem:[#allocation89_spill] sm:$0xff]  ;;  %26014 = vst [vmem:[#allocation95_spill] sm:$0xff] %v23508_v31 }
 0xb6d   :  { %12454 = vmatprep.mubr.f32.mxu0 %v26001_v42  ;;  %12677 = vmatprep.mubr.f32.mxu1 %v26007_v12  ;;  %v26013_v42 = vld [vmem:[#allocation92_spill] sm:$0xff] }
 0xb6e   :  { %17290 = vmatprep.subr.mxu0 %v23359_v29  ;;  %17347 = vmatpush3.msra.mxu1 %v13021_v44  ;;  %v23502_v44 = vand.u32 4294901760, %v11018_v7 }
 0xb6f   :  { %17291 = vmatpush3.msra.mxu0 %v23359_v29  ;;  %17348 = vmatprep.subr.mxu1 %v13028_v60 }
 0xb70   :  { %12456 = vmatmul.mubr.f32.gmra.mxu0 %v26003_v55  ;;  %12679 = vmatmul.mubr.f32.gmra.mxu1 %v26009_v4  ;;  %v13055_v55 = vsub.f32 %v23473_v43, %v23490_v3  ;;  %v26025_v3 = vld [vmem:[#allocation47_spill] sm:$0xff] }
 0xb71   :  { %12461 = vmatprep.mubr.f32.mxu0 %v26004_v30  ;;  %12684 = vmatprep.mubr.f32.mxu1 %v26010_v39  ;;  %v23511_v30 = vsub.f32 %v11019_v16, %v23492_v57  ;;  %v11016_v16 = vld [vmem:[%s24471_s13 + $0x100] sm:$0xff]  ;;  %v10928_v23 = vrot.slane %v26025_v3, 2  ;;  %v10931_v3 = vrot.slane %v26029_v33, 2  ;;  %v10934_v33 = vrot.slane %v26035_v27, 2 }
 0xb72   :  { %17292 = vmatprep.subr.mxu0 %v23369_v34  ;;  %17349 = vmatpush3.msra.mxu1 %v13028_v60  ;;  %v11017_v60 = vld [vmem:[%s24471_s13 + $0x108] sm:$0xff]  ;;  %v23540_v53 = vand.u32 4294901760, %v11016_v16  ;;  %v26039_v27 = vld [vmem:[#allocation59_spill] sm:$0xff] }
 0xb73   :  { %17293 = vmatpush3.msra.mxu0 %v23369_v34  ;;  %17350 = vmatprep.subr.mxu1 %v13035_v28  ;;  %v23527_v21 = vand.u32 4294901760, %v23511_v30 }
 0xb74   :  { %12463 = vmatmul.mubr.f32.gmra.mxu0 %v26006_v2  ;;  %12686 = vmatmul.mubr.f32.gmra.mxu1 %v26012_v18  ;;  %v23521_v2 = vand.u32 4294901760, %v11017_v60 }
 0xb75   :  { %12468 = vmatprep.mubr.f32.mxu0 %v26007_v12  ;;  %12691 = vmatprep.mubr.f32.mxu1 %v26013_v42  ;;  %v13056_v12 = vand.u32 4294901760, %v13055_v55  ;;  %26017 = vst [vmem:[#allocation102_spill] sm:$0xff] %v23527_v21  ;;  %v13069_v55 = vsub.f32 %v23511_v30, %v23527_v21  ;;  %v23559_v21 = vsub.f32 %v11016_v16, %v23540_v53 }
 0xb76   :  { %17294 = vmatprep.subr.mxu0 %v23388_v41  ;;  %17351 = vmatpush3.msra.mxu1 %v13035_v28  ;;  %v13062_v28 = vsub.f32 %v23484_v11, %v23508_v31  ;;  %v23549_v31 = vsub.f32 %v11017_v60, %v23521_v2 }
 0xb77   :  { %17295 = vmatpush3.msra.mxu0 %v23388_v41  ;;  %17352 = vmatprep.subr.mxu1 %v13042_v25  ;;  %26027 = vst [vmem:[#allocation13_spill] sm:$0xff] %v23559_v21  ;;  %v13070_v60 = vand.u32 4294901760, %v13069_v55  ;;  %v23575_v55 = vand.u32 4294901760, %v23559_v21 }
 0xb78   :  { %12470 = vmatmul.mubr.f32.gmra.mxu0 %v26009_v4  ;;  %12693 = vmatmul.mubr.f32.gmra.mxu1 %v26015_v36  ;;  %v23530_v4 = vsub.f32 %v11018_v7, %v23502_v44  ;;  %v13063_v7 = vand.u32 4294901760, %v13062_v28  ;;  %26022 = vst [vmem:[#allocation11_spill] sm:$0xff] %v23549_v31  ;;  %v26026_v28 = vld [vmem:[#allocation53_spill] sm:$0xff] }
 0xb79   :  { %12475 = vmatprep.mubr.f32.mxu0 %v26010_v39  ;;  %12698 = vmatprep.mubr.f32.mxu1 %v26016_v0  ;;  %v26019_v39 = vld [vmem:[#allocation18_spill] sm:$0xff]  ;;  %v10929_v26 = vrot.slane %v26026_v28, 2  ;;  %v26030_v28 = vld [vmem:[#allocation101_spill] sm:$0xff]  ;;  %26033 = vst [vmem:[#allocation94_spill] sm:$0xff] %v23575_v55 }
 0xb7a   :  { %17296 = vmatprep.subr.mxu0 %v23416_v49  ;;  %17353 = vmatpush3.msra.mxu1 %v13042_v25  ;;  %26018 = vst [vmem:[#allocation108_spill] sm:$0xff] %v23530_v4  ;;  %v26020_v25 = vld [vmem:[#allocation98_spill] sm:$0xff] }
 0xb7b   :  { %17297 = vmatpush3.msra.mxu0 %v23416_v49  ;;  %17354 = vmatprep.subr.mxu1 %v13049_v15  ;;  %v10930_v16 = vsel %vm26032_vm8, %v10928_v23, %v10929_v26  ;;  %v26036_v23 = vld [vmem:[#allocation103_spill] sm:$0xff]  ;;  %vm26143_vm8 = vmmov %vm26140_vm0 }
 0xb7c   :  { %12477 = vmatmul.mubr.f32.gmra.mxu0 %v26012_v18  ;;  %12700 = vmatmul.mubr.f32.gmra.mxu1 %v26019_v39  ;;  %v23546_v18 = vand.u32 4294901760, %v23530_v4  ;;  %v23585_v32 = vand.u32 4294901760, %v10930_v16 }
 0xb7d   :  { %12482 = vmatprep.mubr.f32.mxu0 %v26013_v42  ;;  %12705 = vmatprep.mubr.f32.mxu1 %v26020_v25  ;;  %v26023_v42 = vld [vmem:[#allocation30_spill] sm:$0xff] }
 0xb7e   :  { %17298 = vmatprep.subr.mxu0 %v23426_v14  ;;  %17355 = vmatpush3.msra.mxu1 %v13049_v15  ;;  %26021 = vst [vmem:[#allocation73_spill] sm:$0xff] %v23546_v18  ;;  %v26024_v15 = vld [vmem:[#allocation104_spill] sm:$0xff]  ;;  %26038 = vst [vmem:[#allocation99_spill] sm:$0xff] %v23585_v32 }
 0xb7f   :  { %17299 = vmatpush3.msra.mxu0 %v23426_v14  ;;  %17356 = vmatprep.subr.mxu1 %v13056_v12 }
 0xb80   :  { %12484 = vmatmul.mubr.f32.gmra.mxu0 %v26015_v36  ;;  %12707 = vmatmul.mubr.f32.gmra.mxu1 %v26023_v42  ;;  %v13076_v36 = vsub.f32 %v23530_v4, %v23546_v18  ;;  %v26034_v18 = vld [vmem:[#allocation62_spill] sm:$0xff] }
 0xb81   :  { %12489 = vmatprep.mubr.f32.mxu0 %v26016_v0  ;;  %12712 = vmatprep.mubr.f32.mxu1 %v26024_v15  ;;  %v23565_v0 = vand.u32 4294901760, %v23549_v31  ;;  %v10933_v20 = vrot.slane %v26034_v18, 2  ;;  %v10936_v18 = vrot.slane %v26039_v27, 2  ;;  %v23600_v27 = vsub.f32 %v10930_v16, %v23585_v32 }
 0xb82   :  { %17300 = vmatprep.subr.mxu0 %v23454_v51  ;;  %17357 = vmatpush3.msra.mxu1 %v13056_v12  ;;  %v26031_v12 = vld [vmem:[#allocation106_spill] sm:$0xff] }
 0xb83   :  { %17301 = vmatpush3.msra.mxu0 %v23454_v51  ;;  %17358 = vmatprep.subr.mxu1 %v13063_v7  ;;  %26028 = vst [vmem:[#allocation34_spill] sm:$0xff] %v23565_v0 }
 0xb84   :  { %12491 = vmatmul.mubr.f32.gmra.mxu0 %v26019_v39  ;;  %12714 = vmatmul.mubr.f32.gmra.mxu1 %v26030_v28  ;;  %v13077_v39 = vand.u32 4294901760, %v13076_v36  ;;  %v13090_v36 = vsub.f32 %v23559_v21, %v23575_v55  ;;  %v26045_v55 = vld [vmem:[#allocation42_spill] sm:$0xff]  ;;  %v26053_v21 = vld [vmem:[#allocation80_spill] sm:$0xff] }
 0xb85   :  { %12496 = vmatprep.mubr.f32.mxu0 %v26020_v25  ;;  %12719 = vmatprep.mubr.f32.mxu1 %v26031_v12  ;;  %v13083_v25 = vsub.f32 %v23549_v31, %v23565_v0  ;;  %v10938_v0 = vrot.slane %v26045_v55, 2  ;;  %v10944_v55 = vrot.slane %v26053_v21, 2 }
 0xb86   :  { %17302 = vmatprep.subr.mxu0 %v23464_v52  ;;  %17359 = vmatpush3.msra.mxu1 %v13063_v7  ;;  %v10932_v7 = vsel %vm26037_vm3, %v10929_v26, %v10931_v3  ;;  %vm26144_vm3 = vmmov %vm26140_vm0 }
 0xb87   :  { %17303 = vmatpush3.msra.mxu0 %v23464_v52  ;;  %17360 = vmatprep.subr.mxu1 %v13070_v60  ;;  %v13084_v26 = vand.u32 4294901760, %v13083_v25  ;;  %v23595_v3 = vand.u32 4294901760, %v10932_v7  ;;  %v26046_v25 = vld [vmem:[#allocation31_spill] sm:$0xff] }
 0xb88   :  { %12498 = vmatmul.mubr.f32.gmra.mxu0 %v26023_v42  ;;  %12721 = vmatmul.mubr.f32.gmra.mxu1 %v26036_v23  ;;  %v10935_v42 = vsel %vm26040_vm15, %v10933_v20, %v10934_v33  ;;  %v10937_v20 = vsel %vm26044_vm1, %v10934_v33, %v10936_v18  ;;  %v10939_v10 = vrot.slane %v26046_v25, 2  ;;  %v26049_v18 = vld [vmem:[#allocation76_spill] sm:$0xff]  ;;  %vm26145_vm15 = vmmov %vm26140_vm0 }
 0xb89   :  { %12503 = vmatprep.mubr.f32.mxu0 %v26024_v15  ;;  %12726 = vmatprep.mubr.f32.mxu1 %v23037_v37  ;;  %26041 = vst [vmem:[#allocation111_spill] sm:$0xff] %v23595_v3  ;;  %v26042_v15 = vld [vmem:[#allocation110_spill] sm:$0xff]  ;;  %v23616_v33 = vand.u32 4294901760, %v10937_v20  ;;  %v10941_v25 = vrot.slane %v26049_v18, 2  ;;  %vm26146_vm1 = vmmov %vm26140_vm0 }
 0xb8a   :  { %17304 = vmatprep.subr.mxu0 %v23492_v57  ;;  %17361 = vmatpush3.msra.mxu1 %v13070_v60  ;;  %v23604_v60 = vand.u32 4294901760, %v10935_v42 }
 0xb8b   :  { %17305 = vmatpush3.msra.mxu0 %v23492_v57  ;;  %17362 = vmatprep.subr.mxu1 %v13077_v39  ;;  %v10942_v21 = vsel %vm26056_vm12, %v10939_v10, %v10941_v25  ;;  %vm26148_vm12 = vmmov %vm26140_vm0 }
 0xb8c   :  { %12505 = vmatmul.mubr.f32.gmra.mxu0 %v26030_v28  ;;  %12728 = vmatmul.mubr.f32.gmra.mxu1 %v26042_v15  ;;  %26043 = vst [vmem:[#allocation35_spill] sm:$0xff] %v23604_v60  ;;  %v13091_v28 = vand.u32 4294901760, %v13090_v36  ;;  %v10940_v36 = vsel %vm26050_vm11, %v10938_v0, %v10939_v10  ;;  %v23623_v1 = vsub.f32 %v10935_v42, %v23604_v60  ;;  %v26054_v42 = vand.u32 4294901760, %v23600_v27  ;;  %vm26147_vm11 = vmmov %vm26140_vm0 }
 0xb8d   :  { %12510 = vmatprep.mubr.f32.mxu0 %v26031_v12  ;;  %12733 = vmatprep.mubr.f32.mxu1 %v23045_v61  ;;  %v15408_v16 = vpop.f32.mrf.mxu1  ;;  %v23612_v12 = vsub.f32 %v10932_v7, %v23595_v3  ;;  %v26052_v7 = vld [vmem:[#allocation14_spill] sm:$0xff]  ;;  %v23635_v0 = vsub.f32 %v10937_v20, %v23616_v33  ;;  %v23640_v18 = vand.u32 4294901760, %v10940_v36 }
 0xb8e   :  { %17306 = vmatprep.subr.mxu0 %v23502_v44  ;;  %17363 = vmatpush3.msra.mxu1 %v13077_v39  ;;  %26051 = vst [vmem:[#allocation38_spill] sm:$0xff] %v23623_v1  ;;  %v10943_v48 = vrot.slane %v26052_v7, 2  ;;  %v26058_v7 = vld [vmem:[#allocation82_spill] sm:$0xff] }
 0xb8f   :  { %17307 = vmatpush3.msra.mxu0 %v23502_v44  ;;  %17364 = vmatprep.subr.mxu1 %v13084_v26  ;;  %26047 = vst [vmem:[#allocation24_spill] sm:$0xff] %v23612_v12  ;;  %v15409_v39 = vpop.f32.mrf.mxu1  ;;  %26055 = vst [vmem:[#allocation29_spill] sm:$0xff] %v23640_v18 }
 0xb90   :  { %12512 = vmatmul.mubr.f32.gmra.mxu0 %v26036_v23  ;;  %12735 = vmatmul.mubr.f32.gmra.mxu1 %v26048_v13  ;;  %v23626_v23 = vadd.f32 %v15409_v39, %v15408_v16  ;;  %v12824_v16 = vsub.f32 %v23600_v27, %v26054_v42  ;;  %v10945_v39 = vsel %vm26057_vm9, %v10943_v48, %v10944_v55  ;;  %v10946_v42 = vrot.slane %v26058_v7, 2  ;;  %vm26149_vm9 = vmmov %vm26140_vm0 }
 0xb91   :  { %12517 = vmatprep.mubr.f32.mxu0 %v23037_v37  ;;  %17365 = vmatpush3.msra.mxu1 %v13084_v26  ;;  %v15411_v37 = vpop.f32.mrf.mxu1  ;;  %v25032_v26 = vand.u32 4294901760, %v23612_v12 }
 0xb92   :  { %17368 = vmatprep.mubr.f32.mxu1 %v23585_v32  ;;  %17366 = vmatprep.subr.mxu1 %v13091_v28  ;;  %v26062_v32 = vld [vmem:[#allocation87_spill] sm:$0xff] }
 0xb93   :  { %17308 = vmatprep.subr.mxu0 %v23521_v2  ;;  %17367 = vmatpush3.msra.mxu1 %v13091_v28  ;;  %v15412_v28 = vpop.f32.mrf.mxu1  ;;  %v10949_v31 = vrot.slane %v26062_v32, 2 }
 0xb94   :  { %12519 = vmatmul.mubr.f32.gmra.mxu0 %v26042_v15  ;;  %17369 = vmatmul.mubr.f32.vlgmr.msra.gmra.mxu1 %v23595_v3  ;;  %v23648_v20 = vadd.f32 %v15412_v28, %v15411_v37  ;;  %v12834_v15 = vsub.f32 %v23612_v12, %v25032_v26  ;;  %v23657_v3 = vand.u32 4294901760, %v10942_v21  ;;  %v23663_v37 = vsub.f32 %v10940_v36, %v23640_v18 }
 0xb95   :  { %17309 = vmatpush3.msra.mxu0 %v23521_v2  ;;  %17448 = vmatprep.subr.mxu1 %v23243_v35  ;;  %v15328_v10 = vpop.f32.mrf.mxu0  ;;  %v15414_v25 = vpop.f32.mrf.mxu1  ;;  %v26059_v28 = vand.u32 4294901760, %v23623_v1  ;;  %v23670_v26 = vand.u32 4294901760, %v10945_v39 }
 0xb96   :  { %12524 = vmatprep.mubr.f32.mxu0 %v23045_v61  ;;  %17371 = vmatprep.mubr.f32.mxu1 %v23604_v60  ;;  %v12825_v61 = vand.u32 4294901760, %v12824_v16  ;;  %v26061_v60 = vld [vmem:[#allocation86_spill] sm:$0xff] }
 0xb97   :  { %17449 = vmatpush3.msra.mxu1 %v23243_v35  ;;  %17310 = vmatprep.subr.mxu0 %v23540_v53  ;;  %v12844_v7 = vsub.f32 %v23623_v1, %v26059_v28  ;;  %26060 = vst [vmem:[#allocation97_spill] sm:$0xff] %v23670_v26  ;;  %v15329_v16 = vpop.f32.mrf.mxu0  ;;  %v15415_v48 = vpop.f32.mrf.mxu1  ;;  %v10948_v36 = vrot.slane %v26061_v60, 2  ;;  %v10947_v28 = vsel %vm26063_vm14, %v10944_v55, %v10946_v42  ;;  %v12835_v1 = vand.u32 4294901760, %v12834_v15  ;;  %vm26151_vm14 = vmmov %vm26140_vm0 }
 0xb98   :  { %17450 = vmatprep.subr.mxu1 %v23263_v38  ;;  %12526 = vmatmul.mubr.f32.gmra.mxu0 %v26048_v13  ;;  %v23675_v13 = vld [vmem:[%s24472_s14] ss:$0 sm:$0xff]  ;;  %v23681_v4 = vadd.f32 %v15415_v48, %v15414_v25  ;;  %v23686_v35 = vsub.f32 %v10942_v21, %v23657_v3  ;;  %v26064_v25 = vld [vmem:[#allocation88_spill] sm:$0xff]  ;;  %v26065_v55 = vand.u32 4294901760, %v23635_v0  ;;  %v23697_v15 = vand.u32 4294901760, %v10947_v28  ;;  %s17743_s14 = smov [#allocation7]  }
 0xb99   :  { %17451 = vmatpush3.msra.mxu1 %v23263_v38  ;;  %17311 = vmatpush3.msra.mxu0 %v23540_v53  ;;  %v15330_v38 = vadd.f32 %v15329_v16, %v15328_v10  ;;  %v15331_v12 = vpop.f32.mrf.mxu0  ;;  %v15417_v60 = vpop.f32.mrf.mxu1  ;;  %v10951_v48 = vrot.slane %v26064_v25, 2  ;;  %v10950_v42 = vsel %vm26067_vm2, %v10948_v36, %v10949_v31  ;;  %vm26154_vm2 = vmmov %vm26140_vm0  ;;  %s14256_s18 = sshll.u32 %s17743_s14, 4  ;;  %s14257_s18 = int_to_ptr.vmem [resolvable:$true] %s14256_s18 }
 0xb9a   :  { %17372 = vmatmul.mubr.f32.gmra.mxu1 %v23616_v33  ;;  %17452 = vmatprep.subr.mxu1 %v23289_v50  ;;  %v12854_v21 = vsub.f32 %v23635_v0, %v26065_v55  ;;  %26066 = vst [vmem:[#allocation44_spill] sm:$0xff] %v23697_v15  ;;  %s17707_s9 = scalar_lea.vmem %s14257_s18, 2048  ;;  %p17712_p11 = scmp.lt.s32.totalorder %s14257_s18, %s14257_s18 }
 0xb9b   :  { %17312 = vmatprep.mubr.f32.mxu0 %v12825_v61  ;;  %17374 = vmatprep.mubr.f32.mxu1 %v23640_v18  ;;  %v11147_v32 = vadd.f32 %v15330_v38, %v23675_v13  ;;  %v15332_v61 = vpop.f32.mrf.mxu0  ;;  %v15418_v16 = vpop.f32.mrf.mxu1  ;;  %v23701_v18 = vsub.f32 %v10945_v39, %v23670_v26  ;;  %v12845_v38 = vand.u32 4294901760, %v12844_v7  ;;  %v23717_v7 = vand.u32 4294901760, %v10950_v42  ;;  %p17708_p10 = scmp.ne.s32.totalorder %s14257_s18, %s17707_s9  ;;  %p17713_p12 = scmp.lt.s32.totalorder %s17707_s9, %s17707_s9 }
 0xb9c   :  { %17453 = vmatpush3.msra.mxu1 %v23289_v50  ;;  %17392 = vmatprep.subr.mxu0 %v23261_v40  ;;  %v15333_v25 = vadd.f32 %v15332_v61, %v15331_v12 }
 0xb9d   :  { %17454 = vmatprep.subr.mxu1 %v23314_v56  ;;  %17313 = vmatmul.mubr.f32.vlgmr.msra.gmra.mxu0 %v12835_v1  ;;  %v23705_v1 = vadd.f32 %v15418_v16, %v15417_v60  ;;  %v23708_v10 = vadd.f32 %v23626_v23, %v11147_v32  ;;  %v15334_v36 = vpop.f32.mrf.mxu0  ;;  %v15420_v55 = vpop.f32.mrf.mxu1  ;;  %26069 = vst [vmem:[#allocation33_spill] sm:$0xff] %v23717_v7  ;;  %p17714_p13 = por %p17713_p12, %p17712_p11 }
 0xb9e   :  { %17455 = vmatpush3.msra.mxu1 %v23314_v56  ;;  %17393 = vmatpush3.msra.mxu0 %v23261_v40  ;;  %v26068_v40 = vand.u32 4294901760, %v23663_v37  ;;  %v11162_v23 = vadd.f32 %v15333_v25, %v23675_v13  ;;  %v10952_v60 = vsel %vm26070_vm13, %v10949_v31, %v10951_v48  ;;  %v23724_v32 = vsub.f32 %v10947_v28, %v23697_v15  ;;  %vm26155_vm13 = vmmov %vm26140_vm0 }
 0xb9f   :  { %17375 = vmatmul.mubr.f32.gmra.mxu1 %v23657_v3  ;;  %17456 = vmatprep.subr.mxu1 %v23338_v17  ;;  %v15335_v16 = vpop.f32.mrf.mxu0  ;;  %v23736_v28 = vand.u32 4294901760, %v10952_v60  ;;  %p17715_p0 = pnand %p17714_p13, %p17708_p10 }
 0xba0   :  { %17315 = vmatprep.mubr.f32.mxu0 %v12845_v38  ;;  %17377 = vmatprep.mubr.f32.mxu1 %v23670_v26  ;;  %v12864_v12 = vsub.f32 %v23663_v37, %v26068_v40  ;;  %v15421_v38 = vpop.f32.mrf.mxu1  ;;  %v12855_v40 = vand.u32 4294901760, %v12854_v21  ;;  %v15336_v39 = vadd.f32 %v15335_v16, %v15334_v36  ;;  %v23732_v31 = vadd.f32 %v23648_v20, %v11162_v23 }
 0xba1   :  { %17394 = vmatprep.subr.mxu0 %v23284_v54  ;;  %17457 = vmatpush3.msra.mxu1 %v23338_v17  ;;  %v23729_v25 = vadd.f32 %v15421_v38, %v15420_v55  ;;  %v15337_v48 = vpop.f32.mrf.mxu0  ;;  %v26071_v21 = vand.u32 4294901760, %v23686_v35  ;;  %v23744_v20 = vsub.f32 %v10950_v42, %v23717_v7  ;;  %v26072_v23 = vand.u32 4294901760, %v23701_v18 }
 0xba2   :  { %17395 = vmatpush3.msra.mxu0 %v23284_v54  ;;  %17458 = vmatprep.subr.mxu1 %v23359_v29  ;;  %v15423_v61 = vpop.f32.mrf.mxu1  ;;  %v12865_v54 = vand.u32 4294901760, %v12864_v12  ;;  %v11177_v55 = vadd.f32 %v15336_v39, %v23675_v13  ;;  %v23752_v38 = vand.u32 4294901760, %v23169_v5 }
 0xba3   :  { %17396 = vmatprep.subr.mxu0 %v23312_v45  ;;  %17459 = vmatpush3.msra.mxu1 %v23359_v29  ;;  %v12874_v36 = vsub.f32 %v23686_v35, %v26071_v21  ;;  %v12884_v16 = vsub.f32 %v23701_v18, %v26072_v23  ;;  %v23764_v23 = vsub.f32 %v10952_v60, %v23736_v28 }
 0xba4   :  { %17316 = vmatmul.mubr.f32.gmra.mxu0 %v12855_v40  ;;  %17378 = vmatmul.mubr.f32.gmra.mxu1 %v23697_v15  ;;  %26073 = vst [vmem:[#allocation67_spill] sm:$0xff] %v23752_v38  ;;  %v15338_v40 = vpop.f32.mrf.mxu0  ;;  %v15424_v21 = vpop.f32.mrf.mxu1 }
 0xba5   :  { %17397 = vmatpush3.msra.mxu0 %v23312_v45  ;;  %17460 = vmatprep.subr.mxu1 %v23369_v34  ;;  %v15339_v42 = vadd.f32 %v15338_v40, %v15337_v48  ;;  %v23756_v39 = vadd.f32 %v15424_v21, %v15423_v61  ;;  %v23759_v45 = vadd.f32 %v23681_v4, %v11177_v55  ;;  %v26074_v4 = vand.u32 4294901760, %v23724_v32 }
 0xba6   :  { %17318 = vmatprep.mubr.f32.mxu0 %v12865_v54  ;;  %17380 = vmatprep.mubr.f32.mxu1 %v23717_v7  ;;  %v15340_v15 = vpop.f32.mrf.mxu0  ;;  %v15426_v12 = vpop.f32.mrf.mxu1  ;;  %v12875_v54 = vand.u32 4294901760, %v12874_v36  ;;  %v23776_v55 = vand.u32 4294901760, %v23176_v59  ;;  %v12885_v21 = vand.u32 4294901760, %v12884_v16  ;;  %v23796_v16 = vand.u32 4294901760, %v23191_v63 }
 0xba7   :  { %17398 = vmatprep.subr.mxu0 %v23336_v62  ;;  %17461 = vmatpush3.msra.mxu1 %v23369_v34  ;;  %v11192_v48 = vadd.f32 %v15339_v42, %v23675_v13  ;;  %v12894_v60 = vsub.f32 %v23724_v32, %v26074_v4  ;;  %v25059_v4 = vand.u32 4294901760, %v23764_v23 }
 0xba8   :  { %17399 = vmatpush3.msra.mxu0 %v23336_v62  ;;  %17462 = vmatprep.subr.mxu1 %v23388_v41  ;;  %v23780_v62 = vsub.f32 %v23169_v5, %v23752_v38  ;;  %v15341_v36 = vpop.f32.mrf.mxu0  ;;  %v15427_v40 = vpop.f32.mrf.mxu1 }
 0xba9   :  { %17400 = vmatprep.subr.mxu0 %v23357_v47  ;;  %17463 = vmatpush3.msra.mxu1 %v23388_v41  ;;  %v15342_v42 = vadd.f32 %v15341_v36, %v15340_v15  ;;  %v23783_v61 = vadd.f32 %v15427_v40, %v15426_v12  ;;  %v23786_v7 = vadd.f32 %v23705_v1, %v11192_v48  ;;  %v12895_v40 = vand.u32 4294901760, %v12894_v60 }
 0xbaa   :  { %17319 = vmatmul.mubr.f32.gmra.mxu0 %v12875_v54  ;;  %17381 = vmatmul.mubr.f32.gmra.mxu1 %v23736_v28  ;;  %v15343_v5 = vpop.f32.mrf.mxu0  ;;  %v15429_v26 = vpop.f32.mrf.mxu1  ;;  %v26075_v54 = vand.u32 4294901760, %v23744_v20 }
 0xbab   :  { %17401 = vmatpush3.msra.mxu0 %v23357_v47  ;;  %17464 = vmatprep.subr.mxu1 %v23416_v49  ;;  %v11207_v1 = vadd.f32 %v15342_v42, %v23675_v13  ;;  %v23803_v47 = vsub.f32 %v23176_v59, %v23776_v55  ;;  %v12914_v59 = vsub.f32 %v23764_v23, %v25059_v4 }
 0xbac   :  { %17321 = vmatprep.mubr.f32.mxu0 %v12885_v21  ;;  %17383 = vmatprep.mubr.f32.mxu1 %v23752_v38  ;;  %v12904_v15 = vsub.f32 %v23744_v20, %v26075_v54  ;;  %v15344_v48 = vpop.f32.mrf.mxu0  ;;  %v15430_v36 = vpop.f32.mrf.mxu1 }
 0xbad   :  { %17402 = vmatprep.subr.mxu0 %v23377_v46  ;;  %17465 = vmatpush3.msra.mxu1 %v23416_v49  ;;  %v15345_v21 = vadd.f32 %v15344_v48, %v15343_v5  ;;  %v23808_v54 = vadd.f32 %v15430_v36, %v15429_v26  ;;  %v23811_v42 = vadd.f32 %v23729_v25, %v11207_v1  ;;  %v23820_v26 = vand.u32 4294901760, %v23198_v22 }
 0xbae   :  { %17403 = vmatpush3.msra.mxu0 %v23377_v46  ;;  %17466 = vmatprep.subr.mxu1 %v23426_v14  ;;  %v15346_v12 = vpop.f32.mrf.mxu0  ;;  %v15432_v38 = vpop.f32.mrf.mxu1  ;;  %v12905_v46 = vand.u32 4294901760, %v12904_v15  ;;  %v23824_v25 = vsub.f32 %v23191_v63, %v23796_v16  ;;  %v26077_v5 = vand.u32 4294901760, %v23780_v62  ;;  %v23835_v63 = vand.u32 4294901760, %v23204_v19 }
 0xbaf   :  { %17404 = vmatprep.subr.mxu0 %v23397_v8  ;;  %17467 = vmatpush3.msra.mxu1 %v23426_v14  ;;  %26076 = vst [vmem:[#allocation46_spill] sm:$0xff] %v23820_v26  ;;  %v11222_v60 = vadd.f32 %v15345_v21, %v23675_v13  ;;  %v23848_v48 = vsub.f32 %v23198_v22, %v23820_v26  ;;  %v23859_v22 = vand.u32 4294901760, %v23217_v24 }
 0xbb0   :  { %17322 = vmatmul.mubr.f32.gmra.mxu0 %v12895_v40  ;;  %17384 = vmatmul.mubr.f32.gmra.mxu1 %v23776_v55  ;;  %v12924_v1 = vsub.f32 %v23780_v62, %v26077_v5  ;;  %v15347_v15 = vpop.f32.mrf.mxu0  ;;  %v15433_v36 = vpop.f32.mrf.mxu1  ;;  %26078 = vst [vmem:[#allocation25_spill] sm:$0xff] %v23835_v63 }
 0xbb1   :  { %17405 = vmatpush3.msra.mxu0 %v23397_v8  ;;  %17468 = vmatprep.subr.mxu1 %v23454_v51  ;;  %v15348_v40 = vadd.f32 %v15347_v15, %v15346_v12  ;;  %v15434_v21 = vadd.f32 %v15433_v36, %v15432_v38  ;;  %v23838_v8 = vadd.f32 %v23756_v39, %v11222_v60  ;;  %v26079_v60 = vand.u32 4294901760, %v23803_v47 }
 0xbb2   :  { %17324 = vmatprep.mubr.f32.mxu0 %v12905_v46  ;;  %17386 = vmatprep.mubr.f32.mxu1 %v23796_v16  ;;  %v15349_v5 = vpop.f32.mrf.mxu0  ;;  %v23842_v4 = vpop.f32.mrf.mxu1  ;;  %v12915_v46 = vand.u32 4294901760, %v12914_v59  ;;  %v12925_v12 = vand.u32 4294901760, %v12924_v1  ;;  %26080 = vst [vmem:[#allocation100_spill] sm:$0xff] %v23859_v22  ;;  %v23863_v59 = vsub.f32 %v23204_v19, %v23835_v63 }
 0xbb3   :  { %17406 = vmatprep.subr.mxu0 %v23408_v58  ;;  %17469 = vmatpush3.msra.mxu1 %v23454_v51  ;;  %v11237_v39 = vadd.f32 %v15348_v40, %v23675_v13 }
 0xbb4   :  { %17407 = vmatpush3.msra.mxu0 %v23408_v58  ;;  %17470 = vmatprep.subr.mxu1 %v23464_v52  ;;  %v12934_v58 = vsub.f32 %v23803_v47, %v26079_v60  ;;  %v15350_v15 = vpop.f32.mrf.mxu0  ;;  %v15436_v36 = vpop.f32.mrf.mxu1 }
 0xbb5   :  { %17408 = vmatprep.subr.mxu0 %v23435_v6  ;;  %17471 = vmatpush3.msra.mxu1 %v23464_v52  ;;  %v15351_v40 = vadd.f32 %v15350_v15, %v15349_v5  ;;  %v23866_v38 = vadd.f32 %v23783_v61, %v11237_v39  ;;  %v23882_v39 = vsub.f32 %v23217_v24, %v23859_v22 }
 0xbb6   :  { %17325 = vmatmul.mubr.f32.gmra.mxu0 %v12915_v46  ;;  %17387 = vmatmul.mubr.f32.gmra.mxu1 %v23820_v26  ;;  %v15352_v1 = vpop.f32.mrf.mxu0  ;;  %v26081_v46 = vand.u32 4294901760, %v23824_v25  ;;  %v25064_v26 = vand.u32 4294901760, %v23848_v48  ;;  %v12935_v61 = vand.u32 4294901760, %v12934_v58 }
 0xbb7   :  { %17409 = vmatpush3.msra.mxu0 %v23435_v6  ;;  %17472 = vmatprep.subr.mxu1 %v23492_v57  ;;  %v11252_v19 = vadd.f32 %v15351_v40, %v23675_v13 }
 0xbb8   :  { %17327 = vmatprep.mubr.f32.mxu0 %v12925_v12  ;;  %17389 = vmatprep.mubr.f32.mxu1 %v23835_v63  ;;  %v12944_v60 = vsub.f32 %v23824_v25, %v26081_v46  ;;  %v15438_v6 = vpop.f32.mrf.mxu1  ;;  %v15353_v5 = vpop.f32.mrf.mxu0  ;;  %v12954_v24 = vsub.f32 %v23848_v48, %v25064_v26  ;;  %v26091_v63 = vld [vmem:[#allocation11_spill] sm:$0xff] }
 0xbb9   :  { %17410 = vmatprep.subr.mxu0 %v23446_v9  ;;  %17473 = vmatpush3.msra.mxu1 %v23492_v57  ;;  %v15354_v15 = vadd.f32 %v15353_v5, %v15352_v1  ;;  %v23886_v40 = vadd.f32 %v23808_v54, %v11252_v19  ;;  %v25065_v5 = vand.u32 4294901760, %v23882_v39 }
 0xbba   :  { %17411 = vmatpush3.msra.mxu0 %v23446_v9  ;;  %17474 = vmatprep.subr.mxu1 %v23502_v44  ;;  %v15439_v58 = vpop.f32.mrf.mxu1  ;;  %v15355_v46 = vpop.f32.mrf.mxu0  ;;  %v12945_v9 = vand.u32 4294901760, %v12944_v60 }
 0xbbb   :  { %17412 = vmatprep.subr.mxu0 %v23473_v43  ;;  %17475 = vmatpush3.msra.mxu1 %v23502_v44  ;;  %v11267_v12 = vadd.f32 %v15354_v15, %v23675_v13  ;;  %v15440_v1 = vadd.f32 %v15439_v58, %v15438_v6  ;;  %v12955_v15 = vand.u32 4294901760, %v12954_v24  ;;  %v15437_v58 = vadd.f32 %v15436_v36, %v23842_v4  ;;  %v26086_v4 = vld [vmem:[#allocation51_spill] sm:$0xff] }
 0xbbc   :  { %17328 = vmatmul.mubr.f32.gmra.mxu0 %v12935_v61  ;;  %17390 = vmatmul.mubr.f32.gmra.mxu1 %v23859_v22  ;;  %v15356_v19 = vpop.f32.mrf.mxu0  ;;  %v26082_v61 = vand.u32 4294901760, %v23863_v59 }
 0xbbd   :  { %17413 = vmatpush3.msra.mxu0 %v23473_v43  ;;  %17476 = vmatprep.subr.mxu1 %v23521_v2  ;;  %v15441_v54 = vpop.f32.mrf.mxu1  ;;  %v15357_v22 = vadd.f32 %v15356_v19, %v15355_v46  ;;  %v23902_v26 = vadd.f32 %v15434_v21, %v11267_v12  ;;  %v26083_v43 = vand.u32 4294901760, %v23600_v27  ;;  %v26084_v12 = vld [vmem:[#allocation24_spill] sm:$0xff] }
 0xbbe   :  { %17330 = vmatprep.mubr.f32.mxu0 %v12945_v9  ;;  %17414 = vmatprep.subr.mxu0 %v23484_v11  ;;  %v12964_v60 = vsub.f32 %v23863_v59, %v26082_v61  ;;  %v26085_v46 = vand.u32 4294901760, %v26084_v12 }
 0xbbf   :  { %17477 = vmatpush3.msra.mxu1 %v23521_v2  ;;  %17480 = vmatprep.mubr.f32.mxu1 %v26083_v43  ;;  %v15442_v6 = vpop.f32.mrf.mxu1  ;;  %v11282_v9 = vadd.f32 %v15357_v22, %v23675_v13 }
 0xbc0   :  { %17415 = vmatpush3.msra.mxu0 %v23484_v11  ;;  %17478 = vmatprep.subr.mxu1 %v23540_v53  ;;  %v15443_v61 = vadd.f32 %v15442_v6, %v15441_v54  ;;  %v12965_v19 = vand.u32 4294901760, %v12964_v60  ;;  %v12974_v11 = vsub.f32 %v23882_v39, %v25065_v5  ;;  %v26087_v54 = vld [vmem:[#allocation108_spill] sm:$0xff]  ;;  %v26088_v6 = vld [vmem:[#allocation38_spill] sm:$0xff] }
 0xbc1   :  { %17416 = vmatprep.subr.mxu0 %v23511_v30  ;;  %17479 = vmatpush3.msra.mxu1 %v23540_v53  ;;  %v15358_v21 = vpop.f32.mrf.mxu0  ;;  %v23918_v24 = vadd.f32 %v15437_v58, %v11282_v9  ;;  %v26090_v58 = vld [vmem:[#allocation19_spill] sm:$0xff] }
 0xbc2   :  { %17331 = vmatmul.mubr.f32.gmra.mxu0 %v12955_v15  ;;  %17481 = vmatmul.mubr.f32.vlgmr.msra.gmra.mxu1 %v26085_v46  ;;  %v26089_v15 = vand.u32 4294901760, %v26088_v6 }
 0xbc3   :  { %17417 = vmatpush3.msra.mxu0 %v23511_v30  ;;  %17560 = vmatprep.subr.mxu1 %v26086_v4  ;;  %v15444_v36 = vpop.f32.mrf.mxu1  ;;  %v15359_v22 = vpop.f32.mrf.mxu0  ;;  %v12975_v30 = vand.u32 4294901760, %v12974_v11 }
 0xbc4   :  { %17333 = vmatprep.mubr.f32.mxu0 %v12965_v19  ;;  %17418 = vmatprep.subr.mxu0 %v26087_v54  ;;  %v15360_v43 = vadd.f32 %v15359_v22, %v15358_v21  ;;  %v26092_v22 = vand.u32 4294901760, %v23635_v0 }
 0xbc5   :  { %17483 = vmatprep.mubr.f32.mxu1 %v26089_v15  ;;  %17561 = vmatpush3.msra.mxu1 %v26086_v4  ;;  %v15445_v60 = vpop.f32.mrf.mxu1  ;;  %v15361_v46 = vpop.f32.mrf.mxu0 }
 0xbc6   :  { %17419 = vmatpush3.msra.mxu0 %v26087_v54  ;;  %17562 = vmatprep.subr.mxu1 %v26090_v58  ;;  %v11297_v9 = vadd.f32 %v15360_v43, %v23675_v13  ;;  %v15446_v5 = vadd.f32 %v15445_v60, %v15444_v36  ;;  %v26093_v54 = vld [vmem:[#allocation13_spill] sm:$0xff]  ;;  %v26094_v60 = vand.u32 4294901760, %v23663_v37 }
 0xbc7   :  { %17420 = vmatprep.subr.mxu0 %v26091_v63  ;;  %17563 = vmatpush3.msra.mxu1 %v26090_v58  ;;  %v15447_v21 = vpop.f32.mrf.mxu1  ;;  %v15362_v19 = vpop.f32.mrf.mxu0  ;;  %v26095_v58 = vld [vmem:[#allocation55_spill] sm:$0xff] }
 0xbc8   :  { %17334 = vmatmul.mubr.f32.gmra.mxu0 %v12975_v30  ;;  %17484 = vmatmul.mubr.f32.gmra.mxu1 %v26092_v22  ;;  %v15363_v4 = vadd.f32 %v15362_v19, %v15361_v46  ;;  %v23933_v15 = vadd.f32 %v15440_v1, %v11297_v9  ;;  %v26096_v30 = vand.u32 4294901760, %v23686_v35 }
 0xbc9   :  { %17421 = vmatpush3.msra.mxu0 %v26091_v63  ;;  %17564 = vmatprep.subr.mxu1 %v23289_v50  ;;  %v15448_v11 = vpop.f32.mrf.mxu1 }
 0xbca   :  { %17422 = vmatprep.subr.mxu0 %v26093_v54  ;;  %17424 = vmatprep.mubr.f32.mxu0 %v23600_v27  ;;  %v11312_v36 = vadd.f32 %v15363_v4, %v23675_v13  ;;  %v15449_v43 = vadd.f32 %v15448_v11, %v15447_v21 }
 0xbcb   :  { %17486 = vmatprep.mubr.f32.mxu1 %v26094_v60  ;;  %17565 = vmatpush3.msra.mxu1 %v23289_v50 }
 0xbcc   :  { %v15364_v46 = vpop.f32.mrf.mxu0  ;;  %17423 = vmatpush3.msra.mxu0 %v26093_v54  ;;  %17566 = vmatprep.subr.mxu1 %v23314_v56  ;;  %v15450_v63 = vpop.f32.mrf.mxu1  ;;  %v23945_v1 = vadd.f32 %v15443_v61, %v11312_v36  ;;  %v26097_v61 = vand.u32 4294901760, %v23701_v18 }
 0xbcd   :  { %17504 = vmatprep.subr.mxu0 %v26095_v58  ;;  %17567 = vmatpush3.msra.mxu1 %v23314_v56 }
 0xbce   :  { %v15365_v27 = vpop.f32.mrf.mxu0  ;;  %17425 = vmatmul.mubr.f32.vlgmr.msra.gmra.mxu0 %v26084_v12  ;;  %17487 = vmatmul.mubr.f32.gmra.mxu1 %v26096_v30  ;;  %v15451_v50 = vpop.f32.mrf.mxu1  ;;  %v26098_v12 = vld [vmem:[#allocation40_spill] sm:$0xff] }
 0xbcf   :  { %v15366_v9 = vadd.f32 %v15365_v27, %v15364_v46  ;;  %17505 = vmatpush3.msra.mxu0 %v26095_v58  ;;  %17568 = vmatprep.subr.mxu1 %v23338_v17  ;;  %v15452_v21 = vadd.f32 %v15451_v50, %v15450_v63  ;;  %v26100_v46 = vand.u32 4294901760, %v23724_v32 }
 0xbd0   :  { %v15367_v19 = vpop.f32.mrf.mxu0  ;;  %17427 = vmatprep.mubr.f32.mxu0 %v26088_v6  ;;  %17489 = vmatprep.mubr.f32.mxu1 %v26097_v61  ;;  %v15453_v22 = vpop.f32.mrf.mxu1  ;;  %v26099_v6 = vld [vmem:[#allocation52_spill] sm:$0xff] }
 0xbd1   :  { %v11327_v56 = vadd.f32 %v15366_v9, %v23675_v13  ;;  %17506 = vmatprep.subr.mxu0 %v26098_v12  ;;  %17569 = vmatpush3.msra.mxu1 %v23338_v17 }
 0xbd2   :  { %v15368_v4 = vpop.f32.mrf.mxu0  ;;  %17507 = vmatpush3.msra.mxu0 %v26098_v12  ;;  %17570 = vmatprep.subr.mxu1 %v23359_v29  ;;  %v15454_v54 = vpop.f32.mrf.mxu1 }
 0xbd3   :  { %v15369_v11 = vadd.f32 %v15368_v4, %v15367_v19  ;;  %v23962_v36 = vadd.f32 %v15446_v5, %v11327_v56  ;;  %17508 = vmatprep.subr.mxu0 %v26099_v6  ;;  %17571 = vmatpush3.msra.mxu1 %v23359_v29  ;;  %v15455_v60 = vadd.f32 %v15454_v54, %v15453_v22  ;;  %v26101_v5 = vand.u32 4294901760, %v23744_v20 }
 0xbd4   :  { %17428 = vmatmul.mubr.f32.gmra.mxu0 %v23635_v0  ;;  %17490 = vmatmul.mubr.f32.gmra.mxu1 %v26100_v46  ;;  %v15370_v63 = vpop.f32.mrf.mxu0  ;;  %v15568_v58 = vpop.f32.mrf.mxu1  ;;  %v26102_v0 = vld [vmem:[#allocation12_spill] sm:$0xff] }
 0xbd5   :  { %v11342_v17 = vadd.f32 %v15369_v11, %v23675_v13  ;;  %17509 = vmatpush3.msra.mxu0 %v26099_v6  ;;  %17572 = vmatprep.subr.mxu1 %v23369_v34  ;;  %v26106_v6 = vld [vmem:[#allocation23_spill] sm:$0xff] }
 0xbd6   :  { %17430 = vmatprep.mubr.f32.mxu0 %v23663_v37  ;;  %17492 = vmatprep.mubr.f32.mxu1 %v26101_v5  ;;  %v15371_v29 = vpop.f32.mrf.mxu0  ;;  %v15569_v27 = vpop.f32.mrf.mxu1  ;;  %v26103_v37 = vld [vmem:[#allocation16_spill] sm:$0xff] }
 0xbd7   :  { %v23975_v30 = vadd.f32 %v15449_v43, %v11342_v17  ;;  %17510 = vmatprep.subr.mxu0 %v26102_v0  ;;  %17573 = vmatpush3.msra.mxu1 %v23369_v34  ;;  %v15372_v9 = vadd.f32 %v15371_v29, %v15370_v63  ;;  %v15570_v50 = vadd.f32 %v15569_v27, %v15568_v58  ;;  %v26104_v43 = vand.u32 4294901760, %v23764_v23  ;;  %v26107_v63 = vld [vmem:[#allocation32_spill] sm:$0xff] }
 0xbd8   :  { %17511 = vmatpush3.msra.mxu0 %v26102_v0  ;;  %17574 = vmatprep.subr.mxu1 %v23388_v41  ;;  %v15373_v19 = vpop.f32.mrf.mxu0  ;;  %v15571_v61 = vpop.f32.mrf.mxu1 }
 0xbd9   :  { %17512 = vmatprep.subr.mxu0 %v26103_v37  ;;  %17575 = vmatpush3.msra.mxu1 %v23388_v41  ;;  %v11357_v56 = vadd.f32 %v15372_v9, %v23675_v13  ;;  %v26105_v41 = vand.u32 4294901760, %v23780_v62  ;;  %v26110_v9 = vld [vmem:[#allocation71_spill] sm:$0xff] }
 0xbda   :  { %17431 = vmatmul.mubr.f32.gmra.mxu0 %v23686_v35  ;;  %17493 = vmatmul.mubr.f32.gmra.mxu1 %v26104_v43  ;;  %v15374_v34 = vpop.f32.mrf.mxu0  ;;  %v15572_v22 = vpop.f32.mrf.mxu1 }
 0xbdb   :  { %17513 = vmatpush3.msra.mxu0 %v26103_v37  ;;  %17576 = vmatprep.subr.mxu1 %v23416_v49  ;;  %v15375_v12 = vadd.f32 %v15374_v34, %v15373_v19  ;;  %v15573_v4 = vadd.f32 %v15572_v22, %v15571_v61  ;;  %v23989_v11 = vadd.f32 %v15452_v21, %v11357_v56 }
 0xbdc   :  { %17433 = vmatprep.mubr.f32.mxu0 %v23701_v18  ;;  %17495 = vmatprep.mubr.f32.mxu1 %v26105_v41  ;;  %v15488_v54 = vpop.f32.mrf.mxu0  ;;  %v15574_v35 = vpop.f32.mrf.mxu1  ;;  %v26114_v41 = vld [vmem:[#allocation74_spill] sm:$0xff] }
 0xbdd   :  { %17514 = vmatprep.subr.mxu0 %v26106_v6  ;;  %17577 = vmatpush3.msra.mxu1 %v23416_v49  ;;  %v11372_v46 = vadd.f32 %v15375_v12, %v23675_v13  ;;  %v26108_v49 = vand.u32 4294901760, %v23803_v47 }
 0xbde   :  { %17515 = vmatpush3.msra.mxu0 %v26106_v6  ;;  %17578 = vmatprep.subr.mxu1 %v23426_v14  ;;  %v15489_v17 = vpop.f32.mrf.mxu0  ;;  %v15575_v21 = vpop.f32.mrf.mxu1  ;;  %v26115_v6 = vld [vmem:[#allocation93_spill] sm:$0xff] }
 0xbdf   :  { %17516 = vmatprep.subr.mxu0 %v26107_v63  ;;  %17579 = vmatpush3.msra.mxu1 %v23426_v14  ;;  %v15490_v18 = vadd.f32 %v15489_v17, %v15488_v54  ;;  %v15576_v58 = vadd.f32 %v15575_v21, %v15574_v35  ;;  %v24001_v5 = vadd.f32 %v15455_v60, %v11372_v46  ;;  %v26109_v14 = vand.u32 4294901760, %v23824_v25 }
 0xbe0   :  { %17434 = vmatmul.mubr.f32.gmra.mxu0 %v23724_v32  ;;  %17496 = vmatmul.mubr.f32.gmra.mxu1 %v26108_v49  ;;  %v15491_v13 = vpop.f32.mrf.mxu0  ;;  %v15577_v29 = vpop.f32.mrf.mxu1 }
 0xbe1   :  { %17517 = vmatpush3.msra.mxu0 %v26107_v63  ;;  %17580 = vmatprep.subr.mxu1 %v23454_v51  ;;  %v11847_v27 = vadd.f32 %v15490_v18, %v23708_v10 }
 0xbe2   :  { %17436 = vmatprep.mubr.f32.mxu0 %v23744_v20  ;;  %17498 = vmatprep.mubr.f32.mxu1 %v26109_v14  ;;  %v15492_v60 = vpop.f32.mrf.mxu0  ;;  %v15578_v0 = vpop.f32.mrf.mxu1  ;;  %v26111_v20 = vld [vmem:[#allocation72_spill] sm:$0xff]  ;;  %v26119_v14 = vld [vmem:[#allocation102_spill] sm:$0xff] }
 0xbe3   :  { %17518 = vmatprep.subr.mxu0 %v26110_v9  ;;  %17581 = vmatpush3.msra.mxu1 %v23454_v51  ;;  %v15493_v32 = vadd.f32 %v15492_v60, %v15491_v13  ;;  %v15579_v19 = vadd.f32 %v15578_v0, %v15577_v29  ;;  %v24014_v61 = vadd.f32 %v15570_v50, %v11847_v27  ;;  %v26112_v51 = vand.u32 4294901760, %v23848_v48 }
 0xbe4   :  { %17519 = vmatpush3.msra.mxu0 %v26110_v9  ;;  %17582 = vmatprep.subr.mxu1 %v23464_v52  ;;  %v15494_v10 = vpop.f32.mrf.mxu0  ;;  %v15580_v37 = vpop.f32.mrf.mxu1 }
 0xbe5   :  { %17520 = vmatprep.subr.mxu0 %v26111_v20  ;;  %17583 = vmatpush3.msra.mxu1 %v23464_v52  ;;  %v11856_v56 = vadd.f32 %v15493_v32, %v23732_v31  ;;  %v26113_v52 = vand.u32 4294901760, %v23863_v59 }
 0xbe6   :  { %17437 = vmatmul.mubr.f32.gmra.mxu0 %v23764_v23  ;;  %17499 = vmatmul.mubr.f32.gmra.mxu1 %v26112_v51  ;;  %v15495_v43 = vpop.f32.mrf.mxu0  ;;  %v15581_v50 = vpop.f32.mrf.mxu1 }
 0xbe7   :  { %17521 = vmatpush3.msra.mxu0 %v26111_v20  ;;  %17584 = vmatprep.subr.mxu1 %v23492_v57  ;;  %v15496_v34 = vadd.f32 %v15495_v43, %v15494_v10  ;;  %v15582_v22 = vadd.f32 %v15581_v50, %v15580_v37  ;;  %v24026_v12 = vadd.f32 %v15573_v4, %v11856_v56  ;;  %v26121_v10 = vld [vmem:[#allocation73_spill] sm:$0xff]  ;;  %v26122_v37 = vld [vmem:[#allocation35_spill] sm:$0xff]  ;;  %v26123_v20 = vld [vmem:[#allocation34_spill] sm:$0xff] }
 0xbe8   :  { %17439 = vmatprep.mubr.f32.mxu0 %v23780_v62  ;;  %17501 = vmatprep.mubr.f32.mxu1 %v26113_v52  ;;  %v15497_v31 = vpop.f32.mrf.mxu0  ;;  %v15583_v23 = vpop.f32.mrf.mxu1  ;;  %v26125_v52 = vld [vmem:[#allocation29_spill] sm:$0xff] }
 0xbe9   :  { %17522 = vmatprep.subr.mxu0 %v26114_v41  ;;  %17585 = vmatpush3.msra.mxu1 %v23492_v57  ;;  %v11865_v54 = vadd.f32 %v15496_v34, %v23759_v45  ;;  %v26116_v57 = vand.u32 4294901760, %v23882_v39  ;;  %v26124_v34 = vld [vmem:[#allocation94_spill] sm:$0xff] }
 0xbea   :  { %17523 = vmatpush3.msra.mxu0 %v26114_v41  ;;  %17586 = vmatprep.subr.mxu1 %v23502_v44  ;;  %v15498_v35 = vpop.f32.mrf.mxu0  ;;  %v15584_v4 = vpop.f32.mrf.mxu1 }
 0xbeb   :  { %17524 = vmatprep.subr.mxu0 %v26115_v6  ;;  %17587 = vmatpush3.msra.mxu1 %v23502_v44  ;;  %v15499_v62 = vadd.f32 %v15498_v35, %v15497_v31  ;;  %v15585_v46 = vadd.f32 %v15584_v4, %v15583_v23  ;;  %v24038_v17 = vadd.f32 %v15576_v58, %v11865_v54  ;;  %v26117_v44 = vld [vmem:[#allocation95_spill] sm:$0xff]  ;;  %v26126_v4 = vld [vmem:[#allocation97_spill] sm:$0xff] }
 0xbec   :  { %17440 = vmatmul.mubr.f32.gmra.mxu0 %v23803_v47  ;;  %17502 = vmatmul.mubr.f32.gmra.mxu1 %v26116_v57  ;;  %v15500_v45 = vpop.f32.mrf.mxu0  ;;  %v15586_v21 = vpop.f32.mrf.mxu1  ;;  %v26118_v47 = vld [vmem:[#allocation99_spill] sm:$0xff] }
 0xbed   :  { %17525 = vmatpush3.msra.mxu0 %v26115_v6  ;;  %17588 = vmatprep.subr.mxu1 %v23521_v2  ;;  %v11874_v63 = vadd.f32 %v15499_v62, %v23786_v7 }
 0xbee   :  { %17442 = vmatprep.mubr.f32.mxu0 %v23824_v25  ;;  %17526 = vmatprep.subr.mxu0 %v26117_v44  ;;  %v15501_v18 = vpop.f32.mrf.mxu0  ;;  %v15587_v58 = vpop.f32.mrf.mxu1 }
 0xbef   :  { %17589 = vmatpush3.msra.mxu1 %v23521_v2  ;;  %17592 = vmatprep.mubr.f32.mxu1 %v26118_v47  ;;  %v15502_v49 = vadd.f32 %v15501_v18, %v15500_v45  ;;  %v15588_v13 = vadd.f32 %v15587_v58, %v15586_v21  ;;  %v24050_v29 = vadd.f32 %v15579_v19, %v11874_v63  ;;  %v26120_v2 = vld [vmem:[#allocation111_spill] sm:$0xff]  ;;  %v26127_v45 = vld [vmem:[#allocation44_spill] sm:$0xff]  ;;  %v26128_v18 = vld [vmem:[#allocation33_spill] sm:$0xff] }
 0xbf0   :  { %17527 = vmatpush3.msra.mxu0 %v26117_v44  ;;  %17590 = vmatprep.subr.mxu1 %v23540_v53  ;;  %v15503_v27 = vpop.f32.mrf.mxu0  ;;  %v15589_v7 = vpop.f32.mrf.mxu1 }
 0xbf1   :  { %17528 = vmatprep.subr.mxu0 %v26119_v14  ;;  %17591 = vmatpush3.msra.mxu1 %v23540_v53  ;;  %v11883_v25 = vadd.f32 %v15502_v49, %v23811_v42 }
 0xbf2   :  { %17443 = vmatmul.mubr.f32.gmra.mxu0 %v23848_v48  ;;  %17593 = vmatmul.mubr.f32.vlgmr.msra.gmra.mxu1 %v26120_v2  ;;  %v15504_v60 = vpop.f32.mrf.mxu0  ;;  %v15590_v0 = vpop.f32.mrf.mxu1 }
 0xbf3   :  { %17529 = vmatpush3.msra.mxu0 %v26119_v14  ;;  %17445 = vmatprep.mubr.f32.mxu0 %v23863_v59  ;;  %v15505_v9 = vadd.f32 %v15504_v60, %v15503_v27  ;;  %v15591_v32 = vadd.f32 %v15590_v0, %v15589_v7  ;;  %v24061_v19 = vadd.f32 %v15582_v22, %v11883_v25  ;;  %v26129_v14 = vld [vmem:[#allocation67_spill] sm:$0xff] }
 0xbf4   :  { %17530 = vmatprep.subr.mxu0 %v26121_v10  ;;  %17595 = vmatprep.mubr.f32.mxu1 %v26122_v37  ;;  %v15506_v53 = vpop.f32.mrf.mxu0  ;;  %v15592_v42 = vpop.f32.mrf.mxu1 }
 0xbf5   :  { %17531 = vmatpush3.msra.mxu0 %v26121_v10  ;;  %v11892_v48 = vadd.f32 %v15505_v9, %v23838_v8 }
 0xbf6   :  { %17532 = vmatprep.subr.mxu0 %v26123_v20  ;;  %17446 = vmatmul.mubr.f32.gmra.mxu0 %v23882_v39  ;;  %v15507_v56 = vpop.f32.mrf.mxu0  ;;  %v15593_v59 = vpop.f32.mrf.mxu1 }
 0xbf7   :  { %17533 = vmatpush3.msra.mxu0 %v26123_v20  ;;  %17596 = vmatmul.mubr.f32.gmra.mxu1 %v23616_v33  ;;  %v15508_v51 = vadd.f32 %v15507_v56, %v15506_v53  ;;  %v15594_v43 = vadd.f32 %v15593_v59, %v15592_v42  ;;  %v24071_v50 = vadd.f32 %v15585_v46, %v11892_v48  ;;  %v26130_v48 = vld [vmem:[#allocation46_spill] sm:$0xff] }
 0xbf8   :  { %17534 = vmatprep.subr.mxu0 %v26124_v34  ;;  %17536 = vmatprep.mubr.f32.mxu0 %v26118_v47  ;;  %v15509_v22 = vpop.f32.mrf.mxu0  ;;  %v15595_v8 = vpop.f32.mrf.mxu1 }
 0xbf9   :  { %17598 = vmatprep.mubr.f32.mxu1 %v26125_v52  ;;  %17535 = vmatpush3.msra.mxu0 %v26124_v34  ;;  %v11901_v39 = vadd.f32 %v15508_v51, %v23866_v38  ;;  %v26131_v51 = vld [vmem:[#allocation25_spill] sm:$0xff] }
 0xbfa   :  { %17537 = vmatmul.mubr.f32.vlgmr.msra.gmra.mxu0 %v26120_v2  ;;  %v15510_v31 = vpop.f32.mrf.mxu0  ;;  %v15596_v23 = vpop.f32.mrf.mxu1 }
 0xbfb   :  { %17599 = vmatmul.mubr.f32.gmra.mxu1 %v23657_v3  ;;  %17539 = vmatprep.mubr.f32.mxu0 %v26122_v37  ;;  %v15511_v41 = vadd.f32 %v15510_v31, %v15509_v22  ;;  %v15597_v54 = vadd.f32 %v15596_v23, %v15595_v8  ;;  %v24081_v35 = vadd.f32 %v15588_v13, %v11901_v39  ;;  %v26132_v8 = vld [vmem:[#allocation100_spill] sm:$0xff] }
 0xbfc   :  { %17601 = vmatprep.mubr.f32.mxu1 %v26126_v4  ;;  %v15512_v6 = vpop.f32.mrf.mxu0  ;;  %v15598_v62 = vpop.f32.mrf.mxu1 }
 0xbfd   :  { %v11910_v46 = vadd.f32 %v15511_v41, %v23886_v40 }
 0xbfe   :  { %17540 = vmatmul.mubr.f32.gmra.mxu0 %v23616_v33  ;;  %v15513_v38 = vpop.f32.mrf.mxu0  ;;  %v15599_v57 = vpop.f32.mrf.mxu1 }
 0xbff   :  { %17602 = vmatmul.mubr.f32.gmra.mxu1 %v26127_v45  ;;  %17542 = vmatprep.mubr.f32.mxu0 %v26125_v52  ;;  %v15514_v21 = vadd.f32 %v15513_v38, %v15512_v6  ;;  %v15600_v63 = vadd.f32 %v15599_v57, %v15598_v62  ;;  %v24088_v44 = vadd.f32 %v15591_v32, %v11910_v46 }
 0xc00   :  { %17604 = vmatprep.mubr.f32.mxu1 %v26128_v18  ;;  %v15515_v58 = vpop.f32.mrf.mxu0  ;;  %v15601_v47 = vpop.f32.mrf.mxu1 }
 0xc01   :  { %v11919_v49 = vadd.f32 %v15514_v21, %v23902_v26 }
 0xc02   :  { %17543 = vmatmul.mubr.f32.gmra.mxu0 %v23657_v3  ;;  %v15516_v40 = vpop.f32.mrf.mxu0  ;;  %v15602_v33 = vpop.f32.mrf.mxu1 }
 0xc03   :  { %17605 = vmatmul.mubr.f32.gmra.mxu1 %v23736_v28  ;;  %17545 = vmatprep.mubr.f32.mxu0 %v26126_v4  ;;  %v15517_v13 = vadd.f32 %v15516_v40, %v15515_v58  ;;  %v15603_v27 = vadd.f32 %v15602_v33, %v15601_v47  ;;  %v24095_v7 = vadd.f32 %v15594_v43, %v11919_v49 }
 0xc04   :  { %17607 = vmatprep.mubr.f32.mxu1 %v26129_v14  ;;  %v15518_v25 = vpop.f32.mrf.mxu0  ;;  %v15604_v2 = vpop.f32.mrf.mxu1 }
 0xc05   :  { %v11928_v60 = vadd.f32 %v15517_v13, %v23918_v24 }
 0xc06   :  { %17546 = vmatmul.mubr.f32.gmra.mxu0 %v26127_v45  ;;  %v15519_v26 = vpop.f32.mrf.mxu0  ;;  %v15605_v3 = vpop.f32.mrf.mxu1 }
 0xc07   :  { %17608 = vmatmul.mubr.f32.gmra.mxu1 %v23776_v55  ;;  %17548 = vmatprep.mubr.f32.mxu0 %v26128_v18  ;;  %v15520_v0 = vadd.f32 %v15519_v26, %v15518_v25  ;;  %v15606_v9 = vadd.f32 %v15605_v3, %v15604_v2  ;;  %v24102_v32 = vadd.f32 %v15597_v54, %v11928_v60 }
 0xc08   :  { %17610 = vmatprep.mubr.f32.mxu1 %v23796_v16  ;;  %v15521_v10 = vpop.f32.mrf.mxu0  ;;  %v15607_v37 = vpop.f32.mrf.mxu1 }
 0xc09   :  { %v11937_v53 = vadd.f32 %v15520_v0, %v23933_v15 }
 0xc0a   :  { %17549 = vmatmul.mubr.f32.gmra.mxu0 %v23736_v28  ;;  %v15522_v24 = vpop.f32.mrf.mxu0  ;;  %v15608_v42 = vpop.f32.mrf.mxu1 }
 0xc0b   :  { %17611 = vmatmul.mubr.f32.gmra.mxu1 %v26130_v48  ;;  %17551 = vmatprep.mubr.f32.mxu0 %v26129_v14  ;;  %v15523_v20 = vadd.f32 %v15522_v24, %v15521_v10  ;;  %v15609_v56 = vadd.f32 %v15608_v42, %v15607_v37  ;;  %v24109_v59 = vadd.f32 %v15600_v63, %v11937_v53 }
 0xc0c   :  { %17613 = vmatprep.mubr.f32.mxu1 %v26131_v51  ;;  %v15524_v43 = vpop.f32.mrf.mxu0  ;;  %v15610_v34 = vpop.f32.mrf.mxu1 }
 0xc0d   :  { %v11946_v22 = vadd.f32 %v15523_v20, %v23945_v1 }
 0xc0e   :  { %17552 = vmatmul.mubr.f32.gmra.mxu0 %v23776_v55  ;;  %v15525_v15 = vpop.f32.mrf.mxu0  ;;  %v15611_v28 = vpop.f32.mrf.mxu1 }
 0xc0f   :  { %17614 = vmatmul.mubr.f32.gmra.mxu1 %v26132_v8  ;;  %17554 = vmatprep.mubr.f32.mxu0 %v23796_v16  ;;  %v15526_v52 = vadd.f32 %v15525_v15, %v15524_v43  ;;  %v15612_v39 = vadd.f32 %v15611_v28, %v15610_v34  ;;  %v24116_v31 = vadd.f32 %v15603_v27, %v11946_v22 }
 0xc10   :  { %v15527_v23 = vpop.f32.mrf.mxu0  ;;  %v15613_v41 = vpop.f32.mrf.mxu1 }
 0xc11   :  { %v11955_v54 = vadd.f32 %v15526_v52, %v23962_v36 }
 0xc12   :  { %17555 = vmatmul.mubr.f32.gmra.mxu0 %v26130_v48  ;;  %v15528_v4 = vpop.f32.mrf.mxu0  ;;  %v15614_v1 = vpop.f32.mrf.mxu1 }
 0xc13   :  { %17557 = vmatprep.mubr.f32.mxu0 %v26131_v51  ;;  %v15529_v55 = vadd.f32 %v15528_v4, %v15527_v23  ;;  %v15615_v6 = vadd.f32 %v15614_v1, %v15613_v41  ;;  %v24121_v62 = vadd.f32 %v15606_v9, %v11955_v54 }
 0xc14   :  { %v15530_v46 = vpop.f32.mrf.mxu0  ;;  %v15728_v16 = vpop.f32.mrf.mxu1 }
 0xc15   :  { %v11964_v38 = vadd.f32 %v15529_v55, %v23975_v30 }
 0xc16   :  { %17558 = vmatmul.mubr.f32.gmra.mxu0 %v26132_v8  ;;  %v15531_v57 = vpop.f32.mrf.mxu0  ;;  %v15729_v45 = vpop.f32.mrf.mxu1 }
 0xc17   :  { %v15532_v21 = vadd.f32 %v15531_v57, %v15530_v46  ;;  %v15730_v36 = vadd.f32 %v15729_v45, %v15728_v16  ;;  %v24125_v63 = vadd.f32 %v15609_v56, %v11964_v38 }
 0xc18   :  { %v15533_v18 = vpop.f32.mrf.mxu0  ;;  %v15731_v58 = vpop.f32.mrf.mxu1 }
 0xc19   :  { %v11973_v47 = vadd.f32 %v15532_v21, %v23989_v11 }
 0xc1a   :  { %v15534_v49 = vpop.f32.mrf.mxu0  ;;  %v15732_v40 = vpop.f32.mrf.mxu1 }
 0xc1b   :  { %v15535_v33 = vadd.f32 %v15534_v49, %v15533_v18  ;;  %v15733_v13 = vadd.f32 %v15732_v40, %v15731_v58  ;;  %v24128_v27 = vadd.f32 %v15612_v39, %v11973_v47 }
 0xc1c   :  { %v15648_v14 = vpop.f32.mrf.mxu0  ;;  %v15734_v30 = vpop.f32.mrf.mxu1 }
 0xc1d   :  { %v11982_v25 = vadd.f32 %v15535_v33, %v24001_v5 }
 0xc1e   :  { %v15649_v2 = vpop.f32.mrf.mxu0  ;;  %v15735_v60 = vpop.f32.mrf.mxu1 }
 0xc1f   :  { %v15650_v26 = vadd.f32 %v15649_v2, %v15648_v14  ;;  %v15736_v3 = vadd.f32 %v15735_v60, %v15734_v30  ;;  %v24131_v0 = vadd.f32 %v15615_v6, %v11982_v25 }
 0xc20   :  { %v15651_v9 = vpop.f32.mrf.mxu0  ;;  %v15737_v10 = vpop.f32.mrf.mxu1 }
 0xc21   :  { %v12423_v11 = vadd.f32 %v15650_v26, %v24014_v61 }
 0xc22   :  { %v15652_v37 = vpop.f32.mrf.mxu0  ;;  %v15738_v53 = vpop.f32.mrf.mxu1 }
 0xc23   :  { %v15653_v24 = vadd.f32 %v15652_v37, %v15651_v9  ;;  %v15739_v42 = vadd.f32 %v15738_v53, %v15737_v10  ;;  %v24134_v48 = vadd.f32 %v15730_v36, %v12423_v11 }
 0xc24   :  { %v15654_v20 = vpop.f32.mrf.mxu0  ;;  %v15740_v56 = vpop.f32.mrf.mxu1 }
 0xc25   :  { %v12430_v5 = vadd.f32 %v15653_v24, %v24026_v12 }
 0xc26   :  { %v15655_v51 = vpop.f32.mrf.mxu0  ;;  %v15741_v43 = vpop.f32.mrf.mxu1 }
 0xc27   :  { %v15656_v34 = vadd.f32 %v15655_v51, %v15654_v20  ;;  %v15742_v22 = vadd.f32 %v15741_v43, %v15740_v56  ;;  %v24137_v15 = vadd.f32 %v15733_v13, %v12430_v5 }
 0xc28   :  { %v15657_v28 = vpop.f32.mrf.mxu0  ;;  %v15743_v8 = vpop.f32.mrf.mxu1 }
 0xc29   :  { %v12437_v61 = vadd.f32 %v15656_v34, %v24038_v17 }
 0xc2a   :  { %v15658_v52 = vpop.f32.mrf.mxu0  ;;  %v15744_v39 = vpop.f32.mrf.mxu1 }
 0xc2b   :  { %v15659_v23 = vadd.f32 %v15658_v52, %v15657_v28  ;;  %v15745_v41 = vadd.f32 %v15744_v39, %v15743_v8  ;;  %v24140_v54 = vadd.f32 %v15736_v3, %v12437_v61 }
 0xc2c   :  { %v15660_v4 = vpop.f32.mrf.mxu0  ;;  %v15746_v1 = vpop.f32.mrf.mxu1 }
 0xc2d   :  { %v12444_v12 = vadd.f32 %v15659_v23, %v24050_v29 }
 0xc2e   :  { %v15661_v55 = vpop.f32.mrf.mxu0  ;;  %v15747_v6 = vpop.f32.mrf.mxu1 }
 0xc2f   :  { %v15662_v46 = vadd.f32 %v15661_v55, %v15660_v4  ;;  %v15748_v16 = vadd.f32 %v15747_v6, %v15746_v1  ;;  %v24143_v38 = vadd.f32 %v15739_v42, %v12444_v12 }
 0xc30   :  { %v15663_v57 = vpop.f32.mrf.mxu0  ;;  %v15749_v45 = vpop.f32.mrf.mxu1 }
 0xc31   :  { %v12451_v17 = vadd.f32 %v15662_v46, %v24061_v19 }
 0xc32   :  { %v15664_v21 = vpop.f32.mrf.mxu0  ;;  %v15750_v36 = vpop.f32.mrf.mxu1 }
 0xc33   :  { %v15665_v18 = vadd.f32 %v15664_v21, %v15663_v57  ;;  %v15751_v58 = vadd.f32 %v15750_v36, %v15749_v45  ;;  %v24146_v47 = vadd.f32 %v15742_v22, %v12451_v17 }
 0xc34   :  { %v15666_v49 = vpop.f32.mrf.mxu0  ;;  %v15752_v40 = vpop.f32.mrf.mxu1 }
 0xc35   :  { %v12458_v29 = vadd.f32 %v15665_v18, %v24071_v50 }
 0xc36   :  { %v15667_v33 = vpop.f32.mrf.mxu0  ;;  %v15753_v13 = vpop.f32.mrf.mxu1 }
 0xc37   :  { %v15668_v14 = vadd.f32 %v15667_v33, %v15666_v49  ;;  %v15754_v30 = vadd.f32 %v15753_v13, %v15752_v40  ;;  %v24149_v25 = vadd.f32 %v15745_v41, %v12458_v29 }
 0xc38   :  { %v15669_v2 = vpop.f32.mrf.mxu0  ;;  %v15755_v60 = vpop.f32.mrf.mxu1 }
 0xc39   :  { %v12465_v19 = vadd.f32 %v15668_v14, %v24081_v35 }
 0xc3a   :  { %v15670_v26 = vpop.f32.mrf.mxu0  ;;  %v15756_v3 = vpop.f32.mrf.mxu1 }
 0xc3b   :  { %v15671_v9 = vadd.f32 %v15670_v26, %v15669_v2  ;;  %v15757_v10 = vadd.f32 %v15756_v3, %v15755_v60  ;;  %v24152_v11 = vadd.f32 %v15748_v16, %v12465_v19 }
 0xc3c   :  { %v15672_v37 = vpop.f32.mrf.mxu0  ;;  %v15758_v53 = vpop.f32.mrf.mxu1 }
 0xc3d   :  { %v12472_v50 = vadd.f32 %v15671_v9, %v24088_v44 }
 0xc3e   :  { %v15673_v24 = vpop.f32.mrf.mxu0  ;;  %v15759_v42 = vpop.f32.mrf.mxu1 }
 0xc3f   :  { %v15674_v20 = vadd.f32 %v15673_v24, %v15672_v37  ;;  %v15760_v56 = vadd.f32 %v15759_v42, %v15758_v53  ;;  %v24155_v5 = vadd.f32 %v15751_v58, %v12472_v50 }
 0xc40   :  { %v15675_v51 = vpop.f32.mrf.mxu0  ;;  %v15761_v43 = vpop.f32.mrf.mxu1 }
 0xc41   :  { %v12479_v35 = vadd.f32 %v15674_v20, %v24095_v7 }
 0xc42   :  { %v15676_v34 = vpop.f32.mrf.mxu0  ;;  %v15762_v22 = vpop.f32.mrf.mxu1 }
 0xc43   :  { %v15677_v28 = vadd.f32 %v15676_v34, %v15675_v51  ;;  %v15763_v8 = vadd.f32 %v15762_v22, %v15761_v43  ;;  %v24158_v61 = vadd.f32 %v15754_v30, %v12479_v35 }
 0xc44   :  { %v15678_v52 = vpop.f32.mrf.mxu0  ;;  %v15764_v39 = vpop.f32.mrf.mxu1 }
 0xc45   :  { %v12486_v44 = vadd.f32 %v15677_v28, %v24102_v32 }
 0xc46   :  { %v15679_v23 = vpop.f32.mrf.mxu0  ;;  %v15765_v41 = vpop.f32.mrf.mxu1 }
 0xc47   :  { %v15680_v4 = vadd.f32 %v15679_v23, %v15678_v52  ;;  %v15766_v1 = vadd.f32 %v15765_v41, %v15764_v39  ;;  %v24161_v12 = vadd.f32 %v15757_v10, %v12486_v44 }
 0xc48   :  { %v15681_v55 = vpop.f32.mrf.mxu0  ;;  %v15767_v6 = vpop.f32.mrf.mxu1 }
 0xc49   :  { %v12493_v7 = vadd.f32 %v15680_v4, %v24109_v59 }
 0xc4a   :  { %v15682_v46 = vpop.f32.mrf.mxu0  ;;  %v15768_v16 = vpop.f32.mrf.mxu1 }
 0xc4b   :  { %v15683_v57 = vadd.f32 %v15682_v46, %v15681_v55  ;;  %v15769_v45 = vadd.f32 %v15768_v16, %v15767_v6  ;;  %v24164_v17 = vadd.f32 %v15760_v56, %v12493_v7 }
 0xc4c   :  { %v15684_v21 = vpop.f32.mrf.mxu0  ;;  %v15770_v36 = vpop.f32.mrf.mxu1 }
 0xc4d   :  { %v12500_v32 = vadd.f32 %v15683_v57, %v24116_v31 }
 0xc4e   :  { %v15685_v18 = vpop.f32.mrf.mxu0  ;;  %v15771_v58 = vpop.f32.mrf.mxu1 }
 0xc4f   :  { %v15686_v49 = vadd.f32 %v15685_v18, %v15684_v21  ;;  %v15772_v40 = vadd.f32 %v15771_v58, %v15770_v36  ;;  %v12709_v29 = vadd.f32 %v15763_v8, %v12500_v32 }
 0xc50   :  { %v15687_v33 = vpop.f32.mrf.mxu0  ;;  %v15773_v13 = vpop.f32.mrf.mxu1 }
 0xc51   :  { %v12507_v14 = vadd.f32 %v15686_v49, %v24121_v62 }
 0xc52   :  { %v15688_v59 = vpop.f32.mrf.mxu0  ;;  %v15774_v30 = vpop.f32.mrf.mxu1 }
 0xc53   :  { %v15689_v2 = vadd.f32 %v15688_v59, %v15687_v33  ;;  %v15775_v60 = vadd.f32 %v15774_v30, %v15773_v13  ;;  %v12716_v19 = vadd.f32 %v15766_v1, %v12507_v14 }
 0xc54   :  { %v15690_v26 = vpop.f32.mrf.mxu0  ;;  %v24168_v3 = vpop.f32.mrf.mxu1 }
 0xc55   :  { %v12514_v9 = vadd.f32 %v15689_v2, %v24125_v63 }
 0xc56   :  { %v15691_v31 = vpop.f32.mrf.mxu0  ;;  %v24171_v10 = vpop.f32.mrf.mxu1 }
 0xc57   :  { %v15692_v37 = vadd.f32 %v15691_v31, %v15690_v26  ;;  %v12723_v53 = vadd.f32 %v15769_v45, %v12514_v9 }
 0xc58   :  { %v15693_v50 = vpop.f32.mrf.mxu0 }
 0xc59   :  { %v12521_v24 = vadd.f32 %v15692_v37, %v24128_v27 }
 0xc5a   :  { %v24174_v42 = vpop.f32.mrf.mxu1  ;;  %v15694_v62 = vpop.f32.mrf.mxu0 }
 0xc5b   :  { %v15695_v20 = vadd.f32 %v15694_v62, %v15693_v50  ;;  %v12730_v56 = vadd.f32 %v15772_v40, %v12521_v24 }
 0xc5c   :  { %v24176_v51 = vpop.f32.mrf.mxu1 }
 0xc5d   :  { %v12528_v43 = vadd.f32 %v15695_v20, %v24131_v0  ;;  %v24179_v35 = vpop.f32.mrf.mxu0 }
 0xc5f   :  { %v24181_v63 = vpop.f32.mrf.mxu1  ;;  %v12737_v34 = vadd.f32 %v15775_v60, %v12528_v43  ;;  %v24183_v22 = vpop.f32.mrf.mxu0 }
 0xc61   :  { %v13152_v28 = vpop.f32.mrf.mxu1 }
 0xc64   :  { %v24185_v8 = vpop.f32.mrf.mxu0  ;;  %v17379_v27 = vpop.f32.mrf.mxu1 }
 0xc66   :  { %v24187_v52 = vpop.f32.mrf.mxu0  ;;  %v13164_v39 = vpop.f32.mrf.mxu1 }
 0xc6a   :  { %v24189_v44 = vpop.f32.mrf.mxu0  ;;  %v17382_v23 = vpop.f32.mrf.mxu1 }
 0xc6c   :  { %v12867_v41 = vpop.f32.mrf.mxu0  ;;  %v13176_v4 = vpop.f32.mrf.mxu1 }
 0xc6d   :  { %v12868_v0 = vadd.f32 %v12867_v41, %v24146_v47 }
 0xc6f   :  { %v24192_v1 = vadd.f32 %v13152_v28, %v12868_v0 }
 0xc70   :  { %v17323_v55 = vpop.f32.mrf.mxu0  ;;  %v17385_v6 = vpop.f32.mrf.mxu1 }
 0xc71   :  { %v12898_v7 = vadd.f32 %v17323_v55, %v24155_v5 }
 0xc72   :  { %v12887_v46 = vpop.f32.mrf.mxu0  ;;  %v13188_v16 = vpop.f32.mrf.mxu1 }
 0xc73   :  { %v12888_v57 = vadd.f32 %v12887_v46, %v24152_v11  ;;  %v24196_v45 = vadd.f32 %v17379_v27, %v12898_v7 }
 0xc75   :  { %v24198_v21 = vadd.f32 %v13164_v39, %v12888_v57 }
 0xc76   :  { %v17326_v36 = vpop.f32.mrf.mxu0  ;;  %v17388_v32 = vpop.f32.mrf.mxu1 }
 0xc77   :  { %v12918_v18 = vadd.f32 %v17326_v36, %v24161_v12 }
 0xc78   :  { %v12907_v58 = vpop.f32.mrf.mxu0  ;;  %v13200_v47 = vpop.f32.mrf.mxu1 }
 0xc79   :  { %v12908_v49 = vadd.f32 %v12907_v58, %v24158_v61  ;;  %v24202_v40 = vadd.f32 %v17382_v23, %v12918_v18 }
 0xc7b   :  { %v24204_v33 = vadd.f32 %v13176_v4, %v12908_v49 }
 0xc7c   :  { %v17329_v5 = vpop.f32.mrf.mxu0  ;;  %v17391_v13 = vpop.f32.mrf.mxu1 }
 0xc7d   :  { %v12938_v14 = vadd.f32 %v17329_v5, %v12709_v29 }
 0xc7e   :  { %v12927_v11 = vpop.f32.mrf.mxu0  ;;  %v13212_v59 = vpop.f32.mrf.mxu1 }
 0xc7f   :  { %v12928_v30 = vadd.f32 %v12927_v11, %v24164_v17  ;;  %v24207_v2 = vadd.f32 %v17385_v6, %v12938_v14 }
 0xc81   :  { %v24209_v60 = vadd.f32 %v13188_v16, %v12928_v30  ;;  %v12828_v30 = vadd.f32 %v24183_v22, %v24134_v48  ;;  %v12878_v48 = vadd.f32 %v24189_v44, %v24149_v25 }
 0xc82   :  { %v17332_v12 = vpop.f32.mrf.mxu0  ;;  %v17482_v26 = vpop.f32.mrf.mxu1 }
 0xc83   :  { %v12958_v9 = vadd.f32 %v17332_v12, %v12723_v53 }
 0xc84   :  { %v12947_v31 = vpop.f32.mrf.mxu0  ;;  %v13516_v61 = vpop.f32.mrf.mxu1 }
 0xc85   :  { %v12948_v37 = vadd.f32 %v12947_v31, %v12716_v19  ;;  %v24211_v50 = vadd.f32 %v17388_v32, %v12958_v9  ;;  %v12858_v31 = vadd.f32 %v24185_v8, %v24143_v38 }
 0xc87   :  { %v24213_v24 = vadd.f32 %v13200_v47, %v12948_v37 }
 0xc88   :  { %v17335_v62 = vpop.f32.mrf.mxu0  ;;  %v17485_v29 = vpop.f32.mrf.mxu1 }
 0xc89   :  { %v12978_v20 = vadd.f32 %v17335_v62, %v12737_v34  ;;  %v12848_v62 = vadd.f32 %v24187_v52, %v24140_v54 }
 0xc8a   :  { %v12967_v43 = vpop.f32.mrf.mxu0  ;;  %v13532_v28 = vpop.f32.mrf.mxu1 }
 0xc8b   :  { %v12968_v17 = vadd.f32 %v12967_v43, %v12730_v56  ;;  %v24215_v27 = vadd.f32 %v17391_v13, %v12978_v20  ;;  %v13141_v38 = vadd.f32 %v24176_v51, %v12848_v62 }
 0xc8d   :  { %26133 = vst [vmem:[#allocation107_spill] sm:$0xff] %v24215_v27  ;;  %v24217_v39 = vadd.f32 %v13212_v59, %v12968_v17  ;;  %v12838_v59 = vadd.f32 %v24179_v35, %v24137_v15  ;;  %v13129_v15 = vadd.f32 %v24171_v10, %v12828_v30 }
 0xc8e   :  { %v17426_v23 = vpop.f32.mrf.mxu0  ;;  %v24219_v41 = vpop.f32.mrf.mxu1 }
 0xc8f   :  { %v13135_v37 = vadd.f32 %v24168_v3, %v12838_v59 }
 0xc90   :  { %v13322_v53 = vpop.f32.mrf.mxu0  ;;  %v24221_v4 = vpop.f32.mrf.mxu1 }
 0xc91   :  { %v13330_v17 = vadd.f32 %v17426_v23, %v13135_v37  ;;  %v13323_v22 = vadd.f32 %v13322_v53, %v13129_v15  ;;  %v13159_v23 = vadd.f32 %v24181_v63, %v12878_v48 }
 0xc93   :  { %v13525_v52 = vadd.f32 %v17482_v26, %v13330_v17  ;;  %v13517_v30 = vadd.f32 %v13516_v61, %v13323_v22 }
 0xc94   :  { %v17429_v19 = vpop.f32.mrf.mxu0  ;;  %v24223_v0 = vpop.f32.mrf.mxu1 }
 0xc96   :  { %v13336_v55 = vpop.f32.mrf.mxu0  ;;  %v24225_v6 = vpop.f32.mrf.mxu1 }
 0xc97   :  { %v13337_v59 = vadd.f32 %v13336_v55, %v13141_v38 }
 0xc9a   :  { %v17432_v34 = vpop.f32.mrf.mxu0  ;;  %v24227_v7 = vpop.f32.mrf.mxu1 }
 0xc9c   :  { %v13350_v56 = vpop.f32.mrf.mxu0  ;;  %v24229_v46 = vpop.f32.mrf.mxu1 }
 0xc9d   :  { %v13351_v51 = vadd.f32 %v13350_v56, %v24192_v1 }
 0xca0   :  { %v17435_v16 = vpop.f32.mrf.mxu0  ;;  %v24231_v57 = vpop.f32.mrf.mxu1 }
 0xca2   :  { %v24233_v36 = vpop.f32.mrf.mxu0  ;;  %v24235_v32 = vpop.f32.mrf.mxu1 }
 0xca3   :  { %v13365_v48 = vadd.f32 %v24233_v36, %v24198_v21 }
 0xca5   :  { %v13565_v38 = vadd.f32 %v24225_v6, %v13365_v48 }
 0xca6   :  { %v24237_v18 = vpop.f32.mrf.mxu0  ;;  %v24239_v58 = vpop.f32.mrf.mxu1 }
 0xca8   :  { %v24241_v47 = vpop.f32.mrf.mxu0  ;;  %v24243_v49 = vpop.f32.mrf.mxu1 }
 0xcac   :  { %v24245_v5 = vpop.f32.mrf.mxu0  ;;  %v24247_v13 = vpop.f32.mrf.mxu1 }
 0xcad   :  { %26134 = vst [vmem:[#allocation27_spill] sm:$0xff] %v24247_v13  ;;  %v13147_v13 = vadd.f32 %v24174_v42, %v12858_v31  ;;  %v13533_v31 = vadd.f32 %v13532_v28, %v13337_v59  ;;  %v13549_v28 = vadd.f32 %v24221_v4, %v13351_v51  ;;  %v13386_v4 = vadd.f32 %v24237_v18, %v24202_v40 }
 0xcae   :  { %v24249_v14 = vpop.f32.mrf.mxu0  ;;  %v24251_v11 = vpop.f32.mrf.mxu1  ;;  %v13379_v59 = vadd.f32 %v24241_v47, %v24204_v33 }
 0xcaf   :  { %26135 = vst [vmem:[#allocation63_spill] sm:$0xff] %v24251_v11  ;;  %v13344_v54 = vadd.f32 %v17429_v19, %v13147_v13  ;;  %v13358_v11 = vadd.f32 %v17432_v34, %v13159_v23  ;;  %v13589_v6 = vadd.f32 %v24227_v7, %v13386_v4 }
 0xcb0   :  { %v13581_v7 = vadd.f32 %v24229_v46, %v13379_v59 }
 0xcb1   :  { %v13541_v53 = vadd.f32 %v17485_v29, %v13344_v54  ;;  %v13557_v61 = vadd.f32 %v24219_v41, %v13358_v11 }
 0xcb2   :  { %v24257_v12 = vpop.f32.mrf.mxu0  ;;  %v17594_v9 = vpop.f32.mrf.mxu1 }
 0xcb4   :  { %v24264_v20 = vpop.f32.mrf.mxu0  ;;  %v13932_v43 = vpop.f32.mrf.mxu1 }
 0xcb6   :  { %v24267_v35 = vpop.f32.mrf.mxu0 }
 0xcb7   :  { %26136 = vst [vmem:[#allocation45_spill] sm:$0xff] %v24267_v35  ;;  %v17597_v3 = vpop.f32.mrf.mxu1 }
 0xcb8   :  { %v24273_v8 = vpop.f32.mrf.mxu0 }
 0xcb9   :  { %v13944_v37 = vpop.f32.mrf.mxu1 }
 0xcba   :  { %v17538_v27 = vpop.f32.mrf.mxu0 }
 0xcbb   :  { %v13762_v10 = vadd.f32 %v17538_v27, %v13525_v52  ;;  %v17600_v26 = vpop.f32.mrf.mxu1  ;;  %v13372_v27 = vadd.f32 %v17435_v16, %v24196_v45 }
 0xcbc   :  { %v13755_v35 = vpop.f32.mrf.mxu0 }
 0xcbd   :  { %v13939_v25 = vadd.f32 %v17594_v9, %v13762_v10  ;;  %v13756_v44 = vadd.f32 %v13755_v35, %v13517_v30  ;;  %v13956_v17 = vpop.f32.mrf.mxu1  ;;  %v13573_v15 = vadd.f32 %v24223_v0, %v13372_v27 }
 0xcbe   :  { %v17541_v42 = vpop.f32.mrf.mxu0 }
 0xcbf   :  { %17633 = vtanh.f32 %v13939_v25  ;;  %v13933_v62 = vadd.f32 %v13932_v43, %v13756_v44  ;;  %v13774_v19 = vadd.f32 %v17541_v42, %v13541_v53  ;;  %v17603_v41 = vpop.f32.mrf.mxu1 }
 0xcc0   :  { %v13767_v55 = vpop.f32.mrf.mxu0 }
 0xcc1   :  { %17635 = vtanh.f32 %v13933_v62  ;;  %v13951_v13 = vadd.f32 %v17597_v3, %v13774_v19  ;;  %v13768_v63 = vadd.f32 %v13767_v55, %v13533_v31  ;;  %v13968_v54 = vpop.f32.mrf.mxu1  ;;  %v13400_v31 = vadd.f32 %v24245_v5, %v24207_v2 }
 0xcc2   :  { %v17544_v34 = vpop.f32.mrf.mxu0 }
 0xcc3   :  { %17637 = vtanh.f32 %v13951_v13  ;;  %v13945_v9 = vadd.f32 %v13944_v37, %v13768_v63  ;;  %v13786_v29 = vadd.f32 %v17544_v34, %v13557_v61  ;;  %v17606_v30 = vpop.f32.mrf.mxu1  ;;  %v13393_v61 = vadd.f32 %v24249_v14, %v24209_v60 }
 0xcc4   :  { %v13779_v1 = vpop.f32.mrf.mxu0  ;;  %v13605_v2 = vadd.f32 %v24231_v57, %v13400_v31  ;;  %v13414_v60 = vadd.f32 %v24257_v12, %v24211_v50 }
 0xcc5   :  { %17639 = vtanh.f32 %v13945_v9  ;;  %v13963_v56 = vadd.f32 %v17600_v26, %v13786_v29  ;;  %v13780_v43 = vadd.f32 %v13779_v1, %v13549_v28  ;;  %v13980_v62 = vpop.f32.mrf.mxu1  ;;  %v13597_v57 = vadd.f32 %v24235_v32, %v13393_v61 }
 0xcc6   :  { %v17547_v35 = vpop.f32.mrf.mxu0  ;;  %v13621_v50 = vadd.f32 %v24239_v58, %v13414_v60  ;;  %v13407_v32 = vadd.f32 %v24264_v20, %v24213_v24  ;;  %v13421_v24 = vadd.f32 %v24273_v8, %v24217_v39  ;;  %v26150_v39 = vld [vmem:[#allocation63_spill] sm:$0xff] }
 0xcc7   :  { %v13798_v11 = vadd.f32 %v17547_v35, %v13573_v15  ;;  %17641 = vtanh.f32 %v13963_v56  ;;  %v13957_v16 = vadd.f32 %v13956_v17, %v13780_v43  ;;  %v17609_v27 = vpop.f32.mrf.mxu1 }
 0xcc8   :  { %v13791_v45 = vpop.f32.mrf.mxu0  ;;  %v13613_v20 = vadd.f32 %v24243_v49, %v13407_v32  ;;  %v13629_v8 = vadd.f32 %v26150_v39, %v13421_v24 }
 0xcc9   :  { %v13975_v52 = vadd.f32 %v17603_v41, %v13798_v11  ;;  %17643 = vtanh.f32 %v13957_v16  ;;  %v13792_v0 = vadd.f32 %v13791_v45, %v13565_v38  ;;  %v13992_v56 = vpop.f32.mrf.mxu1 }
 0xcca   :  { %v17550_v22 = vpop.f32.mrf.mxu0 }
 0xccb   :  { %17645 = vtanh.f32 %v13975_v52  ;;  %v13969_v25 = vadd.f32 %v13968_v54, %v13792_v0  ;;  %v13810_v33 = vadd.f32 %v17550_v22, %v13589_v6  ;;  %v17612_v45 = vpop.f32.mrf.mxu1 }
 0xccc   :  { %v24286_v3 = vpop.eup %17633  ;;  %v13803_v23 = vpop.f32.mrf.mxu0 }
 0xccd   :  { %v14045_v21 = vsel %vm26137_vm10, %v24286_v3, 0.0  ;;  %v14112_v40 = vmul.f32 %v24286_v3, %v24286_v3  ;;  %v13804_v19 = vadd.f32 %v13803_v23, %v13581_v7  ;;  %17647 = vtanh.f32 %v13969_v25  ;;  %v14004_v0 = vpop.f32.mrf.mxu1  ;;  %vm26157_vm10 = vmmov %vm26140_vm0 }
 0xcce   :  { %v24290_v36 = vpop.eup %17635  ;;  %14046 = vadd.xlane.f32.xlu1 %v14045_v21  ;;  %v17553_v42 = vpop.f32.mrf.mxu0  ;;  %v13987_v26 = vadd.f32 %v17606_v30, %v13810_v33  ;;  %v26152_v30 = vld [vmem:[#allocation107_spill] sm:$0xff] }
 0xccf   :  { %v14042_v18 = vsel %vm26138_vm7, %v24290_v36, 0.0  ;;  %v14111_v37 = vmul.f32 %v24290_v36, %v24290_v36  ;;  %v14130_v47 = vsel %vm26139_vm4, %v14112_v40, 0.0  ;;  %v13981_v34 = vadd.f32 %v13980_v62, %v13804_v19  ;;  %v17615_v33 = vpop.f32.mrf.mxu1  ;;  %v26156_v19 = vld [vmem:[#allocation27_spill] sm:$0xff]  ;;  %vm26158_vm7 = vmmov %vm26140_vm0 }
 0xcd0   :  { %v24299_v10 = vpop.eup %17637  ;;  %14043 = vadd.xlane.f32.xlu0 %v14042_v18  ;;  %v13815_v46 = vpop.f32.mrf.mxu0  ;;  %17649 = vtanh.f32 %v13987_v26  ;;  %v13822_v9 = vadd.f32 %v17553_v42, %v13605_v2  ;;  %vm26159_vm4 = vmmov %vm26140_vm0 }
 0xcd1   :  { %v14114_v44 = vmul.f32 %v24299_v10, %v24299_v10  ;;  %v14127_v51 = vsel %vm26140_vm0, %v14111_v37, 0.0  ;;  %v14051_v5 = vsel %vm26142_vm6, %v24299_v10, 0.0  ;;  %17651 = vtanh.f32 %v13981_v34  ;;  %v26153_v37 = vld [vmem:[#allocation45_spill] sm:$0xff]  ;;  %v14016_v62 = vpop.f32.mrf.mxu1  ;;  %vm26161_vm6 = vmmov %vm26140_vm0 }
 0xcd2   :  { %v24306_v53 = vpop.eup %17639  ;;  %14131 = vadd.xlane.f32.xlu1 %v14130_v47  ;;  %v17556_v14 = vpop.f32.mrf.mxu0  ;;  %v13999_v15 = vadd.f32 %v17609_v27, %v13822_v9  ;;  %v13816_v35 = vadd.f32 %v13815_v46, %v13597_v57  ;;  %v13428_v25 = vadd.f32 %v26153_v37, %v26152_v30 }
 0xcd3   :  { %v14136_v55 = vsel %vm26141_vm5, %v14114_v44, 0.0  ;;  %v14113_v13 = vmul.f32 %v24306_v53, %v24306_v53  ;;  %v14048_v1 = vsel %vm26144_vm3, %v24306_v53, 0.0  ;;  %v13834_v16 = vadd.f32 %v17556_v14, %v13621_v50  ;;  %vm26160_vm5 = vmmov %vm26140_vm0 }
 0xcd4   :  { %14128 = vadd.xlane.f32.xlu0 %v14127_v51  ;;  %v24315_v63 = vpop.eup %17641  ;;  %v13827_v12 = vpop.f32.mrf.mxu0  ;;  %17653 = vtanh.f32 %v13999_v15  ;;  %v13993_v22 = vadd.f32 %v13992_v56, %v13816_v35  ;;  %v13637_v26 = vadd.f32 %v26156_v19, %v13428_v25  ;;  %vm26163_vm3 = vmmov %vm26140_vm0 }
 0xcd5   :  { %v14133_v29 = vsel %vm26143_vm8, %v14113_v13, 0.0  ;;  %v14116_v28 = vmul.f32 %v24315_v63, %v24315_v63  ;;  %v14057_v11 = vsel %vm26146_vm1, %v24315_v63, 0.0  ;;  %v14011_v21 = vadd.f32 %v17612_v45, %v13834_v16  ;;  %vm26162_vm8 = vmmov %vm26140_vm0 }
 0xcd6   :  { %14137 = vadd.xlane.f32.xlu1 %v14136_v55  ;;  %v24325_v17 = vpop.eup %17643  ;;  %v17559_v58 = vpop.f32.mrf.mxu0  ;;  %17655 = vtanh.f32 %v13993_v22  ;;  %v13828_v59 = vadd.f32 %v13827_v12, %v13613_v20  ;;  %vm26165_vm1 = vmmov %vm26140_vm0 }
 0xcd7   :  { %v14142_v48 = vsel %vm26145_vm15, %v14116_v28, 0.0  ;;  %v14115_v41 = vmul.f32 %v24325_v17, %v24325_v17  ;;  %v14054_v52 = vsel %vm26148_vm12, %v24325_v17, 0.0  ;;  %17657 = vtanh.f32 %v14011_v21  ;;  %vm26164_vm15 = vmmov %vm26140_vm0 }
 0xcd8   :  { %14052 = vadd.xlane.f32.xlu0 %v14051_v5  ;;  %v24332_v43 = vpop.eup %17645  ;;  %v13839_v18 = vpop.f32.mrf.mxu0  ;;  %v14005_v44 = vadd.f32 %v14004_v0, %v13828_v59  ;;  %v13846_v2 = vadd.f32 %v17559_v58, %v13637_v26  ;;  %vm26167_vm12 = vmmov %vm26140_vm0 }
 0xcd9   :  { %v14139_v4 = vsel %vm26147_vm11, %v14115_v41, 0.0  ;;  %v14118_v38 = vmul.f32 %v24332_v43, %v24332_v43  ;;  %v14063_v49 = vsel %vm26151_vm14, %v24332_v43, 0.0  ;;  %v13840_v7 = vadd.f32 %v13839_v18, %v13629_v8  ;;  %vm26166_vm11 = vmmov %vm26140_vm0 }
 0xcda   :  { %14134 = vadd.xlane.f32.xlu1 %v14133_v29  ;;  %v24345_v54 = vpop.eup %17647  ;;  %17659 = vtanh.f32 %v14005_v44  ;;  %v14023_v29 = vadd.f32 %v17615_v33, %v13846_v2  ;;  %vm26169_vm14 = vmmov %vm26140_vm0 }
 0xcdb   :  { %v14148_v23 = vsel %vm26149_vm9, %v14118_v38, 0.0  ;;  %v14117_v40 = vmul.f32 %v24345_v54, %v24345_v54  ;;  %v14060_v51 = vsel %vm26155_vm13, %v24345_v54, 0.0  ;;  %v14017_v55 = vadd.f32 %v14016_v62, %v13840_v7  ;;  %vm26168_vm9 = vmmov %vm26140_vm0 }
 0xcdc   :  { %14049 = vadd.xlane.f32.xlu0 %v14048_v1  ;;  %vm26171_vm13 = vmmov %vm26140_vm0 }
 0xcdd   :  { %v24355_v6 = vpop.eup %17649  ;;  %v14145_v42 = vsel %vm26154_vm2, %v14117_v40, 0.0  ;;  %17661 = vtanh.f32 %v14017_v55  ;;  %vm26170_vm2 = vmmov %vm26140_vm0 }
 0xcde   :  { %14143 = vadd.xlane.f32.xlu1 %v14142_v48  ;;  %v24362_v47 = vpop.eup %17651  ;;  %v14120_v31 = vmul.f32 %v24355_v6, %v24355_v6  ;;  %v14069_v5 = vsel %vm26158_vm7, %v24355_v6, 0.0  ;;  %17663 = vtanh.f32 %v14023_v29  ;;  %vm26173_vm7 = vmmov %vm26140_vm0 }
 0xcdf   :  { %v14119_v46 = vmul.f32 %v24362_v47, %v24362_v47  ;;  %v14066_v28 = vsel %vm26140_vm0, %v24362_v47, 0.0 }
 0xce0   :  { %14058 = vadd.xlane.f32.xlu0 %v14057_v11  ;;  %v14154_v13 = vsel %vm26157_vm10, %v14120_v31, 0.0  ;;  %vm26172_vm10 = vmmov %vm26140_vm0 }
 0xce1   :  { %v24373_v61 = vpop.eup %17653  ;;  %v14151_v27 = vsel %vm26159_vm4, %v14119_v46, 0.0  ;;  %vm26174_vm4 = vmmov %vm26140_vm0 }
 0xce2   :  { %14140 = vadd.xlane.f32.xlu1 %v14139_v4  ;;  %v14122_v34 = vmul.f32 %v24373_v61, %v24373_v61  ;;  %v14075_v1 = vsel %vm26161_vm6, %v24373_v61, 0.0  ;;  %vm26176_vm6 = vmmov %vm26140_vm0 }
 0xce3   :  { %v24380_v9 = vpop.eup %17655 }
 0xce4   :  { %14055 = vadd.xlane.f32.xlu0 %v14054_v52  ;;  %v24384_v60 = vpop.eup %17657  ;;  %v14160_v14 = vsel %vm26160_vm5, %v14122_v34, 0.0  ;;  %v14121_v57 = vmul.f32 %v24380_v9, %v24380_v9  ;;  %v14072_v48 = vsel %vm26163_vm3, %v24380_v9, 0.0  ;;  %vm26175_vm5 = vmmov %vm26140_vm0 }
 0xce5   :  { %v14124_v15 = vmul.f32 %v24384_v60, %v24384_v60  ;;  %v14081_v32 = vsel %vm26165_vm1, %v24384_v60, 0.0  ;;  %vm26178_vm3 = vmmov %vm26140_vm0 }
 0xce6   :  { %14149 = vadd.xlane.f32.xlu1 %v14148_v23  ;;  %v14157_v56 = vsel %vm26162_vm8, %v14121_v57, 0.0  ;;  %vm26177_vm8 = vmmov %vm26140_vm0 }
 0xce7   :  { %v24394_v35 = vpop.eup %17659  ;;  %v14166_v41 = vsel %vm26164_vm15, %v14124_v15, 0.0  ;;  %vm26179_vm15 = vmmov %vm26140_vm0 }
 0xce8   :  { %14064 = vadd.xlane.f32.xlu0 %v14063_v49  ;;  %v14123_v50 = vmul.f32 %v24394_v35, %v24394_v35  ;;  %v14078_v16 = vsel %vm26167_vm12, %v24394_v35, 0.0  ;;  %vm26180_vm1 = vmmov %vm26140_vm0 }
 0xce9   :  { %vm26182_vm12 = vmmov %vm26140_vm0 }
 0xcea   :  { %14146 = vadd.xlane.f32.xlu1 %v14145_v42  ;;  %v24401_v12 = vpop.eup %17661  ;;  %v14163_v11 = vsel %vm26166_vm11, %v14123_v50, 0.0  ;;  %vm26181_vm11 = vmmov %vm26140_vm0 }
 0xceb   :  { %v14125_v45 = vmul.f32 %v24401_v12, %v24401_v12  ;;  %v24410_v22 = vpop.eup %17663  ;;  %v14084_v58 = vsel %vm26170_vm2, %v24401_v12, 0.0  ;;  %vm26185_vm2 = vmmov %vm26140_vm0 }
 0xcec   :  { %14061 = vadd.xlane.f32.xlu0 %v14060_v51  ;;  %v14087_v38 = vsel %vm26169_vm14, %v24410_v22, 0.0  ;;  %v14126_v24 = vmul.f32 %v24410_v22, %v24410_v22  ;;  %vm26184_vm14 = vmmov %vm26140_vm0 }
 0xced   :  { %v14169_v4 = vsel %vm26168_vm9, %v14125_v45, 0.0  ;;  %vm26183_vm9 = vmmov %vm26140_vm0 }
 0xcee   :  { %14155 = vadd.xlane.f32.xlu1 %v14154_v13  ;;  %v14172_v20 = vsel %vm26171_vm13, %v14126_v24, 0.0  ;;  %vm26186_vm13 = vmmov %vm26140_vm0 }
 0xcf0   :  { %14070 = vadd.xlane.f32.xlu0 %v14069_v5 }
 0xcf2   :  { %14152 = vadd.xlane.f32.xlu1 %v14151_v27 }
 0xcf4   :  { %14067 = vadd.xlane.f32.xlu0 %v14066_v28 }
 0xcf6   :  { %14161 = vadd.xlane.f32.xlu1 %v14160_v14 }
 0xcf8   :  { %14076 = vadd.xlane.f32.xlu0 %v14075_v1 }
 0xcfa   :  { %14158 = vadd.xlane.f32.xlu1 %v14157_v56 }
 0xcfc   :  { %14073 = vadd.xlane.f32.xlu0 %v14072_v48 }
 0xcfe   :  { %14167 = vadd.xlane.f32.xlu1 %v14166_v41 }
 0xd00   :  { %14082 = vadd.xlane.f32.xlu0 %v14081_v32 }
 0xd02   :  { %14164 = vadd.xlane.f32.xlu1 %v14163_v11 }
 0xd04   :  { %14079 = vadd.xlane.f32.xlu0 %v14078_v16 }
 0xd06   :  { %14170 = vadd.xlane.f32.xlu1 %v14169_v4 }
 0xd08   :  { %14088 = vadd.xlane.f32.xlu0 %v14087_v38 }
 0xd0c   :  { %14085 = vadd.xlane.f32.xlu0 %v14084_v58 }
 0xd10   :  { %14173 = vadd.xlane.f32.xlu0 %v14172_v20 }
 0xd57   :  { %v14047_v52 = vpop.xlane.xlu1 %14046 }
 0xd59   :  { %v14044_v0 = vpop.xlane.xlu0 %14043 }
 0xd5a   :  { %v14090_v33 = vadd.f32 %v14047_v52, %v14044_v0 }
 0xd5b   :  { %v14132_v21 = vpop.xlane.xlu1 %14131 }
 0xd5d   :  { %v14129_v59 = vpop.xlane.xlu0 %14128 }
 0xd5e   :  { %v14175_v44 = vadd.f32 %v14132_v21, %v14129_v59 }
 0xd5f   :  { %v14138_v23 = vpop.xlane.xlu1 %14137 }
 0xd61   :  { %v14053_v40 = vpop.xlane.xlu0 %14052 }
 0xd63   :  { %v14135_v18 = vpop.xlane.xlu1 %14134 }
 0xd64   :  { %v14176_v42 = vadd.f32 %v14175_v44, %v14135_v18 }
 0xd65   :  { %v14050_v39 = vpop.xlane.xlu0 %14049 }
 0xd66   :  { %v14091_v31 = vadd.f32 %v14090_v33, %v14050_v39  ;;  %v14177_v19 = vadd.f32 %v14176_v42, %v14138_v23 }
 0xd67   :  { %v14144_v8 = vpop.xlane.xlu1 %14143 }
 0xd68   :  { %v14092_v26 = vadd.f32 %v14091_v31, %v14053_v40 }
 0xd69   :  { %v14059_v49 = vpop.xlane.xlu0 %14058 }
 0xd6b   :  { %v14141_v30 = vpop.xlane.xlu1 %14140 }
 0xd6c   :  { %v14178_v13 = vadd.f32 %v14177_v19, %v14141_v30 }
 0xd6d   :  { %v14056_v37 = vpop.xlane.xlu0 %14055 }
 0xd6e   :  { %v14093_v46 = vadd.f32 %v14092_v26, %v14056_v37  ;;  %v14179_v27 = vadd.f32 %v14178_v13, %v14144_v8 }
 0xd6f   :  { %v14150_v25 = vpop.xlane.xlu1 %14149 }
 0xd70   :  { %v14094_v34 = vadd.f32 %v14093_v46, %v14059_v49 }
 0xd71   :  { %v14065_v7 = vpop.xlane.xlu0 %14064 }
 0xd73   :  { %v14147_v51 = vpop.xlane.xlu1 %14146 }
 0xd74   :  { %v14180_v28 = vadd.f32 %v14179_v27, %v14147_v51 }
 0xd75   :  { %v14062_v62 = vpop.xlane.xlu0 %14061 }
 0xd76   :  { %v14095_v14 = vadd.f32 %v14094_v34, %v14062_v62  ;;  %v14181_v56 = vadd.f32 %v14180_v28, %v14150_v25 }
 0xd77   :  { %v14156_v55 = vpop.xlane.xlu1 %14155 }
 0xd78   :  { %v14096_v15 = vadd.f32 %v14095_v14, %v14065_v7 }
 0xd79   :  { %v14071_v2 = vpop.xlane.xlu0 %14070 }
 0xd7b   :  { %v14153_v5 = vpop.xlane.xlu1 %14152 }
 0xd7c   :  { %v14182_v41 = vadd.f32 %v14181_v56, %v14153_v5 }
 0xd7d   :  { %v14068_v29 = vpop.xlane.xlu0 %14067 }
 0xd7e   :  { %v14097_v50 = vadd.f32 %v14096_v15, %v14068_v29  ;;  %v14183_v45 = vadd.f32 %v14182_v41, %v14156_v55 }
 0xd7f   :  { %v14162_v57 = vpop.xlane.xlu1 %14161 }
 0xd80   :  { %v14098_v16 = vadd.f32 %v14097_v50, %v14071_v2 }
 0xd81   :  { %v14077_v1 = vpop.xlane.xlu0 %14076 }
 0xd83   :  { %v14159_v48 = vpop.xlane.xlu1 %14158 }
 0xd84   :  { %v14184_v38 = vadd.f32 %v14183_v45, %v14159_v48 }
 0xd85   :  { %v14074_v32 = vpop.xlane.xlu0 %14073 }
 0xd86   :  { %v14099_v58 = vadd.f32 %v14098_v16, %v14074_v32  ;;  %v14185_v52 = vadd.f32 %v14184_v38, %v14162_v57 }
 0xd87   :  { %v14168_v11 = vpop.xlane.xlu1 %14167 }
 0xd88   :  { %v14100_v0 = vadd.f32 %v14099_v58, %v14077_v1 }
 0xd89   :  { %v14083_v4 = vpop.xlane.xlu0 %14082 }
 0xd8b   :  { %v14165_v24 = vpop.xlane.xlu1 %14164 }
 0xd8c   :  { %v14186_v21 = vadd.f32 %v14185_v52, %v14165_v24 }
 0xd8d   :  { %v14080_v20 = vpop.xlane.xlu0 %14079 }
 0xd8e   :  { %v14101_v59 = vadd.f32 %v14100_v0, %v14080_v20  ;;  %v14187_v40 = vadd.f32 %v14186_v21, %v14168_v11 }
 0xd8f   :  { %v14171_v39 = vpop.xlane.xlu1 %14170 }
 0xd90   :  { %v14102_v18 = vadd.f32 %v14101_v59, %v14083_v4  ;;  %v14188_v30 = vadd.f32 %v14187_v40, %v14171_v39 }
 0xd91   :  { %v14089_v23 = vpop.xlane.xlu0 %14088 }
 0xd95   :  { %v14086_v8 = vpop.xlane.xlu0 %14085 }
 0xd96   :  { %v14103_v49 = vadd.f32 %v14102_v18, %v14086_v8 }
 0xd98   :  { %v14104_v37 = vadd.f32 %v14103_v49, %v14089_v23 }
 0xd99   :  { %v14174_v25 = vpop.xlane.xlu0 %14173 }
 0xd9a   :  { %v14105_v33 = vrot.slane %v14104_v37, 4  ;;  %v14189_v44 = vadd.f32 %v14188_v30, %v14174_v25 }
 0xd9c   :  { %v14106_v7 = vadd.f32 %v14105_v33, %v14104_v37  ;;  %v14190_v42 = vrot.slane %v14189_v44, 4 }
 0xd9e   :  { %v14107_v31 = vrot.slane %v14106_v7, 2  ;;  %v14191_v51 = vadd.f32 %v14190_v42, %v14189_v44 }
 0xda0   :  { %v14108_v62 = vadd.f32 %v14107_v31, %v14106_v7  ;;  %v14192_v19 = vrot.slane %v14191_v51, 2 }
 0xda2   :  { %v14109_v26 = vrot.slane %v14108_v62, 1  ;;  %v14193_v55 = vadd.f32 %v14192_v19, %v14191_v51 }
 0xda4   :  { %v14110_v13 = vadd.f32 %v14109_v26, %v14108_v62  ;;  %v14194_v46 = vrot.slane %v14193_v55, 1 }
 0xda6   :  { %v14196_v2 = vmul.f32 0.00048828125, %v14110_v13  ;;  %v14195_v5 = vadd.f32 %v14194_v46, %v14193_v55 }
 0xda8   :  { %v14198_v27 = vmul.f32 %v14196_v2, %v14196_v2  ;;  %v14197_v34 = vmul.f32 0.00048828125, %v14195_v5  ;;  %v14201_v57 = vsub.f32 %v24290_v36, %v14196_v2  ;;  %v14202_v1 = vsub.f32 %v24286_v3, %v14196_v2 }
 0xda9   :  { %v14203_v56 = vsub.f32 %v24306_v53, %v14196_v2  ;;  %v14204_v15 = vsub.f32 %v24299_v10, %v14196_v2  ;;  %v14205_v48 = vsub.f32 %v24325_v17, %v14196_v2  ;;  %v14206_v41 = vsub.f32 %v24315_v63, %v14196_v2 }
 0xdaa   :  { %v14199_v29 = vsub.f32 %v14197_v34, %v14198_v27  ;;  %v14207_v50 = vsub.f32 %v24345_v54, %v14196_v2  ;;  %v14208_v32 = vsub.f32 %v24332_v43, %v14196_v2  ;;  %v14209_v11 = vsub.f32 %v24362_v47, %v14196_v2 }
 0xdab   :  { %v14210_v45 = vsub.f32 %v24355_v6, %v14196_v2  ;;  %v14211_v36 = vsub.f32 %v24380_v9, %v14196_v2  ;;  %v14212_v3 = vsub.f32 %v24373_v61, %v14196_v2  ;;  %v14213_v53 = vsub.f32 %v24394_v35, %v14196_v2 }
 0xdac   :  { %v14200_v28 = vmax.f32 %v14199_v29, 0.0  ;;  %v14214_v10 = vsub.f32 %v24384_v60, %v14196_v2  ;;  %v14215_v17 = vsub.f32 %v24401_v12, %v14196_v2  ;;  %v14216_v63 = vsub.f32 %v24410_v22, %v14196_v2 }
 0xdae   :  { %v14217_v14 = vadd.f32 1e-05, %v14200_v28 }
 0xdb0   :  { %17665 = vrsqrt.f32 %v14217_v14 }
 0xdbd   :  { %v17666_v16 = vpop.eup %17665 }
 0xdbe   :  { %v14219_v54 = vmul.f32 %v17666_v16, %v14201_v57  ;;  %v14220_v4 = vmul.f32 %v17666_v16, %v14202_v1  ;;  %v14221_v43 = vmul.f32 %v17666_v16, %v14203_v56  ;;  %v14222_v38 = vmul.f32 %v17666_v16, %v14204_v15 }
 0xdbf   :  { %v14223_v6 = vmul.f32 %v17666_v16, %v14205_v48  ;;  %v14224_v47 = vmul.f32 %v17666_v16, %v14206_v41  ;;  %v14225_v9 = vmul.f32 %v17666_v16, %v14207_v50  ;;  %v14226_v58 = vmul.f32 %v17666_v16, %v14208_v32 }
 0xdc0   :  { %v14227_v61 = vmul.f32 %v17666_v16, %v14209_v11  ;;  %v14228_v24 = vmul.f32 %v17666_v16, %v14210_v45  ;;  %v14229_v20 = vmul.f32 %v17666_v16, %v14211_v36  ;;  %v14230_v35 = vmul.f32 %v17666_v16, %v14212_v3  ;;  %14235 = vst.msk [vmem:[#allocation7] sm:$0xff] %vm26172_vm10, %v14219_v54 }
 0xdc1   :  { %14236 = vst.msk [vmem:[#allocation7 + $0x8] sm:$0xff] %vm26173_vm7, %v14220_v4  ;;  %v14231_v60 = vmul.f32 %v17666_v16, %v14213_v53  ;;  %v14232_v12 = vmul.f32 %v17666_v16, %v14214_v10  ;;  %v14233_v22 = vmul.f32 %v17666_v16, %v14215_v17  ;;  %v14234_v52 = vmul.f32 %v17666_v16, %v14216_v63 }
 0xdc2   :  { %14237 = vst.msk [vmem:[#allocation7 + $0x10] sm:$0xff] %vm26174_vm4, %v14221_v43 }
 0xdc3   :  { %14238 = vst.msk [vmem:[#allocation7 + $0x18] sm:$0xff] %vm26140_vm0, %v14222_v38 }
 0xdc4   :  { %14239 = vst.msk [vmem:[#allocation7 + $0x20] sm:$0xff] %vm26175_vm5, %v14223_v6 }
 0xdc5   :  { %14240 = vst.msk [vmem:[#allocation7 + $0x28] sm:$0xff] %vm26176_vm6, %v14224_v47 }
 0xdc6   :  { %14241 = vst.msk [vmem:[#allocation7 + $0x30] sm:$0xff] %vm26177_vm8, %v14225_v9 }
 0xdc7   :  { %14242 = vst.msk [vmem:[#allocation7 + $0x38] sm:$0xff] %vm26178_vm3, %v14226_v58 }
 0xdc8   :  { %14243 = vst.msk [vmem:[#allocation7 + $0x40] sm:$0xff] %vm26179_vm15, %v14227_v61 }
 0xdc9   :  { %14244 = vst.msk [vmem:[#allocation7 + $0x48] sm:$0xff] %vm26180_vm1, %v14228_v24 }
 0xdca   :  { %14245 = vst.msk [vmem:[#allocation7 + $0x50] sm:$0xff] %vm26181_vm11, %v14229_v20 }
 0xdcb   :  { %14246 = vst.msk [vmem:[#allocation7 + $0x58] sm:$0xff] %vm26182_vm12, %v14230_v35 }
 0xdcc   :  { %14247 = vst.msk [vmem:[#allocation7 + $0x60] sm:$0xff] %vm26183_vm9, %v14231_v60 }
 0xdcd   :  { %14248 = vst.msk [vmem:[#allocation7 + $0x68] sm:$0xff] %vm26184_vm14, %v14232_v12 }
 0xdce   :  { %14249 = vst.msk [vmem:[#allocation7 + $0x70] sm:$0xff] %vm26185_vm2, %v14233_v22 }
 0xdcf   :  { %14250 = vst.msk [vmem:[#allocation7 + $0x78] sm:$0xff] %vm26186_vm13, %v14234_v52 }
 0xdd0   :  { %17718 = shalt.err (!%p17715_p0)
}
 0xdd1   :  { %14262 = dma.vmem_to_hbm [thread:$0]  %s14257_s18, 2048, %s24473_s15, [#allocation4], %s17734_s21, %s17734_s21, %s17735_s22  }
 0xdd2   :  { %17731 = dma.done.wait [#allocation4], 2048  }
 0xdd3   :  { %17732 = vsyncadd [#allocation4], 4294965248 }
 0xdd4   :  { %14266 = vsyncpa [#allocation3], 1 }
 0xdd5   :  { %14267 = vsyncpa [#allocation6], 1 }
 0xdd6   :  { %14268 = vsyncpa [#allocation4], 1 }

</bundles_post_ra>
